<compile_context>
chip_gen: v6e
topology: v6e:2x2x1
jax: 0.10.0
libtpu: 0.0.40
codegen_flags: <defaults>
</compile_context>

<pallas_src>
import functools

import jax
import jax.numpy as jnp
from jax.experimental import pallas as pl
from jax.experimental.pallas import tpu as pltpu


NGF = 64
NC = 3          # cifar10 -> image_shape (3, 32, 32)
NSIZE = 32
NC_PAD = 128    # lane-dense channel padding for the final layer's output
BN_EPS = 1e-5


def _pick_tile(n, candidates):
    for c in candidates:
        if c <= n and n % c == 0:
            return c
    return n


# ----------------------------- Pallas kernels ------------------------------

def _latent_convt_bn_relu_kernel(z_ref, w_ref, g_ref, b_ref, o_ref, *, spatial):
    """(N, nz) @ (nz, spatial*C) -> fused BatchNorm(batch stats) + ReLU.

    Columns are laid out (oy, ox, c) with c fastest, so channel c occupies
    columns {j*C + c} for the `spatial` spatial positions j.  Stats are taken
    over rows and the spatial column groups (== PyTorch BN over N*H*W).
    """
    y = jnp.dot(z_ref[...], w_ref[...], preferred_element_type=jnp.float32)
    C = g_ref.shape[-1]
    blks = [y[:, j * C:(j + 1) * C] for j in range(spatial)]   # lane-aligned slices
    inv_cnt = 1.0 / float(spatial * y.shape[0])

    tot = blks[0]
    totsq = blks[0] * blks[0]
    for b in blks[1:]:
        tot = tot + b
        totsq = totsq + b * b
    mean = jnp.sum(tot, axis=0, keepdims=True) * inv_cnt                 # (1, C)
    var = jnp.maximum(jnp.sum(totsq, axis=0, keepdims=True) * inv_cnt
                      - mean * mean, 0.0)                                # biased, like PyTorch

    scale = g_ref[...] * jax.lax.rsqrt(var + BN_EPS)                     # (1, C) fp32
    shift = b_ref[...] - mean * scale
    for j, b in enumerate(blks):
        o_ref[:, j * C:(j + 1) * C] = jnp.maximum(b * scale + shift,
                                                  0.0).astype(o_ref.dtype)


def pallas_latent_convt_bn_relu(z, w1m, gamma, beta, *, spatial=16):
    """Fused View + ConvTranspose2d(nz, C, 4, 1, 0) + BN + ReLU."""
    N, K = z.shape
    _, D = w1m.shape
    C = D // spatial
    kernel = functools.partial(_latent_convt_bn_relu_kernel, spatial=spatial)
    return pl.pallas_call(
        kernel,
        out_shape=jax.ShapeDtypeStruct((N, D), jnp.bfloat16),
        grid=(1,),
        in_specs=[pl.BlockSpec((N, K), lambda i: (0, 0)),
                  pl.BlockSpec((K, D), lambda i: (0, 0)),
                  pl.BlockSpec((1, C), lambda i: (0, 0)),
                  pl.BlockSpec((1, C), lambda i: (0, 0))],
        out_specs=pl.BlockSpec((N, D), lambda i: (0, 0)),
        compiler_params=pltpu.CompilerParams(
            dimension_semantics=("arbitrary",)),
    )(z, w1m, gamma, beta)


def _convt_bn_relu_kernel(p_ref, w_ref, g_ref, b_ref, o_ref, acc_ref):
    """Grouped (4-parity) matmul over K tiles + fused BN(batch stats) + ReLU."""
    k = pl.program_id(0)

    @pl.when(k == 0)
    def _():
        acc_ref[...] = jnp.zeros_like(acc_ref)

    for p in range(4):                      # 4 parity groups, bf16 MXU, fp32 acc
        acc_ref[p] = acc_ref[p] + jnp.dot(p_ref[p], w_ref[p],
                                          preferred_element_type=jnp.float32)

    @pl.when(k == pl.num_programs(0) - 1)
    def _():
        y = [acc_ref[p] for p in range(4)]
        inv_cnt = 1.0 / float(4 * y[0].shape[0])          # rows = N*Ho*Wo
        tot = y[0] + y[1] + y[2] + y[3]
        totsq = y[0] * y[0] + y[1] * y[1] + y[2] * y[2] + y[3] * y[3]
        mean = jnp.sum(tot, axis=0, keepdims=True) * inv_cnt
        var = jnp.maximum(jnp.sum(totsq, axis=0, keepdims=True) * inv_cnt
                          - mean * mean, 0.0)
        scale = g_ref[...] * jax.lax.rsqrt(var + BN_EPS)  # (1, C) fp32
        shift = b_ref[...] - mean * scale
        for p in range(4):
            o_ref[p] = jnp.maximum(y[p] * scale + shift, 0.0).astype(o_ref.dtype)


def pallas_convt_bn_relu(patches, wmat, gamma, beta):
    """patches (4, M, K) bf16, wmat (4, K, C) bf16 -> (4, M, C) bf16."""
    P, M, K = patches.shape
    _, _, C = wmat.shape
    tk = _pick_tile(K, (512, 256))
    nk = K // tk
    return pl.pallas_call(
        _convt_bn_relu_kernel,
        out_shape=jax.ShapeDtypeStruct((P, M, C), jnp.bfloat16),
        grid=(nk,),
        in_specs=[pl.BlockSpec((P, M, tk), lambda k: (0, 0, k)),
                  pl.BlockSpec((P, tk, C), lambda k: (0, k, 0)),
                  pl.BlockSpec((1, C), lambda k: (0, 0)),
                  pl.BlockSpec((1, C), lambda k: (0, 0))],
        out_specs=pl.BlockSpec((P, M, C), lambda k: (0, 0, 0)),
        scratch_shapes=[pltpu.VMEM((P, M, C), jnp.float32)],
        compiler_params=pltpu.CompilerParams(
            dimension_semantics=("arbitrary",)),
    )(patches, wmat, gamma, beta)


def _convt_bias_tanh_kernel(p_ref, w_ref, b_ref, o_ref):
    bias = b_ref[...]                                   # hoisted, loaded once
    for p in range(4):
        y = jnp.dot(p_ref[p], w_ref[p], preferred_element_type=jnp.float32)
        o_ref[p] = jnp.tanh(y + bias)


def pallas_convt_bias_tanh(patches, wmat, bias):
    """Final layer: grouped matmul + bias + tanh, lane-dense (128-padded) output."""
    P, M, K = patches.shape
    _, _, C = wmat.shape
    tm = _pick_tile(M, (1024, 512, 256, 128))
    return pl.pallas_call(
        _convt_bias_tanh_kernel,
        out_shape=jax.ShapeDtypeStruct((P, M, C), jnp.float32),
        grid=(M // tm,),
        in_specs=[pl.BlockSpec((P, tm, K), lambda i: (0, i, 0)),
                  pl.BlockSpec((P, K, C), lambda i: (0, 0, 0)),
                  pl.BlockSpec((1, C), lambda i: (0, 0))],
        out_specs=pl.BlockSpec((P, tm, C), lambda i: (0, i, 0)),
        compiler_params=pltpu.CompilerParams(
            dimension_semantics=("parallel",)),
    )(patches, wmat, bias)


# --------------------- plain-JAX glue (parity patches) ----------------------

def _parity_patches(x_nhwc):
    """x (N,H,W,Cin) -> (4, N*H*W, 4*Cin) patches for ConvT(k=4,s=2,p=1).

    Parity (py,px) of output pixel (2m+py, 2n+px) only touches the 2x2 window
    of the 1-padded input starting at (m+py, n+px); contraction order is
    (dy, dx, ci) with ci fastest, matching _pack_convt_weight_parity.
    """
    N, H, W, Cin = x_nhwc.shape
    xp = jnp.pad(x_nhwc, ((0, 0), (1, 1), (1, 1), (0, 0)))
    pats = []
    for py in range(2):
        for px in range(2):
            cols = [xp[:, py + dy:py + dy + H, px + dx:px + dx + W, :]
                    for dy in range(2) for dx in range(2)]
            pats.append(jnp.concatenate(cols, axis=-1).reshape(N * H * W, 4 * Cin))
    return jnp.stack(pats, axis=0)


def _interleave_parities(y, N, H, W):
    """y (4, N*H*W, C), parity index py*2+px  ->  (N, 2H, 2W, C)."""
    C = y.shape[-1]
    y = y.reshape(2, 2, N, H, W, C)
    y = jnp.transpose(y, (2, 3, 0, 4, 1, 5))       # (N, H, py, W, px, C)
    return y.reshape(N, 2 * H, 2 * W, C)


# ------------------------ parameters & one-time packing ---------------------

def init_params(key, nz, nc=NC, ngf=NGF):
    """PyTorch-layout parameters (ConvTranspose2d weight: (Cin, Cout, kH, kW))."""
    ks = jax.random.split(key, 10)
    s = 0.02
    f32 = jnp.float32

    def bn(kg, kb, c):
        return (1.0 + 0.1 * jax.random.normal(kg, (c,), f32),
                0.1 * jax.random.normal(kb, (c,), f32))

    g1, b1 = bn(ks[4], ks[5], ngf * 4)
    g2, b2 = bn(ks[6], ks[7], ngf * 2)
    g3, b3 = bn(ks[8], ks[9], ngf)
    return {
        'w1': jax.random.normal(ks[0], (nz, ngf * 4, 4, 4), f32) * s,
        'g1': g1, 'b1': b1,
        'w2': jax.random.normal(ks[1], (ngf * 4, ngf * 2, 4, 4), f32) * s,
        'g2': g2, 'b2': b2,
        'w3': jax.random.normal(ks[2], (ngf * 2, ngf, 4, 4), f32) * s,
        'g3': g3, 'b3': b3,
        'w4': jax.random.normal(ks[3], (ngf, nc, 4, 4), f32) * s,
        'b4': 0.1 * jax.random.normal(ks[0], (nc,), f32),
    }


def _pack_convt_weight_parity(w_pt):
    """(Cin, Cout, 4, 4) ConvT weight -> (4, 4*Cin, Cout) per-parity matmul weights."""
    mats = []
    for py in range(2):
        for px in range(2):
            rows = []
            for dy in range(2):
                for dx in range(2):
                    rows.append(w_pt[:, :, 3 - py - 2 * dy, 3 - px - 2 * dx])
            mats.append(jnp.concatenate(rows, axis=0))
    return jnp.stack(mats, axis=0)


def pack_params(p, nc=NC, ngf=NGF):
    """One-time packing: matmul layout, kernel flips, bf16 MXU operands."""
    bf16, f32 = jnp.bfloat16, jnp.float32
    nz = p['w1'].shape[0]
    c4 = ngf * 4
    # layer 1: columns ordered (oy, ox, c) with c fastest
    w1m = jnp.transpose(p['w1'], (0, 2, 3, 1)).reshape(nz, 16 * c4)
    # layer 4: pad output channels to NC_PAD for lane-dense stores
    w4p = _pack_convt_weight_parity(p['w4'])
    w4p = jnp.pad(w4p, ((0, 0), (0, 0), (0, NC_PAD - nc)))
    b4p = jnp.pad(p['b4'], (0, NC_PAD - nc)).reshape(1, NC_PAD)
    return {
        'w1m': w1m.astype(bf16),
        'g1': p['g1'].reshape(1, -1).astype(f32),
        'b1': p['b1'].reshape(1, -1).astype(f32),
        'w2p': _pack_convt_weight_parity(p['w2']).astype(bf16),
        'g2': p['g2'].reshape(1, -1).astype(f32),
        'b2': p['b2'].reshape(1, -1).astype(f32),
        'w3p': _pack_convt_weight_parity(p['w3']).astype(bf16),
        'g3': p['g3'].reshape(1, -1).astype(f32),
        'b3': p['b3'].reshape(1, -1).astype(f32),
        'w4p': w4p.astype(bf16),
        'b4p': b4p.astype(f32),
    }


# ------------------------------ Generator ----------------------------------

def generator_forward(packed, z):
    """z: (N, nz)  ->  images (N, 3, 32, 32) in [-1, 1] (NCHW, like PyTorch)."""
    N = z.shape[0]
    c4 = NGF * 4

    # View(-1, nz, 1, 1) + ConvTranspose2d(nz, 4ngf, 4, 1, 0) + BN + ReLU (fused)
    h = pallas_latent_convt_bn_relu(z.astype(jnp.bfloat16), packed['w1m'],
                                    packed['g1'], packed['b1'], spatial=16)
    h = h.reshape(N, 4, 4, c4)                                     # bf16, NHWC

    # ConvTranspose2d(4ngf, 2ngf, 4, 2, 1) + BN + ReLU  -> 8x8   (fused)
    h = pallas_convt_bn_relu(_parity_patches(h), packed['w2p'],
                             packed['g2'], packed['b2'])
    h = _interleave_parities(h, N, 4, 4)

    # ConvTranspose2d(2ngf, ngf, 4, 2, 1) + BN + ReLU   -> 16x16 (fused)
    h = pallas_convt_bn_relu(_parity_patches(h), packed['w3p'],
                             packed['g3'], packed['b3'])
    h = _interleave_parities(h, N, 8, 8)

    # ConvTranspose2d(ngf, nc, 4, 2, 1, bias=True) + Tanh -> 32x32 (fused)
    y = pallas_convt_bias_tanh(_parity_patches(h), packed['w4p'], packed['b4p'])
    y = y[:, :, :NC]                                               # drop lane padding
    img = _interleave_parities(y, N, 16, 16)                       # (N, 32, 32, 3) f32
    return jnp.transpose(img, (0, 3, 1, 2))                        # NHWC -> NCHW


# --------------------------- pure-JAX reference -----------------------------

def _convt_ref(x, w, stride, padding):
    """x (N,Cin,H,W), w (Cin,Cout,kH,kW) PyTorch layout -> ConvTranspose2d."""
    k = w.shape[2]
    wf = jnp.transpose(jnp.flip(w, axis=(2, 3)), (1, 0, 2, 3))    # OIHW, flipped
    pad = k - 1 - padding
    return jax.lax.conv_general_dilated(
        x, wf, window_strides=(1, 1),
        padding=[(pad, pad), (pad, pad)],
        lhs_dilation=(stride, stride),
        dimension_numbers=('NCHW', 'OIHW', 'NCHW'))


def _bn_relu_ref(x, gamma, beta):
    mean = jnp.mean(x, axis=(0, 2, 3), keepdims=True)
    var = jnp.mean(jnp.square(x - mean), axis=(0, 2, 3), keepdims=True)
    xh = (x - mean) * jax.lax.rsqrt(var + BN_EPS)
    return jnp.maximum(xh * gamma.reshape(1, -1, 1, 1)
                       + beta.reshape(1, -1, 1, 1), 0.0)


def generator_reference(p, z):
    x = z.reshape(z.shape[0], -1, 1, 1)
    x = _bn_relu_ref(_convt_ref(x, p['w1'], 1, 0), p['g1'], p['b1'])
    x = _bn_relu_ref(_convt_ref(x, p['w2'], 2, 1), p['g2'], p['b2'])
    x = _bn_relu_ref(_convt_ref(x, p['w3'], 2, 1), p['g3'], p['b3'])
    x = _convt_ref(x, p['w4'], 2, 1) + p['b4'].reshape(1, -1, 1, 1)
    return jnp.tanh(x)


if __name__ == "__main__":
    key = jax.random.PRNGKey(0)
    kp, kz = jax.random.split(key)

    batch, latent_dim = 2, 64
    raw_params = init_params(kp, latent_dim)
    packed = pack_params(raw_params)          # one-time weight packing (not per call)

    z = jax.random.normal(kz, (batch, latent_dim), jnp.float32)

    fwd = jax.jit(generator_forward)
    imgs = fwd(packed, z)
    jax.block_until_ready(imgs)

    assert imgs.shape == (batch, NC, NSIZE, NSIZE), imgs.shape
    assert imgs.dtype == jnp.float32
    assert bool(jnp.all(jnp.isfinite(imgs)))
    assert bool(jnp.all(jnp.abs(imgs) <= 1.0 + 1e-6))   # tanh range
    assert bool(jnp.std(imgs) > 0.0)                    # non-degenerate output

    # correctness vs fp32 reference (kernel path uses bf16 MXU operands)
    ref = jax.jit(generator_reference)(raw_params, z)
    jax.block_until_ready(ref)
    max_err = float(jnp.max(jnp.abs(imgs - ref)))
    assert max_err < 0.1, f"max abs err vs reference = {max_err}"

    print("KERNEL_OK")
</pallas_src>

<mosaic_0001>
module attributes {stable_mosaic.version = 11 : i64} {
  func.func @_latent_convt_bn_relu_kernel(%arg0: i32, %arg1: memref<2x64xbf16, #tpu.memory_space<vmem>>, %arg2: memref<64x4096xbf16, #tpu.memory_space<vmem>>, %arg3: memref<1x256xf32, #tpu.memory_space<vmem>>, %arg4: memref<1x256xf32, #tpu.memory_space<vmem>>, %arg5: memref<2x4096xbf16, #tpu.memory_space<vmem>>) attributes {dimension_semantics = [#tpu.dimension_semantics<arbitrary>], iteration_bounds = array<i64: 1>, scalar_prefetch = 0 : i64, scratch_operands = 0 : i64, tpu.core_type = #tpu.core_type<tc>, window_params = [{pipeline_mode = #tpu.pipeline_mode<synchronous>, transform_indices = @transform_0, window_bounds = array<i64: 2, 64>}, {pipeline_mode = #tpu.pipeline_mode<synchronous>, transform_indices = @transform_1, window_bounds = array<i64: 64, 4096>}, {pipeline_mode = #tpu.pipeline_mode<synchronous>, transform_indices = @transform_2, window_bounds = array<i64: 1, 256>}, {pipeline_mode = #tpu.pipeline_mode<synchronous>, transform_indices = @transform_3, window_bounds = array<i64: 1, 256>}, {pipeline_mode = #tpu.pipeline_mode<synchronous>, transform_indices = @transform_4, window_bounds = array<i64: 2, 4096>}]} {
    %c0 = arith.constant 0 : index
    %c0_0 = arith.constant 0 : index
    %0 = vector.load %arg1[%c0, %c0_0] : memref<2x64xbf16, #tpu.memory_space<vmem>>, vector<2x64xbf16>
    %c0_1 = arith.constant 0 : index
    %c0_2 = arith.constant 0 : index
    %1 = vector.load %arg2[%c0_1, %c0_2] : memref<64x4096xbf16, #tpu.memory_space<vmem>>, vector<64x4096xbf16>
    %cst = arith.constant dense<0.000000e+00> : vector<2x4096xf32>
    %2 = tpu.matmul %0, %1, %cst {dimension_numbers = #tpu.dot_dimension_numbers<[1], [0], [0], [1], [0, 0, 1, 1], [], []>} : vector<2x64xbf16>, vector<64x4096xbf16>, vector<2x4096xf32> -> vector<2x4096xf32>
    %3 = vector.extract_strided_slice %2 {offsets = [0, 0], sizes = [2, 256], strides = [1, 1]} : vector<2x4096xf32> to vector<2x256xf32>
    %4 = vector.extract_strided_slice %2 {offsets = [0, 256], sizes = [2, 256], strides = [1, 1]} : vector<2x4096xf32> to vector<2x256xf32>
    %5 = vector.extract_strided_slice %2 {offsets = [0, 512], sizes = [2, 256], strides = [1, 1]} : vector<2x4096xf32> to vector<2x256xf32>
    %6 = vector.extract_strided_slice %2 {offsets = [0, 768], sizes = [2, 256], strides = [1, 1]} : vector<2x4096xf32> to vector<2x256xf32>
    %7 = vector.extract_strided_slice %2 {offsets = [0, 1024], sizes = [2, 256], strides = [1, 1]} : vector<2x4096xf32> to vector<2x256xf32>
    %8 = vector.extract_strided_slice %2 {offsets = [0, 1280], sizes = [2, 256], strides = [1, 1]} : vector<2x4096xf32> to vector<2x256xf32>
    %9 = vector.extract_strided_slice %2 {offsets = [0, 1536], sizes = [2, 256], strides = [1, 1]} : vector<2x4096xf32> to vector<2x256xf32>
    %10 = vector.extract_strided_slice %2 {offsets = [0, 1792], sizes = [2, 256], strides = [1, 1]} : vector<2x4096xf32> to vector<2x256xf32>
    %11 = vector.extract_strided_slice %2 {offsets = [0, 2048], sizes = [2, 256], strides = [1, 1]} : vector<2x4096xf32> to vector<2x256xf32>
    %12 = vector.extract_strided_slice %2 {offsets = [0, 2304], sizes = [2, 256], strides = [1, 1]} : vector<2x4096xf32> to vector<2x256xf32>
    %13 = vector.extract_strided_slice %2 {offsets = [0, 2560], sizes = [2, 256], strides = [1, 1]} : vector<2x4096xf32> to vector<2x256xf32>
    %14 = vector.extract_strided_slice %2 {offsets = [0, 2816], sizes = [2, 256], strides = [1, 1]} : vector<2x4096xf32> to vector<2x256xf32>
    %15 = vector.extract_strided_slice %2 {offsets = [0, 3072], sizes = [2, 256], strides = [1, 1]} : vector<2x4096xf32> to vector<2x256xf32>
    %16 = vector.extract_strided_slice %2 {offsets = [0, 3328], sizes = [2, 256], strides = [1, 1]} : vector<2x4096xf32> to vector<2x256xf32>
    %17 = vector.extract_strided_slice %2 {offsets = [0, 3584], sizes = [2, 256], strides = [1, 1]} : vector<2x4096xf32> to vector<2x256xf32>
    %18 = vector.extract_strided_slice %2 {offsets = [0, 3840], sizes = [2, 256], strides = [1, 1]} : vector<2x4096xf32> to vector<2x256xf32>
    %19 = arith.mulf %3, %3 : vector<2x256xf32>
    %20 = arith.addf %3, %4 : vector<2x256xf32>
    %21 = arith.mulf %4, %4 : vector<2x256xf32>
    %22 = arith.addf %19, %21 : vector<2x256xf32>
    %23 = arith.addf %20, %5 : vector<2x256xf32>
    %24 = arith.mulf %5, %5 : vector<2x256xf32>
    %25 = arith.addf %22, %24 : vector<2x256xf32>
    %26 = arith.addf %23, %6 : vector<2x256xf32>
    %27 = arith.mulf %6, %6 : vector<2x256xf32>
    %28 = arith.addf %25, %27 : vector<2x256xf32>
    %29 = arith.addf %26, %7 : vector<2x256xf32>
    %30 = arith.mulf %7, %7 : vector<2x256xf32>
    %31 = arith.addf %28, %30 : vector<2x256xf32>
    %32 = arith.addf %29, %8 : vector<2x256xf32>
    %33 = arith.mulf %8, %8 : vector<2x256xf32>
    %34 = arith.addf %31, %33 : vector<2x256xf32>
    %35 = arith.addf %32, %9 : vector<2x256xf32>
    %36 = arith.mulf %9, %9 : vector<2x256xf32>
    %37 = arith.addf %34, %36 : vector<2x256xf32>
    %38 = arith.addf %35, %10 : vector<2x256xf32>
    %39 = arith.mulf %10, %10 : vector<2x256xf32>
    %40 = arith.addf %37, %39 : vector<2x256xf32>
    %41 = arith.addf %38, %11 : vector<2x256xf32>
    %42 = arith.mulf %11, %11 : vector<2x256xf32>
    %43 = arith.addf %40, %42 : vector<2x256xf32>
    %44 = arith.addf %41, %12 : vector<2x256xf32>
    %45 = arith.mulf %12, %12 : vector<2x256xf32>
    %46 = arith.addf %43, %45 : vector<2x256xf32>
    %47 = arith.addf %44, %13 : vector<2x256xf32>
    %48 = arith.mulf %13, %13 : vector<2x256xf32>
    %49 = arith.addf %46, %48 : vector<2x256xf32>
    %50 = arith.addf %47, %14 : vector<2x256xf32>
    %51 = arith.mulf %14, %14 : vector<2x256xf32>
    %52 = arith.addf %49, %51 : vector<2x256xf32>
    %53 = arith.addf %50, %15 : vector<2x256xf32>
    %54 = arith.mulf %15, %15 : vector<2x256xf32>
    %55 = arith.addf %52, %54 : vector<2x256xf32>
    %56 = arith.addf %53, %16 : vector<2x256xf32>
    %57 = arith.mulf %16, %16 : vector<2x256xf32>
    %58 = arith.addf %55, %57 : vector<2x256xf32>
    %59 = arith.addf %56, %17 : vector<2x256xf32>
    %60 = arith.mulf %17, %17 : vector<2x256xf32>
    %61 = arith.addf %58, %60 : vector<2x256xf32>
    %62 = arith.addf %59, %18 : vector<2x256xf32>
    %63 = arith.mulf %18, %18 : vector<2x256xf32>
    %64 = arith.addf %61, %63 : vector<2x256xf32>
    %cst_3 = arith.constant dense<0.000000e+00> : vector<256xf32>
    %65 = vector.multi_reduction <add>, %62, %cst_3 [0] : vector<2x256xf32> to vector<256xf32>
    %66 = vector.shape_cast %65 : vector<256xf32> to vector<1x256xf32>
    %cst_4 = arith.constant 3.125000e-02 : f32
    %67 = vector.broadcast %cst_4 : f32 to vector<1x256xf32>
    %68 = arith.mulf %66, %67 : vector<1x256xf32>
    %cst_5 = arith.constant dense<0.000000e+00> : vector<256xf32>
    %69 = vector.multi_reduction <add>, %64, %cst_5 [0] : vector<2x256xf32> to vector<256xf32>
    %70 = vector.shape_cast %69 : vector<256xf32> to vector<1x256xf32>
    %cst_6 = arith.constant 3.125000e-02 : f32
    %71 = vector.broadcast %cst_6 : f32 to vector<1x256xf32>
    %72 = arith.mulf %70, %71 : vector<1x256xf32>
    %73 = arith.mulf %68, %68 : vector<1x256xf32>
    %74 = arith.subf %72, %73 : vector<1x256xf32>
    %cst_7 = arith.constant 0.000000e+00 : f32
    %75 = vector.broadcast %cst_7 : f32 to vector<1x256xf32>
    %76 = arith.maximumf %74, %75 : vector<1x256xf32>
    %c0_8 = arith.constant 0 : index
    %c0_9 = arith.constant 0 : index
    %77 = vector.load %arg3[%c0_8, %c0_9] : memref<1x256xf32, #tpu.memory_space<vmem>>, vector<1x256xf32>
    %cst_10 = arith.constant 9.99999974E-6 : f32
    %78 = vector.broadcast %cst_10 : f32 to vector<1x256xf32>
    %79 = arith.addf %76, %78 : vector<1x256xf32>
    %80 = math.rsqrt %79 : vector<1x256xf32>
    %81 = arith.mulf %77, %80 : vector<1x256xf32>
    %c0_11 = arith.constant 0 : index
    %c0_12 = arith.constant 0 : index
    %82 = vector.load %arg4[%c0_11, %c0_12] : memref<1x256xf32, #tpu.memory_space<vmem>>, vector<1x256xf32>
    %83 = arith.mulf %68, %81 : vector<1x256xf32>
    %84 = arith.subf %82, %83 : vector<1x256xf32>
    %85 = vector.broadcast %81 : vector<1x256xf32> to vector<2x256xf32>
    %86 = arith.mulf %3, %85 : vector<2x256xf32>
    %87 = vector.broadcast %84 : vector<1x256xf32> to vector<2x256xf32>
    %88 = arith.addf %86, %87 : vector<2x256xf32>
    %cst_13 = arith.constant 0.000000e+00 : f32
    %89 = vector.broadcast %cst_13 : f32 to vector<2x256xf32>
    %90 = arith.maximumf %88, %89 : vector<2x256xf32>
    %91 = arith.truncf %90 : vector<2x256xf32> to vector<2x256xbf16>
    %c0_14 = arith.constant 0 : index
    %c0_15 = arith.constant 0 : index
    %92 = vector.load %arg5[%c0_14, %c0_15] : memref<2x4096xbf16, #tpu.memory_space<vmem>>, vector<2x256xbf16>
    tpu.vector_store %arg5[%c0_14, %c0_15], %91 {strides = array<i32>} : memref<2x4096xbf16, #tpu.memory_space<vmem>>, vector<2x256xbf16>,
    %93 = vector.broadcast %81 : vector<1x256xf32> to vector<2x256xf32>
    %94 = arith.mulf %4, %93 : vector<2x256xf32>
    %95 = vector.broadcast %84 : vector<1x256xf32> to vector<2x256xf32>
    %96 = arith.addf %94, %95 : vector<2x256xf32>
    %cst_16 = arith.constant 0.000000e+00 : f32
    %97 = vector.broadcast %cst_16 : f32 to vector<2x256xf32>
    %98 = arith.maximumf %96, %97 : vector<2x256xf32>
    %99 = arith.truncf %98 : vector<2x256xf32> to vector<2x256xbf16>
    %c0_17 = arith.constant 0 : index
    %c256 = arith.constant 256 : index
    %100 = vector.load %arg5[%c0_17, %c256] : memref<2x4096xbf16, #tpu.memory_space<vmem>>, vector<2x256xbf16>
    tpu.vector_store %arg5[%c0_17, %c256], %99 {strides = array<i32>} : memref<2x4096xbf16, #tpu.memory_space<vmem>>, vector<2x256xbf16>,
    %101 = vector.broadcast %81 : vector<1x256xf32> to vector<2x256xf32>
    %102 = arith.mulf %5, %101 : vector<2x256xf32>
    %103 = vector.broadcast %84 : vector<1x256xf32> to vector<2x256xf32>
    %104 = arith.addf %102, %103 : vector<2x256xf32>
    %cst_18 = arith.constant 0.000000e+00 : f32
    %105 = vector.broadcast %cst_18 : f32 to vector<2x256xf32>
    %106 = arith.maximumf %104, %105 : vector<2x256xf32>
    %107 = arith.truncf %106 : vector<2x256xf32> to vector<2x256xbf16>
    %c0_19 = arith.constant 0 : index
    %c512 = arith.constant 512 : index
    %108 = vector.load %arg5[%c0_19, %c512] : memref<2x4096xbf16, #tpu.memory_space<vmem>>, vector<2x256xbf16>
    tpu.vector_store %arg5[%c0_19, %c512], %107 {strides = array<i32>} : memref<2x4096xbf16, #tpu.memory_space<vmem>>, vector<2x256xbf16>,
    %109 = vector.broadcast %81 : vector<1x256xf32> to vector<2x256xf32>
    %110 = arith.mulf %6, %109 : vector<2x256xf32>
    %111 = vector.broadcast %84 : vector<1x256xf32> to vector<2x256xf32>
    %112 = arith.addf %110, %111 : vector<2x256xf32>
    %cst_20 = arith.constant 0.000000e+00 : f32
    %113 = vector.broadcast %cst_20 : f32 to vector<2x256xf32>
    %114 = arith.maximumf %112, %113 : vector<2x256xf32>
    %115 = arith.truncf %114 : vector<2x256xf32> to vector<2x256xbf16>
    %c0_21 = arith.constant 0 : index
    %c768 = arith.constant 768 : index
    %116 = vector.load %arg5[%c0_21, %c768] : memref<2x4096xbf16, #tpu.memory_space<vmem>>, vector<2x256xbf16>
    tpu.vector_store %arg5[%c0_21, %c768], %115 {strides = array<i32>} : memref<2x4096xbf16, #tpu.memory_space<vmem>>, vector<2x256xbf16>,
    %117 = vector.broadcast %81 : vector<1x256xf32> to vector<2x256xf32>
    %118 = arith.mulf %7, %117 : vector<2x256xf32>
    %119 = vector.broadcast %84 : vector<1x256xf32> to vector<2x256xf32>
    %120 = arith.addf %118, %119 : vector<2x256xf32>
    %cst_22 = arith.constant 0.000000e+00 : f32
    %121 = vector.broadcast %cst_22 : f32 to vector<2x256xf32>
    %122 = arith.maximumf %120, %121 : vector<2x256xf32>
    %123 = arith.truncf %122 : vector<2x256xf32> to vector<2x256xbf16>
    %c0_23 = arith.constant 0 : index
    %c1024 = arith.constant 1024 : index
    %124 = vector.load %arg5[%c0_23, %c1024] : memref<2x4096xbf16, #tpu.memory_space<vmem>>, vector<2x256xbf16>
    tpu.vector_store %arg5[%c0_23, %c1024], %123 {strides = array<i32>} : memref<2x4096xbf16, #tpu.memory_space<vmem>>, vector<2x256xbf16>,
    %125 = vector.broadcast %81 : vector<1x256xf32> to vector<2x256xf32>
    %126 = arith.mulf %8, %125 : vector<2x256xf32>
    %127 = vector.broadcast %84 : vector<1x256xf32> to vector<2x256xf32>
    %128 = arith.addf %126, %127 : vector<2x256xf32>
    %cst_24 = arith.constant 0.000000e+00 : f32
    %129 = vector.broadcast %cst_24 : f32 to vector<2x256xf32>
    %130 = arith.maximumf %128, %129 : vector<2x256xf32>
    %131 = arith.truncf %130 : vector<2x256xf32> to vector<2x256xbf16>
    %c0_25 = arith.constant 0 : index
    %c1280 = arith.constant 1280 : index
    %132 = vector.load %arg5[%c0_25, %c1280] : memref<2x4096xbf16, #tpu.memory_space<vmem>>, vector<2x256xbf16>
    tpu.vector_store %arg5[%c0_25, %c1280], %131 {strides = array<i32>} : memref<2x4096xbf16, #tpu.memory_space<vmem>>, vector<2x256xbf16>,
    %133 = vector.broadcast %81 : vector<1x256xf32> to vector<2x256xf32>
    %134 = arith.mulf %9, %133 : vector<2x256xf32>
    %135 = vector.broadcast %84 : vector<1x256xf32> to vector<2x256xf32>
    %136 = arith.addf %134, %135 : vector<2x256xf32>
    %cst_26 = arith.constant 0.000000e+00 : f32
    %137 = vector.broadcast %cst_26 : f32 to vector<2x256xf32>
    %138 = arith.maximumf %136, %137 : vector<2x256xf32>
    %139 = arith.truncf %138 : vector<2x256xf32> to vector<2x256xbf16>
    %c0_27 = arith.constant 0 : index
    %c1536 = arith.constant 1536 : index
    %140 = vector.load %arg5[%c0_27, %c1536] : memref<2x4096xbf16, #tpu.memory_space<vmem>>, vector<2x256xbf16>
    tpu.vector_store %arg5[%c0_27, %c1536], %139 {strides = array<i32>} : memref<2x4096xbf16, #tpu.memory_space<vmem>>, vector<2x256xbf16>,
    %141 = vector.broadcast %81 : vector<1x256xf32> to vector<2x256xf32>
    %142 = arith.mulf %10, %141 : vector<2x256xf32>
    %143 = vector.broadcast %84 : vector<1x256xf32> to vector<2x256xf32>
    %144 = arith.addf %142, %143 : vector<2x256xf32>
    %cst_28 = arith.constant 0.000000e+00 : f32
    %145 = vector.broadcast %cst_28 : f32 to vector<2x256xf32>
    %146 = arith.maximumf %144, %145 : vector<2x256xf32>
    %147 = arith.truncf %146 : vector<2x256xf32> to vector<2x256xbf16>
    %c0_29 = arith.constant 0 : index
    %c1792 = arith.constant 1792 : index
    %148 = vector.load %arg5[%c0_29, %c1792] : memref<2x4096xbf16, #tpu.memory_space<vmem>>, vector<2x256xbf16>
    tpu.vector_store %arg5[%c0_29, %c1792], %147 {strides = array<i32>} : memref<2x4096xbf16, #tpu.memory_space<vmem>>, vector<2x256xbf16>,
    %149 = vector.broadcast %81 : vector<1x256xf32> to vector<2x256xf32>
    %150 = arith.mulf %11, %149 : vector<2x256xf32>
    %151 = vector.broadcast %84 : vector<1x256xf32> to vector<2x256xf32>
    %152 = arith.addf %150, %151 : vector<2x256xf32>
    %cst_30 = arith.constant 0.000000e+00 : f32
    %153 = vector.broadcast %cst_30 : f32 to vector<2x256xf32>
    %154 = arith.maximumf %152, %153 : vector<2x256xf32>
    %155 = arith.truncf %154 : vector<2x256xf32> to vector<2x256xbf16>
    %c0_31 = arith.constant 0 : index
    %c2048 = arith.constant 2048 : index
    %156 = vector.load %arg5[%c0_31, %c2048] : memref<2x4096xbf16, #tpu.memory_space<vmem>>, vector<2x256xbf16>
    tpu.vector_store %arg5[%c0_31, %c2048], %155 {strides = array<i32>} : memref<2x4096xbf16, #tpu.memory_space<vmem>>, vector<2x256xbf16>,
    %157 = vector.broadcast %81 : vector<1x256xf32> to vector<2x256xf32>
    %158 = arith.mulf %12, %157 : vector<2x256xf32>
    %159 = vector.broadcast %84 : vector<1x256xf32> to vector<2x256xf32>
    %160 = arith.addf %158, %159 : vector<2x256xf32>
    %cst_32 = arith.constant 0.000000e+00 : f32
    %161 = vector.broadcast %cst_32 : f32 to vector<2x256xf32>
    %162 = arith.maximumf %160, %161 : vector<2x256xf32>
    %163 = arith.truncf %162 : vector<2x256xf32> to vector<2x256xbf16>
    %c0_33 = arith.constant 0 : index
    %c2304 = arith.constant 2304 : index
    %164 = vector.load %arg5[%c0_33, %c2304] : memref<2x4096xbf16, #tpu.memory_space<vmem>>, vector<2x256xbf16>
    tpu.vector_store %arg5[%c0_33, %c2304], %163 {strides = array<i32>} : memref<2x4096xbf16, #tpu.memory_space<vmem>>, vector<2x256xbf16>,
    %165 = vector.broadcast %81 : vector<1x256xf32> to vector<2x256xf32>
    %166 = arith.mulf %13, %165 : vector<2x256xf32>
    %167 = vector.broadcast %84 : vector<1x256xf32> to vector<2x256xf32>
    %168 = arith.addf %166, %167 : vector<2x256xf32>
    %cst_34 = arith.constant 0.000000e+00 : f32
    %169 = vector.broadcast %cst_34 : f32 to vector<2x256xf32>
    %170 = arith.maximumf %168, %169 : vector<2x256xf32>
    %171 = arith.truncf %170 : vector<2x256xf32> to vector<2x256xbf16>
    %c0_35 = arith.constant 0 : index
    %c2560 = arith.constant 2560 : index
    %172 = vector.load %arg5[%c0_35, %c2560] : memref<2x4096xbf16, #tpu.memory_space<vmem>>, vector<2x256xbf16>
    tpu.vector_store %arg5[%c0_35, %c2560], %171 {strides = array<i32>} : memref<2x4096xbf16, #tpu.memory_space<vmem>>, vector<2x256xbf16>,
    %173 = vector.broadcast %81 : vector<1x256xf32> to vector<2x256xf32>
    %174 = arith.mulf %14, %173 : vector<2x256xf32>
    %175 = vector.broadcast %84 : vector<1x256xf32> to vector<2x256xf32>
    %176 = arith.addf %174, %175 : vector<2x256xf32>
    %cst_36 = arith.constant 0.000000e+00 : f32
    %177 = vector.broadcast %cst_36 : f32 to vector<2x256xf32>
    %178 = arith.maximumf %176, %177 : vector<2x256xf32>
    %179 = arith.truncf %178 : vector<2x256xf32> to vector<2x256xbf16>
    %c0_37 = arith.constant 0 : index
    %c2816 = arith.constant 2816 : index
    %180 = vector.load %arg5[%c0_37, %c2816] : memref<2x4096xbf16, #tpu.memory_space<vmem>>, vector<2x256xbf16>
    tpu.vector_store %arg5[%c0_37, %c2816], %179 {strides = array<i32>} : memref<2x4096xbf16, #tpu.memory_space<vmem>>, vector<2x256xbf16>,
    %181 = vector.broadcast %81 : vector<1x256xf32> to vector<2x256xf32>
    %182 = arith.mulf %15, %181 : vector<2x256xf32>
    %183 = vector.broadcast %84 : vector<1x256xf32> to vector<2x256xf32>
    %184 = arith.addf %182, %183 : vector<2x256xf32>
    %cst_38 = arith.constant 0.000000e+00 : f32
    %185 = vector.broadcast %cst_38 : f32 to vector<2x256xf32>
    %186 = arith.maximumf %184, %185 : vector<2x256xf32>
    %187 = arith.truncf %186 : vector<2x256xf32> to vector<2x256xbf16>
    %c0_39 = arith.constant 0 : index
    %c3072 = arith.constant 3072 : index
    %188 = vector.load %arg5[%c0_39, %c3072] : memref<2x4096xbf16, #tpu.memory_space<vmem>>, vector<2x256xbf16>
    tpu.vector_store %arg5[%c0_39, %c3072], %187 {strides = array<i32>} : memref<2x4096xbf16, #tpu.memory_space<vmem>>, vector<2x256xbf16>,
    %189 = vector.broadcast %81 : vector<1x256xf32> to vector<2x256xf32>
    %190 = arith.mulf %16, %189 : vector<2x256xf32>
    %191 = vector.broadcast %84 : vector<1x256xf32> to vector<2x256xf32>
    %192 = arith.addf %190, %191 : vector<2x256xf32>
    %cst_40 = arith.constant 0.000000e+00 : f32
    %193 = vector.broadcast %cst_40 : f32 to vector<2x256xf32>
    %194 = arith.maximumf %192, %193 : vector<2x256xf32>
    %195 = arith.truncf %194 : vector<2x256xf32> to vector<2x256xbf16>
    %c0_41 = arith.constant 0 : index
    %c3328 = arith.constant 3328 : index
    %196 = vector.load %arg5[%c0_41, %c3328] : memref<2x4096xbf16, #tpu.memory_space<vmem>>, vector<2x256xbf16>
    tpu.vector_store %arg5[%c0_41, %c3328], %195 {strides = array<i32>} : memref<2x4096xbf16, #tpu.memory_space<vmem>>, vector<2x256xbf16>,
    %197 = vector.broadcast %81 : vector<1x256xf32> to vector<2x256xf32>
    %198 = arith.mulf %17, %197 : vector<2x256xf32>
    %199 = vector.broadcast %84 : vector<1x256xf32> to vector<2x256xf32>
    %200 = arith.addf %198, %199 : vector<2x256xf32>
    %cst_42 = arith.constant 0.000000e+00 : f32
    %201 = vector.broadcast %cst_42 : f32 to vector<2x256xf32>
    %202 = arith.maximumf %200, %201 : vector<2x256xf32>
    %203 = arith.truncf %202 : vector<2x256xf32> to vector<2x256xbf16>
    %c0_43 = arith.constant 0 : index
    %c3584 = arith.constant 3584 : index
    %204 = vector.load %arg5[%c0_43, %c3584] : memref<2x4096xbf16, #tpu.memory_space<vmem>>, vector<2x256xbf16>
    tpu.vector_store %arg5[%c0_43, %c3584], %203 {strides = array<i32>} : memref<2x4096xbf16, #tpu.memory_space<vmem>>, vector<2x256xbf16>,
    %205 = vector.broadcast %81 : vector<1x256xf32> to vector<2x256xf32>
    %206 = arith.mulf %18, %205 : vector<2x256xf32>
    %207 = vector.broadcast %84 : vector<1x256xf32> to vector<2x256xf32>
    %208 = arith.addf %206, %207 : vector<2x256xf32>
    %cst_44 = arith.constant 0.000000e+00 : f32
    %209 = vector.broadcast %cst_44 : f32 to vector<2x256xf32>
    %210 = arith.maximumf %208, %209 : vector<2x256xf32>
    %211 = arith.truncf %210 : vector<2x256xf32> to vector<2x256xbf16>
    %c0_45 = arith.constant 0 : index
    %c3840 = arith.constant 3840 : index
    %212 = vector.load %arg5[%c0_45, %c3840] : memref<2x4096xbf16, #tpu.memory_space<vmem>>, vector<2x256xbf16>
    tpu.vector_store %arg5[%c0_45, %c3840], %211 {strides = array<i32>} : memref<2x4096xbf16, #tpu.memory_space<vmem>>, vector<2x256xbf16>,
    return
  }
  func.func @transform_0(%arg0: i32) -> (i32, i32) {
    %c0_i32 = arith.constant 0 : i32
    %c0_i32_0 = arith.constant 0 : i32
    %c0_i32_1 = arith.constant 0 : i32
    return %c0_i32, %c0_i32_0 : i32, i32
  }
  func.func @transform_1(%arg0: i32) -> (i32, i32) {
    %c0_i32 = arith.constant 0 : i32
    %c0_i32_0 = arith.constant 0 : i32
    %c0_i32_1 = arith.constant 0 : i32
    return %c0_i32, %c0_i32_0 : i32, i32
  }
  func.func @transform_2(%arg0: i32) -> (i32, i32) {
    %c0_i32 = arith.constant 0 : i32
    %c0_i32_0 = arith.constant 0 : i32
    %c0_i32_1 = arith.constant 0 : i32
    return %c0_i32, %c0_i32_0 : i32, i32
  }
  func.func @transform_3(%arg0: i32) -> (i32, i32) {
    %c0_i32 = arith.constant 0 : i32
    %c0_i32_0 = arith.constant 0 : i32
    %c0_i32_1 = arith.constant 0 : i32
    return %c0_i32, %c0_i32_0 : i32, i32
  }
  func.func @transform_4(%arg0: i32) -> (i32, i32) {
    %c0_i32 = arith.constant 0 : i32
    %c0_i32_0 = arith.constant 0 : i32
    %c0_i32_1 = arith.constant 0 : i32
    return %c0_i32, %c0_i32_0 : i32, i32
  }
}

module attributes {stable_mosaic.version = 11 : i64} {
  func.func @_convt_bn_relu_kernel(%arg0: i32, %arg1: memref<4x32x512xbf16, #tpu.memory_space<vmem>>, %arg2: memref<4x512x128xbf16, #tpu.memory_space<vmem>>, %arg3: memref<1x128xf32, #tpu.memory_space<vmem>>, %arg4: memref<1x128xf32, #tpu.memory_space<vmem>>, %arg5: memref<4x32x128xbf16, #tpu.memory_space<vmem>>, %arg6: memref<4x32x128xf32, #tpu.memory_space<vmem>>) attributes {dimension_semantics = [#tpu.dimension_semantics<arbitrary>], iteration_bounds = array<i64: 2>, scalar_prefetch = 0 : i64, scratch_operands = 1 : i64, tpu.core_type = #tpu.core_type<tc>, window_params = [{transform_indices = @transform_0, window_bounds = array<i64: 4, 32, 512>}, {transform_indices = @transform_1, window_bounds = array<i64: 4, 512, 128>}, {pipeline_mode = #tpu.pipeline_mode<synchronous>, transform_indices = @transform_2, window_bounds = array<i64: 1, 128>}, {pipeline_mode = #tpu.pipeline_mode<synchronous>, transform_indices = @transform_3, window_bounds = array<i64: 1, 128>}, {pipeline_mode = #tpu.pipeline_mode<synchronous>, transform_indices = @transform_4, window_bounds = array<i64: 4, 32, 128>}]} {
    %c0_i32 = arith.constant 0 : i32
    %0 = arith.cmpi eq, %arg0, %c0_i32 : i32
    %1 = arith.extui %0 : i1 to i32
    %c0_i32_0 = arith.constant 0 : i32
    %2 = arith.cmpi ne, %1, %c0_i32_0 : i32
    scf.if %2 {
      %cst_49 = arith.constant 0.000000e+00 : f32
      %50 = vector.broadcast %cst_49 : f32 to vector<4x32x128xf32>
      %c0_50 = arith.constant 0 : index
      %c0_51 = arith.constant 0 : index
      %c0_52 = arith.constant 0 : index
      %51 = vector.load %arg6[%c0_50, %c0_51, %c0_52] : memref<4x32x128xf32, #tpu.memory_space<vmem>>, vector<4x32x128xf32>
      tpu.vector_store %arg6[%c0_50, %c0_51, %c0_52], %50 {strides = array<i32>} : memref<4x32x128xf32, #tpu.memory_space<vmem>>, vector<4x32x128xf32>,
    } else {
    }
    %c0 = arith.constant 0 : index
    %c0_1 = arith.constant 0 : index
    %c0_2 = arith.constant 0 : index
    %3 = vector.load %arg6[%c0, %c0_1, %c0_2] : memref<4x32x128xf32, #tpu.memory_space<vmem>>, vector<1x32x128xf32>
    %4 = vector.shape_cast %3 : vector<1x32x128xf32> to vector<32x128xf32>
    %c0_3 = arith.constant 0 : index
    %c0_4 = arith.constant 0 : index
    %c0_5 = arith.constant 0 : index
    %5 = vector.load %arg1[%c0_3, %c0_4, %c0_5] : memref<4x32x512xbf16, #tpu.memory_space<vmem>>, vector<1x32x512xbf16>
    %6 = vector.shape_cast %5 : vector<1x32x512xbf16> to vector<32x512xbf16>
    %c0_6 = arith.constant 0 : index
    %c0_7 = arith.constant 0 : index
    %c0_8 = arith.constant 0 : index
    %7 = vector.load %arg2[%c0_6, %c0_7, %c0_8] : memref<4x512x128xbf16, #tpu.memory_space<vmem>>, vector<1x512x128xbf16>
    %8 = vector.shape_cast %7 : vector<1x512x128xbf16> to vector<512x128xbf16>
    %cst = arith.constant dense<0.000000e+00> : vector<32x128xf32>
    %9 = tpu.matmul %6, %8, %cst {dimension_numbers = #tpu.dot_dimension_numbers<[1], [0], [0], [1], [0, 0, 1, 1], [], []>} : vector<32x512xbf16>, vector<512x128xbf16>, vector<32x128xf32> -> vector<32x128xf32>
    %10 = arith.addf %4, %9 : vector<32x128xf32>
    %c0_9 = arith.constant 0 : index
    %c0_10 = arith.constant 0 : index
    %c0_11 = arith.constant 0 : index
    %11 = vector.load %arg6[%c0_9, %c0_10, %c0_11] : memref<4x32x128xf32, #tpu.memory_space<vmem>>, vector<1x32x128xf32>
    %12 = vector.shape_cast %11 : vector<1x32x128xf32> to vector<32x128xf32>
    %13 = vector.shape_cast %10 : vector<32x128xf32> to vector<1x32x128xf32>
    tpu.vector_store %arg6[%c0_9, %c0_10, %c0_11], %13 {strides = array<i32>} : memref<4x32x128xf32, #tpu.memory_space<vmem>>, vector<1x32x128xf32>,
    %c1 = arith.constant 1 : index
    %c0_12 = arith.constant 0 : index
    %c0_13 = arith.constant 0 : index
    %14 = vector.load %arg6[%c1, %c0_12, %c0_13] : memref<4x32x128xf32, #tpu.memory_space<vmem>>, vector<1x32x128xf32>
    %15 = vector.shape_cast %14 : vector<1x32x128xf32> to vector<32x128xf32>
    %c1_14 = arith.constant 1 : index
    %c0_15 = arith.constant 0 : index
    %c0_16 = arith.constant 0 : index
    %16 = vector.load %arg1[%c1_14, %c0_15, %c0_16] : memref<4x32x512xbf16, #tpu.memory_space<vmem>>, vector<1x32x512xbf16>
    %17 = vector.shape_cast %16 : vector<1x32x512xbf16> to vector<32x512xbf16>
    %c1_17 = arith.constant 1 : index
    %c0_18 = arith.constant 0 : index
    %c0_19 = arith.constant 0 : index
    %18 = vector.load %arg2[%c1_17, %c0_18, %c0_19] : memref<4x512x128xbf16, #tpu.memory_space<vmem>>, vector<1x512x128xbf16>
    %19 = vector.shape_cast %18 : vector<1x512x128xbf16> to vector<512x128xbf16>
    %cst_20 = arith.constant dense<0.000000e+00> : vector<32x128xf32>
    %20 = tpu.matmul %17, %19, %cst_20 {dimension_numbers = #tpu.dot_dimension_numbers<[1], [0], [0], [1], [0, 0, 1, 1], [], []>} : vector<32x512xbf16>, vector<512x128xbf16>, vector<32x128xf32> -> vector<32x128xf32>
    %21 = arith.addf %15, %20 : vector<32x128xf32>
    %c1_21 = arith.constant 1 : index
    %c0_22 = arith.constant 0 : index
    %c0_23 = arith.constant 0 : index
    %22 = vector.load %arg6[%c1_21, %c0_22, %c0_23] : memref<4x32x128xf32, #tpu.memory_space<vmem>>, vector<1x32x128xf32>
    %23 = vector.shape_cast %22 : vector<1x32x128xf32> to vector<32x128xf32>
    %24 = vector.shape_cast %21 : vector<32x128xf32> to vector<1x32x128xf32>
    tpu.vector_store %arg6[%c1_21, %c0_22, %c0_23], %24 {strides = array<i32>} : memref<4x32x128xf32, #tpu.memory_space<vmem>>, vector<1x32x128xf32>,
    %c2 = arith.constant 2 : index
    %c0_24 = arith.constant 0 : index
    %c0_25 = arith.constant 0 : index
    %25 = vector.load %arg6[%c2, %c0_24, %c0_25] : memref<4x32x128xf32, #tpu.memory_space<vmem>>, vector<1x32x128xf32>
    %26 = vector.shape_cast %25 : vector<1x32x128xf32> to vector<32x128xf32>
    %c2_26 = arith.constant 2 : index
    %c0_27 = arith.constant 0 : index
    %c0_28 = arith.constant 0 : index
    %27 = vector.load %arg1[%c2_26, %c0_27, %c0_28] : memref<4x32x512xbf16, #tpu.memory_space<vmem>>, vector<1x32x512xbf16>
    %28 = vector.shape_cast %27 : vector<1x32x512xbf16> to vector<32x512xbf16>
    %c2_29 = arith.constant 2 : index
    %c0_30 = arith.constant 0 : index
    %c0_31 = arith.constant 0 : index
    %29 = vector.load %arg2[%c2_29, %c0_30, %c0_31] : memref<4x512x128xbf16, #tpu.memory_space<vmem>>, vector<1x512x128xbf16>
    %30 = vector.shape_cast %29 : vector<1x512x128xbf16> to vector<512x128xbf16>
    %cst_32 = arith.constant dense<0.000000e+00> : vector<32x128xf32>
    %31 = tpu.matmul %28, %30, %cst_32 {dimension_numbers = #tpu.dot_dimension_numbers<[1], [0], [0], [1], [0, 0, 1, 1], [], []>} : vector<32x512xbf16>, vector<512x128xbf16>, vector<32x128xf32> -> vector<32x128xf32>
    %32 = arith.addf %26, %31 : vector<32x128xf32>
    %c2_33 = arith.constant 2 : index
    %c0_34 = arith.constant 0 : index
    %c0_35 = arith.constant 0 : index
    %33 = vector.load %arg6[%c2_33, %c0_34, %c0_35] : memref<4x32x128xf32, #tpu.memory_space<vmem>>, vector<1x32x128xf32>
    %34 = vector.shape_cast %33 : vector<1x32x128xf32> to vector<32x128xf32>
    %35 = vector.shape_cast %32 : vector<32x128xf32> to vector<1x32x128xf32>
    tpu.vector_store %arg6[%c2_33, %c0_34, %c0_35], %35 {strides = array<i32>} : memref<4x32x128xf32, #tpu.memory_space<vmem>>, vector<1x32x128xf32>,
    %c3 = arith.constant 3 : index
    %c0_36 = arith.constant 0 : index
    %c0_37 = arith.constant 0 : index
    %36 = vector.load %arg6[%c3, %c0_36, %c0_37] : memref<4x32x128xf32, #tpu.memory_space<vmem>>, vector<1x32x128xf32>
    %37 = vector.shape_cast %36 : vector<1x32x128xf32> to vector<32x128xf32>
    %c3_38 = arith.constant 3 : index
    %c0_39 = arith.constant 0 : index
    %c0_40 = arith.constant 0 : index
    %38 = vector.load %arg1[%c3_38, %c0_39, %c0_40] : memref<4x32x512xbf16, #tpu.memory_space<vmem>>, vector<1x32x512xbf16>
    %39 = vector.shape_cast %38 : vector<1x32x512xbf16> to vector<32x512xbf16>
    %c3_41 = arith.constant 3 : index
    %c0_42 = arith.constant 0 : index
    %c0_43 = arith.constant 0 : index
    %40 = vector.load %arg2[%c3_41, %c0_42, %c0_43] : memref<4x512x128xbf16, #tpu.memory_space<vmem>>, vector<1x512x128xbf16>
    %41 = vector.shape_cast %40 : vector<1x512x128xbf16> to vector<512x128xbf16>
    %cst_44 = arith.constant dense<0.000000e+00> : vector<32x128xf32>
    %42 = tpu.matmul %39, %41, %cst_44 {dimension_numbers = #tpu.dot_dimension_numbers<[1], [0], [0], [1], [0, 0, 1, 1], [], []>} : vector<32x512xbf16>, vector<512x128xbf16>, vector<32x128xf32> -> vector<32x128xf32>
    %43 = arith.addf %37, %42 : vector<32x128xf32>
    %c3_45 = arith.constant 3 : index
    %c0_46 = arith.constant 0 : index
    %c0_47 = arith.constant 0 : index
    %44 = vector.load %arg6[%c3_45, %c0_46, %c0_47] : memref<4x32x128xf32, #tpu.memory_space<vmem>>, vector<1x32x128xf32>
    %45 = vector.shape_cast %44 : vector<1x32x128xf32> to vector<32x128xf32>
    %46 = vector.shape_cast %43 : vector<32x128xf32> to vector<1x32x128xf32>
    tpu.vector_store %arg6[%c3_45, %c0_46, %c0_47], %46 {strides = array<i32>} : memref<4x32x128xf32, #tpu.memory_space<vmem>>, vector<1x32x128xf32>,
    %c1_i32 = arith.constant 1 : i32
    %47 = arith.cmpi eq, %arg0, %c1_i32 : i32
    %48 = arith.extui %47 : i1 to i32
    %c0_i32_48 = arith.constant 0 : i32
    %49 = arith.cmpi ne, %48, %c0_i32_48 : i32
    scf.if %49 {
      %c0_49 = arith.constant 0 : index
      %c0_50 = arith.constant 0 : index
      %c0_51 = arith.constant 0 : index
      %50 = vector.load %arg6[%c0_49, %c0_50, %c0_51] : memref<4x32x128xf32, #tpu.memory_space<vmem>>, vector<1x32x128xf32>
      %51 = vector.shape_cast %50 : vector<1x32x128xf32> to vector<32x128xf32>
      %c1_52 = arith.constant 1 : index
      %c0_53 = arith.constant 0 : index
      %c0_54 = arith.constant 0 : index
      %52 = vector.load %arg6[%c1_52, %c0_53, %c0_54] : memref<4x32x128xf32, #tpu.memory_space<vmem>>, vector<1x32x128xf32>
      %53 = vector.shape_cast %52 : vector<1x32x128xf32> to vector<32x128xf32>
      %c2_55 = arith.constant 2 : index
      %c0_56 = arith.constant 0 : index
      %c0_57 = arith.constant 0 : index
      %54 = vector.load %arg6[%c2_55, %c0_56, %c0_57] : memref<4x32x128xf32, #tpu.memory_space<vmem>>, vector<1x32x128xf32>
      %55 = vector.shape_cast %54 : vector<1x32x128xf32> to vector<32x128xf32>
      %c3_58 = arith.constant 3 : index
      %c0_59 = arith.constant 0 : index
      %c0_60 = arith.constant 0 : index
      %56 = vector.load %arg6[%c3_58, %c0_59, %c0_60] : memref<4x32x128xf32, #tpu.memory_space<vmem>>, vector<1x32x128xf32>
      %57 = vector.shape_cast %56 : vector<1x32x128xf32> to vector<32x128xf32>
      %58 = arith.addf %51, %53 : vector<32x128xf32>
      %59 = arith.addf %58, %55 : vector<32x128xf32>
      %60 = arith.addf %59, %57 : vector<32x128xf32>
      %61 = arith.mulf %51, %51 : vector<32x128xf32>
      %62 = arith.mulf %53, %53 : vector<32x128xf32>
      %63 = arith.addf %61, %62 : vector<32x128xf32>
      %64 = arith.mulf %55, %55 : vector<32x128xf32>
      %65 = arith.addf %63, %64 : vector<32x128xf32>
      %66 = arith.mulf %57, %57 : vector<32x128xf32>
      %67 = arith.addf %65, %66 : vector<32x128xf32>
      %cst_61 = arith.constant dense<0.000000e+00> : vector<128xf32>
      %68 = vector.multi_reduction <add>, %60, %cst_61 [0] : vector<32x128xf32> to vector<128xf32>
      %69 = vector.shape_cast %68 : vector<128xf32> to vector<1x128xf32>
      %cst_62 = arith.constant 7.812500e-03 : f32
      %70 = vector.broadcast %cst_62 : f32 to vector<1x128xf32>
      %71 = arith.mulf %69, %70 : vector<1x128xf32>
      %cst_63 = arith.constant dense<0.000000e+00> : vector<128xf32>
      %72 = vector.multi_reduction <add>, %67, %cst_63 [0] : vector<32x128xf32> to vector<128xf32>
      %73 = vector.shape_cast %72 : vector<128xf32> to vector<1x128xf32>
      %cst_64 = arith.constant 7.812500e-03 : f32
      %74 = vector.broadcast %cst_64 : f32 to vector<1x128xf32>
      %75 = arith.mulf %73, %74 : vector<1x128xf32>
      %76 = arith.mulf %71, %71 : vector<1x128xf32>
      %77 = arith.subf %75, %76 : vector<1x128xf32>
      %cst_65 = arith.constant 0.000000e+00 : f32
      %78 = vector.broadcast %cst_65 : f32 to vector<1x128xf32>
      %79 = arith.maximumf %77, %78 : vector<1x128xf32>
      %c0_66 = arith.constant 0 : index
      %c0_67 = arith.constant 0 : index
      %80 = vector.load %arg3[%c0_66, %c0_67] : memref<1x128xf32, #tpu.memory_space<vmem>>, vector<1x128xf32>
      %cst_68 = arith.constant 9.99999974E-6 : f32
      %81 = vector.broadcast %cst_68 : f32 to vector<1x128xf32>
      %82 = arith.addf %79, %81 : vector<1x128xf32>
      %83 = math.rsqrt %82 : vector<1x128xf32>
      %84 = arith.mulf %80, %83 : vector<1x128xf32>
      %c0_69 = arith.constant 0 : index
      %c0_70 = arith.constant 0 : index
      %85 = vector.load %arg4[%c0_69, %c0_70] : memref<1x128xf32, #tpu.memory_space<vmem>>, vector<1x128xf32>
      %86 = arith.mulf %71, %84 : vector<1x128xf32>
      %87 = arith.subf %85, %86 : vector<1x128xf32>
      %88 = vector.broadcast %84 : vector<1x128xf32> to vector<32x128xf32>
      %89 = arith.mulf %51, %88 : vector<32x128xf32>
      %90 = vector.broadcast %87 : vector<1x128xf32> to vector<32x128xf32>
      %91 = arith.addf %89, %90 : vector<32x128xf32>
      %cst_71 = arith.constant 0.000000e+00 : f32
      %92 = vector.broadcast %cst_71 : f32 to vector<32x128xf32>
      %93 = arith.maximumf %91, %92 : vector<32x128xf32>
      %94 = arith.truncf %93 : vector<32x128xf32> to vector<32x128xbf16>
      %c0_72 = arith.constant 0 : index
      %c0_73 = arith.constant 0 : index
      %c0_74 = arith.constant 0 : index
      %95 = vector.load %arg5[%c0_72, %c0_73, %c0_74] : memref<4x32x128xbf16, #tpu.memory_space<vmem>>, vector<1x32x128xbf16>
      %96 = vector.shape_cast %95 : vector<1x32x128xbf16> to vector<32x128xbf16>
      %97 = vector.shape_cast %94 : vector<32x128xbf16> to vector<1x32x128xbf16>
      tpu.vector_store %arg5[%c0_72, %c0_73, %c0_74], %97 {strides = array<i32>} : memref<4x32x128xbf16, #tpu.memory_space<vmem>>, vector<1x32x128xbf16>,
      %98 = vector.broadcast %84 : vector<1x128xf32> to vector<32x128xf32>
      %99 = arith.mulf %53, %98 : vector<32x128xf32>
      %100 = vector.broadcast %87 : vector<1x128xf32> to vector<32x128xf32>
      %101 = arith.addf %99, %100 : vector<32x128xf32>
      %cst_75 = arith.constant 0.000000e+00 : f32
      %102 = vector.broadcast %cst_75 : f32 to vector<32x128xf32>
      %103 = arith.maximumf %101, %102 : vector<32x128xf32>
      %104 = arith.truncf %103 : vector<32x128xf32> to vector<32x128xbf16>
      %c1_76 = arith.constant 1 : index
      %c0_77 = arith.constant 0 : index
      %c0_78 = arith.constant 0 : index
      %105 = vector.load %arg5[%c1_76, %c0_77, %c0_78] : memref<4x32x128xbf16, #tpu.memory_space<vmem>>, vector<1x32x128xbf16>
      %106 = vector.shape_cast %105 : vector<1x32x128xbf16> to vector<32x128xbf16>
      %107 = vector.shape_cast %104 : vector<32x128xbf16> to vector<1x32x128xbf16>
      tpu.vector_store %arg5[%c1_76, %c0_77, %c0_78], %107 {strides = array<i32>} : memref<4x32x128xbf16, #tpu.memory_space<vmem>>, vector<1x32x128xbf16>,
      %108 = vector.broadcast %84 : vector<1x128xf32> to vector<32x128xf32>
      %109 = arith.mulf %55, %108 : vector<32x128xf32>
      %110 = vector.broadcast %87 : vector<1x128xf32> to vector<32x128xf32>
      %111 = arith.addf %109, %110 : vector<32x128xf32>
      %cst_79 = arith.constant 0.000000e+00 : f32
      %112 = vector.broadcast %cst_79 : f32 to vector<32x128xf32>
      %113 = arith.maximumf %111, %112 : vector<32x128xf32>
      %114 = arith.truncf %113 : vector<32x128xf32> to vector<32x128xbf16>
      %c2_80 = arith.constant 2 : index
      %c0_81 = arith.constant 0 : index
      %c0_82 = arith.constant 0 : index
      %115 = vector.load %arg5[%c2_80, %c0_81, %c0_82] : memref<4x32x128xbf16, #tpu.memory_space<vmem>>, vector<1x32x128xbf16>
      %116 = vector.shape_cast %115 : vector<1x32x128xbf16> to vector<32x128xbf16>
      %117 = vector.shape_cast %114 : vector<32x128xbf16> to vector<1x32x128xbf16>
      tpu.vector_store %arg5[%c2_80, %c0_81, %c0_82], %117 {strides = array<i32>} : memref<4x32x128xbf16, #tpu.memory_space<vmem>>, vector<1x32x128xbf16>,
      %118 = vector.broadcast %84 : vector<1x128xf32> to vector<32x128xf32>
      %119 = arith.mulf %57, %118 : vector<32x128xf32>
      %120 = vector.broadcast %87 : vector<1x128xf32> to vector<32x128xf32>
      %121 = arith.addf %119, %120 : vector<32x128xf32>
      %cst_83 = arith.constant 0.000000e+00 : f32
      %122 = vector.broadcast %cst_83 : f32 to vector<32x128xf32>
      %123 = arith.maximumf %121, %122 : vector<32x128xf32>
      %124 = arith.truncf %123 : vector<32x128xf32> to vector<32x128xbf16>
      %c3_84 = arith.constant 3 : index
      %c0_85 = arith.constant 0 : index
      %c0_86 = arith.constant 0 : index
      %125 = vector.load %arg5[%c3_84, %c0_85, %c0_86] : memref<4x32x128xbf16, #tpu.memory_space<vmem>>, vector<1x32x128xbf16>
      %126 = vector.shape_cast %125 : vector<1x32x128xbf16> to vector<32x128xbf16>
      %127 = vector.shape_cast %124 : vector<32x128xbf16> to vector<1x32x128xbf16>
      tpu.vector_store %arg5[%c3_84, %c0_85, %c0_86], %127 {strides = array<i32>} : memref<4x32x128xbf16, #tpu.memory_space<vmem>>, vector<1x32x128xbf16>,
    } else {
    }
    return
  }
  func.func @transform_0(%arg0: i32) -> (i32, i32, i32) {
    %c0_i32 = arith.constant 0 : i32
    %c0_i32_0 = arith.constant 0 : i32
    %c0_i32_1 = arith.constant 0 : i32
    return %c0_i32, %c0_i32_0, %arg0 : i32, i32, i32
  }
  func.func @transform_1(%arg0: i32) -> (i32, i32, i32) {
    %c0_i32 = arith.constant 0 : i32
    %c0_i32_0 = arith.constant 0 : i32
    %c0_i32_1 = arith.constant 0 : i32
    return %c0_i32, %arg0, %c0_i32_0 : i32, i32, i32
  }
  func.func @transform_2(%arg0: i32) -> (i32, i32) {
    %c0_i32 = arith.constant 0 : i32
    %c0_i32_0 = arith.constant 0 : i32
    %c0_i32_1 = arith.constant 0 : i32
    return %c0_i32, %c0_i32_0 : i32, i32
  }
  func.func @transform_3(%arg0: i32) -> (i32, i32) {
    %c0_i32 = arith.constant 0 : i32
    %c0_i32_0 = arith.constant 0 : i32
    %c0_i32_1 = arith.constant 0 : i32
    return %c0_i32, %c0_i32_0 : i32, i32
  }
  func.func @transform_4(%arg0: i32) -> (i32, i32, i32) {
    %c0_i32 = arith.constant 0 : i32
    %c0_i32_0 = arith.constant 0 : i32
    %c0_i32_1 = arith.constant 0 : i32
    %c0_i32_2 = arith.constant 0 : i32
    return %c0_i32, %c0_i32_0, %c0_i32_1 : i32, i32, i32
  }
}

module attributes {stable_mosaic.version = 11 : i64} {
  func.func @_convt_bn_relu_kernel(%arg0: i32, %arg1: memref<4x128x512xbf16, #tpu.memory_space<vmem>>, %arg2: memref<4x512x64xbf16, #tpu.memory_space<vmem>>, %arg3: memref<1x64xf32, #tpu.memory_space<vmem>>, %arg4: memref<1x64xf32, #tpu.memory_space<vmem>>, %arg5: memref<4x128x64xbf16, #tpu.memory_space<vmem>>, %arg6: memref<4x128x64xf32, #tpu.memory_space<vmem>>) attributes {dimension_semantics = [#tpu.dimension_semantics<arbitrary>], iteration_bounds = array<i64: 1>, scalar_prefetch = 0 : i64, scratch_operands = 1 : i64, tpu.core_type = #tpu.core_type<tc>, window_params = [{transform_indices = @transform_0, window_bounds = array<i64: 4, 128, 512>}, {transform_indices = @transform_1, window_bounds = array<i64: 4, 512, 64>}, {pipeline_mode = #tpu.pipeline_mode<synchronous>, transform_indices = @transform_2, window_bounds = array<i64: 1, 64>}, {pipeline_mode = #tpu.pipeline_mode<synchronous>, transform_indices = @transform_3, window_bounds = array<i64: 1, 64>}, {pipeline_mode = #tpu.pipeline_mode<synchronous>, transform_indices = @transform_4, window_bounds = array<i64: 4, 128, 64>}]} {
    %c0_i32 = arith.constant 0 : i32
    %0 = arith.cmpi eq, %arg0, %c0_i32 : i32
    %1 = arith.extui %0 : i1 to i32
    %c0_i32_0 = arith.constant 0 : i32
    %2 = arith.cmpi ne, %1, %c0_i32_0 : i32
    scf.if %2 {
      %cst_50 = arith.constant 0.000000e+00 : f32
      %50 = vector.broadcast %cst_50 : f32 to vector<4x128x64xf32>
      %c0_51 = arith.constant 0 : index
      %c0_52 = arith.constant 0 : index
      %c0_53 = arith.constant 0 : index
      %51 = vector.load %arg6[%c0_51, %c0_52, %c0_53] : memref<4x128x64xf32, #tpu.memory_space<vmem>>, vector<4x128x64xf32>
      tpu.vector_store %arg6[%c0_51, %c0_52, %c0_53], %50 {strides = array<i32>} : memref<4x128x64xf32, #tpu.memory_space<vmem>>, vector<4x128x64xf32>,
    } else {
    }
    %c0 = arith.constant 0 : index
    %c0_1 = arith.constant 0 : index
    %c0_2 = arith.constant 0 : index
    %3 = vector.load %arg6[%c0, %c0_1, %c0_2] : memref<4x128x64xf32, #tpu.memory_space<vmem>>, vector<1x128x64xf32>
    %4 = vector.shape_cast %3 : vector<1x128x64xf32> to vector<128x64xf32>
    %c0_3 = arith.constant 0 : index
    %c0_4 = arith.constant 0 : index
    %c0_5 = arith.constant 0 : index
    %5 = vector.load %arg1[%c0_3, %c0_4, %c0_5] : memref<4x128x512xbf16, #tpu.memory_space<vmem>>, vector<1x128x512xbf16>
    %6 = vector.shape_cast %5 : vector<1x128x512xbf16> to vector<128x512xbf16>
    %c0_6 = arith.constant 0 : index
    %c0_7 = arith.constant 0 : index
    %c0_8 = arith.constant 0 : index
    %7 = vector.load %arg2[%c0_6, %c0_7, %c0_8] : memref<4x512x64xbf16, #tpu.memory_space<vmem>>, vector<1x512x64xbf16>
    %8 = vector.shape_cast %7 : vector<1x512x64xbf16> to vector<512x64xbf16>
    %cst = arith.constant dense<0.000000e+00> : vector<128x64xf32>
    %9 = tpu.matmul %6, %8, %cst {dimension_numbers = #tpu.dot_dimension_numbers<[1], [0], [0], [1], [0, 0, 1, 1], [], []>} : vector<128x512xbf16>, vector<512x64xbf16>, vector<128x64xf32> -> vector<128x64xf32>
    %10 = arith.addf %4, %9 : vector<128x64xf32>
    %c0_9 = arith.constant 0 : index
    %c0_10 = arith.constant 0 : index
    %c0_11 = arith.constant 0 : index
    %11 = vector.load %arg6[%c0_9, %c0_10, %c0_11] : memref<4x128x64xf32, #tpu.memory_space<vmem>>, vector<1x128x64xf32>
    %12 = vector.shape_cast %11 : vector<1x128x64xf32> to vector<128x64xf32>
    %13 = vector.shape_cast %10 : vector<128x64xf32> to vector<1x128x64xf32>
    tpu.vector_store %arg6[%c0_9, %c0_10, %c0_11], %13 {strides = array<i32>} : memref<4x128x64xf32, #tpu.memory_space<vmem>>, vector<1x128x64xf32>,
    %c1 = arith.constant 1 : index
    %c0_12 = arith.constant 0 : index
    %c0_13 = arith.constant 0 : index
    %14 = vector.load %arg6[%c1, %c0_12, %c0_13] : memref<4x128x64xf32, #tpu.memory_space<vmem>>, vector<1x128x64xf32>
    %15 = vector.shape_cast %14 : vector<1x128x64xf32> to vector<128x64xf32>
    %c1_14 = arith.constant 1 : index
    %c0_15 = arith.constant 0 : index
    %c0_16 = arith.constant 0 : index
    %16 = vector.load %arg1[%c1_14, %c0_15, %c0_16] : memref<4x128x512xbf16, #tpu.memory_space<vmem>>, vector<1x128x512xbf16>
    %17 = vector.shape_cast %16 : vector<1x128x512xbf16> to vector<128x512xbf16>
    %c1_17 = arith.constant 1 : index
    %c0_18 = arith.constant 0 : index
    %c0_19 = arith.constant 0 : index
    %18 = vector.load %arg2[%c1_17, %c0_18, %c0_19] : memref<4x512x64xbf16, #tpu.memory_space<vmem>>, vector<1x512x64xbf16>
    %19 = vector.shape_cast %18 : vector<1x512x64xbf16> to vector<512x64xbf16>
    %cst_20 = arith.constant dense<0.000000e+00> : vector<128x64xf32>
    %20 = tpu.matmul %17, %19, %cst_20 {dimension_numbers = #tpu.dot_dimension_numbers<[1], [0], [0], [1], [0, 0, 1, 1], [], []>} : vector<128x512xbf16>, vector<512x64xbf16>, vector<128x64xf32> -> vector<128x64xf32>
    %21 = arith.addf %15, %20 : vector<128x64xf32>
    %c1_21 = arith.constant 1 : index
    %c0_22 = arith.constant 0 : index
    %c0_23 = arith.constant 0 : index
    %22 = vector.load %arg6[%c1_21, %c0_22, %c0_23] : memref<4x128x64xf32, #tpu.memory_space<vmem>>, vector<1x128x64xf32>
    %23 = vector.shape_cast %22 : vector<1x128x64xf32> to vector<128x64xf32>
    %24 = vector.shape_cast %21 : vector<128x64xf32> to vector<1x128x64xf32>
    tpu.vector_store %arg6[%c1_21, %c0_22, %c0_23], %24 {strides = array<i32>} : memref<4x128x64xf32, #tpu.memory_space<vmem>>, vector<1x128x64xf32>,
    %c2 = arith.constant 2 : index
    %c0_24 = arith.constant 0 : index
    %c0_25 = arith.constant 0 : index
    %25 = vector.load %arg6[%c2, %c0_24, %c0_25] : memref<4x128x64xf32, #tpu.memory_space<vmem>>, vector<1x128x64xf32>
    %26 = vector.shape_cast %25 : vector<1x128x64xf32> to vector<128x64xf32>
    %c2_26 = arith.constant 2 : index
    %c0_27 = arith.constant 0 : index
    %c0_28 = arith.constant 0 : index
    %27 = vector.load %arg1[%c2_26, %c0_27, %c0_28] : memref<4x128x512xbf16, #tpu.memory_space<vmem>>, vector<1x128x512xbf16>
    %28 = vector.shape_cast %27 : vector<1x128x512xbf16> to vector<128x512xbf16>
    %c2_29 = arith.constant 2 : index
    %c0_30 = arith.constant 0 : index
    %c0_31 = arith.constant 0 : index
    %29 = vector.load %arg2[%c2_29, %c0_30, %c0_31] : memref<4x512x64xbf16, #tpu.memory_space<vmem>>, vector<1x512x64xbf16>
    %30 = vector.shape_cast %29 : vector<1x512x64xbf16> to vector<512x64xbf16>
    %cst_32 = arith.constant dense<0.000000e+00> : vector<128x64xf32>
    %31 = tpu.matmul %28, %30, %cst_32 {dimension_numbers = #tpu.dot_dimension_numbers<[1], [0], [0], [1], [0, 0, 1, 1], [], []>} : vector<128x512xbf16>, vector<512x64xbf16>, vector<128x64xf32> -> vector<128x64xf32>
    %32 = arith.addf %26, %31 : vector<128x64xf32>
    %c2_33 = arith.constant 2 : index
    %c0_34 = arith.constant 0 : index
    %c0_35 = arith.constant 0 : index
    %33 = vector.load %arg6[%c2_33, %c0_34, %c0_35] : memref<4x128x64xf32, #tpu.memory_space<vmem>>, vector<1x128x64xf32>
    %34 = vector.shape_cast %33 : vector<1x128x64xf32> to vector<128x64xf32>
    %35 = vector.shape_cast %32 : vector<128x64xf32> to vector<1x128x64xf32>
    tpu.vector_store %arg6[%c2_33, %c0_34, %c0_35], %35 {strides = array<i32>} : memref<4x128x64xf32, #tpu.memory_space<vmem>>, vector<1x128x64xf32>,
    %c3 = arith.constant 3 : index
    %c0_36 = arith.constant 0 : index
    %c0_37 = arith.constant 0 : index
    %36 = vector.load %arg6[%c3, %c0_36, %c0_37] : memref<4x128x64xf32, #tpu.memory_space<vmem>>, vector<1x128x64xf32>
    %37 = vector.shape_cast %36 : vector<1x128x64xf32> to vector<128x64xf32>
    %c3_38 = arith.constant 3 : index
    %c0_39 = arith.constant 0 : index
    %c0_40 = arith.constant 0 : index
    %38 = vector.load %arg1[%c3_38, %c0_39, %c0_40] : memref<4x128x512xbf16, #tpu.memory_space<vmem>>, vector<1x128x512xbf16>
    %39 = vector.shape_cast %38 : vector<1x128x512xbf16> to vector<128x512xbf16>
    %c3_41 = arith.constant 3 : index
    %c0_42 = arith.constant 0 : index
    %c0_43 = arith.constant 0 : index
    %40 = vector.load %arg2[%c3_41, %c0_42, %c0_43] : memref<4x512x64xbf16, #tpu.memory_space<vmem>>, vector<1x512x64xbf16>
    %41 = vector.shape_cast %40 : vector<1x512x64xbf16> to vector<512x64xbf16>
    %cst_44 = arith.constant dense<0.000000e+00> : vector<128x64xf32>
    %42 = tpu.matmul %39, %41, %cst_44 {dimension_numbers = #tpu.dot_dimension_numbers<[1], [0], [0], [1], [0, 0, 1, 1], [], []>} : vector<128x512xbf16>, vector<512x64xbf16>, vector<128x64xf32> -> vector<128x64xf32>
    %43 = arith.addf %37, %42 : vector<128x64xf32>
    %c3_45 = arith.constant 3 : index
    %c0_46 = arith.constant 0 : index
    %c0_47 = arith.constant 0 : index
    %44 = vector.load %arg6[%c3_45, %c0_46, %c0_47] : memref<4x128x64xf32, #tpu.memory_space<vmem>>, vector<1x128x64xf32>
    %45 = vector.shape_cast %44 : vector<1x128x64xf32> to vector<128x64xf32>
    %46 = vector.shape_cast %43 : vector<128x64xf32> to vector<1x128x64xf32>
    tpu.vector_store %arg6[%c3_45, %c0_46, %c0_47], %46 {strides = array<i32>} : memref<4x128x64xf32, #tpu.memory_space<vmem>>, vector<1x128x64xf32>,
    %c0_i32_48 = arith.constant 0 : i32
    %47 = arith.cmpi eq, %arg0, %c0_i32_48 : i32
    %48 = arith.extui %47 : i1 to i32
    %c0_i32_49 = arith.constant 0 : i32
    %49 = arith.cmpi ne, %48, %c0_i32_49 : i32
    scf.if %49 {
      %c0_50 = arith.constant 0 : index
      %c0_51 = arith.constant 0 : index
      %c0_52 = arith.constant 0 : index
      %50 = vector.load %arg6[%c0_50, %c0_51, %c0_52] : memref<4x128x64xf32, #tpu.memory_space<vmem>>, vector<1x128x64xf32>
      %51 = vector.shape_cast %50 : vector<1x128x64xf32> to vector<128x64xf32>
      %c1_53 = arith.constant 1 : index
      %c0_54 = arith.constant 0 : index
      %c0_55 = arith.constant 0 : index
      %52 = vector.load %arg6[%c1_53, %c0_54, %c0_55] : memref<4x128x64xf32, #tpu.memory_space<vmem>>, vector<1x128x64xf32>
      %53 = vector.shape_cast %52 : vector<1x128x64xf32> to vector<128x64xf32>
      %c2_56 = arith.constant 2 : index
      %c0_57 = arith.constant 0 : index
      %c0_58 = arith.constant 0 : index
      %54 = vector.load %arg6[%c2_56, %c0_57, %c0_58] : memref<4x128x64xf32, #tpu.memory_space<vmem>>, vector<1x128x64xf32>
      %55 = vector.shape_cast %54 : vector<1x128x64xf32> to vector<128x64xf32>
      %c3_59 = arith.constant 3 : index
      %c0_60 = arith.constant 0 : index
      %c0_61 = arith.constant 0 : index
      %56 = vector.load %arg6[%c3_59, %c0_60, %c0_61] : memref<4x128x64xf32, #tpu.memory_space<vmem>>, vector<1x128x64xf32>
      %57 = vector.shape_cast %56 : vector<1x128x64xf32> to vector<128x64xf32>
      %58 = arith.addf %51, %53 : vector<128x64xf32>
      %59 = arith.addf %58, %55 : vector<128x64xf32>
      %60 = arith.addf %59, %57 : vector<128x64xf32>
      %61 = arith.mulf %51, %51 : vector<128x64xf32>
      %62 = arith.mulf %53, %53 : vector<128x64xf32>
      %63 = arith.addf %61, %62 : vector<128x64xf32>
      %64 = arith.mulf %55, %55 : vector<128x64xf32>
      %65 = arith.addf %63, %64 : vector<128x64xf32>
      %66 = arith.mulf %57, %57 : vector<128x64xf32>
      %67 = arith.addf %65, %66 : vector<128x64xf32>
      %cst_62 = arith.constant dense<0.000000e+00> : vector<64xf32>
      %68 = vector.multi_reduction <add>, %60, %cst_62 [0] : vector<128x64xf32> to vector<64xf32>
      %69 = vector.shape_cast %68 : vector<64xf32> to vector<1x64xf32>
      %cst_63 = arith.constant 0.001953125 : f32
      %70 = vector.broadcast %cst_63 : f32 to vector<1x64xf32>
      %71 = arith.mulf %69, %70 : vector<1x64xf32>
      %cst_64 = arith.constant dense<0.000000e+00> : vector<64xf32>
      %72 = vector.multi_reduction <add>, %67, %cst_64 [0] : vector<128x64xf32> to vector<64xf32>
      %73 = vector.shape_cast %72 : vector<64xf32> to vector<1x64xf32>
      %cst_65 = arith.constant 0.001953125 : f32
      %74 = vector.broadcast %cst_65 : f32 to vector<1x64xf32>
      %75 = arith.mulf %73, %74 : vector<1x64xf32>
      %76 = arith.mulf %71, %71 : vector<1x64xf32>
      %77 = arith.subf %75, %76 : vector<1x64xf32>
      %cst_66 = arith.constant 0.000000e+00 : f32
      %78 = vector.broadcast %cst_66 : f32 to vector<1x64xf32>
      %79 = arith.maximumf %77, %78 : vector<1x64xf32>
      %c0_67 = arith.constant 0 : index
      %c0_68 = arith.constant 0 : index
      %80 = vector.load %arg3[%c0_67, %c0_68] : memref<1x64xf32, #tpu.memory_space<vmem>>, vector<1x64xf32>
      %cst_69 = arith.constant 9.99999974E-6 : f32
      %81 = vector.broadcast %cst_69 : f32 to vector<1x64xf32>
      %82 = arith.addf %79, %81 : vector<1x64xf32>
      %83 = math.rsqrt %82 : vector<1x64xf32>
      %84 = arith.mulf %80, %83 : vector<1x64xf32>
      %c0_70 = arith.constant 0 : index
      %c0_71 = arith.constant 0 : index
      %85 = vector.load %arg4[%c0_70, %c0_71] : memref<1x64xf32, #tpu.memory_space<vmem>>, vector<1x64xf32>
      %86 = arith.mulf %71, %84 : vector<1x64xf32>
      %87 = arith.subf %85, %86 : vector<1x64xf32>
      %88 = vector.broadcast %84 : vector<1x64xf32> to vector<128x64xf32>
      %89 = arith.mulf %51, %88 : vector<128x64xf32>
      %90 = vector.broadcast %87 : vector<1x64xf32> to vector<128x64xf32>
      %91 = arith.addf %89, %90 : vector<128x64xf32>
      %cst_72 = arith.constant 0.000000e+00 : f32
      %92 = vector.broadcast %cst_72 : f32 to vector<128x64xf32>
      %93 = arith.maximumf %91, %92 : vector<128x64xf32>
      %94 = arith.truncf %93 : vector<128x64xf32> to vector<128x64xbf16>
      %c0_73 = arith.constant 0 : index
      %c0_74 = arith.constant 0 : index
      %c0_75 = arith.constant 0 : index
      %95 = vector.load %arg5[%c0_73, %c0_74, %c0_75] : memref<4x128x64xbf16, #tpu.memory_space<vmem>>, vector<1x128x64xbf16>
      %96 = vector.shape_cast %95 : vector<1x128x64xbf16> to vector<128x64xbf16>
      %97 = vector.shape_cast %94 : vector<128x64xbf16> to vector<1x128x64xbf16>
      tpu.vector_store %arg5[%c0_73, %c0_74, %c0_75], %97 {strides = array<i32>} : memref<4x128x64xbf16, #tpu.memory_space<vmem>>, vector<1x128x64xbf16>,
      %98 = vector.broadcast %84 : vector<1x64xf32> to vector<128x64xf32>
      %99 = arith.mulf %53, %98 : vector<128x64xf32>
      %100 = vector.broadcast %87 : vector<1x64xf32> to vector<128x64xf32>
      %101 = arith.addf %99, %100 : vector<128x64xf32>
      %cst_76 = arith.constant 0.000000e+00 : f32
      %102 = vector.broadcast %cst_76 : f32 to vector<128x64xf32>
      %103 = arith.maximumf %101, %102 : vector<128x64xf32>
      %104 = arith.truncf %103 : vector<128x64xf32> to vector<128x64xbf16>
      %c1_77 = arith.constant 1 : index
      %c0_78 = arith.constant 0 : index
      %c0_79 = arith.constant 0 : index
      %105 = vector.load %arg5[%c1_77, %c0_78, %c0_79] : memref<4x128x64xbf16, #tpu.memory_space<vmem>>, vector<1x128x64xbf16>
      %106 = vector.shape_cast %105 : vector<1x128x64xbf16> to vector<128x64xbf16>
      %107 = vector.shape_cast %104 : vector<128x64xbf16> to vector<1x128x64xbf16>
      tpu.vector_store %arg5[%c1_77, %c0_78, %c0_79], %107 {strides = array<i32>} : memref<4x128x64xbf16, #tpu.memory_space<vmem>>, vector<1x128x64xbf16>,
      %108 = vector.broadcast %84 : vector<1x64xf32> to vector<128x64xf32>
      %109 = arith.mulf %55, %108 : vector<128x64xf32>
      %110 = vector.broadcast %87 : vector<1x64xf32> to vector<128x64xf32>
      %111 = arith.addf %109, %110 : vector<128x64xf32>
      %cst_80 = arith.constant 0.000000e+00 : f32
      %112 = vector.broadcast %cst_80 : f32 to vector<128x64xf32>
      %113 = arith.maximumf %111, %112 : vector<128x64xf32>
      %114 = arith.truncf %113 : vector<128x64xf32> to vector<128x64xbf16>
      %c2_81 = arith.constant 2 : index
      %c0_82 = arith.constant 0 : index
      %c0_83 = arith.constant 0 : index
      %115 = vector.load %arg5[%c2_81, %c0_82, %c0_83] : memref<4x128x64xbf16, #tpu.memory_space<vmem>>, vector<1x128x64xbf16>
      %116 = vector.shape_cast %115 : vector<1x128x64xbf16> to vector<128x64xbf16>
      %117 = vector.shape_cast %114 : vector<128x64xbf16> to vector<1x128x64xbf16>
      tpu.vector_store %arg5[%c2_81, %c0_82, %c0_83], %117 {strides = array<i32>} : memref<4x128x64xbf16, #tpu.memory_space<vmem>>, vector<1x128x64xbf16>,
      %118 = vector.broadcast %84 : vector<1x64xf32> to vector<128x64xf32>
      %119 = arith.mulf %57, %118 : vector<128x64xf32>
      %120 = vector.broadcast %87 : vector<1x64xf32> to vector<128x64xf32>
      %121 = arith.addf %119, %120 : vector<128x64xf32>
      %cst_84 = arith.constant 0.000000e+00 : f32
      %122 = vector.broadcast %cst_84 : f32 to vector<128x64xf32>
      %123 = arith.maximumf %121, %122 : vector<128x64xf32>
      %124 = arith.truncf %123 : vector<128x64xf32> to vector<128x64xbf16>
      %c3_85 = arith.constant 3 : index
      %c0_86 = arith.constant 0 : index
      %c0_87 = arith.constant 0 : index
      %125 = vector.load %arg5[%c3_85, %c0_86, %c0_87] : memref<4x128x64xbf16, #tpu.memory_space<vmem>>, vector<1x128x64xbf16>
      %126 = vector.shape_cast %125 : vector<1x128x64xbf16> to vector<128x64xbf16>
      %127 = vector.shape_cast %124 : vector<128x64xbf16> to vector<1x128x64xbf16>
      tpu.vector_store %arg5[%c3_85, %c0_86, %c0_87], %127 {strides = array<i32>} : memref<4x128x64xbf16, #tpu.memory_space<vmem>>, vector<1x128x64xbf16>,
    } else {
    }
    return
  }
  func.func @transform_0(%arg0: i32) -> (i32, i32, i32) {
    %c0_i32 = arith.constant 0 : i32
    %c0_i32_0 = arith.constant 0 : i32
    %c0_i32_1 = arith.constant 0 : i32
    return %c0_i32, %c0_i32_0, %arg0 : i32, i32, i32
  }
  func.func @transform_1(%arg0: i32) -> (i32, i32, i32) {
    %c0_i32 = arith.constant 0 : i32
    %c0_i32_0 = arith.constant 0 : i32
    %c0_i32_1 = arith.constant 0 : i32
    return %c0_i32, %arg0, %c0_i32_0 : i32, i32, i32
  }
  func.func @transform_2(%arg0: i32) -> (i32, i32) {
    %c0_i32 = arith.constant 0 : i32
    %c0_i32_0 = arith.constant 0 : i32
    %c0_i32_1 = arith.constant 0 : i32
    return %c0_i32, %c0_i32_0 : i32, i32
  }
  func.func @transform_3(%arg0: i32) -> (i32, i32) {
    %c0_i32 = arith.constant 0 : i32
    %c0_i32_0 = arith.constant 0 : i32
    %c0_i32_1 = arith.constant 0 : i32
    return %c0_i32, %c0_i32_0 : i32, i32
  }
  func.func @transform_4(%arg0: i32) -> (i32, i32, i32) {
    %c0_i32 = arith.constant 0 : i32
    %c0_i32_0 = arith.constant 0 : i32
    %c0_i32_1 = arith.constant 0 : i32
    %c0_i32_2 = arith.constant 0 : i32
    return %c0_i32, %c0_i32_0, %c0_i32_1 : i32, i32, i32
  }
}

module attributes {stable_mosaic.version = 11 : i64} {
  func.func @_convt_bias_tanh_kernel(%arg0: i32, %arg1: memref<4x512x256xbf16, #tpu.memory_space<vmem>>, %arg2: memref<4x256x128xbf16, #tpu.memory_space<vmem>>, %arg3: memref<1x128xf32, #tpu.memory_space<vmem>>, %arg4: memref<4x512x128xf32, #tpu.memory_space<vmem>>) attributes {dimension_semantics = [#tpu.dimension_semantics<parallel>], iteration_bounds = array<i64: 1>, scalar_prefetch = 0 : i64, scratch_operands = 0 : i64, tpu.core_type = #tpu.core_type<tc>, window_params = [{transform_indices = @transform_0, window_bounds = array<i64: 4, 512, 256>}, {pipeline_mode = #tpu.pipeline_mode<synchronous>, transform_indices = @transform_1, window_bounds = array<i64: 4, 256, 128>}, {pipeline_mode = #tpu.pipeline_mode<synchronous>, transform_indices = @transform_2, window_bounds = array<i64: 1, 128>}, {transform_indices = @transform_3, window_bounds = array<i64: 4, 512, 128>}]} {
    %c0 = arith.constant 0 : index
    %c0_0 = arith.constant 0 : index
    %0 = vector.load %arg3[%c0, %c0_0] : memref<1x128xf32, #tpu.memory_space<vmem>>, vector<1x128xf32>
    %c0_1 = arith.constant 0 : index
    %c0_2 = arith.constant 0 : index
    %c0_3 = arith.constant 0 : index
    %1 = vector.load %arg1[%c0_1, %c0_2, %c0_3] : memref<4x512x256xbf16, #tpu.memory_space<vmem>>, vector<1x512x256xbf16>
    %2 = vector.shape_cast %1 : vector<1x512x256xbf16> to vector<512x256xbf16>
    %c0_4 = arith.constant 0 : index
    %c0_5 = arith.constant 0 : index
    %c0_6 = arith.constant 0 : index
    %3 = vector.load %arg2[%c0_4, %c0_5, %c0_6] : memref<4x256x128xbf16, #tpu.memory_space<vmem>>, vector<1x256x128xbf16>
    %4 = vector.shape_cast %3 : vector<1x256x128xbf16> to vector<256x128xbf16>
    %cst = arith.constant dense<0.000000e+00> : vector<512x128xf32>
    %5 = tpu.matmul %2, %4, %cst {dimension_numbers = #tpu.dot_dimension_numbers<[1], [0], [0], [1], [0, 0, 1, 1], [], []>} : vector<512x256xbf16>, vector<256x128xbf16>, vector<512x128xf32> -> vector<512x128xf32>
    %6 = vector.broadcast %0 : vector<1x128xf32> to vector<512x128xf32>
    %7 = arith.addf %5, %6 : vector<512x128xf32>
    %8 = math.tanh %7 : vector<512x128xf32>
    %c0_7 = arith.constant 0 : index
    %c0_8 = arith.constant 0 : index
    %c0_9 = arith.constant 0 : index
    %9 = vector.load %arg4[%c0_7, %c0_8, %c0_9] : memref<4x512x128xf32, #tpu.memory_space<vmem>>, vector<1x512x128xf32>
    %10 = vector.shape_cast %9 : vector<1x512x128xf32> to vector<512x128xf32>
    %11 = vector.shape_cast %8 : vector<512x128xf32> to vector<1x512x128xf32>
    tpu.vector_store %arg4[%c0_7, %c0_8, %c0_9], %11 {strides = array<i32>} : memref<4x512x128xf32, #tpu.memory_space<vmem>>, vector<1x512x128xf32>,
    %c1 = arith.constant 1 : index
    %c0_10 = arith.constant 0 : index
    %c0_11 = arith.constant 0 : index
    %12 = vector.load %arg1[%c1, %c0_10, %c0_11] : memref<4x512x256xbf16, #tpu.memory_space<vmem>>, vector<1x512x256xbf16>
    %13 = vector.shape_cast %12 : vector<1x512x256xbf16> to vector<512x256xbf16>
    %c1_12 = arith.constant 1 : index
    %c0_13 = arith.constant 0 : index
    %c0_14 = arith.constant 0 : index
    %14 = vector.load %arg2[%c1_12, %c0_13, %c0_14] : memref<4x256x128xbf16, #tpu.memory_space<vmem>>, vector<1x256x128xbf16>
    %15 = vector.shape_cast %14 : vector<1x256x128xbf16> to vector<256x128xbf16>
    %cst_15 = arith.constant dense<0.000000e+00> : vector<512x128xf32>
    %16 = tpu.matmul %13, %15, %cst_15 {dimension_numbers = #tpu.dot_dimension_numbers<[1], [0], [0], [1], [0, 0, 1, 1], [], []>} : vector<512x256xbf16>, vector<256x128xbf16>, vector<512x128xf32> -> vector<512x128xf32>
    %17 = vector.broadcast %0 : vector<1x128xf32> to vector<512x128xf32>
    %18 = arith.addf %16, %17 : vector<512x128xf32>
    %19 = math.tanh %18 : vector<512x128xf32>
    %c1_16 = arith.constant 1 : index
    %c0_17 = arith.constant 0 : index
    %c0_18 = arith.constant 0 : index
    %20 = vector.load %arg4[%c1_16, %c0_17, %c0_18] : memref<4x512x128xf32, #tpu.memory_space<vmem>>, vector<1x512x128xf32>
    %21 = vector.shape_cast %20 : vector<1x512x128xf32> to vector<512x128xf32>
    %22 = vector.shape_cast %19 : vector<512x128xf32> to vector<1x512x128xf32>
    tpu.vector_store %arg4[%c1_16, %c0_17, %c0_18], %22 {strides = array<i32>} : memref<4x512x128xf32, #tpu.memory_space<vmem>>, vector<1x512x128xf32>,
    %c2 = arith.constant 2 : index
    %c0_19 = arith.constant 0 : index
    %c0_20 = arith.constant 0 : index
    %23 = vector.load %arg1[%c2, %c0_19, %c0_20] : memref<4x512x256xbf16, #tpu.memory_space<vmem>>, vector<1x512x256xbf16>
    %24 = vector.shape_cast %23 : vector<1x512x256xbf16> to vector<512x256xbf16>
    %c2_21 = arith.constant 2 : index
    %c0_22 = arith.constant 0 : index
    %c0_23 = arith.constant 0 : index
    %25 = vector.load %arg2[%c2_21, %c0_22, %c0_23] : memref<4x256x128xbf16, #tpu.memory_space<vmem>>, vector<1x256x128xbf16>
    %26 = vector.shape_cast %25 : vector<1x256x128xbf16> to vector<256x128xbf16>
    %cst_24 = arith.constant dense<0.000000e+00> : vector<512x128xf32>
    %27 = tpu.matmul %24, %26, %cst_24 {dimension_numbers = #tpu.dot_dimension_numbers<[1], [0], [0], [1], [0, 0, 1, 1], [], []>} : vector<512x256xbf16>, vector<256x128xbf16>, vector<512x128xf32> -> vector<512x128xf32>
    %28 = vector.broadcast %0 : vector<1x128xf32> to vector<512x128xf32>
    %29 = arith.addf %27, %28 : vector<512x128xf32>
    %30 = math.tanh %29 : vector<512x128xf32>
    %c2_25 = arith.constant 2 : index
    %c0_26 = arith.constant 0 : index
    %c0_27 = arith.constant 0 : index
    %31 = vector.load %arg4[%c2_25, %c0_26, %c0_27] : memref<4x512x128xf32, #tpu.memory_space<vmem>>, vector<1x512x128xf32>
    %32 = vector.shape_cast %31 : vector<1x512x128xf32> to vector<512x128xf32>
    %33 = vector.shape_cast %30 : vector<512x128xf32> to vector<1x512x128xf32>
    tpu.vector_store %arg4[%c2_25, %c0_26, %c0_27], %33 {strides = array<i32>} : memref<4x512x128xf32, #tpu.memory_space<vmem>>, vector<1x512x128xf32>,
    %c3 = arith.constant 3 : index
    %c0_28 = arith.constant 0 : index
    %c0_29 = arith.constant 0 : index
    %34 = vector.load %arg1[%c3, %c0_28, %c0_29] : memref<4x512x256xbf16, #tpu.memory_space<vmem>>, vector<1x512x256xbf16>
    %35 = vector.shape_cast %34 : vector<1x512x256xbf16> to vector<512x256xbf16>
    %c3_30 = arith.constant 3 : index
    %c0_31 = arith.constant 0 : index
    %c0_32 = arith.constant 0 : index
    %36 = vector.load %arg2[%c3_30, %c0_31, %c0_32] : memref<4x256x128xbf16, #tpu.memory_space<vmem>>, vector<1x256x128xbf16>
    %37 = vector.shape_cast %36 : vector<1x256x128xbf16> to vector<256x128xbf16>
    %cst_33 = arith.constant dense<0.000000e+00> : vector<512x128xf32>
    %38 = tpu.matmul %35, %37, %cst_33 {dimension_numbers = #tpu.dot_dimension_numbers<[1], [0], [0], [1], [0, 0, 1, 1], [], []>} : vector<512x256xbf16>, vector<256x128xbf16>, vector<512x128xf32> -> vector<512x128xf32>
    %39 = vector.broadcast %0 : vector<1x128xf32> to vector<512x128xf32>
    %40 = arith.addf %38, %39 : vector<512x128xf32>
    %41 = math.tanh %40 : vector<512x128xf32>
    %c3_34 = arith.constant 3 : index
    %c0_35 = arith.constant 0 : index
    %c0_36 = arith.constant 0 : index
    %42 = vector.load %arg4[%c3_34, %c0_35, %c0_36] : memref<4x512x128xf32, #tpu.memory_space<vmem>>, vector<1x512x128xf32>
    %43 = vector.shape_cast %42 : vector<1x512x128xf32> to vector<512x128xf32>
    %44 = vector.shape_cast %41 : vector<512x128xf32> to vector<1x512x128xf32>
    tpu.vector_store %arg4[%c3_34, %c0_35, %c0_36], %44 {strides = array<i32>} : memref<4x512x128xf32, #tpu.memory_space<vmem>>, vector<1x512x128xf32>,
    return
  }
  func.func @transform_0(%arg0: i32) -> (i32, i32, i32) {
    %c0_i32 = arith.constant 0 : i32
    %c0_i32_0 = arith.constant 0 : i32
    %c0_i32_1 = arith.constant 0 : i32
    return %c0_i32, %arg0, %c0_i32_0 : i32, i32, i32
  }
  func.func @transform_1(%arg0: i32) -> (i32, i32, i32) {
    %c0_i32 = arith.constant 0 : i32
    %c0_i32_0 = arith.constant 0 : i32
    %c0_i32_1 = arith.constant 0 : i32
    %c0_i32_2 = arith.constant 0 : i32
    return %c0_i32, %c0_i32_0, %c0_i32_1 : i32, i32, i32
  }
  func.func @transform_2(%arg0: i32) -> (i32, i32) {
    %c0_i32 = arith.constant 0 : i32
    %c0_i32_0 = arith.constant 0 : i32
    %c0_i32_1 = arith.constant 0 : i32
    return %c0_i32, %c0_i32_0 : i32, i32
  }
  func.func @transform_3(%arg0: i32) -> (i32, i32, i32) {
    %c0_i32 = arith.constant 0 : i32
    %c0_i32_0 = arith.constant 0 : i32
    %c0_i32_1 = arith.constant 0 : i32
    return %c0_i32, %arg0, %c0_i32_0 : i32, i32, i32
  }
}

</mosaic_0001>

<bundles_post_ra>
// kernel: generator_forward.4
= control target key start
LH: loop header
LB: loop body
LE: loop exit
PB: predicated region body
PF: predicated region fallthrough
CT: control target
= control target key end

     0   :  { %9 = vsyncpa [#allocation3], 0  ;;  %s2810_s0 = inlined_call_operand.vmem [shape: bf16[2,64], index: 0, kind: input, shape index: {}]   ;;  %s2811_s1 = inlined_call_operand.hbm [shape: bf16[64,4096], index: 1, kind: input, shape index: {}]   ;;  %s2812_s2 = inlined_call_operand.hbm [shape: f32[1,256], index: 2, kind: input, shape index: {}]   ;;  %s2813_s3 = inlined_call_operand.hbm [shape: f32[1,256], index: 3, kind: input, shape index: {}]   ;;  %s2814_s4 = inlined_call_operand.vmem [shape: bf16[2,4096], index: 4, kind: output, shape index: {}]  }
   0x1   :  { %10 = vsyncpa [#allocation5], 0  ;;  %s2372_s15 = smov [#allocation4]   ;;  %s2373_s17 = smov [#allocation2]  }
   0x2   :  { %s31_s16 = sshll.u32 %s2372_s15, 4  ;;  %s18_s18 = sshll.u32 %s2373_s17, 4  ;;  %s32_s16 = int_to_ptr.vmem [resolvable:$true] %s31_s16  ;;  %s19_s18 = int_to_ptr.vmem [resolvable:$true] %s18_s18 }
   0x3   :  { %s2316_s19 = scalar_lea.vmem %s32_s16, 32  ;;  %p2321_p1 = scmp.lt.s32.totalorder %s32_s16, %s32_s16 }
   0x4   :  { %p2317_p0 = scmp.ne.s32.totalorder %s32_s16, %s2316_s19  ;;  %p2322_p2 = scmp.lt.s32.totalorder %s2316_s19, %s2316_s19 }
   0x6   :  { %p2323_p3 = por %p2322_p2, %p2321_p1 }
   0x8   :  { %p2324_p4 = pnand %p2323_p3, %p2317_p0 }
   0xa   :  { %2327 = shalt.err (!%p2324_p4)
}
   0xb   :  { %34 = dma.hbm_to_vmem [thread:$0]  %s2812_s2, 32, %s32_s16, [#allocation5]  }
   0xc   :  { %s2336_s22 = scalar_lea.vmem %s19_s18, 16384  ;;  %p2341_p6 = scmp.lt.s32.totalorder %s19_s18, %s19_s18 }
   0xd   :  { %p2337_p5 = scmp.ne.s32.totalorder %s19_s18, %s2336_s22  ;;  %p2342_p7 = scmp.lt.s32.totalorder %s2336_s22, %s2336_s22 }
   0xf   :  { %p2343_p8 = por %p2342_p7, %p2341_p6 }
  0x11   :  { %p2344_p9 = pnand %p2343_p8, %p2337_p5 }
  0x13   :  { %2347 = shalt.err (!%p2344_p9)
}
  0x14   :  { %s2374_s23 = smov 2048   ;;  %s2375_s24 = smov 128  }
  0x15   :  { %24 = dma.hbm_to_vmem [thread:$0]  %s2811_s1, 16384, %s19_s18, [#allocation3], %s2374_s23, %s2374_s23, %s2375_s24  }
  0x16   :  { %s2376_s27 = smov [#allocation6]  }
  0x17   :  { %s41_s28 = sshll.u32 %s2376_s27, 4  ;;  %s42_s28 = int_to_ptr.vmem [resolvable:$true] %s41_s28 }
  0x18   :  { %s2356_s29 = scalar_lea.vmem %s42_s28, 32  ;;  %p2361_p11 = scmp.lt.s32.totalorder %s42_s28, %s42_s28 }
  0x19   :  { %p2357_p10 = scmp.ne.s32.totalorder %s42_s28, %s2356_s29  ;;  %p2362_p12 = scmp.lt.s32.totalorder %s2356_s29, %s2356_s29 }
  0x1b   :  { %p2363_p13 = por %p2362_p12, %p2361_p11 }
  0x1d   :  { %p2364_p0 = pnand %p2363_p13, %p2357_p10 }
  0x1f   :  { %2367 = shalt.err (!%p2364_p0)
}
  0x20   :  { %44 = dma.hbm_to_vmem [thread:$0]  %s2813_s3, 32, %s42_s28, [#allocation5]  }
  0x21   :  { %2368 = dma.done.wait [#allocation3], 16384  }
  0x22   :  { %2369 = vsyncadd [#allocation3], 4294950912 }
  0x23   :  { %2370 = dma.done.wait [#allocation5], 64  }
  0x24   :  { %2371 = vsyncadd [#allocation5], 4294967232  ;;  %v2377_v0 = vmov 0   ;;  %v152_v1 = vld [vmem:[#allocation2 + $0x300] sm:$0xff]  ;;  %v153_v3 = vld [vmem:[#allocation2 + $0x308] sm:$0xff]  ;;  %vm824_vm0 = vcmask 523264  }
  0x25   :  { %860 = vmatprep.mubr.bf16.mxu0 %v2377_v0  ;;  %901 = vmatprep.mubr.bf16.mxu1 %v2377_v0  ;;  %v168_v2 = vld [vmem:[#allocation2 + $0x380] sm:$0xff]  ;;  %v169_v5 = vld [vmem:[#allocation2 + $0x388] sm:$0xff]  ;;  %v154_v31 = vld [vmem:[#allocation2 + $0x310] sm:$0xff]  ;;  %vm1576_vm1 = vcmask 1041408  }
  0x26   :  { %v2218_v4 = vcombine.high %v152_v1, %v168_v2  ;;  %v2217_v6 = vcombine.low %v152_v1, %v168_v2  ;;  %v120_v7 = vld [vmem:[#allocation2 + $0x200] sm:$0xff]  ;;  %v2220_v9 = vcombine.high %v153_v3, %v169_v5  ;;  %v2219_v10 = vcombine.low %v153_v3, %v169_v5  ;;  %v121_v12 = vld [vmem:[#allocation2 + $0x208] sm:$0xff]  ;;  %v170_v32 = vld [vmem:[#allocation2 + $0x390] sm:$0xff] }
  0x27   :  { %v136_v8 = vld [vmem:[#allocation2 + $0x280] sm:$0xff]  ;;  %v137_v13 = vld [vmem:[#allocation2 + $0x288] sm:$0xff]  ;;  %v155_v33 = vld [vmem:[#allocation2 + $0x318] sm:$0xff]  ;;  %v2222_v37 = vcombine.high %v154_v31, %v170_v32  ;;  %v2221_v44 = vcombine.low %v154_v31, %v170_v32 }
  0x28   :  { %v2186_v11 = vcombine.high %v120_v7, %v136_v8  ;;  %v88_v14 = vld [vmem:[#allocation2 + $0x100] sm:$0xff]  ;;  %836 = vmatprep.subr.bf16.mxu0 %v2218_v4  ;;  %v2188_v15 = vcombine.high %v121_v12, %v137_v13  ;;  %v89_v17 = vld [vmem:[#allocation2 + $0x108] sm:$0xff]  ;;  %877 = vmatprep.subr.bf16.mxu1 %v2220_v9  ;;  %v2185_v19 = vcombine.low %v120_v7, %v136_v8  ;;  %v171_v34 = vld [vmem:[#allocation2 + $0x398] sm:$0xff] }
  0x29   :  { %v104_v16 = vld [vmem:[#allocation2 + $0x180] sm:$0xff]  ;;  %v105_v18 = vld [vmem:[#allocation2 + $0x188] sm:$0xff]  ;;  %837 = vmatpush1.bf16.msra.mxu0 %v2217_v6  ;;  %878 = vmatpush1.bf16.msra.mxu1 %v2219_v10  ;;  %v2187_v20 = vcombine.low %v121_v12, %v137_v13  ;;  %v2224_v38 = vcombine.high %v155_v33, %v171_v34  ;;  %v122_v39 = vld [vmem:[#allocation2 + $0x210] sm:$0xff]  ;;  %v2223_v45 = vcombine.low %v155_v33, %v171_v34 }
  0x2a   :  { %838 = vmatprep.subr.bf16.mxu0 %v2186_v11  ;;  %v2154_v21 = vcombine.high %v88_v14, %v104_v16  ;;  %879 = vmatprep.subr.bf16.mxu1 %v2188_v15  ;;  %v2156_v22 = vcombine.high %v89_v17, %v105_v18  ;;  %v56_v23 = vld [vmem:[#allocation2] sm:$0xff]  ;;  %v57_v25 = vld [vmem:[#allocation2 + $0x8] sm:$0xff]  ;;  %v2153_v27 = vcombine.low %v88_v14, %v104_v16  ;;  %v138_v40 = vld [vmem:[#allocation2 + $0x290] sm:$0xff] }
  0x2b   :  { %v72_v24 = vld [vmem:[#allocation2 + $0x80] sm:$0xff]  ;;  %v73_v26 = vld [vmem:[#allocation2 + $0x88] sm:$0xff]  ;;  %v2155_v28 = vcombine.low %v89_v17, %v105_v18  ;;  %v123_v41 = vld [vmem:[#allocation2 + $0x218] sm:$0xff]  ;;  %v2190_v46 = vcombine.high %v122_v39, %v138_v40  ;;  %v2189_v52 = vcombine.low %v122_v39, %v138_v40 }
  0x2c   :  { %v2122_v29 = vcombine.high %v56_v23, %v72_v24  ;;  %v2124_v30 = vcombine.high %v57_v25, %v73_v26  ;;  %v2121_v35 = vcombine.low %v56_v23, %v72_v24  ;;  %v2123_v36 = vcombine.low %v57_v25, %v73_v26  ;;  %v139_v42 = vld [vmem:[#allocation2 + $0x298] sm:$0xff]  ;;  %v2418_v43 = vld [vmem:[%s2810_s0] sm:$0x1]  ;;  %v90_v48 = vld [vmem:[#allocation2 + $0x110] sm:$0xff] }
  0x2d   :  { %839 = vmatpush1.bf16.msra.mxu0 %v2185_v19  ;;  %880 = vmatpush1.bf16.msra.mxu1 %v2187_v20  ;;  %v2192_v47 = vcombine.high %v123_v41, %v139_v42  ;;  %v106_v49 = vld [vmem:[#allocation2 + $0x190] sm:$0xff]  ;;  %v91_v50 = vld [vmem:[#allocation2 + $0x118] sm:$0xff]  ;;  %v2191_v53 = vcombine.low %v123_v41, %v139_v42  ;;  %v156_v1 = vld [vmem:[#allocation2 + $0x320] sm:$0xff] }
  0x2e   :  { %840 = vmatprep.subr.bf16.mxu0 %v2154_v21  ;;  %881 = vmatprep.subr.bf16.mxu1 %v2156_v22  ;;  %v107_v51 = vld [vmem:[#allocation2 + $0x198] sm:$0xff]  ;;  %v2158_v54 = vcombine.high %v90_v48, %v106_v49  ;;  %v58_v56 = vld [vmem:[#allocation2 + $0x10] sm:$0xff]  ;;  %v2157_v60 = vcombine.low %v90_v48, %v106_v49  ;;  %v172_v2 = vld [vmem:[#allocation2 + $0x3a0] sm:$0xff] }
  0x2f   :  { %v2160_v55 = vcombine.high %v91_v50, %v107_v51  ;;  %v74_v57 = vld [vmem:[#allocation2 + $0x90] sm:$0xff]  ;;  %v59_v58 = vld [vmem:[#allocation2 + $0x18] sm:$0xff]  ;;  %v2159_v61 = vcombine.low %v91_v50, %v107_v51  ;;  %v157_v3 = vld [vmem:[#allocation2 + $0x328] sm:$0xff]  ;;  %v2226_v7 = vcombine.high %v156_v1, %v172_v2  ;;  %v2225_v13 = vcombine.low %v156_v1, %v172_v2 }
  0x30   :  { %v75_v59 = vld [vmem:[#allocation2 + $0x98] sm:$0xff]  ;;  %v2126_v62 = vcombine.high %v58_v56, %v74_v57  ;;  %v173_v4 = vld [vmem:[#allocation2 + $0x3a8] sm:$0xff]  ;;  %v2125_v5 = vcombine.low %v58_v56, %v74_v57  ;;  %v124_v9 = vld [vmem:[#allocation2 + $0x220] sm:$0xff] }
  0x31   :  { %841 = vmatpush1.bf16.msra.mxu0 %v2153_v27  ;;  %882 = vmatpush1.bf16.msra.mxu1 %v2155_v28  ;;  %v2128_v63 = vcombine.high %v59_v58, %v75_v59  ;;  %v2127_v6 = vcombine.low %v59_v58, %v75_v59  ;;  %v2228_v8 = vcombine.high %v157_v3, %v173_v4  ;;  %v140_v10 = vld [vmem:[#allocation2 + $0x2a0] sm:$0xff]  ;;  %v125_v11 = vld [vmem:[#allocation2 + $0x228] sm:$0xff]  ;;  %v158_v33 = vld [vmem:[#allocation2 + $0x330] sm:$0xff] }
  0x32   :  { %842 = vmatprep.subr.bf16.mxu0 %v2122_v29  ;;  %883 = vmatprep.subr.bf16.mxu1 %v2124_v30  ;;  %v141_v12 = vld [vmem:[#allocation2 + $0x2a8] sm:$0xff]  ;;  %v2227_v14 = vcombine.low %v157_v3, %v173_v4  ;;  %v2194_v15 = vcombine.high %v124_v9, %v140_v10  ;;  %v92_v17 = vld [vmem:[#allocation2 + $0x120] sm:$0xff]  ;;  %v2193_v21 = vcombine.low %v124_v9, %v140_v10  ;;  %v174_v34 = vld [vmem:[#allocation2 + $0x3b0] sm:$0xff] }
  0x33   :  { %v2196_v16 = vcombine.high %v125_v11, %v141_v12  ;;  %v108_v18 = vld [vmem:[#allocation2 + $0x1a0] sm:$0xff]  ;;  %v93_v19 = vld [vmem:[#allocation2 + $0x128] sm:$0xff]  ;;  %v2195_v22 = vcombine.low %v125_v11, %v141_v12  ;;  %v2230_v39 = vcombine.high %v158_v33, %v174_v34  ;;  %v126_v41 = vld [vmem:[#allocation2 + $0x230] sm:$0xff] }
  0x34   :  { %v109_v20 = vld [vmem:[#allocation2 + $0x1a8] sm:$0xff]  ;;  %v2162_v23 = vcombine.high %v92_v17, %v108_v18  ;;  %v60_v25 = vld [vmem:[#allocation2 + $0x20] sm:$0xff]  ;;  %v2161_v29 = vcombine.low %v92_v17, %v108_v18  ;;  %v142_v42 = vld [vmem:[#allocation2 + $0x2b0] sm:$0xff] }
  0x35   :  { %843 = vmatpush1.bf16.msra.mxu0 %v2121_v35  ;;  %884 = vmatpush1.bf16.msra.mxu1 %v2123_v36  ;;  %v2164_v24 = vcombine.high %v93_v19, %v109_v20  ;;  %v76_v26 = vld [vmem:[#allocation2 + $0xa0] sm:$0xff]  ;;  %v61_v27 = vld [vmem:[#allocation2 + $0x28] sm:$0xff]  ;;  %v2163_v30 = vcombine.low %v93_v19, %v109_v20  ;;  %v159_v35 = vld [vmem:[#allocation2 + $0x338] sm:$0xff]  ;;  %v2198_v48 = vcombine.high %v126_v41, %v142_v42 }
  0x36   :  { %918 = vmatprep.subr.bf16.mxu0 %v2222_v37  ;;  %959 = vmatprep.subr.bf16.mxu1 %v2224_v38  ;;  %v77_v28 = vld [vmem:[#allocation2 + $0xa8] sm:$0xff]  ;;  %v2130_v31 = vcombine.high %v60_v25, %v76_v26  ;;  %v175_v36 = vld [vmem:[#allocation2 + $0x3b8] sm:$0xff]  ;;  %v2129_v37 = vcombine.low %v60_v25, %v76_v26  ;;  %v94_v50 = vld [vmem:[#allocation2 + $0x130] sm:$0xff] }
  0x37   :  { %v2132_v32 = vcombine.high %v61_v27, %v77_v28  ;;  %v2131_v38 = vcombine.low %v61_v27, %v77_v28  ;;  %v2232_v40 = vcombine.high %v159_v35, %v175_v36  ;;  %v110_v51 = vld [vmem:[#allocation2 + $0x1b0] sm:$0xff]  ;;  %v160_v3 = vld [vmem:[#allocation2 + $0x340] sm:$0xff] }
  0x38   :  { %2249 = vmatmul.mubr.msk.bf16.vlgmr.msra.gmra.mxu0 %vm824_vm0, %v2418_v43  ;;  %2250 = vmatmul.mubr.msk.bf16.vlgmr.msra.gmra.mxu1 %vm824_vm0, %v2418_v43  ;;  %v2166_v56 = vcombine.high %v94_v50, %v110_v51  ;;  %v62_v58 = vld [vmem:[#allocation2 + $0x30] sm:$0xff]  ;;  %v176_v4 = vld [vmem:[#allocation2 + $0x3c0] sm:$0xff] }
  0x39   :  { %919 = vmatpush1.bf16.msra.mxu0 %v2221_v44  ;;  %960 = vmatpush1.bf16.msra.mxu1 %v2223_v45  ;;  %v127_v44 = vld [vmem:[#allocation2 + $0x238] sm:$0xff]  ;;  %v78_v59 = vld [vmem:[#allocation2 + $0xb0] sm:$0xff]  ;;  %v2234_v9 = vcombine.high %v160_v3, %v176_v4  ;;  %v128_v11 = vld [vmem:[#allocation2 + $0x240] sm:$0xff] }
  0x3a   :  { %920 = vmatprep.subr.bf16.mxu0 %v2190_v46  ;;  %961 = vmatprep.subr.bf16.mxu1 %v2192_v47  ;;  %v143_v45 = vld [vmem:[#allocation2 + $0x2b8] sm:$0xff]  ;;  %v2229_v46 = vcombine.low %v158_v33, %v174_v34  ;;  %v2231_v47 = vcombine.low %v159_v35, %v175_v36  ;;  %v2134_v1 = vcombine.high %v62_v58, %v78_v59  ;;  %v144_v12 = vld [vmem:[#allocation2 + $0x2c0] sm:$0xff]  ;;  %v162_v35 = vld [vmem:[#allocation2 + $0x350] sm:$0xff] }
  0x3b   :  { %942 = vmatprep.mubr.bf16.mxu0 %v2377_v0  ;;  %983 = vmatprep.mubr.bf16.mxu1 %v2377_v0  ;;  %v2200_v49 = vcombine.high %v127_v44, %v143_v45  ;;  %v2202_v17 = vcombine.high %v128_v11, %v144_v12  ;;  %v96_v19 = vld [vmem:[#allocation2 + $0x140] sm:$0xff]  ;;  %v178_v36 = vld [vmem:[#allocation2 + $0x3d0] sm:$0xff] }
  0x3c   :  { %v112_v20 = vld [vmem:[#allocation2 + $0x1c0] sm:$0xff] }
  0x3d   :  { %921 = vmatpush1.bf16.msra.mxu0 %v2189_v52  ;;  %962 = vmatpush1.bf16.msra.mxu1 %v2191_v53  ;;  %v95_v52 = vld [vmem:[#allocation2 + $0x138] sm:$0xff]  ;;  %v2170_v25 = vcombine.high %v96_v19, %v112_v20  ;;  %v64_v27 = vld [vmem:[#allocation2 + $0x40] sm:$0xff] }
  0x3e   :  { %922 = vmatprep.subr.bf16.mxu0 %v2158_v54  ;;  %963 = vmatprep.subr.bf16.mxu1 %v2160_v55  ;;  %v111_v53 = vld [vmem:[#allocation2 + $0x1b8] sm:$0xff]  ;;  %v2197_v54 = vcombine.low %v126_v41, %v142_v42  ;;  %v2199_v55 = vcombine.low %v127_v44, %v143_v45  ;;  %v80_v28 = vld [vmem:[#allocation2 + $0xc0] sm:$0xff]  ;;  %v2238_v41 = vcombine.high %v162_v35, %v178_v36  ;;  %v130_v44 = vld [vmem:[#allocation2 + $0x250] sm:$0xff] }
  0x3f   :  { %v2168_v57 = vcombine.high %v95_v52, %v111_v53  ;;  %v2138_v33 = vcombine.high %v64_v27, %v80_v28  ;;  %v146_v45 = vld [vmem:[#allocation2 + $0x2d0] sm:$0xff] }
  0x41   :  { %923 = vmatpush1.bf16.msra.mxu0 %v2157_v60  ;;  %964 = vmatpush1.bf16.msra.mxu1 %v2159_v61  ;;  %v63_v60 = vld [vmem:[#allocation2 + $0x38] sm:$0xff] }
  0x42   :  { %924 = vmatprep.subr.bf16.mxu0 %v2126_v62  ;;  %965 = vmatprep.subr.bf16.mxu1 %v2128_v63  ;;  %v79_v61 = vld [vmem:[#allocation2 + $0xb8] sm:$0xff]  ;;  %v2165_v62 = vcombine.low %v94_v50, %v110_v51  ;;  %v2167_v63 = vcombine.low %v95_v52, %v111_v53  ;;  %v2206_v50 = vcombine.high %v130_v44, %v146_v45  ;;  %v98_v52 = vld [vmem:[#allocation2 + $0x150] sm:$0xff] }
  0x43   :  { %v2136_v2 = vcombine.high %v63_v60, %v79_v61  ;;  %v114_v53 = vld [vmem:[#allocation2 + $0x1d0] sm:$0xff] }
  0x45   :  { %925 = vmatpush1.bf16.msra.mxu0 %v2125_v5  ;;  %966 = vmatpush1.bf16.msra.mxu1 %v2127_v6  ;;  %v161_v5 = vld [vmem:[#allocation2 + $0x348] sm:$0xff] }
  0x46   :  { %1000 = vmatprep.subr.bf16.mxu0 %v2226_v7  ;;  %1041 = vmatprep.subr.bf16.mxu1 %v2228_v8  ;;  %v177_v6 = vld [vmem:[#allocation2 + $0x3c8] sm:$0xff]  ;;  %v2133_v7 = vcombine.low %v62_v58, %v78_v59  ;;  %v2135_v8 = vcombine.low %v63_v60, %v79_v61  ;;  %v2174_v58 = vcombine.high %v98_v52, %v114_v53  ;;  %v66_v60 = vld [vmem:[#allocation2 + $0x50] sm:$0xff] }
  0x47   :  { %v2236_v10 = vcombine.high %v161_v5, %v177_v6  ;;  %v82_v61 = vld [vmem:[#allocation2 + $0xd0] sm:$0xff] }
  0x48   :  { %2251 = vmatmul.mubr.msk.bf16.vlgmr.msra.gmra.mxu0 %vm824_vm0, %v2418_v43  ;;  %2252 = vmatmul.mubr.msk.bf16.vlgmr.msra.gmra.mxu1 %vm824_vm0, %v2418_v43 }
  0x49   :  { %1001 = vmatpush1.bf16.msra.mxu0 %v2225_v13  ;;  %1042 = vmatpush1.bf16.msra.mxu1 %v2227_v14  ;;  %v129_v13 = vld [vmem:[#allocation2 + $0x248] sm:$0xff] }
  0x4a   :  { %1002 = vmatprep.subr.bf16.mxu0 %v2194_v15  ;;  %1043 = vmatprep.subr.bf16.mxu1 %v2196_v16  ;;  %v145_v14 = vld [vmem:[#allocation2 + $0x2c8] sm:$0xff]  ;;  %v2233_v15 = vcombine.low %v160_v3, %v176_v4  ;;  %v2235_v16 = vcombine.low %v161_v5, %v177_v6  ;;  %v2142_v3 = vcombine.high %v66_v60, %v82_v61  ;;  %v164_v5 = vld [vmem:[#allocation2 + $0x360] sm:$0xff] }
  0x4b   :  { %1024 = vmatprep.mubr.bf16.mxu0 %v2377_v0  ;;  %1065 = vmatprep.mubr.bf16.mxu1 %v2377_v0  ;;  %v2204_v18 = vcombine.high %v129_v13, %v145_v14  ;;  %v180_v6 = vld [vmem:[#allocation2 + $0x3e0] sm:$0xff] }
  0x4d   :  { %1003 = vmatpush1.bf16.msra.mxu0 %v2193_v21  ;;  %1044 = vmatpush1.bf16.msra.mxu1 %v2195_v22  ;;  %v97_v21 = vld [vmem:[#allocation2 + $0x148] sm:$0xff] }
  0x4e   :  { %1004 = vmatprep.subr.bf16.mxu0 %v2162_v23  ;;  %1045 = vmatprep.subr.bf16.mxu1 %v2164_v24  ;;  %v113_v22 = vld [vmem:[#allocation2 + $0x1c8] sm:$0xff]  ;;  %v2201_v23 = vcombine.low %v128_v11, %v144_v12  ;;  %v2203_v24 = vcombine.low %v129_v13, %v145_v14  ;;  %v2242_v11 = vcombine.high %v164_v5, %v180_v6  ;;  %v132_v13 = vld [vmem:[#allocation2 + $0x260] sm:$0xff] }
  0x4f   :  { %v2172_v26 = vcombine.high %v97_v21, %v113_v22  ;;  %v148_v14 = vld [vmem:[#allocation2 + $0x2e0] sm:$0xff] }
  0x51   :  { %1005 = vmatpush1.bf16.msra.mxu0 %v2161_v29  ;;  %1046 = vmatpush1.bf16.msra.mxu1 %v2163_v30  ;;  %v65_v29 = vld [vmem:[#allocation2 + $0x48] sm:$0xff] }
  0x52   :  { %1006 = vmatprep.subr.bf16.mxu0 %v2130_v31  ;;  %1047 = vmatprep.subr.bf16.mxu1 %v2132_v32  ;;  %v81_v30 = vld [vmem:[#allocation2 + $0xc8] sm:$0xff]  ;;  %v2169_v31 = vcombine.low %v96_v19, %v112_v20  ;;  %v2171_v32 = vcombine.low %v97_v21, %v113_v22  ;;  %v2210_v19 = vcombine.high %v132_v13, %v148_v14  ;;  %v100_v21 = vld [vmem:[#allocation2 + $0x160] sm:$0xff] }
  0x53   :  { %v2140_v34 = vcombine.high %v65_v29, %v81_v30  ;;  %v116_v22 = vld [vmem:[#allocation2 + $0x1e0] sm:$0xff] }
  0x55   :  { %1007 = vmatpush1.bf16.msra.mxu0 %v2129_v37  ;;  %1048 = vmatpush1.bf16.msra.mxu1 %v2131_v38  ;;  %v163_v37 = vld [vmem:[#allocation2 + $0x358] sm:$0xff] }
  0x56   :  { %1082 = vmatprep.subr.bf16.mxu0 %v2230_v39  ;;  %1123 = vmatprep.subr.bf16.mxu1 %v2232_v40  ;;  %v179_v38 = vld [vmem:[#allocation2 + $0x3d8] sm:$0xff]  ;;  %v2137_v39 = vcombine.low %v64_v27, %v80_v28  ;;  %v2139_v40 = vcombine.low %v65_v29, %v81_v30  ;;  %v2178_v27 = vcombine.high %v100_v21, %v116_v22  ;;  %v68_v29 = vld [vmem:[#allocation2 + $0x60] sm:$0xff] }
  0x57   :  { %v2240_v42 = vcombine.high %v163_v37, %v179_v38  ;;  %v84_v30 = vld [vmem:[#allocation2 + $0xe0] sm:$0xff] }
  0x58   :  { %2253 = vmatmul.mubr.msk.bf16.vlgmr.msra.gmra.mxu0 %vm824_vm0, %v2418_v43  ;;  %2254 = vmatmul.mubr.msk.bf16.vlgmr.msra.gmra.mxu1 %vm824_vm0, %v2418_v43 }
  0x59   :  { %1083 = vmatpush1.bf16.msra.mxu0 %v2229_v46  ;;  %1124 = vmatpush1.bf16.msra.mxu1 %v2231_v47  ;;  %v131_v46 = vld [vmem:[#allocation2 + $0x258] sm:$0xff] }
  0x5a   :  { %1084 = vmatprep.subr.bf16.mxu0 %v2198_v48  ;;  %1125 = vmatprep.subr.bf16.mxu1 %v2200_v49  ;;  %v147_v47 = vld [vmem:[#allocation2 + $0x2d8] sm:$0xff]  ;;  %v2237_v48 = vcombine.low %v162_v35, %v178_v36  ;;  %v2239_v49 = vcombine.low %v163_v37, %v179_v38  ;;  %v2146_v35 = vcombine.high %v68_v29, %v84_v30  ;;  %v166_v37 = vld [vmem:[#allocation2 + $0x370] sm:$0xff] }
  0x5b   :  { %1106 = vmatprep.mubr.bf16.mxu0 %v2377_v0  ;;  %1147 = vmatprep.mubr.bf16.mxu1 %v2377_v0  ;;  %v2208_v51 = vcombine.high %v131_v46, %v147_v47  ;;  %v182_v38 = vld [vmem:[#allocation2 + $0x3f0] sm:$0xff] }
  0x5d   :  { %1085 = vmatpush1.bf16.msra.mxu0 %v2197_v54  ;;  %1126 = vmatpush1.bf16.msra.mxu1 %v2199_v55  ;;  %v99_v54 = vld [vmem:[#allocation2 + $0x158] sm:$0xff] }
  0x5e   :  { %1086 = vmatprep.subr.bf16.mxu0 %v2166_v56  ;;  %1127 = vmatprep.subr.bf16.mxu1 %v2168_v57  ;;  %v115_v55 = vld [vmem:[#allocation2 + $0x1d8] sm:$0xff]  ;;  %v2205_v56 = vcombine.low %v130_v44, %v146_v45  ;;  %v2207_v57 = vcombine.low %v131_v46, %v147_v47  ;;  %v2246_v44 = vcombine.high %v166_v37, %v182_v38  ;;  %v134_v46 = vld [vmem:[#allocation2 + $0x270] sm:$0xff] }
  0x5f   :  { %v2176_v59 = vcombine.high %v99_v54, %v115_v55  ;;  %v150_v47 = vld [vmem:[#allocation2 + $0x2f0] sm:$0xff] }
  0x61   :  { %1087 = vmatpush1.bf16.msra.mxu0 %v2165_v62  ;;  %1128 = vmatpush1.bf16.msra.mxu1 %v2167_v63  ;;  %v67_v62 = vld [vmem:[#allocation2 + $0x58] sm:$0xff] }
  0x62   :  { %1088 = vmatprep.subr.bf16.mxu0 %v2134_v1  ;;  %1129 = vmatprep.subr.bf16.mxu1 %v2136_v2  ;;  %v83_v63 = vld [vmem:[#allocation2 + $0xd8] sm:$0xff]  ;;  %v2173_v1 = vcombine.low %v98_v52, %v114_v53  ;;  %v2175_v2 = vcombine.low %v99_v54, %v115_v55  ;;  %v2214_v52 = vcombine.high %v134_v46, %v150_v47  ;;  %v102_v54 = vld [vmem:[#allocation2 + $0x170] sm:$0xff] }
  0x63   :  { %v2144_v4 = vcombine.high %v67_v62, %v83_v63  ;;  %v118_v55 = vld [vmem:[#allocation2 + $0x1f0] sm:$0xff] }
  0x65   :  { %1089 = vmatpush1.bf16.msra.mxu0 %v2133_v7  ;;  %1130 = vmatpush1.bf16.msra.mxu1 %v2135_v8  ;;  %v165_v7 = vld [vmem:[#allocation2 + $0x368] sm:$0xff] }
  0x66   :  { %1164 = vmatprep.subr.bf16.mxu0 %v2234_v9  ;;  %1205 = vmatprep.subr.bf16.mxu1 %v2236_v10  ;;  %v181_v8 = vld [vmem:[#allocation2 + $0x3e8] sm:$0xff]  ;;  %v2141_v9 = vcombine.low %v66_v60, %v82_v61  ;;  %v2143_v10 = vcombine.low %v67_v62, %v83_v63  ;;  %v2182_v60 = vcombine.high %v102_v54, %v118_v55  ;;  %v70_v62 = vld [vmem:[#allocation2 + $0x70] sm:$0xff] }
  0x67   :  { %v2244_v12 = vcombine.high %v165_v7, %v181_v8  ;;  %v86_v63 = vld [vmem:[#allocation2 + $0xf0] sm:$0xff] }
  0x68   :  { %2255 = vmatmul.mubr.msk.bf16.vlgmr.msra.gmra.mxu0 %vm824_vm0, %v2418_v43  ;;  %2256 = vmatmul.mubr.msk.bf16.vlgmr.msra.gmra.mxu1 %vm824_vm0, %v2418_v43 }
  0x69   :  { %1165 = vmatpush1.bf16.msra.mxu0 %v2233_v15  ;;  %1206 = vmatpush1.bf16.msra.mxu1 %v2235_v16  ;;  %v133_v15 = vld [vmem:[#allocation2 + $0x268] sm:$0xff] }
  0x6a   :  { %1166 = vmatprep.subr.bf16.mxu0 %v2202_v17  ;;  %1207 = vmatprep.subr.bf16.mxu1 %v2204_v18  ;;  %v149_v16 = vld [vmem:[#allocation2 + $0x2e8] sm:$0xff]  ;;  %v2241_v17 = vcombine.low %v164_v5, %v180_v6  ;;  %v2243_v18 = vcombine.low %v165_v7, %v181_v8  ;;  %v2150_v5 = vcombine.high %v70_v62, %v86_v63 }
  0x6b   :  { %1188 = vmatprep.mubr.bf16.mxu0 %v2377_v0  ;;  %1229 = vmatprep.mubr.bf16.mxu1 %v2377_v0  ;;  %v2212_v20 = vcombine.high %v133_v15, %v149_v16  ;;  %v2149_v7 = vcombine.low %v70_v62, %v86_v63 }
  0x6d   :  { %1167 = vmatpush1.bf16.msra.mxu0 %v2201_v23  ;;  %1208 = vmatpush1.bf16.msra.mxu1 %v2203_v24  ;;  %v101_v23 = vld [vmem:[#allocation2 + $0x168] sm:$0xff] }
  0x6e   :  { %1168 = vmatprep.subr.bf16.mxu0 %v2170_v25  ;;  %1209 = vmatprep.subr.bf16.mxu1 %v2172_v26  ;;  %v117_v24 = vld [vmem:[#allocation2 + $0x1e8] sm:$0xff]  ;;  %v2209_v25 = vcombine.low %v132_v13, %v148_v14  ;;  %v2211_v26 = vcombine.low %v133_v15, %v149_v16 }
  0x6f   :  { %v2180_v28 = vcombine.high %v101_v23, %v117_v24 }
  0x71   :  { %1169 = vmatpush1.bf16.msra.mxu0 %v2169_v31  ;;  %1210 = vmatpush1.bf16.msra.mxu1 %v2171_v32  ;;  %v69_v31 = vld [vmem:[#allocation2 + $0x68] sm:$0xff] }
  0x72   :  { %1170 = vmatprep.subr.bf16.mxu0 %v2138_v33  ;;  %1211 = vmatprep.subr.bf16.mxu1 %v2140_v34  ;;  %v85_v32 = vld [vmem:[#allocation2 + $0xe8] sm:$0xff]  ;;  %v2177_v33 = vcombine.low %v100_v21, %v116_v22  ;;  %v2179_v34 = vcombine.low %v101_v23, %v117_v24 }
  0x73   :  { %v2148_v36 = vcombine.high %v69_v31, %v85_v32 }
  0x75   :  { %1171 = vmatpush1.bf16.msra.mxu0 %v2137_v39  ;;  %1212 = vmatpush1.bf16.msra.mxu1 %v2139_v40  ;;  %v167_v39 = vld [vmem:[#allocation2 + $0x378] sm:$0xff] }
  0x76   :  { %1246 = vmatprep.subr.bf16.mxu0 %v2238_v41  ;;  %1287 = vmatprep.subr.bf16.mxu1 %v2240_v42  ;;  %v183_v40 = vld [vmem:[#allocation2 + $0x3f8] sm:$0xff]  ;;  %v2145_v41 = vcombine.low %v68_v29, %v84_v30  ;;  %v2147_v42 = vcombine.low %v69_v31, %v85_v32 }
  0x77   :  { %v2248_v45 = vcombine.high %v167_v39, %v183_v40 }
  0x78   :  { %2257 = vmatmul.mubr.msk.bf16.vlgmr.msra.gmra.mxu0 %vm824_vm0, %v2418_v43  ;;  %2258 = vmatmul.mubr.msk.bf16.vlgmr.msra.gmra.mxu1 %vm824_vm0, %v2418_v43 }
  0x79   :  { %1247 = vmatpush1.bf16.msra.mxu0 %v2237_v48  ;;  %1288 = vmatpush1.bf16.msra.mxu1 %v2239_v49  ;;  %v135_v48 = vld [vmem:[#allocation2 + $0x278] sm:$0xff] }
  0x7a   :  { %1248 = vmatprep.subr.bf16.mxu0 %v2206_v50  ;;  %1289 = vmatprep.subr.bf16.mxu1 %v2208_v51  ;;  %v151_v49 = vld [vmem:[#allocation2 + $0x2f8] sm:$0xff]  ;;  %v2245_v50 = vcombine.low %v166_v37, %v182_v38  ;;  %v2247_v51 = vcombine.low %v167_v39, %v183_v40 }
  0x7b   :  { %1270 = vmatprep.mubr.bf16.mxu0 %v2377_v0  ;;  %1311 = vmatprep.mubr.bf16.mxu1 %v2377_v0  ;;  %v2216_v53 = vcombine.high %v135_v48, %v151_v49 }
  0x7d   :  { %1249 = vmatpush1.bf16.msra.mxu0 %v2205_v56  ;;  %1290 = vmatpush1.bf16.msra.mxu1 %v2207_v57  ;;  %v103_v56 = vld [vmem:[#allocation2 + $0x178] sm:$0xff] }
  0x7e   :  { %1250 = vmatprep.subr.bf16.mxu0 %v2174_v58  ;;  %1291 = vmatprep.subr.bf16.mxu1 %v2176_v59  ;;  %v119_v57 = vld [vmem:[#allocation2 + $0x1f8] sm:$0xff]  ;;  %v2213_v58 = vcombine.low %v134_v46, %v150_v47  ;;  %v2215_v59 = vcombine.low %v135_v48, %v151_v49 }
  0x7f   :  { %v2184_v61 = vcombine.high %v103_v56, %v119_v57 }
  0x81   :  { %1251 = vmatpush1.bf16.msra.mxu0 %v2173_v1  ;;  %1292 = vmatpush1.bf16.msra.mxu1 %v2175_v2  ;;  %v71_v1 = vld [vmem:[#allocation2 + $0x78] sm:$0xff] }
  0x82   :  { %1252 = vmatprep.subr.bf16.mxu0 %v2142_v3  ;;  %1293 = vmatprep.subr.bf16.mxu1 %v2144_v4  ;;  %v87_v2 = vld [vmem:[#allocation2 + $0xf8] sm:$0xff]  ;;  %v2181_v3 = vcombine.low %v102_v54, %v118_v55  ;;  %v2183_v4 = vcombine.low %v103_v56, %v119_v57 }
  0x83   :  { %v2152_v6 = vcombine.high %v71_v1, %v87_v2  ;;  %v2151_v8 = vcombine.low %v71_v1, %v87_v2 }
  0x85   :  { %1253 = vmatpush1.bf16.msra.mxu0 %v2141_v9  ;;  %1294 = vmatpush1.bf16.msra.mxu1 %v2143_v10 }
  0x86   :  { %1328 = vmatprep.subr.bf16.mxu0 %v2242_v11  ;;  %1369 = vmatprep.subr.bf16.mxu1 %v2244_v12 }
  0x88   :  { %2259 = vmatmul.mubr.msk.bf16.vlgmr.msra.gmra.mxu0 %vm824_vm0, %v2418_v43  ;;  %2260 = vmatmul.mubr.msk.bf16.vlgmr.msra.gmra.mxu1 %vm824_vm0, %v2418_v43 }
  0x89   :  { %1329 = vmatpush1.bf16.msra.mxu0 %v2241_v17  ;;  %1370 = vmatpush1.bf16.msra.mxu1 %v2243_v18 }
  0x8a   :  { %1330 = vmatprep.subr.bf16.mxu0 %v2210_v19  ;;  %1371 = vmatprep.subr.bf16.mxu1 %v2212_v20 }
  0x8b   :  { %1352 = vmatprep.mubr.bf16.mxu0 %v2377_v0  ;;  %1393 = vmatprep.mubr.bf16.mxu1 %v2377_v0 }
  0x8d   :  { %1331 = vmatpush1.bf16.msra.mxu0 %v2209_v25  ;;  %1372 = vmatpush1.bf16.msra.mxu1 %v2211_v26 }
  0x8e   :  { %1332 = vmatprep.subr.bf16.mxu0 %v2178_v27  ;;  %1373 = vmatprep.subr.bf16.mxu1 %v2180_v28 }
  0x91   :  { %1333 = vmatpush1.bf16.msra.mxu0 %v2177_v33  ;;  %1374 = vmatpush1.bf16.msra.mxu1 %v2179_v34 }
  0x92   :  { %1334 = vmatprep.subr.bf16.mxu0 %v2146_v35  ;;  %1375 = vmatprep.subr.bf16.mxu1 %v2148_v36 }
  0x95   :  { %1335 = vmatpush1.bf16.msra.mxu0 %v2145_v41  ;;  %1376 = vmatpush1.bf16.msra.mxu1 %v2147_v42 }
  0x96   :  { %1410 = vmatprep.subr.bf16.mxu0 %v2246_v44  ;;  %1451 = vmatprep.subr.bf16.mxu1 %v2248_v45 }
  0x98   :  { %2261 = vmatmul.mubr.msk.bf16.vlgmr.msra.gmra.mxu0 %vm824_vm0, %v2418_v43  ;;  %2262 = vmatmul.mubr.msk.bf16.vlgmr.msra.gmra.mxu1 %vm824_vm0, %v2418_v43 }
  0x99   :  { %1411 = vmatpush1.bf16.msra.mxu0 %v2245_v50  ;;  %1452 = vmatpush1.bf16.msra.mxu1 %v2247_v51 }
  0x9a   :  { %1412 = vmatprep.subr.bf16.mxu0 %v2214_v52  ;;  %1453 = vmatprep.subr.bf16.mxu1 %v2216_v53 }
  0x9b   :  { %1434 = vmatprep.mubr.bf16.mxu0 %v2377_v0  ;;  %1475 = vmatprep.mubr.bf16.mxu1 %v2377_v0 }
  0x9d   :  { %1413 = vmatpush1.bf16.msra.mxu0 %v2213_v58  ;;  %1454 = vmatpush1.bf16.msra.mxu1 %v2215_v59 }
  0x9e   :  { %1414 = vmatprep.subr.bf16.mxu0 %v2182_v60  ;;  %1455 = vmatprep.subr.bf16.mxu1 %v2184_v61 }
  0xa1   :  { %1415 = vmatpush1.bf16.msra.mxu0 %v2181_v3  ;;  %1456 = vmatpush1.bf16.msra.mxu1 %v2183_v4 }
  0xa2   :  { %1416 = vmatprep.subr.bf16.mxu0 %v2150_v5  ;;  %1457 = vmatprep.subr.bf16.mxu1 %v2152_v6 }
  0xa5   :  { %1417 = vmatpush1.bf16.msra.mxu0 %v2149_v7  ;;  %1458 = vmatpush1.bf16.msra.mxu1 %v2151_v8 }
  0xa8   :  { %2263 = vmatmul.mubr.msk.bf16.vlgmr.msra.gmra.mxu0 %vm824_vm0, %v2418_v43  ;;  %2264 = vmatmul.mubr.msk.bf16.vlgmr.msra.gmra.mxu1 %vm824_vm0, %v2418_v43 }
  0xf8   :  { %v2466_v0 = vpop.f32.mrf.mxu0  ;;  %v2468_v9 = vpop.f32.mrf.mxu1 }
  0xf9   :  { %v1484_v48 = vmul.f32 %v2466_v0, %v2466_v0  ;;  %v1488_v49 = vmul.f32 %v2468_v9, %v2468_v9  ;;  %v1486_v52 = vadd.f32 %v2468_v9, %v2466_v0 }
  0xfa   :  { %v2470_v10 = vpop.f32.mrf.mxu0  ;;  %v2472_v11 = vpop.f32.mrf.mxu1 }
  0xfb   :  { %v1485_v50 = vmul.f32 %v2470_v10, %v2470_v10  ;;  %v1489_v51 = vmul.f32 %v2472_v11, %v2472_v11  ;;  %v1490_v55 = vadd.f32 %v1488_v49, %v1484_v48  ;;  %v1487_v56 = vadd.f32 %v2472_v11, %v2470_v10 }
  0xfc   :  { %v866_v12 = vpop.f32.mrf.mxu0  ;;  %v907_v13 = vpop.f32.mrf.mxu1 }
  0xfd   :  { %v1491_v58 = vadd.f32 %v1489_v51, %v1485_v50 }
  0xfe   :  { %v867_v14 = vpop.f32.mrf.mxu0  ;;  %v908_v15 = vpop.f32.mrf.mxu1 }
 0x108   :  { %v2474_v16 = vpop.f32.mrf.mxu0  ;;  %v2476_v17 = vpop.f32.mrf.mxu1 }
 0x109   :  { %v1494_v53 = vmul.f32 %v2474_v16, %v2474_v16  ;;  %v1492_v57 = vadd.f32 %v1486_v52, %v2474_v16  ;;  %v1500_v60 = vmul.f32 %v2476_v17, %v2476_v17 }
 0x10a   :  { %v2478_v18 = vpop.f32.mrf.mxu0  ;;  %v2480_v19 = vpop.f32.mrf.mxu1 }
 0x10b   :  { %v1495_v54 = vmul.f32 %v2478_v18, %v2478_v18  ;;  %v1496_v59 = vadd.f32 %v1494_v53, %v1490_v55  ;;  %v1493_v61 = vadd.f32 %v1487_v56, %v2478_v18  ;;  %v1501_v63 = vmul.f32 %v2480_v19, %v2480_v19 }
 0x10c   :  { %v948_v43 = vpop.f32.mrf.mxu0  ;;  %v989_v20 = vpop.f32.mrf.mxu1  ;;  %v1498_v2 = vadd.f32 %v1492_v57, %v2476_v17 }
 0x10d   :  { %v1497_v62 = vadd.f32 %v1495_v54, %v1491_v58  ;;  %v1502_v7 = vadd.f32 %v1500_v60, %v1496_v59  ;;  %v1499_v8 = vadd.f32 %v1493_v61, %v2480_v19 }
 0x10e   :  { %v949_v21 = vpop.f32.mrf.mxu0  ;;  %v990_v22 = vpop.f32.mrf.mxu1 }
 0x10f   :  { %v1503_v14 = vadd.f32 %v1501_v63, %v1497_v62 }
 0x118   :  { %v2482_v23 = vpop.f32.mrf.mxu0  ;;  %v2484_v24 = vpop.f32.mrf.mxu1 }
 0x119   :  { %v1506_v3 = vmul.f32 %v2482_v23, %v2482_v23  ;;  %v1504_v12 = vadd.f32 %v1498_v2, %v2482_v23  ;;  %v1512_v20 = vmul.f32 %v2484_v24, %v2484_v24 }
 0x11a   :  { %v2486_v25 = vpop.f32.mrf.mxu0  ;;  %v2488_v26 = vpop.f32.mrf.mxu1 }
 0x11b   :  { %v1507_v5 = vmul.f32 %v2486_v25, %v2486_v25  ;;  %v1508_v43 = vadd.f32 %v1506_v3, %v1502_v7  ;;  %v1505_v21 = vadd.f32 %v1499_v8, %v2486_v25 }
 0x11c   :  { %v1030_v27 = vpop.f32.mrf.mxu0  ;;  %v1071_v28 = vpop.f32.mrf.mxu1 }
 0x11d   :  { %v1509_v27 = vadd.f32 %v1507_v5, %v1503_v14  ;;  %v1513_v28 = vmul.f32 %v2488_v26, %v2488_v26 }
 0x11e   :  { %v1031_v29 = vpop.f32.mrf.mxu0  ;;  %v1072_v30 = vpop.f32.mrf.mxu1 }
 0x11f   :  { %v1510_v30 = vadd.f32 %v1504_v12, %v2484_v24 }
 0x128   :  { %v2490_v31 = vpop.f32.mrf.mxu0  ;;  %v2492_v32 = vpop.f32.mrf.mxu1 }
 0x129   :  { %v1524_v48 = vmul.f32 %v2492_v32, %v2492_v32 }
 0x12a   :  { %v2494_v33 = vpop.f32.mrf.mxu0  ;;  %v2496_v34 = vpop.f32.mrf.mxu1 }
 0x12b   :  { %v1525_v51 = vmul.f32 %v2496_v34, %v2496_v34 }
 0x12c   :  { %v1112_v35 = vpop.f32.mrf.mxu0  ;;  %v1153_v36 = vpop.f32.mrf.mxu1 }
 0x12d   :  { %v1518_v35 = vmul.f32 %v2490_v31, %v2490_v31 }
 0x12e   :  { %v1113_v37 = vpop.f32.mrf.mxu0  ;;  %v1154_v38 = vpop.f32.mrf.mxu1 }
 0x12f   :  { %v1519_v37 = vmul.f32 %v2494_v33, %v2494_v33  ;;  %v1514_v38 = vadd.f32 %v1512_v20, %v1508_v43 }
 0x138   :  { %v2498_v39 = vpop.f32.mrf.mxu0  ;;  %v2500_v40 = vpop.f32.mrf.mxu1 }
 0x139   :  { %v1530_v53 = vmul.f32 %v2498_v39, %v2498_v39  ;;  %v1536_v61 = vmul.f32 %v2500_v40, %v2500_v40 }
 0x13a   :  { %v2502_v41 = vpop.f32.mrf.mxu0  ;;  %v2504_v42 = vpop.f32.mrf.mxu1 }
 0x13b   :  { %v1531_v54 = vmul.f32 %v2502_v41, %v2502_v41  ;;  %v1537_v3 = vmul.f32 %v2504_v42, %v2504_v42 }
 0x13c   :  { %v1194_v44 = vpop.f32.mrf.mxu0  ;;  %v1235_v45 = vpop.f32.mrf.mxu1 }
 0x13d   :  { %v1511_v44 = vadd.f32 %v1505_v21, %v2488_v26  ;;  %v1516_v45 = vadd.f32 %v1510_v30, %v2490_v31 }
 0x13e   :  { %v1195_v46 = vpop.f32.mrf.mxu0  ;;  %v1236_v47 = vpop.f32.mrf.mxu1 }
 0x13f   :  { %v1515_v46 = vadd.f32 %v1513_v28, %v1509_v27  ;;  %v1520_v47 = vadd.f32 %v1518_v35, %v1514_v38  ;;  %v1517_v49 = vadd.f32 %v1511_v44, %v2494_v33  ;;  %v1522_v52 = vadd.f32 %v1516_v45, %v2492_v32 }
 0x141   :  { %v1521_v50 = vadd.f32 %v1519_v37, %v1515_v46  ;;  %v1526_v55 = vadd.f32 %v1524_v48, %v1520_v47  ;;  %v1523_v56 = vadd.f32 %v1517_v49, %v2496_v34  ;;  %v1528_v57 = vadd.f32 %v1522_v52, %v2498_v39 }
 0x143   :  { %v1527_v58 = vadd.f32 %v1525_v51, %v1521_v50  ;;  %v1532_v60 = vadd.f32 %v1530_v53, %v1526_v55  ;;  %v1529_v62 = vadd.f32 %v1523_v56, %v2502_v41  ;;  %v1534_v7 = vadd.f32 %v1528_v57, %v2500_v40 }
 0x145   :  { %v1533_v2 = vadd.f32 %v1531_v54, %v1527_v58  ;;  %v1538_v43 = vadd.f32 %v1536_v61, %v1532_v60  ;;  %v1535_v20 = vadd.f32 %v1529_v62, %v2504_v42 }
 0x147   :  { %v1539_v27 = vadd.f32 %v1537_v3, %v1533_v2 }
 0x148   :  { %v2528_v1 = vpop.f32.mrf.mxu0  ;;  %v2533_v4 = vpop.f32.mrf.mxu1 }
 0x149   :  { %v1542_v8 = vmul.f32 %v2528_v1, %v2528_v1  ;;  %v1540_v21 = vadd.f32 %v1534_v7, %v2528_v1  ;;  %v1548_v30 = vmul.f32 %v2533_v4, %v2533_v4 }
 0x14a   :  { %v2537_v6 = vpop.f32.mrf.mxu0  ;;  %v2541_v13 = vpop.f32.mrf.mxu1 }
 0x14b   :  { %v1543_v14 = vmul.f32 %v2537_v6, %v2537_v6  ;;  %v1541_v35 = vadd.f32 %v1535_v20, %v2537_v6  ;;  %v1549_v38 = vmul.f32 %v2541_v13, %v2541_v13  ;;  %v1546_v44 = vadd.f32 %v1540_v21, %v2533_v4 }
 0x14c   :  { %v1276_v15 = vpop.f32.mrf.mxu0  ;;  %v1317_v22 = vpop.f32.mrf.mxu1 }
 0x14d   :  { %v1545_v37 = vadd.f32 %v1543_v14, %v1539_v27  ;;  %v1547_v48 = vadd.f32 %v1541_v35, %v2541_v13 }
 0x14e   :  { %v1277_v29 = vpop.f32.mrf.mxu0  ;;  %v1318_v36 = vpop.f32.mrf.mxu1 }
 0x14f   :  { %v1544_v29 = vadd.f32 %v1542_v8, %v1538_v43  ;;  %v1551_v50 = vadd.f32 %v1549_v38, %v1545_v37 }
 0x151   :  { %v1550_v47 = vadd.f32 %v1548_v30, %v1544_v29 }
 0x158   :  { %v2567_v59 = vpop.f32.mrf.mxu0  ;;  %v2572_v63 = vpop.f32.mrf.mxu1 }
 0x159   :  { %v1554_v45 = vmul.f32 %v2567_v59, %v2567_v59  ;;  %v1552_v49 = vadd.f32 %v1546_v44, %v2567_v59  ;;  %v1560_v52 = vmul.f32 %v2572_v63, %v2572_v63 }
 0x15a   :  { %v2576_v5 = vpop.f32.mrf.mxu0  ;;  %v2581_v12 = vpop.f32.mrf.mxu1 }
 0x15b   :  { %v1555_v46 = vmul.f32 %v2576_v5, %v2576_v5  ;;  %v1556_v51 = vadd.f32 %v1554_v45, %v1550_v47  ;;  %v1553_v53 = vadd.f32 %v1547_v48, %v2576_v5  ;;  %v1561_v55 = vmul.f32 %v2581_v12, %v2581_v12 }
 0x15c   :  { %v1358_v15 = vpop.f32.mrf.mxu0  ;;  %v1399_v22 = vpop.f32.mrf.mxu1  ;;  %v1558_v56 = vadd.f32 %v1552_v49, %v2572_v63 }
 0x15d   :  { %v1557_v54 = vadd.f32 %v1555_v46, %v1551_v50  ;;  %v1562_v58 = vadd.f32 %v1560_v52, %v1556_v51  ;;  %v1559_v60 = vadd.f32 %v1553_v53, %v2581_v12 }
 0x15e   :  { %v1359_v28 = vpop.f32.mrf.mxu0  ;;  %v1400_v36 = vpop.f32.mrf.mxu1 }
 0x15f   :  { %v1563_v3 = vadd.f32 %v1561_v55, %v1557_v54 }
 0x168   :  { %v2605_v57 = vpop.f32.mrf.mxu0  ;;  %v2611_v2 = vpop.f32.mrf.mxu1 }
 0x169   :  { %v1564_v61 = vadd.f32 %v1558_v56, %v2605_v57  ;;  %v1566_v62 = vmul.f32 %v2605_v57, %v2605_v57  ;;  %v1572_v7 = vmul.f32 %v2611_v2, %v2611_v2 }
 0x16a   :  { %v2615_v8 = vpop.f32.mrf.mxu0  ;;  %v2621_v21 = vpop.f32.mrf.mxu1 }
 0x16b   :  { %v1568_v14 = vadd.f32 %v1566_v62, %v1562_v58  ;;  %v1570_v15 = vadd.f32 %v1564_v61, %v2611_v2  ;;  %v1565_v43 = vadd.f32 %v1559_v60, %v2615_v8  ;;  %v1567_v20 = vmul.f32 %v2615_v8, %v2615_v8 }
 0x16c   :  { %v1573_v22 = vmul.f32 %v2621_v21, %v2621_v21  ;;  %v1440_v27 = vpop.f32.mrf.mxu0  ;;  %v1481_v36 = vpop.f32.mrf.mxu1 }
 0x16d   :  { %v1574_v28 = vadd.f32 %v1572_v7, %v1568_v14  ;;  %v1577_v29 = vsel %vm1576_vm1, %v1570_v15, 0.0  ;;  %v1569_v30 = vadd.f32 %v1567_v20, %v1563_v3  ;;  %v1571_v35 = vadd.f32 %v1565_v43, %v2621_v21 }
 0x16e   :  { %v1578_v37 = vrot.slane %v1577_v29, 4  ;;  %v1441_v38 = vpop.f32.mrf.mxu0  ;;  %v1482_v47 = vpop.f32.mrf.mxu1 }
 0x16f   :  { %v1593_v44 = vsel %vm1576_vm1, %v1574_v28, 0.0  ;;  %v1575_v45 = vadd.f32 %v1573_v22, %v1569_v30  ;;  %v1584_v46 = vsel %vm1576_vm1, %v1571_v35, 0.0 }
 0x170   :  { %v1579_v48 = vadd.f32 %v1578_v37, %v1577_v29  ;;  %v1594_v49 = vrot.slane %v1593_v44, 4  ;;  %v1585_v50 = vrot.slane %v1584_v46, 4 }
 0x171   :  { %v1600_v51 = vsel %vm1576_vm1, %v1575_v45, 0.0 }
 0x172   :  { %v1580_v52 = vrot.slane %v1579_v48, 2  ;;  %v1595_v53 = vadd.f32 %v1594_v49, %v1593_v44  ;;  %v1586_v54 = vadd.f32 %v1585_v50, %v1584_v46  ;;  %v1601_v55 = vrot.slane %v1600_v51, 4 }
 0x174   :  { %v1581_v56 = vadd.f32 %v1580_v52, %v1579_v48  ;;  %v1596_v58 = vrot.slane %v1595_v53, 2  ;;  %v1587_v60 = vrot.slane %v1586_v54, 2  ;;  %v1602_v61 = vadd.f32 %v1601_v55, %v1600_v51 }
 0x175   :  { %v2378_v52 = vmov 1966171168  }
 0x176   :  { %v1582_v62 = vrot.slane %v1581_v56, 1  ;;  %v1597_v3 = vadd.f32 %v1596_v58, %v1595_v53  ;;  %v1588_v7 = vadd.f32 %v1587_v60, %v1586_v54  ;;  %v1603_v14 = vrot.slane %v1602_v61, 2 }
 0x177   :  { %v1624_v53 = vunpack.c.l.s4 %v2378_v52  ;;  %v1626_v54 = vlaneseq }
 0x178   :  { %v1583_v15 = vadd.f32 %v1582_v62, %v1581_v56  ;;  %v1598_v43 = vrot.slane %v1597_v3, 1  ;;  %v1589_v20 = vrot.slane %v1588_v7, 1  ;;  %v1604_v22 = vadd.f32 %v1603_v14, %v1602_v61 }
 0x179   :  { %v1625_v55 = vunpack.c.0.s8 %v1624_v53  ;;  %v1627_v56 = vshrl.u32 %v1626_v54, 7 }
 0x17a   :  { %v1591_v27 = vmul.f32 0.03125, %v1583_v15  ;;  %v1599_v28 = vadd.f32 %v1598_v43, %v1597_v3  ;;  %v1590_v29 = vadd.f32 %v1589_v20, %v1588_v7  ;;  %v1605_v30 = vrot.slane %v1604_v22, 1  ;;  %v1615_v7 = vld [vmem:[#allocation4] sm:$0x3] }
 0x17b   :  { %v2630_v60 = vsub.s32 %v1625_v55, %v1627_v56  ;;  %v1643_v15 = vsub.s32 0, %v1627_v56  ;;  %v1647_v43 = vsub.s32 1, %v1627_v56 }
 0x17c   :  { %v1607_v35 = vmul.f32 0.03125, %v1599_v28  ;;  %v1609_v36 = vmul.f32 %v1591_v27, %v1591_v27  ;;  %v1592_v37 = vmul.f32 0.03125, %v1590_v29  ;;  %v1606_v38 = vadd.f32 %v1605_v30, %v1604_v22 }
 0x17e   :  { %v1611_v44 = vsub.f32 %v1607_v35, %v1609_v36  ;;  %v1608_v45 = vmul.f32 0.03125, %v1606_v38  ;;  %v1610_v46 = vmul.f32 %v1592_v37, %v1592_v37 }
 0x180   :  { %v1613_v47 = vmax.f32 %v1611_v44, 0.0  ;;  %v1612_v48 = vsub.f32 %v1608_v45, %v1610_v46 }
 0x182   :  { %v1616_v49 = vadd.f32 1e-05, %v1613_v47  ;;  %v1614_v50 = vmax.f32 %v1612_v48, 0.0 }
 0x184   :  { %v1617_v51 = vadd.f32 1e-05, %v1614_v50  ;;  %2304 = vrsqrt.f32 %v1616_v49 }
 0x186   :  { %2306 = vrsqrt.f32 %v1617_v51 }
 0x191   :  { %v2305_v58 = vpop.eup %2304 }
 0x193   :  { %v2307_v61 = vpop.eup %2306 }
 0x194   :  { %v1622_v62 = vcombine.low %v2305_v58, %v2307_v61 }
 0x196   :  { %v1629_v3 = vrot.slane %v1622_v62, %v2630_v60 }
 0x198   :  { %v1636_v14 = vrot.slane %v1629_v3, %v2630_v60 }
 0x19a   :  { %v1638_v20 = vmul.f32 %v1636_v14, %v1615_v7 }
 0x19c   :  { %v1644_v22 = vrot.slane %v1638_v20, %v1643_v15  ;;  %v1648_v28 = vrot.slane %v1638_v20, %v1647_v43 }
 0x19e   :  { %v1651_v29 = vmul.f32 %v1644_v22, %v1591_v27  ;;  %v1652_v30 = vmul.f32 %v1648_v28, %v1592_v37  ;;  %v1672_v36 = vmul.f32 %v1644_v22, %v2466_v0  ;;  %v1673_v38 = vmul.f32 %v1648_v28, %v2470_v10  ;;  %v1639_v37 = vld [vmem:[#allocation6] sm:$0x3] }
 0x19f   :  { %v1710_v44 = vmul.f32 %v1644_v22, %v2468_v9  ;;  %v1711_v45 = vmul.f32 %v1648_v28, %v2472_v11  ;;  %v1737_v46 = vmul.f32 %v1644_v22, %v2474_v16  ;;  %v1738_v48 = vmul.f32 %v1648_v28, %v2478_v18 }
 0x1a0   :  { %v1655_v35 = vcombine.low %v1651_v29, %v1652_v30  ;;  %v1764_v49 = vmul.f32 %v1644_v22, %v2476_v17  ;;  %v1765_v27 = vmul.f32 %v1648_v28, %v2480_v19  ;;  %v1791_v50 = vmul.f32 %v1644_v22, %v2482_v23 }
 0x1a1   :  { %v1792_v0 = vmul.f32 %v1648_v28, %v2486_v25  ;;  %v1818_v10 = vmul.f32 %v1644_v22, %v2484_v24  ;;  %v1819_v9 = vmul.f32 %v1648_v28, %v2488_v26  ;;  %v1845_v16 = vmul.f32 %v1644_v22, %v2490_v31 }
 0x1a2   :  { %v1662_v47 = vrot.slane %v1655_v35, %v2630_v60  ;;  %v1846_v51 = vmul.f32 %v1648_v28, %v2494_v33  ;;  %v1872_v18 = vmul.f32 %v1644_v22, %v2492_v32  ;;  %v1873_v17 = vmul.f32 %v1648_v28, %v2496_v34 }
 0x1a3   :  { %v1899_v19 = vmul.f32 %v1644_v22, %v2498_v39  ;;  %v1900_v23 = vmul.f32 %v1648_v28, %v2502_v41  ;;  %v2655_v25 = vmul.f32 %v1644_v22, %v2500_v40  ;;  %v2658_v26 = vmul.f32 %v1648_v28, %v2504_v42 }
 0x1a4   :  { %v1669_v11 = vrot.slane %v1662_v47, %v2630_v60  ;;  %v2661_v52 = vmul.f32 %v1644_v22, %v2528_v1  ;;  %v2664_v31 = vmul.f32 %v1648_v28, %v2537_v6  ;;  %v2667_v32 = vmul.f32 %v1644_v22, %v2533_v4 }
 0x1a5   :  { %v2670_v33 = vmul.f32 %v1648_v28, %v2541_v13  ;;  %v2673_v34 = vmul.f32 %v1644_v22, %v2567_v59  ;;  %v2676_v39 = vmul.f32 %v1648_v28, %v2576_v5  ;;  %v2683_v42 = vmul.f32 %v1644_v22, %v2572_v63 }
 0x1a6   :  { %v1671_v24 = vsub.f32 %v1639_v37, %v1669_v11  ;;  %v2686_v1 = vmul.f32 %v1648_v28, %v2581_v12  ;;  %v2689_v4 = vmul.f32 %v1644_v22, %v2605_v57  ;;  %v2692_v6 = vmul.f32 %v1648_v28, %v2615_v8 }
 0x1a7   :  { %v2695_v13 = vmul.f32 %v1644_v22, %v2611_v2  ;;  %v2698_v59 = vmul.f32 %v1648_v28, %v2621_v21 }
 0x1a8   :  { %v2678_v40 = vrot.slane %v1671_v24, %v1643_v15  ;;  %v2680_v41 = vrot.slane %v1671_v24, %v1647_v43 }
 0x1aa   :  { %v1685_v5 = vadd.f32 %v2678_v40, %v1672_v36  ;;  %v1686_v63 = vadd.f32 %v2680_v41, %v1673_v38  ;;  %v1712_v53 = vadd.f32 %v1710_v44, %v2678_v40  ;;  %v1713_v12 = vadd.f32 %v1711_v45, %v2680_v41 }
 0x1ab   :  { %v1739_v57 = vadd.f32 %v1737_v46, %v2678_v40  ;;  %v1740_v54 = vadd.f32 %v1738_v48, %v2680_v41  ;;  %v1766_v8 = vadd.f32 %v1764_v49, %v2678_v40  ;;  %v1767_v2 = vadd.f32 %v1765_v27, %v2680_v41 }
 0x1ac   :  { %v1687_v55 = vmax.f32 %v1685_v5, 0.0  ;;  %v1688_v56 = vmax.f32 %v1686_v63, 0.0  ;;  %v1714_v21 = vmax.f32 %v1712_v53, 0.0  ;;  %v1715_v58 = vmax.f32 %v1713_v12, 0.0 }
 0x1ad   :  { %v1741_v61 = vmax.f32 %v1739_v57, 0.0  ;;  %v1742_v62 = vmax.f32 %v1740_v54, 0.0  ;;  %v1768_v3 = vmax.f32 %v1766_v8, 0.0  ;;  %v1769_v7 = vmax.f32 %v1767_v2, 0.0 }
 0x1ae   :  { %v2265_v14 = vpack.c.bf16 %v1688_v56, %v1687_v55  ;;  %v2267_v15 = vpack.c.bf16 %v1715_v58, %v1714_v21  ;;  %v1793_v43 = vadd.f32 %v1791_v50, %v2678_v40  ;;  %v1794_v20 = vadd.f32 %v1792_v0, %v2680_v41 }
 0x1af   :  { %v2269_v22 = vpack.c.bf16 %v1742_v62, %v1741_v61  ;;  %v2271_v28 = vpack.c.bf16 %v1769_v7, %v1768_v3  ;;  %v1820_v29 = vadd.f32 %v1818_v10, %v2678_v40  ;;  %v1821_v30 = vadd.f32 %v1819_v9, %v2680_v41 }
 0x1b0   :  { %v1700_v35 = vrot.slane %v2265_v14, %v2630_v60  ;;  %v1727_v36 = vrot.slane %v2267_v15, %v2630_v60  ;;  %v1795_v38 = vmax.f32 %v1793_v43, 0.0  ;;  %v1796_v44 = vmax.f32 %v1794_v20, 0.0 }
 0x1b1   :  { %v1754_v45 = vrot.slane %v2269_v22, %v2630_v60  ;;  %v1781_v46 = vrot.slane %v2271_v28, %v2630_v60  ;;  %v1822_v47 = vmax.f32 %v1820_v29, 0.0  ;;  %v1823_v48 = vmax.f32 %v1821_v30, 0.0 }
 0x1b2   :  { %2266 = vst.sshfl [vmem:[%s2814_s4] sm:$0x5 pattern:$0x73625140] %v1700_v35  ;;  %v2273_v49 = vpack.c.bf16 %v1796_v44, %v1795_v38  ;;  %v1847_v27 = vadd.f32 %v1845_v16, %v2678_v40  ;;  %v1848_v37 = vadd.f32 %v1846_v51, %v2680_v41  ;;  %v1874_v50 = vadd.f32 %v1872_v18, %v2678_v40 }
 0x1b3   :  { %2268 = vst.sshfl [vmem:[%s2814_s4 + $0x2] sm:$0x5 pattern:$0x73625140] %v1727_v36  ;;  %v2275_v0 = vpack.c.bf16 %v1823_v48, %v1822_v47  ;;  %v1875_v10 = vadd.f32 %v1873_v17, %v2680_v41  ;;  %v1901_v9 = vadd.f32 %v1899_v19, %v2678_v40  ;;  %v1902_v11 = vadd.f32 %v1900_v23, %v2680_v41 }
 0x1b4   :  { %2270 = vst.sshfl [vmem:[%s2814_s4 + $0x4] sm:$0x5 pattern:$0x73625140] %v1754_v45  ;;  %v1808_v16 = vrot.slane %v2273_v49, %v2630_v60  ;;  %v1849_v51 = vmax.f32 %v1847_v27, 0.0  ;;  %v1850_v24 = vmax.f32 %v1848_v37, 0.0  ;;  %v1928_v17 = vadd.f32 %v2655_v25, %v2678_v40 }
 0x1b5   :  { %2272 = vst.sshfl [vmem:[%s2814_s4 + $0x6] sm:$0x5 pattern:$0x73625140] %v1781_v46  ;;  %v1876_v18 = vmax.f32 %v1874_v50, 0.0  ;;  %v1835_v5 = vrot.slane %v2275_v0, %v2630_v60  ;;  %v1877_v63 = vmax.f32 %v1875_v10, 0.0  ;;  %v1929_v19 = vadd.f32 %v2658_v26, %v2680_v41 }
 0x1b6   :  { %v1903_v53 = vmax.f32 %v1901_v9, 0.0  ;;  %v1904_v12 = vmax.f32 %v1902_v11, 0.0  ;;  %2274 = vst.sshfl [vmem:[%s2814_s4 + $0x8] sm:$0x5 pattern:$0x73625140] %v1808_v16  ;;  %v2277_v57 = vpack.c.bf16 %v1850_v24, %v1849_v51  ;;  %v1955_v23 = vadd.f32 %v2661_v52, %v2678_v40 }
 0x1b7   :  { %2276 = vst.sshfl [vmem:[%s2814_s4 + $0xa] sm:$0x5 pattern:$0x73625140] %v1835_v5  ;;  %v2279_v54 = vpack.c.bf16 %v1877_v63, %v1876_v18  ;;  %v1956_v2 = vadd.f32 %v2664_v31, %v2680_v41  ;;  %v1982_v55 = vadd.f32 %v2667_v32, %v2678_v40  ;;  %v1930_v56 = vmax.f32 %v1928_v17, 0.0 }
 0x1b8   :  { %v2281_v8 = vpack.c.bf16 %v1904_v12, %v1903_v53  ;;  %v1862_v25 = vrot.slane %v2277_v57, %v2630_v60  ;;  %v1931_v21 = vmax.f32 %v1929_v19, 0.0  ;;  %v1957_v26 = vmax.f32 %v1955_v23, 0.0 }
 0x1b9   :  { %v1889_v58 = vrot.slane %v2279_v54, %v2630_v60  ;;  %v1958_v61 = vmax.f32 %v1956_v2, 0.0  ;;  %v1983_v62 = vadd.f32 %v2670_v33, %v2680_v41  ;;  %v1984_v3 = vmax.f32 %v1982_v55, 0.0 }
 0x1ba   :  { %v1916_v52 = vrot.slane %v2281_v8, %v2630_v60  ;;  %2278 = vst.sshfl [vmem:[%s2814_s4 + $0xc] sm:$0x5 pattern:$0x73625140] %v1862_v25  ;;  %v2283_v31 = vpack.c.bf16 %v1931_v21, %v1930_v56  ;;  %v2009_v32 = vadd.f32 %v2673_v34, %v2678_v40  ;;  %v2010_v7 = vadd.f32 %v2676_v39, %v2680_v41 }
 0x1bb   :  { %2280 = vst.sshfl [vmem:[%s2814_s4 + $0xe] sm:$0x5 pattern:$0x73625140] %v1889_v58  ;;  %v2285_v33 = vpack.c.bf16 %v1958_v61, %v1957_v26  ;;  %v1985_v14 = vmax.f32 %v1983_v62, 0.0  ;;  %v2036_v15 = vadd.f32 %v2683_v42, %v2678_v40  ;;  %v2037_v43 = vadd.f32 %v2686_v1, %v2680_v41 }
 0x1bc   :  { %2282 = vst.sshfl [vmem:[%s2814_s4 + $0x10] sm:$0x5 pattern:$0x73625140] %v1916_v52  ;;  %v1943_v34 = vrot.slane %v2283_v31, %v2630_v60  ;;  %v2011_v20 = vmax.f32 %v2009_v32, 0.0  ;;  %v2012_v39 = vmax.f32 %v2010_v7, 0.0  ;;  %v2063_v22 = vadd.f32 %v2689_v4, %v2678_v40 }
 0x1bd   :  { %v1970_v28 = vrot.slane %v2285_v33, %v2630_v60  ;;  %v2287_v29 = vpack.c.bf16 %v1985_v14, %v1984_v3  ;;  %v2038_v30 = vmax.f32 %v2036_v15, 0.0  ;;  %v2039_v35 = vmax.f32 %v2037_v43, 0.0 }
 0x1be   :  { %2284 = vst.sshfl [vmem:[%s2814_s4 + $0x12] sm:$0x5 pattern:$0x73625140] %v1943_v34  ;;  %v2289_v42 = vpack.c.bf16 %v2012_v39, %v2011_v20  ;;  %v2064_v1 = vadd.f32 %v2692_v6, %v2680_v41  ;;  %v2065_v36 = vmax.f32 %v2063_v22, 0.0  ;;  %v2090_v38 = vadd.f32 %v2695_v13, %v2678_v40 }
 0x1bf   :  { %2286 = vst.sshfl [vmem:[%s2814_s4 + $0x14] sm:$0x5 pattern:$0x73625140] %v1970_v28  ;;  %v1997_v4 = vrot.slane %v2287_v29, %v2630_v60  ;;  %v2291_v44 = vpack.c.bf16 %v2039_v35, %v2038_v30  ;;  %v2091_v45 = vadd.f32 %v2698_v59, %v2680_v41 }
 0x1c0   :  { %v2024_v46 = vrot.slane %v2289_v42, %v2630_v60  ;;  %v2066_v47 = vmax.f32 %v2064_v1, 0.0  ;;  %v2092_v48 = vmax.f32 %v2090_v38, 0.0 }
 0x1c1   :  { %2288 = vst.sshfl [vmem:[%s2814_s4 + $0x16] sm:$0x5 pattern:$0x73625140] %v1997_v4  ;;  %v2051_v40 = vrot.slane %v2291_v44, %v2630_v60  ;;  %v2093_v6 = vmax.f32 %v2091_v45, 0.0 }
 0x1c2   :  { %2290 = vst.sshfl [vmem:[%s2814_s4 + $0x18] sm:$0x5 pattern:$0x73625140] %v2024_v46  ;;  %v2293_v13 = vpack.c.bf16 %v2066_v47, %v2065_v36 }
 0x1c3   :  { %2292 = vst.sshfl [vmem:[%s2814_s4 + $0x1a] sm:$0x5 pattern:$0x73625140] %v2051_v40  ;;  %v2295_v41 = vpack.c.bf16 %v2093_v6, %v2092_v48 }
 0x1c4   :  { %v2078_v59 = vrot.slane %v2293_v13, %v2630_v60 }
 0x1c5   :  { %v2105_v49 = vrot.slane %v2295_v41, %v2630_v60 }
 0x1c6   :  { %2294 = vst.sshfl [vmem:[%s2814_s4 + $0x1c] sm:$0x5 pattern:$0x73625140] %v2078_v59 }
 0x1c7   :  { %2296 = vst.sshfl [vmem:[%s2814_s4 + $0x1e] sm:$0x5 pattern:$0x73625140] %v2105_v49 }
 0x1c8   :  { %2119 = vsyncpa [#allocation3], 1 }
 0x1c9   :  { %2120 = vsyncpa [#allocation5], 1 }

// kernel: generator_forward.5
= control target key start
LH: loop header
LB: loop body
LE: loop exit
PB: predicated region body
PF: predicated region fallthrough
CT: control target
= control target key end

     0   :  { %9 = vsyncpa [#allocation6], 0  ;;  %s5138_s0 = inlined_call_operand.vmem [shape: bf16[4,32,1024], index: 0, kind: input, shape index: {}]   ;;  %s5139_s1 = inlined_call_operand.vmem [shape: bf16[4,1024,128], index: 1, kind: input, shape index: {}]   ;;  %s5140_s2 = inlined_call_operand.hbm [shape: f32[1,128], index: 2, kind: input, shape index: {}]   ;;  %s5141_s3 = inlined_call_operand.hbm [shape: f32[1,128], index: 3, kind: input, shape index: {}]   ;;  %s5142_s4 = inlined_call_operand.vmem [shape: bf16[4,32,128], index: 4, kind: output, shape index: {}]  }
   0x1   :  { %10 = vsyncpa [#allocation8], 0  ;;  %s4419_s15 = smov 0   ;;  %s4421_s16 = smov 0  }
   0x2   :  { %s4423_s17 = smov 0  }
   0x3 LB: > { %s4435_s18 = sadd.s32 4294967295, %s4389_s17   ;;  %s4438_s19 = sadd.s32 1, %s4389_s17   ;;  %s4389_s17 = sphi %s4423_s17, %s5156_s17   ;;  %s4385_s16 = sphi %s4421_s16, %s5155_s16   ;;  %s4381_s15 = sphi %s4419_s15, %s5154_s15  }
   0x4   : > { %s20_s20 = ssub.s32 %s4389_s17, %s4438_s19  ;;  %s23_s21 = sadd.s32 1, %s4385_s16 }
   0x5   : > { %p21_p0 = scmp.eq.s32.totalorder %s20_s20, 0  ;;  %p30_p1 = scmp.ne.s32.totalorder %s4385_s16, %s4381_s15 }
   0x6   : > { %p31_p2 = scmp.eq.s32.totalorder %s4389_s17, 0  ;;  %p3371_p3 = scmp.ge.s32.totalorder %s4389_s17, 1 }
   0x7   : > { %s4448_s22 = scalar_select %p21_p0, %s4385_s16, %s23_s21  }
   0x8   : > { %p4450_p4 = por %p31_p2, %p30_p1  ;;  %p136_p5 = scmp.lt.s32.totalorder %s4389_s17, 3 }
   0x9   : > { %p5143_p7 = scmp.eq.s32.totalorder %s4435_s18, 0  ;;  %s4391_s25 = smov [#allocation5]  }
   0xa   : > { %p4457_p8 = pnand %p3371_p3, %p136_p5  ;;  %s149_s26 = sshll.u32 %s4391_s25, 4  ;;  %s150_s26 = int_to_ptr.vmem [resolvable:$true] %s149_s26 }
   0xb   : > { %s4392_s27 = smov [#allocation7]   ;;  %s4318_s30 = scalar_lea.vmem %s150_s26, 16 }
   0xc   : > { %s5146_s24 = scalar_select %p4457_p8, 1, 0 }
   0xd   : > { %p4091_p9 = pneg %p4457_p8  ;;  %s160_s28 = sshll.u32 %s4392_s27, 4  ;;  %s161_s28 = int_to_ptr.vmem [resolvable:$true] %s160_s28 }
   0xe   : > { %p4319_p12 = scmp.ne.s32.totalorder %s150_s26, %s4318_s30  ;;  %s4325_s5 = scalar_lea.vmem %s150_s26, 32 }
   0xf   : > { %p4465_p10 = pnand %p5143_p7, %p4091_p9  ;;  %p4326_p1 = scmp.lt.s32.totalorder %s150_s26, %s150_s26 }
  0x10   : > { %p4327_p2 = scmp.lt.s32.totalorder %s4325_s5, %s4318_s30 }
  0x11   : > { %p4309_p11 = pneg %p4465_p10 }
  0x12   : > { %p4328_p3 = por %p4327_p2, %p4326_p1 }
  0x13   : > { %p4321_p13 = pnand %p4319_p12, %p4309_p11 }
  0x15   : > { %p4322_p0 = pneg %p4321_p13 }
  0x17   : > { %p4329_p5 = pnand %p4328_p3, %p4322_p0 }
  0x19   : > { %4332 = shalt.err (!%p4329_p5)
}
  0x1a   : > { %4094 = dma.hbm_to_vmem [thread:$0]  (!%p4465_p10), %s5140_s2, 16, %s150_s26, [#allocation6]  }
  0x1b   : > { %s4344_s8 = scalar_lea.vmem %s161_s28, 16  ;;  %s4351_s9 = scalar_lea.vmem %s161_s28, 32 }
  0x1c   : > { %p4345_p9 = scmp.ne.s32.totalorder %s161_s28, %s4344_s8  ;;  %p4352_p13 = scmp.lt.s32.totalorder %s161_s28, %s161_s28 }
  0x1d   : > { %p4353_p7 = scmp.lt.s32.totalorder %s4351_s9, %s4344_s8 }
  0x1e   : > { %p4347_p6 = pnand %p4345_p9, %p4309_p11 }
  0x1f   : > { %p4354_p8 = por %p4353_p7, %p4352_p13 }
  0x20   : > { %p4348_p12 = pneg %p4347_p6 }
  0x22   : > { %p4355_p1 = pnand %p4354_p8, %p4348_p12 }
  0x24   : > { %4358 = shalt.err (!%p4355_p1)
}
  0x25   : > { %4097 = dma.hbm_to_vmem [thread:$0]  (!%p4465_p10), %s5141_s3, 16, %s161_s28, [#allocation8]  }
  0x26   : > { %p3374_p0 = scmp.ge.s32.totalorder %s4389_s17, 2 }
  0x28   : > { %167 = sbr.rel (%p3374_p0) target bundleno = 133 (0x85), region = 24 }
  0x2d   : > { %170 = sbr.rel (!%p4450_p4) target bundleno = 65 (0x41), region = 28  ;;  %s172_s12 = sand.u32 (%p4450_p4), 1, %s4385_s16  }
  0x2e   : > { %s3794_s13 = sshll.u32 (%p4450_p4), %s4389_s17, 4  ;;  %s3375_s14 = sshll.u32 (%p4450_p4), %s172_s12, 8 }
  0x2f   : > { %s4495_s25 = scalar_lea.vmem (%p4450_p4), %s5138_s0, %s3794_s13  ;;  %s4500_s26 = scalar_lea.vmem (%p4450_p4), [#allocation3], %s3375_s14 }
  0x30   : > { %v190_v0 = vld [vmem:[%s4495_s25] sm:$0xff] (%p4450_p4)  ;;  %v192_v1 = vld [vmem:[%s4495_s25 + $0x8] sm:$0xff] (%p4450_p4) }
  0x31   : > { %v194_v2 = vld [vmem:[%s4495_s25 + $0x20] sm:$0xff] (%p4450_p4)  ;;  %191 = vst [vmem:[%s4500_s26] sm:$0xff] (%p4450_p4), %v190_v0  ;;  %193 = vst [vmem:[%s4500_s26 + $0x8] sm:$0xff] (%p4450_p4), %v192_v1  ;;  %v196_v3 = vld [vmem:[%s4495_s25 + $0x28] sm:$0xff] (%p4450_p4) }
  0x32   : > { %195 = vst [vmem:[%s4500_s26 + $0x10] sm:$0xff] %v194_v2  ;;  %v198_v4 = vld [vmem:[%s4495_s25 + $0x40] sm:$0xff]  ;;  %v200_v5 = vld [vmem:[%s4495_s25 + $0x48] sm:$0xff]  ;;  %197 = vst [vmem:[%s4500_s26 + $0x18] sm:$0xff] %v196_v3 }
  0x33   : > { %199 = vst [vmem:[%s4500_s26 + $0x20] sm:$0xff] %v198_v4  ;;  %201 = vst [vmem:[%s4500_s26 + $0x28] sm:$0xff] %v200_v5  ;;  %v202_v6 = vld [vmem:[%s4495_s25 + $0x60] sm:$0xff]  ;;  %v204_v7 = vld [vmem:[%s4495_s25 + $0x68] sm:$0xff] }
  0x34   : > { %v206_v8 = vld [vmem:[%s4495_s25 + $0x80] sm:$0xff]  ;;  %203 = vst [vmem:[%s4500_s26 + $0x30] sm:$0xff] %v202_v6  ;;  %205 = vst [vmem:[%s4500_s26 + $0x38] sm:$0xff] %v204_v7  ;;  %v208_v9 = vld [vmem:[%s4495_s25 + $0x88] sm:$0xff] }
  0x35   : > { %207 = vst [vmem:[%s4500_s26 + $0x40] sm:$0xff] %v206_v8  ;;  %v210_v10 = vld [vmem:[%s4495_s25 + $0xa0] sm:$0xff]  ;;  %v212_v11 = vld [vmem:[%s4495_s25 + $0xa8] sm:$0xff]  ;;  %209 = vst [vmem:[%s4500_s26 + $0x48] sm:$0xff] %v208_v9 }
  0x36   : > { %211 = vst [vmem:[%s4500_s26 + $0x50] sm:$0xff] %v210_v10  ;;  %213 = vst [vmem:[%s4500_s26 + $0x58] sm:$0xff] %v212_v11  ;;  %v214_v12 = vld [vmem:[%s4495_s25 + $0xc0] sm:$0xff]  ;;  %v216_v13 = vld [vmem:[%s4495_s25 + $0xc8] sm:$0xff] }
  0x37   : > { %v218_v14 = vld [vmem:[%s4495_s25 + $0xe0] sm:$0xff]  ;;  %215 = vst [vmem:[%s4500_s26 + $0x60] sm:$0xff] %v214_v12  ;;  %217 = vst [vmem:[%s4500_s26 + $0x68] sm:$0xff] %v216_v13  ;;  %v220_v15 = vld [vmem:[%s4495_s25 + $0xe8] sm:$0xff] }
  0x38   : > { %219 = vst [vmem:[%s4500_s26 + $0x70] sm:$0xff] %v218_v14  ;;  %v222_v16 = vld [vmem:[%s4495_s25 + $0x100] sm:$0xff]  ;;  %v224_v17 = vld [vmem:[%s4495_s25 + $0x108] sm:$0xff]  ;;  %221 = vst [vmem:[%s4500_s26 + $0x78] sm:$0xff] %v220_v15 }
  0x39   : > { %223 = vst [vmem:[%s4500_s26 + $0x80] sm:$0xff] %v222_v16  ;;  %225 = vst [vmem:[%s4500_s26 + $0x88] sm:$0xff] %v224_v17  ;;  %v226_v18 = vld [vmem:[%s4495_s25 + $0x120] sm:$0xff]  ;;  %v228_v19 = vld [vmem:[%s4495_s25 + $0x128] sm:$0xff] }
  0x3a   : > { %v230_v20 = vld [vmem:[%s4495_s25 + $0x140] sm:$0xff]  ;;  %227 = vst [vmem:[%s4500_s26 + $0x90] sm:$0xff] %v226_v18  ;;  %229 = vst [vmem:[%s4500_s26 + $0x98] sm:$0xff] %v228_v19  ;;  %v232_v21 = vld [vmem:[%s4495_s25 + $0x148] sm:$0xff] }
  0x3b   : > { %231 = vst [vmem:[%s4500_s26 + $0xa0] sm:$0xff] %v230_v20  ;;  %v234_v22 = vld [vmem:[%s4495_s25 + $0x160] sm:$0xff]  ;;  %v236_v23 = vld [vmem:[%s4495_s25 + $0x168] sm:$0xff]  ;;  %233 = vst [vmem:[%s4500_s26 + $0xa8] sm:$0xff] %v232_v21 }
  0x3c   : > { %235 = vst [vmem:[%s4500_s26 + $0xb0] sm:$0xff] %v234_v22  ;;  %237 = vst [vmem:[%s4500_s26 + $0xb8] sm:$0xff] %v236_v23  ;;  %v238_v24 = vld [vmem:[%s4495_s25 + $0x180] sm:$0xff]  ;;  %v240_v25 = vld [vmem:[%s4495_s25 + $0x188] sm:$0xff] }
  0x3d   : > { %v242_v26 = vld [vmem:[%s4495_s25 + $0x1a0] sm:$0xff]  ;;  %239 = vst [vmem:[%s4500_s26 + $0xc0] sm:$0xff] %v238_v24  ;;  %241 = vst [vmem:[%s4500_s26 + $0xc8] sm:$0xff] %v240_v25  ;;  %v244_v27 = vld [vmem:[%s4495_s25 + $0x1a8] sm:$0xff] }
  0x3e   : > { %243 = vst [vmem:[%s4500_s26 + $0xd0] sm:$0xff] %v242_v26  ;;  %v246_v28 = vld [vmem:[%s4495_s25 + $0x1c0] sm:$0xff]  ;;  %v248_v29 = vld [vmem:[%s4495_s25 + $0x1c8] sm:$0xff]  ;;  %245 = vst [vmem:[%s4500_s26 + $0xd8] sm:$0xff] %v244_v27 }
  0x3f   : > { %247 = vst [vmem:[%s4500_s26 + $0xe0] sm:$0xff] %v246_v28  ;;  %249 = vst [vmem:[%s4500_s26 + $0xe8] sm:$0xff] %v248_v29  ;;  %v250_v30 = vld [vmem:[%s4495_s25 + $0x1e0] sm:$0xff]  ;;  %v252_v31 = vld [vmem:[%s4495_s25 + $0x1e8] sm:$0xff] }
  0x40   : > { %251 = vst [vmem:[%s4500_s26 + $0xf0] sm:$0xff] %v250_v30  ;;  %253 = vst [vmem:[%s4500_s26 + $0xf8] sm:$0xff] %v252_v31 }
  0x41 PF: > { %259 = sbr.rel (!%p4450_p4) target bundleno = 133 (0x85), region = 51  ;;  %s261_s27 = sand.u32 (%p4450_p4), 1, %s4385_s16  }
  0x42   : > { %s3795_s28 = sshll.u32 (%p4450_p4), %s4389_s17, 8  ;;  %s3378_s29 = sshll.u32 (%p4450_p4), %s261_s27, 10 }
  0x43   : > { %s4570_s6 = scalar_lea.vmem (%p4450_p4), %s5139_s1, %s3795_s28  ;;  %s4575_s23 = scalar_lea.vmem (%p4450_p4), [#allocation4], %s3378_s29 }
  0x44   : > { %v283_v32 = vld [vmem:[%s4570_s6] sm:$0xff] (%p4450_p4)   ;;  %v287_v33 = vld [vmem:[%s4570_s6 + $0x8] sm:$0xff] (%p4450_p4)   ;;  %v291_v34 = vld [vmem:[%s4570_s6 + $0x10] sm:$0xff] (%p4450_p4)  }
  0x45   : > { %284 = vst [vmem:[%s4575_s23] sm:$0xff] (%p4450_p4), %v283_v32   ;;  %288 = vst [vmem:[%s4575_s23 + $0x8] sm:$0xff] (%p4450_p4), %v287_v33   ;;  %v295_v35 = vld [vmem:[%s4570_s6 + $0x18] sm:$0xff] (%p4450_p4)   ;;  %v299_v36 = vld [vmem:[%s4570_s6 + $0x20] sm:$0xff] (%p4450_p4)  }
  0x46   : > { %292 = vst [vmem:[%s4575_s23 + $0x10] sm:$0xff] %v291_v34   ;;  %v303_v37 = vld [vmem:[%s4570_s6 + $0x28] sm:$0xff]   ;;  %296 = vst [vmem:[%s4575_s23 + $0x18] sm:$0xff] %v295_v35   ;;  %v307_v38 = vld [vmem:[%s4570_s6 + $0x30] sm:$0xff]  }
  0x47   : > { %300 = vst [vmem:[%s4575_s23 + $0x20] sm:$0xff] %v299_v36   ;;  %304 = vst [vmem:[%s4575_s23 + $0x28] sm:$0xff] %v303_v37   ;;  %v311_v39 = vld [vmem:[%s4570_s6 + $0x38] sm:$0xff]   ;;  %v315_v40 = vld [vmem:[%s4570_s6 + $0x40] sm:$0xff]  }
  0x48   : > { %308 = vst [vmem:[%s4575_s23 + $0x30] sm:$0xff] %v307_v38   ;;  %312 = vst [vmem:[%s4575_s23 + $0x38] sm:$0xff] %v311_v39   ;;  %v319_v41 = vld [vmem:[%s4570_s6 + $0x48] sm:$0xff]   ;;  %v323_v42 = vld [vmem:[%s4570_s6 + $0x50] sm:$0xff]  }
  0x49   : > { %316 = vst [vmem:[%s4575_s23 + $0x40] sm:$0xff] %v315_v40   ;;  %v327_v43 = vld [vmem:[%s4570_s6 + $0x58] sm:$0xff]   ;;  %320 = vst [vmem:[%s4575_s23 + $0x48] sm:$0xff] %v319_v41   ;;  %v331_v44 = vld [vmem:[%s4570_s6 + $0x60] sm:$0xff]  }
  0x4a   : > { %324 = vst [vmem:[%s4575_s23 + $0x50] sm:$0xff] %v323_v42   ;;  %328 = vst [vmem:[%s4575_s23 + $0x58] sm:$0xff] %v327_v43   ;;  %v335_v45 = vld [vmem:[%s4570_s6 + $0x68] sm:$0xff]   ;;  %v339_v46 = vld [vmem:[%s4570_s6 + $0x70] sm:$0xff]  }
  0x4b   : > { %332 = vst [vmem:[%s4575_s23 + $0x60] sm:$0xff] %v331_v44   ;;  %336 = vst [vmem:[%s4575_s23 + $0x68] sm:$0xff] %v335_v45   ;;  %v343_v47 = vld [vmem:[%s4570_s6 + $0x78] sm:$0xff]   ;;  %v347_v48 = vld [vmem:[%s4570_s6 + $0x80] sm:$0xff]  }
  0x4c   : > { %340 = vst [vmem:[%s4575_s23 + $0x70] sm:$0xff] %v339_v46   ;;  %v351_v49 = vld [vmem:[%s4570_s6 + $0x88] sm:$0xff]   ;;  %344 = vst [vmem:[%s4575_s23 + $0x78] sm:$0xff] %v343_v47   ;;  %v355_v50 = vld [vmem:[%s4570_s6 + $0x90] sm:$0xff]  }
  0x4d   : > { %348 = vst [vmem:[%s4575_s23 + $0x80] sm:$0xff] %v347_v48   ;;  %352 = vst [vmem:[%s4575_s23 + $0x88] sm:$0xff] %v351_v49   ;;  %v359_v51 = vld [vmem:[%s4570_s6 + $0x98] sm:$0xff]   ;;  %v363_v52 = vld [vmem:[%s4570_s6 + $0xa0] sm:$0xff]  }
  0x4e   : > { %356 = vst [vmem:[%s4575_s23 + $0x90] sm:$0xff] %v355_v50   ;;  %360 = vst [vmem:[%s4575_s23 + $0x98] sm:$0xff] %v359_v51   ;;  %v367_v53 = vld [vmem:[%s4570_s6 + $0xa8] sm:$0xff]   ;;  %v371_v54 = vld [vmem:[%s4570_s6 + $0xb0] sm:$0xff]  }
  0x4f   : > { %364 = vst [vmem:[%s4575_s23 + $0xa0] sm:$0xff] %v363_v52   ;;  %v375_v55 = vld [vmem:[%s4570_s6 + $0xb8] sm:$0xff]   ;;  %368 = vst [vmem:[%s4575_s23 + $0xa8] sm:$0xff] %v367_v53   ;;  %v379_v56 = vld [vmem:[%s4570_s6 + $0xc0] sm:$0xff]  }
  0x50   : > { %372 = vst [vmem:[%s4575_s23 + $0xb0] sm:$0xff] %v371_v54   ;;  %376 = vst [vmem:[%s4575_s23 + $0xb8] sm:$0xff] %v375_v55   ;;  %v383_v57 = vld [vmem:[%s4570_s6 + $0xc8] sm:$0xff]   ;;  %v387_v58 = vld [vmem:[%s4570_s6 + $0xd0] sm:$0xff]  }
  0x51   : > { %380 = vst [vmem:[%s4575_s23 + $0xc0] sm:$0xff] %v379_v56   ;;  %384 = vst [vmem:[%s4575_s23 + $0xc8] sm:$0xff] %v383_v57   ;;  %v391_v59 = vld [vmem:[%s4570_s6 + $0xd8] sm:$0xff]   ;;  %v395_v60 = vld [vmem:[%s4570_s6 + $0xe0] sm:$0xff]  }
  0x52   : > { %388 = vst [vmem:[%s4575_s23 + $0xd0] sm:$0xff] %v387_v58   ;;  %v399_v61 = vld [vmem:[%s4570_s6 + $0xe8] sm:$0xff]   ;;  %392 = vst [vmem:[%s4575_s23 + $0xd8] sm:$0xff] %v391_v59   ;;  %v403_v62 = vld [vmem:[%s4570_s6 + $0xf0] sm:$0xff]  }
  0x53   : > { %396 = vst [vmem:[%s4575_s23 + $0xe0] sm:$0xff] %v395_v60   ;;  %400 = vst [vmem:[%s4575_s23 + $0xe8] sm:$0xff] %v399_v61   ;;  %v407_v63 = vld [vmem:[%s4570_s6 + $0xf8] sm:$0xff]   ;;  %v411_v0 = vld [vmem:[%s4570_s6 + $0x200] sm:$0xff]  }
  0x54   : > { %404 = vst [vmem:[%s4575_s23 + $0xf0] sm:$0xff] %v403_v62   ;;  %408 = vst [vmem:[%s4575_s23 + $0xf8] sm:$0xff] %v407_v63   ;;  %v415_v1 = vld [vmem:[%s4570_s6 + $0x208] sm:$0xff]   ;;  %v419_v2 = vld [vmem:[%s4570_s6 + $0x210] sm:$0xff]  }
  0x55   : > { %412 = vst [vmem:[%s4575_s23 + $0x100] sm:$0xff] %v411_v0   ;;  %v423_v3 = vld [vmem:[%s4570_s6 + $0x218] sm:$0xff]   ;;  %416 = vst [vmem:[%s4575_s23 + $0x108] sm:$0xff] %v415_v1   ;;  %v427_v4 = vld [vmem:[%s4570_s6 + $0x220] sm:$0xff]  }
  0x56   : > { %420 = vst [vmem:[%s4575_s23 + $0x110] sm:$0xff] %v419_v2   ;;  %424 = vst [vmem:[%s4575_s23 + $0x118] sm:$0xff] %v423_v3   ;;  %v431_v5 = vld [vmem:[%s4570_s6 + $0x228] sm:$0xff]   ;;  %v435_v6 = vld [vmem:[%s4570_s6 + $0x230] sm:$0xff]  }
  0x57   : > { %428 = vst [vmem:[%s4575_s23 + $0x120] sm:$0xff] %v427_v4   ;;  %432 = vst [vmem:[%s4575_s23 + $0x128] sm:$0xff] %v431_v5   ;;  %v439_v7 = vld [vmem:[%s4570_s6 + $0x238] sm:$0xff]   ;;  %v443_v8 = vld [vmem:[%s4570_s6 + $0x240] sm:$0xff]  }
  0x58   : > { %436 = vst [vmem:[%s4575_s23 + $0x130] sm:$0xff] %v435_v6   ;;  %v447_v9 = vld [vmem:[%s4570_s6 + $0x248] sm:$0xff]   ;;  %440 = vst [vmem:[%s4575_s23 + $0x138] sm:$0xff] %v439_v7   ;;  %v451_v10 = vld [vmem:[%s4570_s6 + $0x250] sm:$0xff]  }
  0x59   : > { %444 = vst [vmem:[%s4575_s23 + $0x140] sm:$0xff] %v443_v8   ;;  %448 = vst [vmem:[%s4575_s23 + $0x148] sm:$0xff] %v447_v9   ;;  %v455_v11 = vld [vmem:[%s4570_s6 + $0x258] sm:$0xff]   ;;  %v459_v12 = vld [vmem:[%s4570_s6 + $0x260] sm:$0xff]  }
  0x5a   : > { %452 = vst [vmem:[%s4575_s23 + $0x150] sm:$0xff] %v451_v10   ;;  %456 = vst [vmem:[%s4575_s23 + $0x158] sm:$0xff] %v455_v11   ;;  %v463_v13 = vld [vmem:[%s4570_s6 + $0x268] sm:$0xff]   ;;  %v467_v14 = vld [vmem:[%s4570_s6 + $0x270] sm:$0xff]  }
  0x5b   : > { %460 = vst [vmem:[%s4575_s23 + $0x160] sm:$0xff] %v459_v12   ;;  %v471_v15 = vld [vmem:[%s4570_s6 + $0x278] sm:$0xff]   ;;  %464 = vst [vmem:[%s4575_s23 + $0x168] sm:$0xff] %v463_v13   ;;  %v475_v16 = vld [vmem:[%s4570_s6 + $0x280] sm:$0xff]  }
  0x5c   : > { %468 = vst [vmem:[%s4575_s23 + $0x170] sm:$0xff] %v467_v14   ;;  %472 = vst [vmem:[%s4575_s23 + $0x178] sm:$0xff] %v471_v15   ;;  %v479_v17 = vld [vmem:[%s4570_s6 + $0x288] sm:$0xff]   ;;  %v483_v18 = vld [vmem:[%s4570_s6 + $0x290] sm:$0xff]  }
  0x5d   : > { %476 = vst [vmem:[%s4575_s23 + $0x180] sm:$0xff] %v475_v16   ;;  %480 = vst [vmem:[%s4575_s23 + $0x188] sm:$0xff] %v479_v17   ;;  %v487_v19 = vld [vmem:[%s4570_s6 + $0x298] sm:$0xff]   ;;  %v491_v20 = vld [vmem:[%s4570_s6 + $0x2a0] sm:$0xff]  }
  0x5e   : > { %484 = vst [vmem:[%s4575_s23 + $0x190] sm:$0xff] %v483_v18   ;;  %v495_v21 = vld [vmem:[%s4570_s6 + $0x2a8] sm:$0xff]   ;;  %488 = vst [vmem:[%s4575_s23 + $0x198] sm:$0xff] %v487_v19   ;;  %v499_v22 = vld [vmem:[%s4570_s6 + $0x2b0] sm:$0xff]  }
  0x5f   : > { %492 = vst [vmem:[%s4575_s23 + $0x1a0] sm:$0xff] %v491_v20   ;;  %496 = vst [vmem:[%s4575_s23 + $0x1a8] sm:$0xff] %v495_v21   ;;  %v503_v23 = vld [vmem:[%s4570_s6 + $0x2b8] sm:$0xff]   ;;  %v507_v24 = vld [vmem:[%s4570_s6 + $0x2c0] sm:$0xff]  }
  0x60   : > { %500 = vst [vmem:[%s4575_s23 + $0x1b0] sm:$0xff] %v499_v22   ;;  %504 = vst [vmem:[%s4575_s23 + $0x1b8] sm:$0xff] %v503_v23   ;;  %v511_v25 = vld [vmem:[%s4570_s6 + $0x2c8] sm:$0xff]   ;;  %v515_v26 = vld [vmem:[%s4570_s6 + $0x2d0] sm:$0xff]  }
  0x61   : > { %508 = vst [vmem:[%s4575_s23 + $0x1c0] sm:$0xff] %v507_v24   ;;  %v519_v27 = vld [vmem:[%s4570_s6 + $0x2d8] sm:$0xff]   ;;  %512 = vst [vmem:[%s4575_s23 + $0x1c8] sm:$0xff] %v511_v25   ;;  %v523_v28 = vld [vmem:[%s4570_s6 + $0x2e0] sm:$0xff]  }
  0x62   : > { %516 = vst [vmem:[%s4575_s23 + $0x1d0] sm:$0xff] %v515_v26   ;;  %520 = vst [vmem:[%s4575_s23 + $0x1d8] sm:$0xff] %v519_v27   ;;  %v527_v29 = vld [vmem:[%s4570_s6 + $0x2e8] sm:$0xff]   ;;  %v531_v30 = vld [vmem:[%s4570_s6 + $0x2f0] sm:$0xff]  }
  0x63   : > { %524 = vst [vmem:[%s4575_s23 + $0x1e0] sm:$0xff] %v523_v28   ;;  %528 = vst [vmem:[%s4575_s23 + $0x1e8] sm:$0xff] %v527_v29   ;;  %v535_v31 = vld [vmem:[%s4570_s6 + $0x2f8] sm:$0xff]   ;;  %v539_v32 = vld [vmem:[%s4570_s6 + $0x400] sm:$0xff]  }
  0x64   : > { %532 = vst [vmem:[%s4575_s23 + $0x1f0] sm:$0xff] %v531_v30   ;;  %v543_v33 = vld [vmem:[%s4570_s6 + $0x408] sm:$0xff]   ;;  %536 = vst [vmem:[%s4575_s23 + $0x1f8] sm:$0xff] %v535_v31   ;;  %v547_v34 = vld [vmem:[%s4570_s6 + $0x410] sm:$0xff]  }
  0x65   : > { %540 = vst [vmem:[%s4575_s23 + $0x200] sm:$0xff] %v539_v32   ;;  %544 = vst [vmem:[%s4575_s23 + $0x208] sm:$0xff] %v543_v33   ;;  %v551_v35 = vld [vmem:[%s4570_s6 + $0x418] sm:$0xff]   ;;  %v555_v36 = vld [vmem:[%s4570_s6 + $0x420] sm:$0xff]  }
  0x66   : > { %548 = vst [vmem:[%s4575_s23 + $0x210] sm:$0xff] %v547_v34   ;;  %552 = vst [vmem:[%s4575_s23 + $0x218] sm:$0xff] %v551_v35   ;;  %v559_v37 = vld [vmem:[%s4570_s6 + $0x428] sm:$0xff]   ;;  %v563_v38 = vld [vmem:[%s4570_s6 + $0x430] sm:$0xff]  }
  0x67   : > { %556 = vst [vmem:[%s4575_s23 + $0x220] sm:$0xff] %v555_v36   ;;  %v567_v39 = vld [vmem:[%s4570_s6 + $0x438] sm:$0xff]   ;;  %560 = vst [vmem:[%s4575_s23 + $0x228] sm:$0xff] %v559_v37   ;;  %v571_v40 = vld [vmem:[%s4570_s6 + $0x440] sm:$0xff]  }
  0x68   : > { %564 = vst [vmem:[%s4575_s23 + $0x230] sm:$0xff] %v563_v38   ;;  %568 = vst [vmem:[%s4575_s23 + $0x238] sm:$0xff] %v567_v39   ;;  %v575_v41 = vld [vmem:[%s4570_s6 + $0x448] sm:$0xff]   ;;  %v579_v42 = vld [vmem:[%s4570_s6 + $0x450] sm:$0xff]  }
  0x69   : > { %572 = vst [vmem:[%s4575_s23 + $0x240] sm:$0xff] %v571_v40   ;;  %576 = vst [vmem:[%s4575_s23 + $0x248] sm:$0xff] %v575_v41   ;;  %v583_v43 = vld [vmem:[%s4570_s6 + $0x458] sm:$0xff]   ;;  %v587_v44 = vld [vmem:[%s4570_s6 + $0x460] sm:$0xff]  }
  0x6a   : > { %580 = vst [vmem:[%s4575_s23 + $0x250] sm:$0xff] %v579_v42   ;;  %v591_v45 = vld [vmem:[%s4570_s6 + $0x468] sm:$0xff]   ;;  %584 = vst [vmem:[%s4575_s23 + $0x258] sm:$0xff] %v583_v43   ;;  %v595_v46 = vld [vmem:[%s4570_s6 + $0x470] sm:$0xff]  }
  0x6b   : > { %588 = vst [vmem:[%s4575_s23 + $0x260] sm:$0xff] %v587_v44   ;;  %592 = vst [vmem:[%s4575_s23 + $0x268] sm:$0xff] %v591_v45   ;;  %v599_v47 = vld [vmem:[%s4570_s6 + $0x478] sm:$0xff]   ;;  %v603_v48 = vld [vmem:[%s4570_s6 + $0x480] sm:$0xff]  }
  0x6c   : > { %596 = vst [vmem:[%s4575_s23 + $0x270] sm:$0xff] %v595_v46   ;;  %600 = vst [vmem:[%s4575_s23 + $0x278] sm:$0xff] %v599_v47   ;;  %v607_v49 = vld [vmem:[%s4570_s6 + $0x488] sm:$0xff]   ;;  %v611_v50 = vld [vmem:[%s4570_s6 + $0x490] sm:$0xff]  }
  0x6d   : > { %604 = vst [vmem:[%s4575_s23 + $0x280] sm:$0xff] %v603_v48   ;;  %v615_v51 = vld [vmem:[%s4570_s6 + $0x498] sm:$0xff]   ;;  %608 = vst [vmem:[%s4575_s23 + $0x288] sm:$0xff] %v607_v49   ;;  %v619_v52 = vld [vmem:[%s4570_s6 + $0x4a0] sm:$0xff]  }
  0x6e   : > { %612 = vst [vmem:[%s4575_s23 + $0x290] sm:$0xff] %v611_v50   ;;  %616 = vst [vmem:[%s4575_s23 + $0x298] sm:$0xff] %v615_v51   ;;  %v623_v53 = vld [vmem:[%s4570_s6 + $0x4a8] sm:$0xff]   ;;  %v627_v54 = vld [vmem:[%s4570_s6 + $0x4b0] sm:$0xff]  }
  0x6f   : > { %620 = vst [vmem:[%s4575_s23 + $0x2a0] sm:$0xff] %v619_v52   ;;  %624 = vst [vmem:[%s4575_s23 + $0x2a8] sm:$0xff] %v623_v53   ;;  %v631_v55 = vld [vmem:[%s4570_s6 + $0x4b8] sm:$0xff]   ;;  %v635_v56 = vld [vmem:[%s4570_s6 + $0x4c0] sm:$0xff]  }
  0x70   : > { %628 = vst [vmem:[%s4575_s23 + $0x2b0] sm:$0xff] %v627_v54   ;;  %v639_v57 = vld [vmem:[%s4570_s6 + $0x4c8] sm:$0xff]   ;;  %632 = vst [vmem:[%s4575_s23 + $0x2b8] sm:$0xff] %v631_v55   ;;  %v643_v58 = vld [vmem:[%s4570_s6 + $0x4d0] sm:$0xff]  }
  0x71   : > { %636 = vst [vmem:[%s4575_s23 + $0x2c0] sm:$0xff] %v635_v56   ;;  %640 = vst [vmem:[%s4575_s23 + $0x2c8] sm:$0xff] %v639_v57   ;;  %v647_v59 = vld [vmem:[%s4570_s6 + $0x4d8] sm:$0xff]   ;;  %v651_v60 = vld [vmem:[%s4570_s6 + $0x4e0] sm:$0xff]  }
  0x72   : > { %644 = vst [vmem:[%s4575_s23 + $0x2d0] sm:$0xff] %v643_v58   ;;  %648 = vst [vmem:[%s4575_s23 + $0x2d8] sm:$0xff] %v647_v59   ;;  %v655_v61 = vld [vmem:[%s4570_s6 + $0x4e8] sm:$0xff]   ;;  %v659_v62 = vld [vmem:[%s4570_s6 + $0x4f0] sm:$0xff]  }
  0x73   : > { %652 = vst [vmem:[%s4575_s23 + $0x2e0] sm:$0xff] %v651_v60   ;;  %v663_v63 = vld [vmem:[%s4570_s6 + $0x4f8] sm:$0xff]   ;;  %656 = vst [vmem:[%s4575_s23 + $0x2e8] sm:$0xff] %v655_v61   ;;  %v667_v0 = vld [vmem:[%s4570_s6 + $0x600] sm:$0xff]  }
  0x74   : > { %660 = vst [vmem:[%s4575_s23 + $0x2f0] sm:$0xff] %v659_v62   ;;  %664 = vst [vmem:[%s4575_s23 + $0x2f8] sm:$0xff] %v663_v63   ;;  %v671_v1 = vld [vmem:[%s4570_s6 + $0x608] sm:$0xff]   ;;  %v675_v2 = vld [vmem:[%s4570_s6 + $0x610] sm:$0xff]  }
  0x75   : > { %668 = vst [vmem:[%s4575_s23 + $0x300] sm:$0xff] %v667_v0   ;;  %672 = vst [vmem:[%s4575_s23 + $0x308] sm:$0xff] %v671_v1   ;;  %v679_v3 = vld [vmem:[%s4570_s6 + $0x618] sm:$0xff]   ;;  %v683_v4 = vld [vmem:[%s4570_s6 + $0x620] sm:$0xff]  }
  0x76   : > { %676 = vst [vmem:[%s4575_s23 + $0x310] sm:$0xff] %v675_v2   ;;  %v687_v5 = vld [vmem:[%s4570_s6 + $0x628] sm:$0xff]   ;;  %680 = vst [vmem:[%s4575_s23 + $0x318] sm:$0xff] %v679_v3   ;;  %v691_v6 = vld [vmem:[%s4570_s6 + $0x630] sm:$0xff]  }
  0x77   : > { %684 = vst [vmem:[%s4575_s23 + $0x320] sm:$0xff] %v683_v4   ;;  %688 = vst [vmem:[%s4575_s23 + $0x328] sm:$0xff] %v687_v5   ;;  %v695_v7 = vld [vmem:[%s4570_s6 + $0x638] sm:$0xff]   ;;  %v699_v8 = vld [vmem:[%s4570_s6 + $0x640] sm:$0xff]  }
  0x78   : > { %692 = vst [vmem:[%s4575_s23 + $0x330] sm:$0xff] %v691_v6   ;;  %696 = vst [vmem:[%s4575_s23 + $0x338] sm:$0xff] %v695_v7   ;;  %v703_v9 = vld [vmem:[%s4570_s6 + $0x648] sm:$0xff]   ;;  %v707_v10 = vld [vmem:[%s4570_s6 + $0x650] sm:$0xff]  }
  0x79   : > { %700 = vst [vmem:[%s4575_s23 + $0x340] sm:$0xff] %v699_v8   ;;  %v711_v11 = vld [vmem:[%s4570_s6 + $0x658] sm:$0xff]   ;;  %704 = vst [vmem:[%s4575_s23 + $0x348] sm:$0xff] %v703_v9   ;;  %v715_v12 = vld [vmem:[%s4570_s6 + $0x660] sm:$0xff]  }
  0x7a   : > { %708 = vst [vmem:[%s4575_s23 + $0x350] sm:$0xff] %v707_v10   ;;  %712 = vst [vmem:[%s4575_s23 + $0x358] sm:$0xff] %v711_v11   ;;  %v719_v13 = vld [vmem:[%s4570_s6 + $0x668] sm:$0xff]   ;;  %v723_v14 = vld [vmem:[%s4570_s6 + $0x670] sm:$0xff]  }
  0x7b   : > { %716 = vst [vmem:[%s4575_s23 + $0x360] sm:$0xff] %v715_v12   ;;  %720 = vst [vmem:[%s4575_s23 + $0x368] sm:$0xff] %v719_v13   ;;  %v727_v15 = vld [vmem:[%s4570_s6 + $0x678] sm:$0xff]   ;;  %v731_v16 = vld [vmem:[%s4570_s6 + $0x680] sm:$0xff]  }
  0x7c   : > { %724 = vst [vmem:[%s4575_s23 + $0x370] sm:$0xff] %v723_v14   ;;  %v735_v17 = vld [vmem:[%s4570_s6 + $0x688] sm:$0xff]   ;;  %728 = vst [vmem:[%s4575_s23 + $0x378] sm:$0xff] %v727_v15   ;;  %v739_v18 = vld [vmem:[%s4570_s6 + $0x690] sm:$0xff]  }
  0x7d   : > { %732 = vst [vmem:[%s4575_s23 + $0x380] sm:$0xff] %v731_v16   ;;  %736 = vst [vmem:[%s4575_s23 + $0x388] sm:$0xff] %v735_v17   ;;  %v743_v19 = vld [vmem:[%s4570_s6 + $0x698] sm:$0xff]   ;;  %v747_v20 = vld [vmem:[%s4570_s6 + $0x6a0] sm:$0xff]  }
  0x7e   : > { %740 = vst [vmem:[%s4575_s23 + $0x390] sm:$0xff] %v739_v18   ;;  %744 = vst [vmem:[%s4575_s23 + $0x398] sm:$0xff] %v743_v19   ;;  %v751_v21 = vld [vmem:[%s4570_s6 + $0x6a8] sm:$0xff]   ;;  %v755_v22 = vld [vmem:[%s4570_s6 + $0x6b0] sm:$0xff]  }
  0x7f   : > { %748 = vst [vmem:[%s4575_s23 + $0x3a0] sm:$0xff] %v747_v20   ;;  %v759_v23 = vld [vmem:[%s4570_s6 + $0x6b8] sm:$0xff]   ;;  %752 = vst [vmem:[%s4575_s23 + $0x3a8] sm:$0xff] %v751_v21   ;;  %v763_v24 = vld [vmem:[%s4570_s6 + $0x6c0] sm:$0xff]  }
  0x80   : > { %756 = vst [vmem:[%s4575_s23 + $0x3b0] sm:$0xff] %v755_v22   ;;  %760 = vst [vmem:[%s4575_s23 + $0x3b8] sm:$0xff] %v759_v23   ;;  %v767_v25 = vld [vmem:[%s4570_s6 + $0x6c8] sm:$0xff]   ;;  %v771_v26 = vld [vmem:[%s4570_s6 + $0x6d0] sm:$0xff]  }
  0x81   : > { %764 = vst [vmem:[%s4575_s23 + $0x3c0] sm:$0xff] %v763_v24   ;;  %768 = vst [vmem:[%s4575_s23 + $0x3c8] sm:$0xff] %v767_v25   ;;  %v775_v27 = vld [vmem:[%s4570_s6 + $0x6d8] sm:$0xff]   ;;  %v779_v28 = vld [vmem:[%s4570_s6 + $0x6e0] sm:$0xff]  }
  0x82   : > { %772 = vst [vmem:[%s4575_s23 + $0x3d0] sm:$0xff] %v771_v26   ;;  %v783_v29 = vld [vmem:[%s4570_s6 + $0x6e8] sm:$0xff]   ;;  %776 = vst [vmem:[%s4575_s23 + $0x3d8] sm:$0xff] %v775_v27   ;;  %v787_v30 = vld [vmem:[%s4570_s6 + $0x6f0] sm:$0xff]  }
  0x83   : > { %780 = vst [vmem:[%s4575_s23 + $0x3e0] sm:$0xff] %v779_v28   ;;  %784 = vst [vmem:[%s4575_s23 + $0x3e8] sm:$0xff] %v783_v29   ;;  %v791_v31 = vld [vmem:[%s4570_s6 + $0x6f8] sm:$0xff]  }
  0x84   : > { %788 = vst [vmem:[%s4575_s23 + $0x3f0] sm:$0xff] %v787_v30   ;;  %792 = vst [vmem:[%s4575_s23 + $0x3f8] sm:$0xff] %v791_v31  }
  0x85 PF: > { %p5148_p4 = scmp.ne.s32.totalorder %s5146_s24, 0 }
  0x86   : > { %s1336_s17 = sand.u32 (!%p5148_p4), 1, %s4381_s15   ;;  %p5149_p6 = scmp.eq.s32.totalorder (!%p5148_p4), %s4435_s18, 0 }
  0x87   : > { %1333 = sbr.rel (%p5148_p4) target bundleno = 582 (0x246), region = 92  ;;  %s3382_s7 = sshll.u32 (!%p5148_p4), %s1336_s17, 8 }
  0x88   : > { %s3383_s8 = sshll.u32 (!%p5148_p4), %s1336_s17, 10  ;;  %s4833_s9 = scalar_lea.vmem (!%p5148_p4), [#allocation3], %s3382_s7 }
  0x89   : > { %s4835_s10 = scalar_lea.vmem (!%p5148_p4), [#allocation4], %s3383_s8 }
  0x8c   : > { %4372 = dma.done.wait (%p5149_p6), [#allocation6], 16   ;;  %p5150_p7 = pmov %p5149_p6 }
  0x8d   : > { %p5151_p8 = pmov %p5149_p6 }
  0x8e   : > { %4374 = vsyncadd (%p5150_p7), [#allocation6], 4294967280 }
  0x8f   : > { %4376 = dma.done.wait (%p5151_p8), [#allocation8], 16   ;;  %p5152_p10 = pmov %p5149_p6 }
  0x90   : > { %p5153_p11 = scmp.ne.s32.totalorder %s4435_s18, 0 }
  0x91   : > { %4378 = vsyncadd (%p5152_p10), [#allocation8], 4294967280 }
  0x92   : > { %1381 = sbr.rel (%p5153_p11) target bundleno = 160 (0xa0), region = 112 }
  0x97   : > { %v4393_v32 = vmov 0.0  }
  0x98   : > { %1382 = vst [vmem:[#allocation2 + $0x30] sm:$0xff] %v4393_v32  ;;  %1383 = vst [vmem:[#allocation2] sm:$0xff] %v4393_v32 }
  0x99   : > { %1384 = vst [vmem:[#allocation2 + $0x58] sm:$0xff] %v4393_v32  ;;  %1385 = vst [vmem:[#allocation2 + $0x18] sm:$0xff] %v4393_v32 }
  0x9a   : > { %1386 = vst [vmem:[#allocation2 + $0x50] sm:$0xff] %v4393_v32  ;;  %1387 = vst [vmem:[#allocation2 + $0x68] sm:$0xff] %v4393_v32 }
  0x9b   : > { %1388 = vst [vmem:[#allocation2 + $0x8] sm:$0xff] %v4393_v32  ;;  %1389 = vst [vmem:[#allocation2 + $0x48] sm:$0xff] %v4393_v32 }
  0x9c   : > { %1390 = vst [vmem:[#allocation2 + $0x40] sm:$0xff] %v4393_v32  ;;  %1391 = vst [vmem:[#allocation2 + $0x20] sm:$0xff] %v4393_v32 }
  0x9d   : > { %1392 = vst [vmem:[#allocation2 + $0x10] sm:$0xff] %v4393_v32  ;;  %1393 = vst [vmem:[#allocation2 + $0x38] sm:$0xff] %v4393_v32 }
  0x9e   : > { %1394 = vst [vmem:[#allocation2 + $0x60] sm:$0xff] %v4393_v32  ;;  %1395 = vst [vmem:[#allocation2 + $0x70] sm:$0xff] %v4393_v32 }
  0x9f   : > { %1396 = vst [vmem:[#allocation2 + $0x78] sm:$0xff] %v4393_v32  ;;  %1397 = vst [vmem:[#allocation2 + $0x28] sm:$0xff] %v4393_v32 }
  0xa0 PF: > { %v4129_v33 = vld [vmem:[%s4835_s10 + $0x78] sm:$0xff]   ;;  %v4133_v37 = vld [vmem:[%s4835_s10 + $0x70] sm:$0xff]   ;;  %v4137_v41 = vld [vmem:[%s4835_s10 + $0x68] sm:$0xff]   ;;  %p3763_p2 = scmp.ne.s32.totalorder %s4435_s18, 1 }
  0xa1   : > { %v4130_v34 = vld [vmem:[%s4835_s10 + $0xf8] sm:$0xff]   ;;  %3859 = vmatprep.subr.bf16.mxu0 %v4129_v33  ;;  %v4134_v38 = vld [vmem:[%s4835_s10 + $0xf0] sm:$0xff]   ;;  %v4138_v42 = vld [vmem:[%s4835_s10 + $0xe8] sm:$0xff]  }
  0xa2   : > { %v4131_v35 = vld [vmem:[%s4835_s10 + $0x38] sm:$0xff]   ;;  %3887 = vmatprep.subr.bf16.mxu1 %v4130_v34  ;;  %v4135_v39 = vld [vmem:[%s4835_s10 + $0x30] sm:$0xff]   ;;  %v4139_v43 = vld [vmem:[%s4835_s10 + $0x28] sm:$0xff]  }
  0xa3   : > { %v4132_v36 = vld [vmem:[%s4835_s10 + $0xb8] sm:$0xff]   ;;  %3860 = vmatpush3.bf16.msra.mxu0 %v4131_v35  ;;  %v4136_v40 = vld [vmem:[%s4835_s10 + $0xb0] sm:$0xff]   ;;  %v4140_v44 = vld [vmem:[%s4835_s10 + $0xa8] sm:$0xff]  }
  0xa4   : > { %3888 = vmatpush3.bf16.msra.mxu1 %v4132_v36  ;;  %3861 = vmatprep.subr.bf16.mxu0 %v4133_v37  ;;  %v4141_v45 = vld [vmem:[%s4835_s10 + $0x60] sm:$0xff]   ;;  %v4145_v49 = vld [vmem:[%s4835_s10 + $0x58] sm:$0xff]   ;;  %v4149_v53 = vld [vmem:[%s4835_s10 + $0x50] sm:$0xff]  }
  0xa5   : > { %3889 = vmatprep.subr.bf16.mxu1 %v4134_v38  ;;  %v4142_v46 = vld [vmem:[%s4835_s10 + $0xe0] sm:$0xff]   ;;  %v4146_v50 = vld [vmem:[%s4835_s10 + $0xd8] sm:$0xff]   ;;  %v4150_v54 = vld [vmem:[%s4835_s10 + $0xd0] sm:$0xff]  }
  0xa6   : > { %v4143_v47 = vld [vmem:[%s4835_s10 + $0x20] sm:$0xff]   ;;  %v4147_v51 = vld [vmem:[%s4835_s10 + $0x18] sm:$0xff]   ;;  %v4151_v55 = vld [vmem:[%s4835_s10 + $0x10] sm:$0xff]  }
  0xa7   : > { %3862 = vmatpush3.bf16.msra.mxu0 %v4135_v39  ;;  %v4144_v48 = vld [vmem:[%s4835_s10 + $0xa0] sm:$0xff]   ;;  %v4148_v52 = vld [vmem:[%s4835_s10 + $0x98] sm:$0xff]   ;;  %v4152_v56 = vld [vmem:[%s4835_s10 + $0x90] sm:$0xff]  }
  0xa8   : > { %3890 = vmatpush3.bf16.msra.mxu1 %v4136_v40  ;;  %3863 = vmatprep.subr.bf16.mxu0 %v4137_v41  ;;  %v4153_v57 = vld [vmem:[%s4835_s10 + $0x48] sm:$0xff]   ;;  %v4157_v61 = vld [vmem:[%s4835_s10 + $0x40] sm:$0xff]   ;;  %v4167_v5 = vld [vmem:[%s4835_s10 + $0x178] sm:$0xff]  }
  0xa9   : > { %3891 = vmatprep.subr.bf16.mxu1 %v4138_v42  ;;  %v4154_v58 = vld [vmem:[%s4835_s10 + $0xc8] sm:$0xff]   ;;  %v4158_v62 = vld [vmem:[%s4835_s10 + $0xc0] sm:$0xff]   ;;  %v4168_v6 = vld [vmem:[%s4835_s10 + $0x1f8] sm:$0xff]  }
  0xaa   : > { %v4155_v59 = vld [vmem:[%s4835_s10 + $0x8] sm:$0xff]   ;;  %v4159_v63 = vld [vmem:[%s4835_s10] sm:$0xff]   ;;  %v4169_v7 = vld [vmem:[%s4835_s10 + $0x138] sm:$0xff]  }
  0xab   : > { %3864 = vmatpush3.bf16.msra.mxu0 %v4139_v43  ;;  %v4156_v60 = vld [vmem:[%s4835_s10 + $0x88] sm:$0xff]   ;;  %v4160_v0 = vld [vmem:[%s4835_s10 + $0x80] sm:$0xff]   ;;  %v4170_v8 = vld [vmem:[%s4835_s10 + $0x1b8] sm:$0xff]  }
  0xac   : > { %3892 = vmatpush3.bf16.msra.mxu1 %v4140_v44  ;;  %3865 = vmatprep.subr.bf16.mxu0 %v4141_v45  ;;  %v4161_v1 = vld [vmem:[%s4833_s9] ss:$16 sps:$4 sm:$0xff]   ;;  %v4163_v2 = vld [vmem:[%s4833_s9 + $0x4] ss:$16 sps:$4 sm:$0xff]   ;;  %v4164_v3 = vld [vmem:[%s4833_s9 + $0x8] ss:$16 sps:$4 sm:$0xff]  }
  0xad   : > { %3893 = vmatprep.subr.bf16.mxu1 %v4142_v46  ;;  %v4166_v4 = vld [vmem:[%s4833_s9 + $0xc] ss:$16 sps:$4 sm:$0xff]   ;;  %1738 = vmatprep.mubr.bf16.mxu0 %v4163_v2  ;;  %v4171_v9 = vld [vmem:[%s4835_s10 + $0x170] sm:$0xff]   ;;  %v4179_v17 = vld [vmem:[%s4835_s10 + $0x160] sm:$0xff]  }
  0xae   : > { %1787 = vmatprep.mubr.bf16.mxu1 %v4166_v4  ;;  %v4172_v10 = vld [vmem:[%s4835_s10 + $0x1f0] sm:$0xff]   ;;  %v4175_v13 = vld [vmem:[%s4835_s10 + $0x168] sm:$0xff]   ;;  %v4180_v18 = vld [vmem:[%s4835_s10 + $0x1e0] sm:$0xff]  }
  0xaf   : > { %3866 = vmatpush3.bf16.msra.mxu0 %v4143_v47  ;;  %v4173_v11 = vld [vmem:[%s4835_s10 + $0x130] sm:$0xff]   ;;  %v4176_v14 = vld [vmem:[%s4835_s10 + $0x1e8] sm:$0xff]   ;;  %v4181_v19 = vld [vmem:[%s4835_s10 + $0x120] sm:$0xff]  }
  0xb0   : > { %3894 = vmatpush3.bf16.msra.mxu1 %v4144_v48  ;;  %3867 = vmatprep.subr.bf16.mxu0 %v4145_v49  ;;  %v4174_v12 = vld [vmem:[%s4835_s10 + $0x1b0] sm:$0xff]   ;;  %v4177_v15 = vld [vmem:[%s4835_s10 + $0x128] sm:$0xff]   ;;  %v4182_v20 = vld [vmem:[%s4835_s10 + $0x1a0] sm:$0xff]  }
  0xb1   : > { %3895 = vmatprep.subr.bf16.mxu1 %v4146_v50  ;;  %v4178_v16 = vld [vmem:[%s4835_s10 + $0x1a8] sm:$0xff]   ;;  %v4183_v21 = vld [vmem:[%s4835_s10 + $0x158] sm:$0xff]   ;;  %v4187_v25 = vld [vmem:[%s4833_s9 + $0x24] ss:$16 sps:$4 sm:$0xff]  }
  0xb2   : > { %v4184_v22 = vld [vmem:[%s4835_s10 + $0x1d8] sm:$0xff]   ;;  %v4191_v27 = vld [vmem:[%s4833_s9 + $0x20] ss:$16 sps:$4 sm:$0xff]   ;;  %v4197_v33 = vld [vmem:[%s4835_s10 + $0x148] sm:$0xff]  }
  0xb3   : > { %3868 = vmatpush3.bf16.msra.mxu0 %v4147_v51  ;;  %v4185_v23 = vld [vmem:[%s4835_s10 + $0x118] sm:$0xff]   ;;  %v4193_v29 = vld [vmem:[%s4835_s10 + $0x150] sm:$0xff]   ;;  %v4198_v34 = vld [vmem:[%s4835_s10 + $0x1c8] sm:$0xff]  }
  0xb4   : > { %3896 = vmatpush3.bf16.msra.mxu1 %v4148_v52  ;;  %3869 = vmatprep.subr.bf16.mxu0 %v4149_v53  ;;  %v4186_v24 = vld [vmem:[%s4835_s10 + $0x198] sm:$0xff]   ;;  %v4194_v30 = vld [vmem:[%s4835_s10 + $0x1d0] sm:$0xff]   ;;  %v4199_v35 = vld [vmem:[%s4835_s10 + $0x108] sm:$0xff]  }
  0xb5   : > { %3897 = vmatprep.subr.bf16.mxu1 %v4150_v54  ;;  %v4189_v26 = vld [vmem:[%s4833_s9 + $0x2c] ss:$16 sps:$4 sm:$0xff]   ;;  %v4192_v28 = vld [vmem:[%s4833_s9 + $0x28] ss:$16 sps:$4 sm:$0xff]   ;;  %v4195_v31 = vld [vmem:[%s4835_s10 + $0x110] sm:$0xff]  }
  0xb6   : > { %v4196_v32 = vld [vmem:[%s4835_s10 + $0x190] sm:$0xff]   ;;  %v4200_v36 = vld [vmem:[%s4835_s10 + $0x188] sm:$0xff]   ;;  %v4201_v37 = vld [vmem:[%s4835_s10 + $0x140] sm:$0xff]  }
  0xb7   : > { %3870 = vmatpush3.bf16.msra.mxu0 %v4151_v55  ;;  %v4202_v38 = vld [vmem:[%s4835_s10 + $0x1c0] sm:$0xff]   ;;  %v4208_v43 = vld [vmem:[%s4833_s9 + $0x48] ss:$16 sps:$4 sm:$0xff]   ;;  %v4210_v44 = vld [vmem:[%s4833_s9 + $0x4c] ss:$16 sps:$4 sm:$0xff]  }
  0xb8   : > { %3898 = vmatpush3.bf16.msra.mxu1 %v4152_v56  ;;  %3871 = vmatprep.subr.bf16.mxu0 %v4153_v57  ;;  %v4203_v39 = vld [vmem:[%s4835_s10 + $0x100] sm:$0xff]   ;;  %v4211_v45 = vld [vmem:[%s4835_s10 + $0x278] sm:$0xff]   ;;  %v4215_v49 = vld [vmem:[%s4835_s10 + $0x270] sm:$0xff]  }
  0xb9   : > { %3899 = vmatprep.subr.bf16.mxu1 %v4154_v58  ;;  %v4204_v40 = vld [vmem:[%s4835_s10 + $0x180] sm:$0xff]   ;;  %v4212_v46 = vld [vmem:[%s4835_s10 + $0x2f8] sm:$0xff]   ;;  %v4216_v50 = vld [vmem:[%s4835_s10 + $0x2f0] sm:$0xff]  }
  0xba   : > { %v4205_v41 = vld [vmem:[%s4833_s9 + $0x40] ss:$16 sps:$4 sm:$0xff]   ;;  %v4207_v42 = vld [vmem:[%s4833_s9 + $0x44] ss:$16 sps:$4 sm:$0xff]   ;;  %v4213_v47 = vld [vmem:[%s4835_s10 + $0x238] sm:$0xff]  }
  0xbb   : > { %3872 = vmatpush3.bf16.msra.mxu0 %v4155_v59  ;;  %v4214_v48 = vld [vmem:[%s4835_s10 + $0x2b8] sm:$0xff]   ;;  %v4217_v51 = vld [vmem:[%s4835_s10 + $0x230] sm:$0xff]   ;;  %v4219_v53 = vld [vmem:[%s4835_s10 + $0x268] sm:$0xff]  }
  0xbc   : > { %3900 = vmatpush3.bf16.msra.mxu1 %v4156_v60  ;;  %3873 = vmatprep.subr.bf16.mxu0 %v4157_v61  ;;  %v4218_v52 = vld [vmem:[%s4835_s10 + $0x2b0] sm:$0xff]   ;;  %v4220_v54 = vld [vmem:[%s4835_s10 + $0x2e8] sm:$0xff]   ;;  %v4223_v57 = vld [vmem:[%s4835_s10 + $0x260] sm:$0xff]  }
  0xbd   : > { %3901 = vmatprep.subr.bf16.mxu1 %v4158_v62  ;;  %v4221_v55 = vld [vmem:[%s4835_s10 + $0x228] sm:$0xff]   ;;  %v4224_v58 = vld [vmem:[%s4835_s10 + $0x2e0] sm:$0xff]   ;;  %v4227_v61 = vld [vmem:[%s4835_s10 + $0x258] sm:$0xff]  }
  0xbe   : > { %v4222_v56 = vld [vmem:[%s4835_s10 + $0x2a8] sm:$0xff]   ;;  %v4225_v59 = vld [vmem:[%s4835_s10 + $0x220] sm:$0xff]   ;;  %v4228_v62 = vld [vmem:[%s4835_s10 + $0x2d8] sm:$0xff]  }
  0xbf   : > { %3874 = vmatpush3.bf16.msra.mxu0 %v4159_v63  ;;  %v4226_v60 = vld [vmem:[%s4835_s10 + $0x2a0] sm:$0xff]   ;;  %v4229_v63 = vld [vmem:[%s4835_s10 + $0x218] sm:$0xff]  }
  0xc0   : > { %3902 = vmatpush3.bf16.msra.mxu1 %v4160_v0  ;;  %3915 = vmatprep.subr.bf16.mxu0 %v4167_v5  ;;  %v4230_v0 = vld [vmem:[%s4835_s10 + $0x298] sm:$0xff]   ;;  %v4237_v5 = vld [vmem:[%s4835_s10 + $0x250] sm:$0xff]  }
  0xc1   : > { %3943 = vmatprep.subr.bf16.mxu1 %v4168_v6  ;;  %v4233_v2 = vld [vmem:[%s4833_s9 + $0x6c] ss:$16 sps:$4 sm:$0xff]   ;;  %v4236_v4 = vld [vmem:[%s4833_s9 + $0x68] ss:$16 sps:$4 sm:$0xff]   ;;  %v4238_v6 = vld [vmem:[%s4835_s10 + $0x2d0] sm:$0xff]  }
  0xc2   : > { %1739 = vmatmul.mubr.bf16.vlgmr.msra.gmra.mxu0 %v4161_v1  ;;  %v4231_v1 = vld [vmem:[%s4833_s9 + $0x64] ss:$16 sps:$4 sm:$0xff]  }
  0xc3   : > { %1788 = vmatmul.mubr.bf16.vlgmr.msra.gmra.mxu1 %v4164_v3  ;;  %3916 = vmatpush3.bf16.msra.mxu0 %v4169_v7  ;;  %v4235_v3 = vld [vmem:[%s4833_s9 + $0x60] ss:$16 sps:$4 sm:$0xff]  }
  0xc4   : > { %3944 = vmatpush3.bf16.msra.mxu1 %v4170_v8  ;;  %3917 = vmatprep.subr.bf16.mxu0 %v4171_v9  ;;  %v4239_v7 = vld [vmem:[%s4835_s10 + $0x210] sm:$0xff]   ;;  %v4241_v9 = vld [vmem:[%s4835_s10 + $0x248] sm:$0xff]  }
  0xc5   : > { %3945 = vmatprep.subr.bf16.mxu1 %v4172_v10  ;;  %1746 = vmatprep.mubr.bf16.mxu0 %v4187_v25  ;;  %v4240_v8 = vld [vmem:[%s4835_s10 + $0x290] sm:$0xff]   ;;  %v4242_v10 = vld [vmem:[%s4835_s10 + $0x2c8] sm:$0xff]  }
  0xc6   : > { %1795 = vmatprep.mubr.bf16.mxu1 %v4189_v26  ;;  %v4259_v25 = vld [vmem:[%s4835_s10 + $0x370] sm:$0xff]  }
  0xc7   : > { %3918 = vmatpush3.bf16.msra.mxu0 %v4173_v11  ;;  %v4243_v11 = vld [vmem:[%s4835_s10 + $0x208] sm:$0xff]   ;;  %v4260_v26 = vld [vmem:[%s4835_s10 + $0x3f0] sm:$0xff]  }
  0xc8   : > { %3946 = vmatpush3.bf16.msra.mxu1 %v4174_v12  ;;  %3919 = vmatprep.subr.bf16.mxu0 %v4175_v13  ;;  %v4244_v12 = vld [vmem:[%s4835_s10 + $0x288] sm:$0xff]   ;;  %v4245_v13 = vld [vmem:[%s4835_s10 + $0x240] sm:$0xff]  }
  0xc9   : > { %3947 = vmatprep.subr.bf16.mxu1 %v4176_v14  ;;  %v4246_v14 = vld [vmem:[%s4835_s10 + $0x2c0] sm:$0xff]  }
  0xca   : > { %1747 = vmatmul.mubr.bf16.gmra.mxu0 %v4191_v27  ;;  %v4261_v27 = vld [vmem:[%s4835_s10 + $0x330] sm:$0xff]  }
  0xcb   : > { %3920 = vmatpush3.bf16.msra.mxu0 %v4177_v15  ;;  %1796 = vmatmul.mubr.bf16.gmra.mxu1 %v4192_v28  ;;  %v4247_v15 = vld [vmem:[%s4835_s10 + $0x200] sm:$0xff]   ;;  %v4262_v28 = vld [vmem:[%s4835_s10 + $0x3b0] sm:$0xff]  }
  0xcc   : > { %3948 = vmatpush3.bf16.msra.mxu1 %v4178_v16  ;;  %3921 = vmatprep.subr.bf16.mxu0 %v4179_v17  ;;  %v4248_v16 = vld [vmem:[%s4835_s10 + $0x280] sm:$0xff]  }
  0xcd   : > { %3949 = vmatprep.subr.bf16.mxu1 %v4180_v18  ;;  %2155 = vmatprep.mubr.bf16.mxu0 %v4207_v42  ;;  %v4249_v17 = vld [vmem:[%s4833_s9 + $0x80] ss:$16 sps:$4 sm:$0xff]   ;;  %v4251_v18 = vld [vmem:[%s4833_s9 + $0x84] ss:$16 sps:$4 sm:$0xff]   ;;  %v4278_v42 = vld [vmem:[%s4835_s10 + $0x398] sm:$0xff]  }
  0xce   : > { %2204 = vmatprep.mubr.bf16.mxu1 %v4210_v44  ;;  %v4280_v44 = vld [vmem:[%s4833_s9 + $0xa8] ss:$16 sps:$4 sm:$0xff]  }
  0xcf   : > { %3922 = vmatpush3.bf16.msra.mxu0 %v4181_v19  ;;  %v4252_v19 = vld [vmem:[%s4833_s9 + $0x88] ss:$16 sps:$4 sm:$0xff]  }
  0xd0   : > { %3950 = vmatpush3.bf16.msra.mxu1 %v4182_v20  ;;  %3923 = vmatprep.subr.bf16.mxu0 %v4183_v21  ;;  %v4254_v20 = vld [vmem:[%s4833_s9 + $0x8c] ss:$16 sps:$4 sm:$0xff]  }
  0xd1   : > { %3951 = vmatprep.subr.bf16.mxu1 %v4184_v22  ;;  %v4255_v21 = vld [vmem:[%s4835_s10 + $0x378] sm:$0xff]  }
  0xd2   : > { %v4256_v22 = vld [vmem:[%s4835_s10 + $0x3f8] sm:$0xff]  }
  0xd3   : > { %3924 = vmatpush3.bf16.msra.mxu0 %v4185_v23  ;;  %v4257_v23 = vld [vmem:[%s4835_s10 + $0x338] sm:$0xff]  }
  0xd4   : > { %3952 = vmatpush3.bf16.msra.mxu1 %v4186_v24  ;;  %3925 = vmatprep.subr.bf16.mxu0 %v4193_v29  ;;  %v4258_v24 = vld [vmem:[%s4835_s10 + $0x3b8] sm:$0xff]   ;;  %v4263_v29 = vld [vmem:[%s4835_s10 + $0x368] sm:$0xff]  }
  0xd5   : > { %3953 = vmatprep.subr.bf16.mxu1 %v4194_v30  ;;  %v4264_v30 = vld [vmem:[%s4835_s10 + $0x3e8] sm:$0xff]  }
  0xd7   : > { %3926 = vmatpush3.bf16.msra.mxu0 %v4195_v31  ;;  %v4265_v31 = vld [vmem:[%s4835_s10 + $0x328] sm:$0xff]  }
  0xd8   : > { %3954 = vmatpush3.bf16.msra.mxu1 %v4196_v32  ;;  %3927 = vmatprep.subr.bf16.mxu0 %v4197_v33  ;;  %v4266_v32 = vld [vmem:[%s4835_s10 + $0x3a8] sm:$0xff]   ;;  %v4267_v33 = vld [vmem:[%s4835_s10 + $0x360] sm:$0xff]  }
  0xd9   : > { %3955 = vmatprep.subr.bf16.mxu1 %v4198_v34  ;;  %v4268_v34 = vld [vmem:[%s4835_s10 + $0x3e0] sm:$0xff]  }
  0xdb   : > { %3928 = vmatpush3.bf16.msra.mxu0 %v4199_v35  ;;  %v4269_v35 = vld [vmem:[%s4835_s10 + $0x320] sm:$0xff]  }
  0xdc   : > { %3956 = vmatpush3.bf16.msra.mxu1 %v4200_v36  ;;  %3929 = vmatprep.subr.bf16.mxu0 %v4201_v37  ;;  %v4270_v36 = vld [vmem:[%s4835_s10 + $0x3a0] sm:$0xff]   ;;  %v4271_v37 = vld [vmem:[%s4835_s10 + $0x358] sm:$0xff]  }
  0xdd   : > { %3957 = vmatprep.subr.bf16.mxu1 %v4202_v38  ;;  %v4272_v38 = vld [vmem:[%s4835_s10 + $0x3d8] sm:$0xff]  }
  0xdf   : > { %3930 = vmatpush3.bf16.msra.mxu0 %v4203_v39  ;;  %v4273_v39 = vld [vmem:[%s4833_s9 + $0xa4] ss:$16 sps:$4 sm:$0xff]  }
  0xe0   : > { %3958 = vmatpush3.bf16.msra.mxu1 %v4204_v40  ;;  %3971 = vmatprep.subr.bf16.mxu0 %v4211_v45  ;;  %v4275_v40 = vld [vmem:[%s4833_s9 + $0xac] ss:$16 sps:$4 sm:$0xff]   ;;  %v4281_v45 = vld [vmem:[%s4835_s10 + $0x350] sm:$0xff]  }
  0xe1   : > { %3999 = vmatprep.subr.bf16.mxu1 %v4212_v46  ;;  %v4282_v46 = vld [vmem:[%s4835_s10 + $0x3d0] sm:$0xff]  }
  0xe2   : > { %2156 = vmatmul.mubr.bf16.vlgmr.msra.gmra.mxu0 %v4205_v41  ;;  %v4277_v41 = vld [vmem:[%s4835_s10 + $0x318] sm:$0xff]  }
  0xe3   : > { %2205 = vmatmul.mubr.bf16.vlgmr.msra.gmra.mxu1 %v4208_v43  ;;  %3972 = vmatpush3.bf16.msra.mxu0 %v4213_v47  ;;  %v4279_v43 = vld [vmem:[%s4833_s9 + $0xa0] ss:$16 sps:$4 sm:$0xff]  }
  0xe4   : > { %4000 = vmatpush3.bf16.msra.mxu1 %v4214_v48  ;;  %3973 = vmatprep.subr.bf16.mxu0 %v4215_v49  ;;  %v4283_v47 = vld [vmem:[%s4835_s10 + $0x310] sm:$0xff]   ;;  %v4285_v49 = vld [vmem:[%s4835_s10 + $0x348] sm:$0xff]  }
  0xe5   : > { %4001 = vmatprep.subr.bf16.mxu1 %v4216_v50  ;;  %2163 = vmatprep.mubr.bf16.mxu0 %v4231_v1  ;;  %v4284_v48 = vld [vmem:[%s4835_s10 + $0x390] sm:$0xff]   ;;  %v4286_v50 = vld [vmem:[%s4835_s10 + $0x3c8] sm:$0xff]  }
  0xe6   : > { %2212 = vmatprep.mubr.bf16.mxu1 %v4233_v2 }
  0xe7   : > { %3974 = vmatpush3.bf16.msra.mxu0 %v4217_v51  ;;  %v4287_v51 = vld [vmem:[%s4835_s10 + $0x308] sm:$0xff]  }
  0xe8   : > { %4002 = vmatpush3.bf16.msra.mxu1 %v4218_v52  ;;  %3975 = vmatprep.subr.bf16.mxu0 %v4219_v53  ;;  %v4288_v52 = vld [vmem:[%s4835_s10 + $0x388] sm:$0xff]   ;;  %v4289_v53 = vld [vmem:[%s4835_s10 + $0x340] sm:$0xff]  }
  0xe9   : > { %4003 = vmatprep.subr.bf16.mxu1 %v4220_v54  ;;  %v4290_v54 = vld [vmem:[%s4835_s10 + $0x3c0] sm:$0xff]  }
  0xea   : > { %2164 = vmatmul.mubr.bf16.gmra.mxu0 %v4235_v3 }
  0xeb   : > { %3976 = vmatpush3.bf16.msra.mxu0 %v4221_v55  ;;  %2213 = vmatmul.mubr.bf16.gmra.mxu1 %v4236_v4  ;;  %v4291_v55 = vld [vmem:[%s4835_s10 + $0x300] sm:$0xff]  }
  0xec   : > { %4004 = vmatpush3.bf16.msra.mxu1 %v4222_v56  ;;  %3977 = vmatprep.subr.bf16.mxu0 %v4223_v57  ;;  %v4292_v56 = vld [vmem:[%s4835_s10 + $0x380] sm:$0xff]  }
  0xed   : > { %4005 = vmatprep.subr.bf16.mxu1 %v4224_v58  ;;  %2572 = vmatprep.mubr.bf16.mxu0 %v4251_v18  ;;  %v4293_v57 = vld [vmem:[%s4833_s9 + $0xc0] ss:$16 sps:$4 sm:$0xff]   ;;  %v4295_v58 = vld [vmem:[%s4833_s9 + $0xc4] ss:$16 sps:$4 sm:$0xff]  }
  0xee   : > { %2621 = vmatprep.mubr.bf16.mxu1 %v4254_v20 }
  0xef   : > { %3978 = vmatpush3.bf16.msra.mxu0 %v4225_v59  ;;  %v4296_v59 = vld [vmem:[%s4833_s9 + $0xc8] ss:$16 sps:$4 sm:$0xff]  }
  0xf0   : > { %4006 = vmatpush3.bf16.msra.mxu1 %v4226_v60  ;;  %3979 = vmatprep.subr.bf16.mxu0 %v4227_v61  ;;  %v4298_v60 = vld [vmem:[%s4833_s9 + $0xcc] ss:$16 sps:$4 sm:$0xff]   ;;  %v4299_v61 = vld [vmem:[%s4833_s9 + $0xe4] ss:$16 sps:$4 sm:$0xff]  }
  0xf1   : > { %4007 = vmatprep.subr.bf16.mxu1 %v4228_v62  ;;  %v4301_v62 = vld [vmem:[%s4833_s9 + $0xec] ss:$16 sps:$4 sm:$0xff]  }
  0xf3   : > { %3980 = vmatpush3.bf16.msra.mxu0 %v4229_v63  ;;  %v4303_v63 = vld [vmem:[%s4833_s9 + $0xe0] ss:$16 sps:$4 sm:$0xff]  }
  0xf4   : > { %4008 = vmatpush3.bf16.msra.mxu1 %v4230_v0  ;;  %3981 = vmatprep.subr.bf16.mxu0 %v4237_v5  ;;  %v4304_v0 = vld [vmem:[%s4833_s9 + $0xe8] ss:$16 sps:$4 sm:$0xff]  }
  0xf5   : > { %4009 = vmatprep.subr.bf16.mxu1 %v4238_v6 }
  0xf7   : > { %3982 = vmatpush3.bf16.msra.mxu0 %v4239_v7 }
  0xf8   : > { %4010 = vmatpush3.bf16.msra.mxu1 %v4240_v8  ;;  %3983 = vmatprep.subr.bf16.mxu0 %v4241_v9  ;;  %v1398_v8 = vld [vmem:[#allocation2 + $0x30] sm:$0xff] }
  0xf9   : > { %4011 = vmatprep.subr.bf16.mxu1 %v4242_v10 }
  0xfb   : > { %3984 = vmatpush3.bf16.msra.mxu0 %v4243_v11 }
  0xfc   : > { %4012 = vmatpush3.bf16.msra.mxu1 %v4244_v12  ;;  %3985 = vmatprep.subr.bf16.mxu0 %v4245_v13 }
  0xfd   : > { %4013 = vmatprep.subr.bf16.mxu1 %v4246_v14 }
  0xff   : > { %3986 = vmatpush3.bf16.msra.mxu0 %v4247_v15 }
 0x100   : > { %4014 = vmatpush3.bf16.msra.mxu1 %v4248_v16  ;;  %4027 = vmatprep.subr.bf16.mxu0 %v4255_v21  ;;  %v1399_v16 = vld [vmem:[#allocation2] sm:$0xff] }
 0x101   : > { %4055 = vmatprep.subr.bf16.mxu1 %v4256_v22 }
 0x102   : > { %2573 = vmatmul.mubr.bf16.vlgmr.msra.gmra.mxu0 %v4249_v17 }
 0x103   : > { %2622 = vmatmul.mubr.bf16.vlgmr.msra.gmra.mxu1 %v4252_v19  ;;  %4028 = vmatpush3.bf16.msra.mxu0 %v4257_v23 }
 0x104   : > { %4056 = vmatpush3.bf16.msra.mxu1 %v4258_v24  ;;  %4029 = vmatprep.subr.bf16.mxu0 %v4259_v25 }
 0x105   : > { %4057 = vmatprep.subr.bf16.mxu1 %v4260_v26  ;;  %2580 = vmatprep.mubr.bf16.mxu0 %v4273_v39  ;;  %v1400_v26 = vld [vmem:[#allocation2 + $0x58] sm:$0xff] }
 0x106   : > { %2629 = vmatprep.mubr.bf16.mxu1 %v4275_v40 }
 0x107   : > { %4030 = vmatpush3.bf16.msra.mxu0 %v4261_v27 }
 0x108   : > { %4058 = vmatpush3.bf16.msra.mxu1 %v4262_v28  ;;  %4031 = vmatprep.subr.bf16.mxu0 %v4263_v29 }
 0x109   : > { %4059 = vmatprep.subr.bf16.mxu1 %v4264_v30 }
 0x10a   : > { %2581 = vmatmul.mubr.bf16.gmra.mxu0 %v4279_v43 }
 0x10b   : > { %4032 = vmatpush3.bf16.msra.mxu0 %v4265_v31  ;;  %2630 = vmatmul.mubr.bf16.gmra.mxu1 %v4280_v44  ;;  %v1813_v44 = vld [vmem:[#allocation2 + $0x50] sm:$0xff] }
 0x10c   : > { %4060 = vmatpush3.bf16.msra.mxu1 %v4266_v32  ;;  %4033 = vmatprep.subr.bf16.mxu0 %v4267_v33 }
 0x10d   : > { %4061 = vmatprep.subr.bf16.mxu1 %v4268_v34  ;;  %2989 = vmatprep.mubr.bf16.mxu0 %v4295_v58  ;;  %v1401_v34 = vld [vmem:[#allocation2 + $0x18] sm:$0xff] }
 0x10e   : > { %3038 = vmatprep.mubr.bf16.mxu1 %v4298_v60 }
 0x10f   : > { %4034 = vmatpush3.bf16.msra.mxu0 %v4269_v35 }
 0x110   : > { %4062 = vmatpush3.bf16.msra.mxu1 %v4270_v36  ;;  %4035 = vmatprep.subr.bf16.mxu0 %v4271_v37 }
 0x111   : > { %4063 = vmatprep.subr.bf16.mxu1 %v4272_v38 }
 0x113   : > { %4036 = vmatpush3.bf16.msra.mxu0 %v4277_v41 }
 0x114   : > { %4064 = vmatpush3.bf16.msra.mxu1 %v4278_v42  ;;  %4037 = vmatprep.subr.bf16.mxu0 %v4281_v45 }
 0x115   : > { %4065 = vmatprep.subr.bf16.mxu1 %v4282_v46 }
 0x117   : > { %4038 = vmatpush3.bf16.msra.mxu0 %v4283_v47 }
 0x118   : > { %4066 = vmatpush3.bf16.msra.mxu1 %v4284_v48  ;;  %4039 = vmatprep.subr.bf16.mxu0 %v4285_v49 }
 0x119   : > { %4067 = vmatprep.subr.bf16.mxu1 %v4286_v50 }
 0x11b   : > { %4040 = vmatpush3.bf16.msra.mxu0 %v4287_v51 }
 0x11c   : > { %4068 = vmatpush3.bf16.msra.mxu1 %v4288_v52  ;;  %4041 = vmatprep.subr.bf16.mxu0 %v4289_v53  ;;  %v1814_v52 = vld [vmem:[#allocation2 + $0x68] sm:$0xff] }
 0x11d   : > { %4069 = vmatprep.subr.bf16.mxu1 %v4290_v54 }
 0x11f   : > { %4042 = vmatpush3.bf16.msra.mxu0 %v4291_v55 }
 0x120   : > { %4070 = vmatpush3.bf16.msra.mxu1 %v4292_v56 }
 0x122   : > { %2990 = vmatmul.mubr.bf16.vlgmr.msra.gmra.mxu0 %v4293_v57 }
 0x123   : > { %3039 = vmatmul.mubr.bf16.vlgmr.msra.gmra.mxu1 %v4296_v59  ;;  %2997 = vmatprep.mubr.bf16.mxu0 %v4299_v61  ;;  %v1815_v61 = vld [vmem:[#allocation2 + $0x8] sm:$0xff] }
 0x124   : > { %3046 = vmatprep.mubr.bf16.mxu1 %v4301_v62 }
 0x12a   : > { %2998 = vmatmul.mubr.bf16.gmra.mxu0 %v4303_v63 }
 0x12b   : > { %3047 = vmatmul.mubr.bf16.gmra.mxu1 %v4304_v0 }
 0x182   : > { %v3875_v1 = vpop.f32.mrf.mxu0 }
 0x183   : > { %v3903_v2 = vpop.f32.mrf.mxu1 }
 0x184   : > { %v3876_v3 = vpop.f32.mrf.mxu0 }
 0x185   : > { %v3877_v4 = vadd.f32 %v3876_v3, %v3875_v1  ;;  %v3904_v5 = vpop.f32.mrf.mxu1 }
 0x186   : > { %v3905_v6 = vadd.f32 %v3904_v5, %v3903_v2  ;;  %v3878_v7 = vpop.f32.mrf.mxu0 }
 0x187   : > { %v3906_v9 = vpop.f32.mrf.mxu1 }
 0x188   : > { %v1790_v10 = vadd.f32 %v3905_v6, %v3877_v4  ;;  %v3879_v11 = vpop.f32.mrf.mxu0  ;;  %v1816_v6 = vld [vmem:[#allocation2 + $0x48] sm:$0xff] }
 0x189   : > { %v3880_v12 = vadd.f32 %v3879_v11, %v3878_v7  ;;  %v3907_v13 = vpop.f32.mrf.mxu1 }
 0x18a   : > { %v1804_v14 = vadd.f32 %v1790_v10, %v1398_v8  ;;  %v3908_v15 = vadd.f32 %v3907_v13, %v3906_v9  ;;  %v3881_v19 = vpop.f32.mrf.mxu0 }
 0x18b   : > { %v3909_v20 = vpop.f32.mrf.mxu1 }
 0x18c   : > { %1808 = vst [vmem:[#allocation2 + $0x30] sm:$0xff] %v1804_v14  ;;  %v1793_v17 = vadd.f32 %v3908_v15, %v3880_v12  ;;  %v3882_v21 = vpop.f32.mrf.mxu0 }
 0x18d   : > { %v3883_v22 = vadd.f32 %v3882_v21, %v3881_v19  ;;  %v3910_v23 = vpop.f32.mrf.mxu1 }
 0x18e   : > { %v1805_v18 = vadd.f32 %v1793_v17, %v1399_v16  ;;  %v3911_v24 = vadd.f32 %v3910_v23, %v3909_v20  ;;  %v3884_v25 = vpop.f32.mrf.mxu0  ;;  %v2230_v16 = vld [vmem:[#allocation2 + $0x40] sm:$0xff] }
 0x18f   : > { %v3912_v27 = vpop.f32.mrf.mxu1 }
 0x190   : > { %1809 = vst [vmem:[#allocation2] sm:$0xff] %v1805_v18  ;;  %v1798_v28 = vadd.f32 %v3911_v24, %v3883_v22  ;;  %v3885_v29 = vpop.f32.mrf.mxu0  ;;  %v2231_v24 = vld [vmem:[#allocation2 + $0x20] sm:$0xff] }
 0x191   : > { %v3886_v30 = vadd.f32 %v3885_v29, %v3884_v25  ;;  %v3913_v31 = vpop.f32.mrf.mxu1 }
 0x192   : > { %v1806_v32 = vadd.f32 %v1798_v28, %v1400_v26  ;;  %v3914_v33 = vadd.f32 %v3913_v31, %v3912_v27 }
 0x194   : > { %1810 = vst [vmem:[#allocation2 + $0x58] sm:$0xff] %v1806_v32  ;;  %v1801_v35 = vadd.f32 %v3914_v33, %v3886_v30 }
 0x196   : > { %v1807_v36 = vadd.f32 %v1801_v35, %v1401_v34  ;;  %v2232_v34 = vld [vmem:[#allocation2 + $0x10] sm:$0xff] }
 0x198   : > { %1811 = vst [vmem:[#allocation2 + $0x18] sm:$0xff] %v1807_v36 }
 0x1a2   : > { %v3931_v37 = vpop.f32.mrf.mxu0 }
 0x1a3   : > { %v3959_v38 = vpop.f32.mrf.mxu1 }
 0x1a4   : > { %v3932_v39 = vpop.f32.mrf.mxu0 }
 0x1a5   : > { %v3933_v40 = vadd.f32 %v3932_v39, %v3931_v37  ;;  %v3960_v41 = vpop.f32.mrf.mxu1 }
 0x1a6   : > { %v3961_v42 = vadd.f32 %v3960_v41, %v3959_v38  ;;  %v3934_v43 = vpop.f32.mrf.mxu0 }
 0x1a7   : > { %v3962_v45 = vpop.f32.mrf.mxu1 }
 0x1a8   : > { %v2207_v46 = vadd.f32 %v3961_v42, %v3933_v40  ;;  %v3935_v47 = vpop.f32.mrf.mxu0  ;;  %v2233_v42 = vld [vmem:[#allocation2 + $0x38] sm:$0xff] }
 0x1a9   : > { %v3936_v48 = vadd.f32 %v3935_v47, %v3934_v43  ;;  %v3963_v49 = vpop.f32.mrf.mxu1 }
 0x1aa   : > { %v2221_v50 = vadd.f32 %v2207_v46, %v1813_v44  ;;  %v3964_v51 = vadd.f32 %v3963_v49, %v3962_v45  ;;  %v3937_v55 = vpop.f32.mrf.mxu0 }
 0x1ab   : > { %v3965_v56 = vpop.f32.mrf.mxu1 }
 0x1ac   : > { %2225 = vst [vmem:[#allocation2 + $0x50] sm:$0xff] %v2221_v50  ;;  %v2210_v53 = vadd.f32 %v3964_v51, %v3936_v48  ;;  %v3938_v57 = vpop.f32.mrf.mxu0 }
 0x1ad   : > { %v3966_v58 = vpop.f32.mrf.mxu1  ;;  %v3939_v59 = vadd.f32 %v3938_v57, %v3937_v55 }
 0x1ae   : > { %v2222_v54 = vadd.f32 %v2210_v53, %v1814_v52  ;;  %v3967_v60 = vadd.f32 %v3966_v58, %v3965_v56  ;;  %v3940_v62 = vpop.f32.mrf.mxu0  ;;  %v2647_v52 = vld [vmem:[#allocation2 + $0x60] sm:$0xff] }
 0x1af   : > { %v3968_v63 = vpop.f32.mrf.mxu1 }
 0x1b0   : > { %2226 = vst [vmem:[#allocation2 + $0x68] sm:$0xff] %v2222_v54  ;;  %v2215_v0 = vadd.f32 %v3967_v60, %v3939_v59  ;;  %v3941_v1 = vpop.f32.mrf.mxu0 }
 0x1b1   : > { %v3969_v2 = vpop.f32.mrf.mxu1  ;;  %v3942_v4 = vadd.f32 %v3941_v1, %v3940_v62 }
 0x1b2   : > { %v2223_v3 = vadd.f32 %v2215_v0, %v1815_v61  ;;  %v3970_v5 = vadd.f32 %v3969_v2, %v3968_v63  ;;  %v2648_v61 = vld [vmem:[#allocation2 + $0x70] sm:$0xff] }
 0x1b4   : > { %2227 = vst [vmem:[#allocation2 + $0x8] sm:$0xff] %v2223_v3  ;;  %v2218_v7 = vadd.f32 %v3970_v5, %v3942_v4 }
 0x1b6   : > { %v2224_v8 = vadd.f32 %v2218_v7, %v1816_v6  ;;  %v2649_v6 = vld [vmem:[#allocation2 + $0x78] sm:$0xff] }
 0x1b8   : > { %2228 = vst [vmem:[#allocation2 + $0x48] sm:$0xff] %v2224_v8 }
 0x1c2   : > { %v3987_v9 = vpop.f32.mrf.mxu0 }
 0x1c3   : > { %v4015_v10 = vpop.f32.mrf.mxu1 }
 0x1c4   : > { %v3988_v11 = vpop.f32.mrf.mxu0 }
 0x1c5   : > { %v3989_v12 = vadd.f32 %v3988_v11, %v3987_v9  ;;  %v4016_v13 = vpop.f32.mrf.mxu1 }
 0x1c6   : > { %v3990_v14 = vpop.f32.mrf.mxu0  ;;  %v4017_v15 = vadd.f32 %v4016_v13, %v4015_v10 }
 0x1c7   : > { %v4018_v17 = vpop.f32.mrf.mxu1 }
 0x1c8   : > { %v3991_v18 = vpop.f32.mrf.mxu0  ;;  %v2624_v19 = vadd.f32 %v4017_v15, %v3989_v12 }
 0x1c9   : > { %v3992_v20 = vadd.f32 %v3991_v18, %v3990_v14  ;;  %v4019_v21 = vpop.f32.mrf.mxu1  ;;  %v2650_v14 = vld [vmem:[#allocation2 + $0x28] sm:$0xff] }
 0x1ca   : > { %v2638_v22 = vadd.f32 %v2624_v19, %v2230_v16  ;;  %v4020_v23 = vadd.f32 %v4019_v21, %v4018_v17  ;;  %v3993_v27 = vpop.f32.mrf.mxu0 }
 0x1cb   : > { %v4021_v28 = vpop.f32.mrf.mxu1 }
 0x1cc   : > { %2642 = vst [vmem:[#allocation2 + $0x40] sm:$0xff] %v2638_v22  ;;  %v2627_v25 = vadd.f32 %v4020_v23, %v3992_v20  ;;  %v3994_v29 = vpop.f32.mrf.mxu0 }
 0x1cd   : > { %v3995_v30 = vadd.f32 %v3994_v29, %v3993_v27  ;;  %v4022_v31 = vpop.f32.mrf.mxu1 }
 0x1ce   : > { %v2639_v26 = vadd.f32 %v2627_v25, %v2231_v24  ;;  %v4023_v32 = vadd.f32 %v4022_v31, %v4021_v28  ;;  %v3996_v33 = vpop.f32.mrf.mxu0 }
 0x1cf   : > { %v4024_v35 = vpop.f32.mrf.mxu1 }
 0x1d0   : > { %2643 = vst [vmem:[#allocation2 + $0x20] sm:$0xff] %v2639_v26  ;;  %v2632_v36 = vadd.f32 %v4023_v32, %v3995_v30  ;;  %v3997_v37 = vpop.f32.mrf.mxu0 }
 0x1d1   : > { %v3998_v38 = vadd.f32 %v3997_v37, %v3996_v33  ;;  %v4025_v39 = vpop.f32.mrf.mxu1 }
 0x1d2   : > { %v2640_v40 = vadd.f32 %v2632_v36, %v2232_v34  ;;  %v4026_v41 = vadd.f32 %v4025_v39, %v4024_v35 }
 0x1d4   : > { %2644 = vst [vmem:[#allocation2 + $0x10] sm:$0xff] %v2640_v40  ;;  %v2635_v43 = vadd.f32 %v4026_v41, %v3998_v38 }
 0x1d6   : > { %v2641_v44 = vadd.f32 %v2635_v43, %v2233_v42 }
 0x1d8   : > { %2645 = vst [vmem:[#allocation2 + $0x38] sm:$0xff] %v2641_v44 }
 0x1e2   : > { %v4043_v45 = vpop.f32.mrf.mxu0 }
 0x1e3   : > { %v4071_v46 = vpop.f32.mrf.mxu1 }
 0x1e4   : > { %v4044_v47 = vpop.f32.mrf.mxu0 }
 0x1e5   : > { %v4045_v48 = vadd.f32 %v4044_v47, %v4043_v45  ;;  %v4072_v49 = vpop.f32.mrf.mxu1 }
 0x1e6   : > { %v4073_v50 = vadd.f32 %v4072_v49, %v4071_v46  ;;  %v4046_v51 = vpop.f32.mrf.mxu0 }
 0x1e7   : > { %v4074_v53 = vpop.f32.mrf.mxu1 }
 0x1e8   : > { %v3041_v54 = vadd.f32 %v4073_v50, %v4045_v48  ;;  %v4047_v55 = vpop.f32.mrf.mxu0 }
 0x1e9   : > { %v4048_v56 = vadd.f32 %v4047_v55, %v4046_v51  ;;  %v4075_v57 = vpop.f32.mrf.mxu1 }
 0x1ea   : > { %v3055_v58 = vadd.f32 %v3041_v54, %v2647_v52  ;;  %v4076_v59 = vadd.f32 %v4075_v57, %v4074_v53  ;;  %v4049_v60 = vpop.f32.mrf.mxu0 }
 0x1eb   : > { %v4077_v62 = vpop.f32.mrf.mxu1 }
 0x1ec   : > { %3059 = vst [vmem:[#allocation2 + $0x60] sm:$0xff] %v3055_v58  ;;  %v3044_v63 = vadd.f32 %v4076_v59, %v4048_v56  ;;  %v4050_v0 = vpop.f32.mrf.mxu0 }
 0x1ed   : > { %v4051_v1 = vadd.f32 %v4050_v0, %v4049_v60  ;;  %v4078_v2 = vpop.f32.mrf.mxu1 }
 0x1ee   : > { %v3056_v3 = vadd.f32 %v3044_v63, %v2648_v61  ;;  %v4079_v4 = vadd.f32 %v4078_v2, %v4077_v62  ;;  %v4052_v5 = vpop.f32.mrf.mxu0 }
 0x1ef   : > { %v4080_v7 = vpop.f32.mrf.mxu1 }
 0x1f0   : > { %3060 = vst [vmem:[#allocation2 + $0x70] sm:$0xff] %v3056_v3  ;;  %v3049_v8 = vadd.f32 %v4079_v4, %v4051_v1  ;;  %v4053_v9 = vpop.f32.mrf.mxu0 }
 0x1f1   : > { %v4054_v10 = vadd.f32 %v4053_v9, %v4052_v5  ;;  %v4081_v11 = vpop.f32.mrf.mxu1 }
 0x1f2   : > { %v3057_v12 = vadd.f32 %v3049_v8, %v2649_v6  ;;  %v4082_v13 = vadd.f32 %v4081_v11, %v4080_v7 }
 0x1f4   : > { %3061 = vst [vmem:[#allocation2 + $0x78] sm:$0xff] %v3057_v12  ;;  %v3052_v15 = vadd.f32 %v4082_v13, %v4054_v10  ;;  %3066 = sbr.rel (%p3763_p2) target bundleno = 582 (0x246), region = 116 }
 0x1f6   : > { %v3058_v16 = vadd.f32 %v3052_v15, %v2650_v14 }
 0x1f8   : > { %3062 = vst [vmem:[#allocation2 + $0x28] sm:$0xff] %v3058_v16 }
 0x1f9   : > { %v5008_v17 = vld [vmem:[#allocation2 + $0x30] sm:$0xff]  ;;  %v5010_v18 = vld [vmem:[#allocation2] sm:$0xff]  ;;  %v5012_v19 = vld [vmem:[#allocation2 + $0x58] sm:$0xff] }
 0x1fa   : > { %v5014_v20 = vld [vmem:[#allocation2 + $0x18] sm:$0xff]  ;;  %v5016_v21 = vld [vmem:[#allocation2 + $0x50] sm:$0xff]  ;;  %v5018_v22 = vld [vmem:[#allocation2 + $0x68] sm:$0xff]  ;;  %v3095_v23 = vmul.f32 %v5008_v17, %v5008_v17  ;;  %v3096_v24 = vmul.f32 %v5010_v18, %v5010_v18  ;;  %v3097_v25 = vmul.f32 %v5012_v19, %v5012_v19 }
 0x1fb   : > { %v5026_v26 = vld [vmem:[#allocation2 + $0x8] sm:$0xff]  ;;  %v5030_v28 = vld [vmem:[#allocation2 + $0x40] sm:$0xff]  ;;  %v3083_v29 = vadd.f32 %v5016_v21, %v5008_v17  ;;  %v3084_v30 = vadd.f32 %v5018_v22, %v5010_v18  ;;  %v3098_v31 = vmul.f32 %v5014_v20, %v5014_v20  ;;  %v3099_v32 = vmul.f32 %v5016_v21, %v5016_v21  ;;  %v5042_v34 = vld [vmem:[#allocation2 + $0x10] sm:$0xff] }
 0x1fc   : > { %v5028_v27 = vld [vmem:[#allocation2 + $0x48] sm:$0xff]  ;;  %v5040_v33 = vld [vmem:[#allocation2 + $0x20] sm:$0xff]  ;;  %v5044_v35 = vld [vmem:[#allocation2 + $0x38] sm:$0xff]  ;;  %v3085_v36 = vadd.f32 %v5026_v26, %v5012_v19  ;;  %v3100_v38 = vmul.f32 %v5018_v22, %v5018_v22  ;;  %v3101_v39 = vmul.f32 %v5026_v26, %v5026_v26  ;;  %v3107_v55 = vmul.f32 %v5030_v28, %v5030_v28 }
 0x1fd   : > { %v3086_v37 = vadd.f32 %v5028_v27, %v5014_v20  ;;  %v5054_v40 = vld [vmem:[#allocation2 + $0x60] sm:$0xff]  ;;  %v5056_v41 = vld [vmem:[#allocation2 + $0x70] sm:$0xff]  ;;  %v5058_v42 = vld [vmem:[#allocation2 + $0x78] sm:$0xff]  ;;  %v3087_v43 = vadd.f32 %v3083_v29, %v5030_v28  ;;  %v3088_v44 = vadd.f32 %v3084_v30, %v5040_v33  ;;  %v3102_v45 = vmul.f32 %v5028_v27, %v5028_v27 }
 0x1fe   : > { %v3103_v46 = vadd.f32 %v3099_v32, %v3095_v23  ;;  %v3089_v47 = vadd.f32 %v3085_v36, %v5042_v34  ;;  %v3104_v49 = vadd.f32 %v3100_v38, %v3096_v24  ;;  %v3105_v50 = vadd.f32 %v3101_v39, %v3097_v25 }
 0x1ff   : > { %v3090_v48 = vadd.f32 %v3086_v37, %v5044_v35  ;;  %v5066_v51 = vld [vmem:[#allocation2 + $0x28] sm:$0xff]  ;;  %v3091_v52 = vadd.f32 %v3087_v43, %v5054_v40  ;;  %v3092_v53 = vadd.f32 %v3088_v44, %v5056_v41  ;;  %v3106_v54 = vadd.f32 %v3102_v45, %v3098_v31 }
 0x200   : > { %v3093_v56 = vadd.f32 %v3089_v47, %v5058_v42  ;;  %v3108_v57 = vmul.f32 %v5040_v33, %v5040_v33  ;;  %v3109_v58 = vmul.f32 %v5042_v34, %v5042_v34  ;;  %v3110_v59 = vmul.f32 %v5044_v35, %v5044_v35 }
 0x201   : > { %v3111_v60 = vadd.f32 %v3107_v55, %v3103_v46  ;;  %v3115_v61 = vmul.f32 %v5054_v40, %v5054_v40  ;;  %v3116_v62 = vmul.f32 %v5056_v41, %v5056_v41  ;;  %v3117_v1 = vmul.f32 %v5058_v42, %v5058_v42  ;;  %v3150_v55 = vld [vmem:[#allocation7] sm:$0x1] }
 0x202   : > { %v3112_v63 = vadd.f32 %v3108_v57, %v3104_v49  ;;  %v3113_v0 = vadd.f32 %v3109_v58, %v3105_v50  ;;  %v3118_v2 = vmul.f32 %v5066_v51, %v5066_v51  ;;  %v3094_v3 = vadd.f32 %v3090_v48, %v5066_v51  ;;  %v3146_v50 = vld [vmem:[#allocation5] sm:$0x1] }
 0x203   : > { %v3114_v4 = vadd.f32 %v3110_v59, %v3106_v54  ;;  %v3119_v5 = vadd.f32 %v3115_v61, %v3111_v60  ;;  %v3123_v6 = vadd.f32 %v3092_v53, %v3091_v52  ;;  %v3154_v48 = vlaneseq }
 0x204   : > { %v3120_v7 = vadd.f32 %v3116_v62, %v3112_v63  ;;  %v3121_v8 = vadd.f32 %v3117_v1, %v3113_v0 }
 0x205   : > { %v3124_v9 = vadd.f32 %v3123_v6, %v3093_v56  ;;  %v3122_v10 = vadd.f32 %v3118_v2, %v3114_v4  ;;  %v3155_v49 = vshrl.u32 %v3154_v48, 7 }
 0x206   : > { %v3133_v11 = vadd.f32 %v3120_v7, %v3119_v5 }
 0x207   : > { %v3125_v12 = vadd.f32 %v3124_v9, %v3094_v3  ;;  %v3156_v52 = vsub.s32 0, %v3155_v49 }
 0x208   : > { %v3134_v13 = vadd.f32 %v3133_v11, %v3121_v8 }
 0x209   : > { %v3126_v14 = vrot.slane %v3125_v12, 4 }
 0x20a   : > { %v3135_v15 = vadd.f32 %v3134_v13, %v3122_v10 }
 0x20b   : > { %v3127_v16 = vadd.f32 %v3126_v14, %v3125_v12 }
 0x20c   : > { %v3136_v23 = vrot.slane %v3135_v15, 4 }
 0x20d   : > { %v3128_v24 = vrot.slane %v3127_v16, 2 }
 0x20e   : > { %v3137_v25 = vadd.f32 %v3136_v23, %v3135_v15 }
 0x20f   : > { %v3129_v29 = vadd.f32 %v3128_v24, %v3127_v16 }
 0x210   : > { %v3138_v30 = vrot.slane %v3137_v25, 2 }
 0x211   : > { %v3130_v31 = vrot.slane %v3129_v29, 1 }
 0x212   : > { %v3139_v32 = vadd.f32 %v3138_v30, %v3137_v25 }
 0x213   : > { %v3131_v36 = vadd.f32 %v3130_v31, %v3129_v29 }
 0x214   : > { %v3140_v37 = vrot.slane %v3139_v32, 1 }
 0x215   : > { %v3132_v38 = vmul.f32 0.0078125, %v3131_v36 }
 0x216   : > { %v3141_v39 = vadd.f32 %v3140_v37, %v3139_v32 }
 0x217   : > { %v3143_v43 = vmul.f32 %v3132_v38, %v3132_v38 }
 0x218   : > { %v3142_v44 = vmul.f32 0.0078125, %v3141_v39 }
 0x21a   : > { %v3144_v45 = vsub.f32 %v3142_v44, %v3143_v43 }
 0x21c   : > { %v3145_v46 = vmax.f32 %v3144_v45, 0.0 }
 0x21e   : > { %v3147_v47 = vadd.f32 1e-05, %v3145_v46 }
 0x220   : > { %4305 = vrsqrt.f32 %v3147_v47 }
 0x22d   : > { %v4306_v53 = vpop.eup %4305 }
 0x22e   : > { %v3149_v54 = vmul.f32 %v4306_v53, %v3146_v50 }
 0x230   : > { %v3151_v56 = vmul.f32 %v3149_v54, %v3132_v38  ;;  %v3157_v57 = vrot.slane %v3149_v54, %v3156_v52 }
 0x232   : > { %v3152_v58 = vsub.f32 %v3150_v55, %v3151_v56  ;;  %v3159_v59 = vmul.f32 %v3157_v57, %v5008_v17  ;;  %v3160_v60 = vmul.f32 %v3157_v57, %v5010_v18  ;;  %v3161_v61 = vmul.f32 %v3157_v57, %v5012_v19 }
 0x233   : > { %v3162_v62 = vmul.f32 %v3157_v57, %v5014_v20  ;;  %v3197_v63 = vmul.f32 %v3157_v57, %v5016_v21  ;;  %v3198_v0 = vmul.f32 %v3157_v57, %v5018_v22  ;;  %v3199_v1 = vmul.f32 %v3157_v57, %v5026_v26 }
 0x234   : > { %v3167_v2 = vrot.slane %v3152_v58, %v3156_v52  ;;  %v3200_v3 = vmul.f32 %v3157_v57, %v5028_v27  ;;  %v3230_v4 = vmul.f32 %v3157_v57, %v5030_v28  ;;  %v3231_v5 = vmul.f32 %v3157_v57, %v5040_v33 }
 0x235   : > { %v3232_v17 = vmul.f32 %v3157_v57, %v5042_v34  ;;  %v3233_v18 = vmul.f32 %v3157_v57, %v5044_v35  ;;  %v3263_v19 = vmul.f32 %v3157_v57, %v5054_v40  ;;  %v3264_v20 = vmul.f32 %v3157_v57, %v5056_v41 }
 0x236   : > { %v3169_v21 = vadd.f32 %v3167_v2, %v3159_v59  ;;  %v3170_v6 = vadd.f32 %v3167_v2, %v3160_v60  ;;  %v3171_v22 = vadd.f32 %v3167_v2, %v3161_v61  ;;  %v3172_v7 = vadd.f32 %v3167_v2, %v3162_v62 }
 0x237   : > { %v3201_v26 = vadd.f32 %v3197_v63, %v3167_v2  ;;  %v3202_v8 = vadd.f32 %v3198_v0, %v3167_v2  ;;  %v3203_v9 = vadd.f32 %v3199_v1, %v3167_v2  ;;  %v3204_v27 = vadd.f32 %v3200_v3, %v3167_v2 }
 0x238   : > { %v3173_v10 = vmax.f32 %v3169_v21, 0.0  ;;  %v3174_v28 = vmax.f32 %v3170_v6, 0.0  ;;  %v3175_v11 = vmax.f32 %v3171_v22, 0.0  ;;  %v3176_v33 = vmax.f32 %v3172_v7, 0.0 }
 0x239   : > { %v3205_v12 = vmax.f32 %v3201_v26, 0.0  ;;  %v3206_v34 = vmax.f32 %v3202_v8, 0.0  ;;  %v3207_v13 = vmax.f32 %v3203_v9, 0.0  ;;  %v3208_v35 = vmax.f32 %v3204_v27, 0.0 }
 0x23a   : > { %v3815_v14 = vpack.c.bf16 %v3174_v28, %v3173_v10  ;;  %v3820_v40 = vpack.c.bf16 %v3176_v33, %v3175_v11  ;;  %v3234_v15 = vadd.f32 %v3230_v4, %v3167_v2  ;;  %v3235_v41 = vadd.f32 %v3231_v5, %v3167_v2 }
 0x23b   : > { %v3825_v16 = vpack.c.bf16 %v3206_v34, %v3205_v12  ;;  %v3830_v23 = vpack.c.bf16 %v3208_v35, %v3207_v13  ;;  %v3236_v24 = vadd.f32 %v3232_v17, %v3167_v2  ;;  %v3237_v25 = vadd.f32 %v3233_v18, %v3167_v2 }
 0x23c   : > { %3816 = vst [vmem:[%s5142_s4] sm:$0xff] %v3815_v14   ;;  %3852 = vst [vmem:[%s5142_s4 + $0x8] sm:$0xff] %v3820_v40   ;;  %v3238_v29 = vmax.f32 %v3234_v15, 0.0  ;;  %v3239_v30 = vmax.f32 %v3235_v41, 0.0  ;;  %v3267_v31 = vadd.f32 %v3263_v19, %v3167_v2  ;;  %v3268_v32 = vadd.f32 %v3264_v20, %v3167_v2 }
 0x23d   : > { %3853 = vst [vmem:[%s5142_s4 + $0x10] sm:$0xff] %v3825_v16   ;;  %3854 = vst [vmem:[%s5142_s4 + $0x18] sm:$0xff] %v3830_v23   ;;  %v3240_v36 = vmax.f32 %v3236_v24, 0.0  ;;  %v3241_v37 = vmax.f32 %v3237_v25, 0.0  ;;  %v3265_v38 = vmul.f32 %v3157_v57, %v5058_v42  ;;  %v3266_v39 = vmul.f32 %v3157_v57, %v5066_v51 }
 0x23e   : > { %v3835_v43 = vpack.c.bf16 %v3239_v30, %v3238_v29  ;;  %v3271_v44 = vmax.f32 %v3267_v31, 0.0  ;;  %v3272_v45 = vmax.f32 %v3268_v32, 0.0 }
 0x23f   : > { %v3840_v46 = vpack.c.bf16 %v3241_v37, %v3240_v36  ;;  %v3269_v47 = vadd.f32 %v3265_v38, %v3167_v2  ;;  %v3270_v48 = vadd.f32 %v3266_v39, %v3167_v2 }
 0x240   : > { %3855 = vst [vmem:[%s5142_s4 + $0x20] sm:$0xff] %v3835_v43   ;;  %v3845_v49 = vpack.c.bf16 %v3272_v45, %v3271_v44 }
 0x241   : > { %3856 = vst [vmem:[%s5142_s4 + $0x28] sm:$0xff] %v3840_v46   ;;  %v3273_v50 = vmax.f32 %v3269_v47, 0.0  ;;  %v3274_v52 = vmax.f32 %v3270_v48, 0.0 }
 0x242   : > { %3857 = vst [vmem:[%s5142_s4 + $0x30] sm:$0xff] %v3845_v49  }
 0x243   : > { %v3850_v42 = vpack.c.bf16 %v3274_v52, %v3273_v50 }
 0x245   : > { %3858 = vst [vmem:[%s5142_s4 + $0x38] sm:$0xff] %v3850_v42  }
 0x246 PF: > { %p13_p3 = scmp.ge.s32.totalorder %s4438_s19, 4   ;;  %s5154_s15 = smov %s4385_s16 }
 0x247   : > { %s5155_s16 = smov %s4448_s22  ;;  %s5156_s17 = smov %s4438_s19 }
 0x248   :  { %15 = sbr.rel (!%p13_p3) target bundleno = 3 (0x3), region = 168 }
 0x24d   :  { %3307 = vsyncpa [#allocation6], 1 }
 0x24e   :  { %3309 = vsyncpa [#allocation6 + $0x1], 1 }
 0x24f   :  { %3310 = vsyncpa [#allocation8], 1 }

// kernel: generator_forward.6
= control target key start
LH: loop header
LB: loop body
LE: loop exit
PB: predicated region body
PF: predicated region fallthrough
CT: control target
= control target key end

     0   :  { %vm22_vm0 = vcmask 523264   ;;  %vm3294_vm1 = vcmask 519168   ;;  %s7291_s1 = inlined_call_operand.vmem [shape: bf16[4,512,64], index: 1, kind: input, shape index: {}]   ;;  %s7292_s0 = inlined_call_operand.vmem [shape: bf16[4,128,512], index: 0, kind: input, shape index: {}]   ;;  %s7293_s2 = inlined_call_operand.vmem [shape: f32[1,64], index: 2, kind: input, shape index: {}]   ;;  %s7294_s3 = inlined_call_operand.vmem [shape: f32[1,64], index: 3, kind: input, shape index: {}]   ;;  %s7295_s4 = inlined_call_operand.vmem [shape: bf16[4,128,64], index: 4, kind: output, shape index: {}]  }
   0x1   :  { %v4935_v0 = vld [vmem:[%s7291_s1 + $0x78] sm:$0xff]   ;;  %v4939_v4 = vld [vmem:[%s7291_s1 + $0x70] sm:$0xff]   ;;  %v4943_v8 = vld [vmem:[%s7291_s1 + $0x68] sm:$0xff]  }
   0x2   :  { %v4936_v1 = vld [vmem:[%s7291_s1 + $0xf8] sm:$0xff]   ;;  %4422 = vmatprep.subr.bf16.mxu0 %v4935_v0  ;;  %v4940_v5 = vld [vmem:[%s7291_s1 + $0xf0] sm:$0xff]   ;;  %v4944_v9 = vld [vmem:[%s7291_s1 + $0xe8] sm:$0xff]  }
   0x3   :  { %v4937_v2 = vld [vmem:[%s7291_s1 + $0x38] sm:$0xff]   ;;  %4486 = vmatprep.subr.bf16.mxu1 %v4936_v1  ;;  %v4941_v6 = vld [vmem:[%s7291_s1 + $0x30] sm:$0xff]   ;;  %v4945_v10 = vld [vmem:[%s7291_s1 + $0x28] sm:$0xff]  }
   0x4   :  { %v4938_v3 = vld [vmem:[%s7291_s1 + $0xb8] sm:$0xff]   ;;  %4423 = vmatpush3.bf16.msra.mxu0 %v4937_v2  ;;  %v4942_v7 = vld [vmem:[%s7291_s1 + $0xb0] sm:$0xff]   ;;  %v4946_v11 = vld [vmem:[%s7291_s1 + $0xa8] sm:$0xff]  }
   0x5   :  { %4487 = vmatpush3.bf16.msra.mxu1 %v4938_v3  ;;  %4424 = vmatprep.subr.bf16.mxu0 %v4939_v4  ;;  %v4947_v12 = vld [vmem:[%s7291_s1 + $0x60] sm:$0xff]   ;;  %v4951_v16 = vld [vmem:[%s7291_s1 + $0x58] sm:$0xff]   ;;  %v4955_v20 = vld [vmem:[%s7291_s1 + $0x50] sm:$0xff]  }
   0x6   :  { %4488 = vmatprep.subr.bf16.mxu1 %v4940_v5  ;;  %v4948_v13 = vld [vmem:[%s7291_s1 + $0xe0] sm:$0xff]   ;;  %v4952_v17 = vld [vmem:[%s7291_s1 + $0xd8] sm:$0xff]   ;;  %v4956_v21 = vld [vmem:[%s7291_s1 + $0xd0] sm:$0xff]  }
   0x7   :  { %v4949_v14 = vld [vmem:[%s7291_s1 + $0x20] sm:$0xff]   ;;  %v4953_v18 = vld [vmem:[%s7291_s1 + $0x18] sm:$0xff]   ;;  %v4957_v22 = vld [vmem:[%s7291_s1 + $0x10] sm:$0xff]  }
   0x8   :  { %4425 = vmatpush3.bf16.msra.mxu0 %v4941_v6  ;;  %v4950_v15 = vld [vmem:[%s7291_s1 + $0xa0] sm:$0xff]   ;;  %v4954_v19 = vld [vmem:[%s7291_s1 + $0x98] sm:$0xff]   ;;  %v4958_v23 = vld [vmem:[%s7291_s1 + $0x90] sm:$0xff]  }
   0x9   :  { %4489 = vmatpush3.bf16.msra.mxu1 %v4942_v7  ;;  %4426 = vmatprep.subr.bf16.mxu0 %v4943_v8  ;;  %v4959_v24 = vld [vmem:[%s7291_s1 + $0x48] sm:$0xff]   ;;  %v4963_v28 = vld [vmem:[%s7291_s1 + $0x40] sm:$0xff]   ;;  %v4973_v36 = vld [vmem:[%s7291_s1 + $0x178] sm:$0xff]  }
   0xa   :  { %4490 = vmatprep.subr.bf16.mxu1 %v4944_v9  ;;  %v4960_v25 = vld [vmem:[%s7291_s1 + $0xc8] sm:$0xff]   ;;  %v4964_v29 = vld [vmem:[%s7291_s1 + $0xc0] sm:$0xff]   ;;  %v4974_v37 = vld [vmem:[%s7291_s1 + $0x1f8] sm:$0xff]  }
   0xb   :  { %v4961_v26 = vld [vmem:[%s7291_s1 + $0x8] sm:$0xff]   ;;  %v4965_v30 = vld [vmem:[%s7291_s1] sm:$0xff]   ;;  %v4975_v38 = vld [vmem:[%s7291_s1 + $0x138] sm:$0xff]  }
   0xc   :  { %4427 = vmatpush3.bf16.msra.mxu0 %v4945_v10  ;;  %v4962_v27 = vld [vmem:[%s7291_s1 + $0x88] sm:$0xff]   ;;  %v4966_v31 = vld [vmem:[%s7291_s1 + $0x80] sm:$0xff]   ;;  %v4976_v39 = vld [vmem:[%s7291_s1 + $0x1b8] sm:$0xff]  }
   0xd   :  { %4491 = vmatpush3.bf16.msra.mxu1 %v4946_v11  ;;  %4428 = vmatprep.subr.bf16.mxu0 %v4947_v12  ;;  %v4967_v32 = vld [vmem:[%s7292_s0] ss:$16 sps:$4 sm:$0xff]   ;;  %v4969_v33 = vld [vmem:[%s7292_s0 + $0x4] ss:$16 sps:$4 sm:$0xff]   ;;  %v4970_v34 = vld [vmem:[%s7292_s0 + $0x8] ss:$16 sps:$4 sm:$0xff]  }
   0xe   :  { %4492 = vmatprep.subr.bf16.mxu1 %v4948_v13  ;;  %v4972_v35 = vld [vmem:[%s7292_s0 + $0xc] ss:$16 sps:$4 sm:$0xff]   ;;  %583 = vmatprep.mubr.bf16.mxu0 %v4969_v33  ;;  %v4977_v40 = vld [vmem:[%s7292_s0 + $0x24] ss:$16 sps:$4 sm:$0xff]   ;;  %v4981_v42 = vld [vmem:[%s7292_s0 + $0x20] ss:$16 sps:$4 sm:$0xff]  }
   0xf   :  { %680 = vmatprep.mubr.bf16.mxu1 %v4972_v35  ;;  %v4979_v41 = vld [vmem:[%s7292_s0 + $0x2c] ss:$16 sps:$4 sm:$0xff]   ;;  %v4982_v43 = vld [vmem:[%s7292_s0 + $0x28] ss:$16 sps:$4 sm:$0xff]   ;;  %v4983_v44 = vld [vmem:[%s7291_s1 + $0x170] sm:$0xff]  }
  0x10   :  { %4429 = vmatpush3.bf16.msra.mxu0 %v4949_v14  ;;  %v4984_v45 = vld [vmem:[%s7291_s1 + $0x1f0] sm:$0xff]   ;;  %v4989_v49 = vld [vmem:[%s7292_s0 + $0x4c] ss:$16 sps:$4 sm:$0xff]   ;;  %v4992_v51 = vld [vmem:[%s7292_s0 + $0x48] ss:$16 sps:$4 sm:$0xff]  }
  0x11   :  { %4493 = vmatpush3.bf16.msra.mxu1 %v4950_v15  ;;  %4430 = vmatprep.subr.bf16.mxu0 %v4951_v16  ;;  %v4985_v46 = vld [vmem:[%s7291_s1 + $0x130] sm:$0xff]   ;;  %v4993_v52 = vld [vmem:[%s7291_s1 + $0x168] sm:$0xff]   ;;  %v5003_v60 = vld [vmem:[%s7291_s1 + $0x160] sm:$0xff]  }
  0x12   :  { %4494 = vmatprep.subr.bf16.mxu1 %v4952_v17  ;;  %v4986_v47 = vld [vmem:[%s7291_s1 + $0x1b0] sm:$0xff]   ;;  %v4994_v53 = vld [vmem:[%s7291_s1 + $0x1e8] sm:$0xff]   ;;  %v5004_v61 = vld [vmem:[%s7291_s1 + $0x1e0] sm:$0xff]  }
  0x13   :  { %v4987_v48 = vld [vmem:[%s7292_s0 + $0x44] ss:$16 sps:$4 sm:$0xff]   ;;  %v4991_v50 = vld [vmem:[%s7292_s0 + $0x40] ss:$16 sps:$4 sm:$0xff]   ;;  %v4995_v54 = vld [vmem:[%s7291_s1 + $0x128] sm:$0xff]  }
  0x14   :  { %4431 = vmatpush3.bf16.msra.mxu0 %v4953_v18  ;;  %v4996_v55 = vld [vmem:[%s7291_s1 + $0x1a8] sm:$0xff]   ;;  %v4997_v56 = vld [vmem:[%s7292_s0 + $0x64] ss:$16 sps:$4 sm:$0xff]   ;;  %v5001_v58 = vld [vmem:[%s7292_s0 + $0x60] ss:$16 sps:$4 sm:$0xff]  }
  0x15   :  { %4495 = vmatpush3.bf16.msra.mxu1 %v4954_v19  ;;  %4432 = vmatprep.subr.bf16.mxu0 %v4955_v20  ;;  %v4999_v57 = vld [vmem:[%s7292_s0 + $0x6c] ss:$16 sps:$4 sm:$0xff]   ;;  %v5002_v59 = vld [vmem:[%s7292_s0 + $0x68] ss:$16 sps:$4 sm:$0xff]   ;;  %v5005_v62 = vld [vmem:[%s7291_s1 + $0x120] sm:$0xff]  }
  0x16   :  { %4496 = vmatprep.subr.bf16.mxu1 %v4956_v21  ;;  %v5006_v63 = vld [vmem:[%s7291_s1 + $0x1a0] sm:$0xff]   ;;  %v5009_v1 = vld [vmem:[%s7292_s0 + $0x8c] ss:$16 sps:$4 sm:$0xff]   ;;  %v5012_v4 = vld [vmem:[%s7292_s0 + $0x88] ss:$16 sps:$4 sm:$0xff]  }
  0x17   :  { %v5007_v0 = vld [vmem:[%s7292_s0 + $0x84] ss:$16 sps:$4 sm:$0xff]   ;;  %v5011_v2 = vld [vmem:[%s7292_s0 + $0x80] ss:$16 sps:$4 sm:$0xff]   ;;  %v5013_v3 = vld [vmem:[%s7291_s1 + $0x158] sm:$0xff]  }
  0x18   :  { %4433 = vmatpush3.bf16.msra.mxu0 %v4957_v22  ;;  %v5014_v5 = vld [vmem:[%s7291_s1 + $0x1d8] sm:$0xff]   ;;  %v5017_v8 = vld [vmem:[%s7292_s0 + $0xa4] ss:$16 sps:$4 sm:$0xff]   ;;  %v5021_v12 = vld [vmem:[%s7292_s0 + $0xa0] ss:$16 sps:$4 sm:$0xff]  }
  0x19   :  { %4497 = vmatpush3.bf16.msra.mxu1 %v4958_v23  ;;  %4434 = vmatprep.subr.bf16.mxu0 %v4959_v24  ;;  %v5015_v6 = vld [vmem:[%s7291_s1 + $0x118] sm:$0xff]   ;;  %v5023_v10 = vld [vmem:[%s7291_s1 + $0x150] sm:$0xff]   ;;  %v5033_v18 = vld [vmem:[%s7291_s1 + $0x148] sm:$0xff]  }
  0x1a   :  { %4498 = vmatprep.subr.bf16.mxu1 %v4960_v25  ;;  %v5016_v7 = vld [vmem:[%s7291_s1 + $0x198] sm:$0xff]   ;;  %v5024_v11 = vld [vmem:[%s7291_s1 + $0x1d0] sm:$0xff]   ;;  %v5034_v19 = vld [vmem:[%s7291_s1 + $0x1c8] sm:$0xff]  }
  0x1b   :  { %v5019_v9 = vld [vmem:[%s7292_s0 + $0xac] ss:$16 sps:$4 sm:$0xff]   ;;  %v5025_v13 = vld [vmem:[%s7291_s1 + $0x110] sm:$0xff]   ;;  %v5022_v15 = vld [vmem:[%s7292_s0 + $0xa8] ss:$16 sps:$4 sm:$0xff]  }
  0x1c   :  { %4435 = vmatpush3.bf16.msra.mxu0 %v4961_v26  ;;  %v5026_v14 = vld [vmem:[%s7291_s1 + $0x190] sm:$0xff]   ;;  %v5029_v17 = vld [vmem:[%s7292_s0 + $0xcc] ss:$16 sps:$4 sm:$0xff]   ;;  %v5032_v23 = vld [vmem:[%s7292_s0 + $0xc8] ss:$16 sps:$4 sm:$0xff]  }
  0x1d   :  { %4499 = vmatpush3.bf16.msra.mxu1 %v4962_v27  ;;  %4436 = vmatprep.subr.bf16.mxu0 %v4963_v28  ;;  %v5027_v16 = vld [vmem:[%s7292_s0 + $0xc4] ss:$16 sps:$4 sm:$0xff]   ;;  %v5035_v20 = vld [vmem:[%s7291_s1 + $0x108] sm:$0xff]   ;;  %v5031_v22 = vld [vmem:[%s7292_s0 + $0xc0] ss:$16 sps:$4 sm:$0xff]  }
  0x1e   :  { %4500 = vmatprep.subr.bf16.mxu1 %v4964_v29  ;;  %v5036_v21 = vld [vmem:[%s7291_s1 + $0x188] sm:$0xff]   ;;  %v5037_v24 = vld [vmem:[%s7292_s0 + $0xe4] ss:$16 sps:$4 sm:$0xff]   ;;  %v5053_v33 = vld [vmem:[%s7291_s1 + $0x278] sm:$0xff]  }
  0x1f   :  { %v5039_v25 = vld [vmem:[%s7292_s0 + $0xec] ss:$16 sps:$4 sm:$0xff]   ;;  %v5043_v26 = vld [vmem:[%s7291_s1 + $0x140] sm:$0xff]  }
  0x20   :  { %4437 = vmatpush3.bf16.msra.mxu0 %v4965_v30  ;;  %v5044_v27 = vld [vmem:[%s7291_s1 + $0x1c0] sm:$0xff]   ;;  %v5052_v35 = vld [vmem:[%s7292_s0 + $0x10c] ss:$16 sps:$4 sm:$0xff]  }
  0x21   :  { %4501 = vmatpush3.bf16.msra.mxu1 %v4966_v31  ;;  %4550 = vmatprep.subr.bf16.mxu0 %v4973_v36  ;;  %v5045_v28 = vld [vmem:[%s7291_s1 + $0x100] sm:$0xff]   ;;  %v5042_v31 = vld [vmem:[%s7292_s0 + $0xe8] ss:$16 sps:$4 sm:$0xff]  }
  0x22   :  { %4614 = vmatprep.subr.bf16.mxu1 %v4974_v37  ;;  %v5046_v29 = vld [vmem:[%s7291_s1 + $0x180] sm:$0xff]   ;;  %v5590_v37 = vld [vmem:[%s7292_s0 + $0x108] ss:$16 sps:$4 sm:$0xff]  }
  0x23   :  { %584 = vmatmul.mubr.bf16.vlgmr.msra.gmra.mxu0 %v4967_v32  ;;  %v5041_v30 = vld [vmem:[%s7292_s0 + $0xe0] ss:$16 sps:$4 sm:$0xff]   ;;  %v5049_v32 = vld [vmem:[%s7292_s0 + $0x104] ss:$16 sps:$4 sm:$0xff]  }
  0x24   :  { %681 = vmatmul.mubr.bf16.vlgmr.msra.gmra.mxu1 %v4970_v34  ;;  %4551 = vmatpush3.bf16.msra.mxu0 %v4975_v38  ;;  %v5054_v34 = vld [vmem:[%s7291_s1 + $0x2f8] sm:$0xff]   ;;  %v5047_v36 = vld [vmem:[%s7292_s0 + $0x100] ss:$16 sps:$4 sm:$0xff]  }
  0x25   :  { %4615 = vmatpush3.bf16.msra.mxu1 %v4976_v39  ;;  %591 = vmatprep.mubr.bf16.mxu0 %v4977_v40  ;;  %v5595_v38 = vld [vmem:[%s7291_s1 + $0x238] sm:$0xff]   ;;  %v5605_v40 = vld [vmem:[%s7292_s0 + $0x124] ss:$16 sps:$4 sm:$0xff]  }
  0x26   :  { %688 = vmatprep.mubr.bf16.mxu1 %v4979_v41  ;;  %4552 = vmatprep.subr.bf16.mxu0 %v4983_v44  ;;  %v5600_v39 = vld [vmem:[%s7291_s1 + $0x2b8] sm:$0xff]   ;;  %v5625_v44 = vld [vmem:[%s7291_s1 + $0x230] sm:$0xff]  }
  0x27   :  { %4616 = vmatprep.subr.bf16.mxu1 %v4984_v45  ;;  %v5610_v41 = vld [vmem:[%s7292_s0 + $0x12c] ss:$16 sps:$4 sm:$0xff]   ;;  %v5258_v45 = vmov 0.0  }
  0x28   :  { %4553 = vmatpush3.bf16.msra.mxu0 %v4985_v46  ;;  %23 = vst.msk [vmem:[#allocation2] sm:$0xff] %vm22_vm0, %v5258_v45  ;;  %24 = vst.msk [vmem:[#allocation2 + $0x8] sm:$0xff] %vm22_vm0, %v5258_v45  ;;  %v5066_v46 = vld [vmem:[%s7291_s1 + $0x2b0] sm:$0xff]  }
  0x29   :  { %4617 = vmatpush3.bf16.msra.mxu1 %v4986_v47  ;;  %4554 = vmatprep.subr.bf16.mxu0 %v4993_v52  ;;  %25 = vst.msk [vmem:[#allocation2 + $0x10] sm:$0xff] %vm22_vm0, %v5258_v45  ;;  %26 = vst.msk [vmem:[#allocation2 + $0x18] sm:$0xff] %vm22_vm0, %v5258_v45  ;;  %v5061_v47 = vld [vmem:[%s7292_s0 + $0x120] ss:$16 sps:$4 sm:$0xff]   ;;  %v5069_v52 = vld [vmem:[%s7292_s0 + $0x14c] ss:$16 sps:$4 sm:$0xff]  }
  0x2a   :  { %4618 = vmatprep.subr.bf16.mxu1 %v4994_v53  ;;  %27 = vst.msk [vmem:[#allocation2 + $0x20] sm:$0xff] %vm22_vm0, %v5258_v45  ;;  %28 = vst.msk [vmem:[#allocation2 + $0x28] sm:$0xff] %vm22_vm0, %v5258_v45  ;;  %v5075_v53 = vld [vmem:[%s7291_s1 + $0x228] sm:$0xff]  }
  0x2b   :  { %592 = vmatmul.mubr.bf16.gmra.mxu0 %v4981_v42  ;;  %v5615_v42 = vld [vmem:[%s7291_s1 + $0x270] sm:$0xff]   ;;  %29 = vst.msk [vmem:[#allocation2 + $0x30] sm:$0xff] %vm22_vm0, %v5258_v45  ;;  %30 = vst.msk [vmem:[#allocation2 + $0x38] sm:$0xff] %vm22_vm0, %v5258_v45 }
  0x2c   :  { %689 = vmatmul.mubr.bf16.gmra.mxu1 %v4982_v43  ;;  %599 = vmatprep.mubr.bf16.mxu0 %v4987_v48  ;;  %v5620_v43 = vld [vmem:[%s7291_s1 + $0x2f0] sm:$0xff]   ;;  %31 = vst.msk [vmem:[#allocation2 + $0x40] sm:$0xff] %vm22_vm0, %v5258_v45  ;;  %32 = vst.msk [vmem:[#allocation2 + $0x48] sm:$0xff] %vm22_vm0, %v5258_v45  ;;  %v5073_v48 = vld [vmem:[%s7291_s1 + $0x268] sm:$0xff]  }
  0x2d   :  { %696 = vmatprep.mubr.bf16.mxu1 %v4989_v49  ;;  %4555 = vmatpush3.bf16.msra.mxu0 %v4995_v54  ;;  %33 = vst.msk [vmem:[#allocation2 + $0x50] sm:$0xff] %vm22_vm0, %v5258_v45  ;;  %34 = vst.msk [vmem:[#allocation2 + $0x58] sm:$0xff] %vm22_vm0, %v5258_v45  ;;  %v5062_v49 = vld [vmem:[%s7292_s0 + $0x128] ss:$16 sps:$4 sm:$0xff]  }
  0x2e   :  { %4619 = vmatpush3.bf16.msra.mxu1 %v4996_v55  ;;  %4556 = vmatprep.subr.bf16.mxu0 %v5003_v60  ;;  %35 = vst.msk [vmem:[#allocation2 + $0x60] sm:$0xff] %vm22_vm0, %v5258_v45  ;;  %36 = vst.msk [vmem:[#allocation2 + $0x68] sm:$0xff] %vm22_vm0, %v5258_v45  ;;  %v5076_v54 = vld [vmem:[%s7291_s1 + $0x2a8] sm:$0xff]   ;;  %v5083_v55 = vld [vmem:[%s7291_s1 + $0x260] sm:$0xff]  }
  0x2f   :  { %4620 = vmatprep.subr.bf16.mxu1 %v5004_v61  ;;  %37 = vst.msk [vmem:[#allocation2 + $0x70] sm:$0xff] %vm22_vm0, %v5258_v45  ;;  %38 = vst.msk [vmem:[#allocation2 + $0x78] sm:$0xff] %vm22_vm0, %v5258_v45  ;;  %v5072_v60 = vld [vmem:[%s7292_s0 + $0x148] ss:$16 sps:$4 sm:$0xff]   ;;  %v5077_v61 = vld [vmem:[%s7292_s0 + $0x164] ss:$16 sps:$4 sm:$0xff]  }
  0x30   :  { %39 = vst.msk [vmem:[#allocation2 + $0x80] sm:$0xff] %vm22_vm0, %v5258_v45  ;;  %40 = vst.msk [vmem:[#allocation2 + $0x88] sm:$0xff] %vm22_vm0, %v5258_v45 }
  0x31   :  { %4557 = vmatpush3.bf16.msra.mxu0 %v5005_v62  ;;  %41 = vst.msk [vmem:[#allocation2 + $0x90] sm:$0xff] %vm22_vm0, %v5258_v45  ;;  %42 = vst.msk [vmem:[#allocation2 + $0x98] sm:$0xff] %vm22_vm0, %v5258_v45  ;;  %v5079_v62 = vld [vmem:[%s7292_s0 + $0x16c] ss:$16 sps:$4 sm:$0xff]  }
  0x32   :  { %4621 = vmatpush3.bf16.msra.mxu1 %v5006_v63  ;;  %4558 = vmatprep.subr.bf16.mxu0 %v5013_v3  ;;  %43 = vst.msk [vmem:[#allocation2 + $0xa0] sm:$0xff] %vm22_vm0, %v5258_v45  ;;  %44 = vst.msk [vmem:[#allocation2 + $0xa8] sm:$0xff] %vm22_vm0, %v5258_v45  ;;  %v5093_v63 = vld [vmem:[%s7291_s1 + $0x258] sm:$0xff]   ;;  %v5081_v3 = vld [vmem:[%s7292_s0 + $0x160] ss:$16 sps:$4 sm:$0xff]  }
  0x33   :  { %600 = vmatmul.mubr.bf16.gmra.mxu0 %v4991_v50  ;;  %4622 = vmatprep.subr.bf16.mxu1 %v5014_v5  ;;  %45 = vst.msk [vmem:[#allocation2 + $0xb0] sm:$0xff] %vm22_vm0, %v5258_v45  ;;  %46 = vst.msk [vmem:[#allocation2 + $0xb8] sm:$0xff] %vm22_vm0, %v5258_v45  ;;  %v5074_v50 = vld [vmem:[%s7291_s1 + $0x2e8] sm:$0xff]   ;;  %v5087_v5 = vld [vmem:[%s7292_s0 + $0x184] ss:$16 sps:$4 sm:$0xff]  }
  0x34   :  { %697 = vmatmul.mubr.bf16.gmra.mxu1 %v4992_v51  ;;  %607 = vmatprep.mubr.bf16.mxu0 %v4997_v56  ;;  %47 = vst.msk [vmem:[#allocation2 + $0xc0] sm:$0xff] %vm22_vm0, %v5258_v45  ;;  %48 = vst.msk [vmem:[#allocation2 + $0xc8] sm:$0xff] %vm22_vm0, %v5258_v45  ;;  %v5067_v51 = vld [vmem:[%s7292_s0 + $0x144] ss:$16 sps:$4 sm:$0xff]  }
  0x35   :  { %704 = vmatprep.mubr.bf16.mxu1 %v4999_v57  ;;  %4559 = vmatpush3.bf16.msra.mxu0 %v5015_v6  ;;  %49 = vst.msk [vmem:[#allocation2 + $0xd0] sm:$0xff] %vm22_vm0, %v5258_v45  ;;  %50 = vst.msk [vmem:[#allocation2 + $0xd8] sm:$0xff] %vm22_vm0, %v5258_v45  ;;  %v5084_v56 = vld [vmem:[%s7291_s1 + $0x2e0] sm:$0xff]   ;;  %v5089_v6 = vld [vmem:[%s7292_s0 + $0x18c] ss:$16 sps:$4 sm:$0xff]  }
  0x36   :  { %4623 = vmatpush3.bf16.msra.mxu1 %v5016_v7  ;;  %4560 = vmatprep.subr.bf16.mxu0 %v5023_v10  ;;  %51 = vst.msk [vmem:[#allocation2 + $0xe0] sm:$0xff] %vm22_vm0, %v5258_v45  ;;  %52 = vst.msk [vmem:[#allocation2 + $0xe8] sm:$0xff] %vm22_vm0, %v5258_v45  ;;  %v5071_v57 = vld [vmem:[%s7292_s0 + $0x140] ss:$16 sps:$4 sm:$0xff]  }
  0x37   :  { %4624 = vmatprep.subr.bf16.mxu1 %v5024_v11  ;;  %53 = vst.msk [vmem:[#allocation2 + $0xf0] sm:$0xff] %vm22_vm0, %v5258_v45  ;;  %54 = vst.msk [vmem:[#allocation2 + $0xf8] sm:$0xff] %vm22_vm0, %v5258_v45  ;;  %v5103_v7 = vld [vmem:[%s7291_s1 + $0x250] sm:$0xff]  }
  0x38   :  { %55 = vst.msk [vmem:[#allocation2 + $0x100] sm:$0xff] %vm22_vm0, %v5258_v45  ;;  %56 = vst.msk [vmem:[#allocation2 + $0x108] sm:$0xff] %vm22_vm0, %v5258_v45  ;;  %v5106_v10 = vld [vmem:[%s7291_s1 + $0x290] sm:$0xff]  }
  0x39   :  { %4561 = vmatpush3.bf16.msra.mxu0 %v5025_v13  ;;  %57 = vst.msk [vmem:[#allocation2 + $0x110] sm:$0xff] %vm22_vm0, %v5258_v45  ;;  %58 = vst.msk [vmem:[#allocation2 + $0x118] sm:$0xff] %vm22_vm0, %v5258_v45  ;;  %v5091_v11 = vld [vmem:[%s7292_s0 + $0x180] ss:$16 sps:$4 sm:$0xff]   ;;  %v5097_v13 = vld [vmem:[%s7292_s0 + $0x1a4] ss:$16 sps:$4 sm:$0xff]  }
  0x3a   :  { %4625 = vmatpush3.bf16.msra.mxu1 %v5026_v14  ;;  %4562 = vmatprep.subr.bf16.mxu0 %v5033_v18  ;;  %59 = vst.msk [vmem:[#allocation2 + $0x120] sm:$0xff] %vm22_vm0, %v5258_v45  ;;  %60 = vst.msk [vmem:[#allocation2 + $0x128] sm:$0xff] %vm22_vm0, %v5258_v45  ;;  %v5099_v14 = vld [vmem:[%s7292_s0 + $0x1ac] ss:$16 sps:$4 sm:$0xff]  }
  0x3b   :  { %608 = vmatmul.mubr.bf16.gmra.mxu0 %v5001_v58  ;;  %4626 = vmatprep.subr.bf16.mxu1 %v5034_v19  ;;  %61 = vst.msk [vmem:[#allocation2 + $0x130] sm:$0xff] %vm22_vm0, %v5258_v45  ;;  %62 = vst.msk [vmem:[#allocation2 + $0x138] sm:$0xff] %vm22_vm0, %v5258_v45  ;;  %v5085_v58 = vld [vmem:[%s7291_s1 + $0x220] sm:$0xff]   ;;  %v5116_v18 = vld [vmem:[%s7291_s1 + $0x288] sm:$0xff]  }
  0x3c   :  { %705 = vmatmul.mubr.bf16.gmra.mxu1 %v5002_v59  ;;  %615 = vmatprep.mubr.bf16.mxu0 %v5007_v0  ;;  %63 = vst.msk [vmem:[#allocation2 + $0x140] sm:$0xff] %vm22_vm0, %v5258_v45  ;;  %64 = vst.msk [vmem:[#allocation2 + $0x148] sm:$0xff] %vm22_vm0, %v5258_v45  ;;  %v5086_v59 = vld [vmem:[%s7291_s1 + $0x2a0] sm:$0xff]   ;;  %v5094_v0 = vld [vmem:[%s7291_s1 + $0x2d8] sm:$0xff]  }
  0x3d   :  { %712 = vmatprep.mubr.bf16.mxu1 %v5009_v1  ;;  %4563 = vmatpush3.bf16.msra.mxu0 %v5035_v20  ;;  %65 = vst.msk [vmem:[#allocation2 + $0x150] sm:$0xff] %vm22_vm0, %v5258_v45  ;;  %66 = vst.msk [vmem:[#allocation2 + $0x158] sm:$0xff] %vm22_vm0, %v5258_v45  ;;  %v5095_v1 = vld [vmem:[%s7291_s1 + $0x218] sm:$0xff]   ;;  %v5101_v19 = vld [vmem:[%s7292_s0 + $0x1a0] ss:$16 sps:$4 sm:$0xff]  }
  0x3e   :  { %4627 = vmatpush3.bf16.msra.mxu1 %v5036_v21  ;;  %4564 = vmatprep.subr.bf16.mxu0 %v5043_v26  ;;  %67 = vst.msk [vmem:[#allocation2 + $0x160] sm:$0xff] %vm22_vm0, %v5258_v45  ;;  %68 = vst.msk [vmem:[#allocation2 + $0x168] sm:$0xff] %vm22_vm0, %v5258_v45  ;;  %v5102_v20 = vld [vmem:[%s7292_s0 + $0x1a8] ss:$16 sps:$4 sm:$0xff]   ;;  %v5107_v21 = vld [vmem:[%s7292_s0 + $0x1c4] ss:$16 sps:$4 sm:$0xff]  }
  0x3f   :  { %4628 = vmatprep.subr.bf16.mxu1 %v5044_v27  ;;  %69 = vst.msk [vmem:[#allocation2 + $0x170] sm:$0xff] %vm22_vm0, %v5258_v45  ;;  %70 = vst.msk [vmem:[#allocation2 + $0x178] sm:$0xff] %vm22_vm0, %v5258_v45  ;;  %v5126_v26 = vld [vmem:[%s7291_s1 + $0x280] sm:$0xff]  }
  0x40   :  { %71 = vst.msk [vmem:[#allocation2 + $0x180] sm:$0xff] %vm22_vm0, %v5258_v45  ;;  %72 = vst.msk [vmem:[#allocation2 + $0x188] sm:$0xff] %vm22_vm0, %v5258_v45  ;;  %v5111_v27 = vld [vmem:[%s7292_s0 + $0x1c0] ss:$16 sps:$4 sm:$0xff]  }
  0x41   :  { %4565 = vmatpush3.bf16.msra.mxu0 %v5045_v28  ;;  %73 = vst.msk [vmem:[#allocation2 + $0x190] sm:$0xff] %vm22_vm0, %v5258_v45  ;;  %74 = vst.msk [vmem:[#allocation2 + $0x198] sm:$0xff] %vm22_vm0, %v5258_v45  ;;  %v5133_v28 = vld [vmem:[%s7291_s1 + $0x378] sm:$0xff]  }
  0x42   :  { %4629 = vmatpush3.bf16.msra.mxu1 %v5046_v29  ;;  %4678 = vmatprep.subr.bf16.mxu0 %v5053_v33  ;;  %75 = vst.msk [vmem:[#allocation2 + $0x1a0] sm:$0xff] %vm22_vm0, %v5258_v45  ;;  %76 = vst.msk [vmem:[#allocation2 + $0x1a8] sm:$0xff] %vm22_vm0, %v5258_v45  ;;  %v5134_v29 = vld [vmem:[%s7291_s1 + $0x3f8] sm:$0xff]   ;;  %v5121_v33 = vld [vmem:[%s7292_s0 + $0x1e0] ss:$16 sps:$4 sm:$0xff]  }
  0x43   :  { %616 = vmatmul.mubr.bf16.gmra.mxu0 %v5011_v2  ;;  %4742 = vmatprep.subr.bf16.mxu1 %v5054_v34  ;;  %77 = vst.msk [vmem:[#allocation2 + $0x1b0] sm:$0xff] %vm22_vm0, %v5258_v45  ;;  %78 = vst.msk [vmem:[#allocation2 + $0x1b8] sm:$0xff] %vm22_vm0, %v5258_v45  ;;  %v5096_v2 = vld [vmem:[%s7291_s1 + $0x298] sm:$0xff]  }
  0x44   :  { %713 = vmatmul.mubr.bf16.gmra.mxu1 %v5012_v4  ;;  %623 = vmatprep.mubr.bf16.mxu0 %v5017_v8  ;;  %79 = vst.msk [vmem:[#allocation2 + $0x1c0] sm:$0xff] %vm22_vm0, %v5258_v45  ;;  %80 = vst.msk [vmem:[#allocation2 + $0x1c8] sm:$0xff] %vm22_vm0, %v5258_v45  ;;  %v5082_v4 = vld [vmem:[%s7292_s0 + $0x168] ss:$16 sps:$4 sm:$0xff]   ;;  %v5104_v8 = vld [vmem:[%s7291_s1 + $0x2d0] sm:$0xff]  }
  0x45   :  { %720 = vmatprep.mubr.bf16.mxu1 %v5019_v9  ;;  %81 = vst.msk [vmem:[#allocation2 + $0x1d0] sm:$0xff] %vm22_vm0, %v5258_v45  ;;  %82 = vst.msk [vmem:[#allocation2 + $0x1d8] sm:$0xff] %vm22_vm0, %v5258_v45  ;;  %v5105_v9 = vld [vmem:[%s7291_s1 + $0x210] sm:$0xff]   ;;  %v5122_v34 = vld [vmem:[%s7292_s0 + $0x1e8] ss:$16 sps:$4 sm:$0xff]  }
  0x46   :  { %83 = vst.msk [vmem:[#allocation2 + $0x1e0] sm:$0xff] %vm22_vm0, %v5258_v45  ;;  %84 = vst.msk [vmem:[#allocation2 + $0x1e8] sm:$0xff] %vm22_vm0, %v5258_v45 }
  0x47   :  { %85 = vst.msk [vmem:[#allocation2 + $0x1f0] sm:$0xff] %vm22_vm0, %v5258_v45  ;;  %86 = vst.msk [vmem:[#allocation2 + $0x1f8] sm:$0xff] %vm22_vm0, %v5258_v45  ;;  %v5145_v45 = vld [vmem:[%s7291_s1 + $0x330] sm:$0xff]  }
  0x4b   :  { %624 = vmatmul.mubr.bf16.gmra.mxu0 %v5021_v12  ;;  %v5092_v12 = vld [vmem:[%s7292_s0 + $0x188] ss:$16 sps:$4 sm:$0xff]  }
  0x4c   :  { %721 = vmatmul.mubr.bf16.gmra.mxu1 %v5022_v15  ;;  %631 = vmatprep.mubr.bf16.mxu0 %v5027_v16  ;;  %v5113_v15 = vld [vmem:[%s7291_s1 + $0x248] sm:$0xff]  }
  0x4d   :  { %728 = vmatprep.mubr.bf16.mxu1 %v5029_v17  ;;  %v5114_v16 = vld [vmem:[%s7291_s1 + $0x2c8] sm:$0xff]  }
  0x4e   :  { %v5115_v17 = vld [vmem:[%s7291_s1 + $0x208] sm:$0xff]  }
  0x53   :  { %632 = vmatmul.mubr.bf16.gmra.mxu0 %v5031_v22  ;;  %v5123_v22 = vld [vmem:[%s7291_s1 + $0x240] sm:$0xff]  }
  0x54   :  { %729 = vmatmul.mubr.bf16.gmra.mxu1 %v5032_v23  ;;  %639 = vmatprep.mubr.bf16.mxu0 %v5037_v24  ;;  %v5109_v23 = vld [vmem:[%s7292_s0 + $0x1cc] ss:$16 sps:$4 sm:$0xff]   ;;  %v5124_v24 = vld [vmem:[%s7291_s1 + $0x2c0] sm:$0xff]  }
  0x55   :  { %736 = vmatprep.mubr.bf16.mxu1 %v5039_v25  ;;  %v5125_v25 = vld [vmem:[%s7291_s1 + $0x200] sm:$0xff]  }
  0x5b   :  { %640 = vmatmul.mubr.bf16.gmra.mxu0 %v5041_v30  ;;  %v5112_v30 = vld [vmem:[%s7292_s0 + $0x1c8] ss:$16 sps:$4 sm:$0xff]  }
  0x5c   :  { %737 = vmatmul.mubr.bf16.gmra.mxu1 %v5042_v31  ;;  %1277 = vmatprep.mubr.bf16.mxu0 %v5049_v32  ;;  %v5117_v31 = vld [vmem:[%s7292_s0 + $0x1e4] ss:$16 sps:$4 sm:$0xff]   ;;  %v5119_v32 = vld [vmem:[%s7292_s0 + $0x1ec] ss:$16 sps:$4 sm:$0xff]  }
  0x5d   :  { %1374 = vmatprep.mubr.bf16.mxu1 %v5052_v35  ;;  %v5129_v35 = vld [vmem:[%s7292_s0 + $0x204] ss:$16 sps:$4 sm:$0xff]  }
  0x63   :  { %1278 = vmatmul.mubr.bf16.vlgmr.msra.gmra.mxu0 %v5047_v36  ;;  %v5132_v36 = vld [vmem:[%s7292_s0 + $0x20c] ss:$16 sps:$4 sm:$0xff]  }
  0x64   :  { %1375 = vmatmul.mubr.bf16.vlgmr.msra.gmra.mxu1 %v5590_v37  ;;  %4679 = vmatpush3.bf16.msra.mxu0 %v5595_v38  ;;  %v5127_v37 = vld [vmem:[%s7292_s0 + $0x200] ss:$16 sps:$4 sm:$0xff]   ;;  %v5130_v38 = vld [vmem:[%s7292_s0 + $0x208] ss:$16 sps:$4 sm:$0xff]  }
  0x65   :  { %4743 = vmatpush3.bf16.msra.mxu1 %v5600_v39  ;;  %1285 = vmatprep.mubr.bf16.mxu0 %v5605_v40  ;;  %v5135_v39 = vld [vmem:[%s7291_s1 + $0x338] sm:$0xff]  }
  0x66   :  { %1382 = vmatprep.mubr.bf16.mxu1 %v5610_v41  ;;  %4680 = vmatprep.subr.bf16.mxu0 %v5615_v42  ;;  %v5136_v40 = vld [vmem:[%s7291_s1 + $0x3b8] sm:$0xff]   ;;  %v5137_v41 = vld [vmem:[%s7292_s0 + $0x224] ss:$16 sps:$4 sm:$0xff]  }
  0x67   :  { %4744 = vmatprep.subr.bf16.mxu1 %v5620_v43  ;;  %v5139_v42 = vld [vmem:[%s7292_s0 + $0x22c] ss:$16 sps:$4 sm:$0xff]   ;;  %v5143_v43 = vld [vmem:[%s7291_s1 + $0x370] sm:$0xff]  }
  0x68   :  { %4681 = vmatpush3.bf16.msra.mxu0 %v5625_v44  ;;  %v5144_v44 = vld [vmem:[%s7291_s1 + $0x3f0] sm:$0xff]  }
  0x69   :  { %4745 = vmatpush3.bf16.msra.mxu1 %v5066_v46  ;;  %4682 = vmatprep.subr.bf16.mxu0 %v5073_v48  ;;  %v5146_v46 = vld [vmem:[%s7291_s1 + $0x3b0] sm:$0xff]   ;;  %v5153_v48 = vld [vmem:[%s7291_s1 + $0x368] sm:$0xff]  }
  0x6a   :  { %4746 = vmatprep.subr.bf16.mxu1 %v5074_v50  ;;  %v5147_v50 = vld [vmem:[%s7292_s0 + $0x244] ss:$16 sps:$4 sm:$0xff]  }
  0x6b   :  { %1286 = vmatmul.mubr.bf16.gmra.mxu0 %v5061_v47  ;;  %v5141_v47 = vld [vmem:[%s7292_s0 + $0x220] ss:$16 sps:$4 sm:$0xff]  }
  0x6c   :  { %1383 = vmatmul.mubr.bf16.gmra.mxu1 %v5062_v49  ;;  %1293 = vmatprep.mubr.bf16.mxu0 %v5067_v51  ;;  %v5142_v49 = vld [vmem:[%s7292_s0 + $0x228] ss:$16 sps:$4 sm:$0xff]  }
  0x6d   :  { %1390 = vmatprep.mubr.bf16.mxu1 %v5069_v52  ;;  %4683 = vmatpush3.bf16.msra.mxu0 %v5075_v53  ;;  %v5154_v51 = vld [vmem:[%s7291_s1 + $0x3e8] sm:$0xff]  }
  0x6e   :  { %4747 = vmatpush3.bf16.msra.mxu1 %v5076_v54  ;;  %4684 = vmatprep.subr.bf16.mxu0 %v5083_v55  ;;  %v5149_v52 = vld [vmem:[%s7292_s0 + $0x24c] ss:$16 sps:$4 sm:$0xff]   ;;  %v5163_v55 = vld [vmem:[%s7291_s1 + $0x360] sm:$0xff]  }
  0x6f   :  { %4748 = vmatprep.subr.bf16.mxu1 %v5084_v56  ;;  %v5155_v53 = vld [vmem:[%s7291_s1 + $0x328] sm:$0xff]   ;;  %v5164_v56 = vld [vmem:[%s7291_s1 + $0x3e0] sm:$0xff]  }
  0x70   :  { %v5156_v54 = vld [vmem:[%s7291_s1 + $0x3a8] sm:$0xff]  }
  0x71   :  { %4685 = vmatpush3.bf16.msra.mxu0 %v5085_v58  ;;  %v5165_v58 = vld [vmem:[%s7291_s1 + $0x320] sm:$0xff]  }
  0x72   :  { %4749 = vmatpush3.bf16.msra.mxu1 %v5086_v59  ;;  %4686 = vmatprep.subr.bf16.mxu0 %v5093_v63  ;;  %v5166_v59 = vld [vmem:[%s7291_s1 + $0x3a0] sm:$0xff]   ;;  %v5159_v63 = vld [vmem:[%s7292_s0 + $0x26c] ss:$16 sps:$4 sm:$0xff]  }
  0x73   :  { %1294 = vmatmul.mubr.bf16.gmra.mxu0 %v5071_v57  ;;  %4750 = vmatprep.subr.bf16.mxu1 %v5094_v0  ;;  %v5151_v57 = vld [vmem:[%s7292_s0 + $0x240] ss:$16 sps:$4 sm:$0xff]   ;;  %v5174_v0 = vld [vmem:[%s7291_s1 + $0x3d8] sm:$0xff]  }
  0x74   :  { %1391 = vmatmul.mubr.bf16.gmra.mxu1 %v5072_v60  ;;  %1301 = vmatprep.mubr.bf16.mxu0 %v5077_v61  ;;  %v5152_v60 = vld [vmem:[%s7292_s0 + $0x248] ss:$16 sps:$4 sm:$0xff]   ;;  %v5157_v61 = vld [vmem:[%s7292_s0 + $0x264] ss:$16 sps:$4 sm:$0xff]  }
  0x75   :  { %1398 = vmatprep.mubr.bf16.mxu1 %v5079_v62  ;;  %4687 = vmatpush3.bf16.msra.mxu0 %v5095_v1  ;;  %v5173_v62 = vld [vmem:[%s7291_s1 + $0x358] sm:$0xff]  }
  0x76   :  { %4751 = vmatpush3.bf16.msra.mxu1 %v5096_v2  ;;  %4688 = vmatprep.subr.bf16.mxu0 %v5103_v7  ;;  %v5175_v1 = vld [vmem:[%s7291_s1 + $0x318] sm:$0xff]   ;;  %v5186_v7 = vld [vmem:[%s7291_s1 + $0x390] sm:$0xff]  }
  0x77   :  { %4752 = vmatprep.subr.bf16.mxu1 %v5104_v8  ;;  %v5176_v2 = vld [vmem:[%s7291_s1 + $0x398] sm:$0xff]  }
  0x78   :  { %v5162_v8 = vld [vmem:[%s7292_s0 + $0x268] ss:$16 sps:$4 sm:$0xff]  }
  0x79   :  { %4689 = vmatpush3.bf16.msra.mxu0 %v5105_v9  ;;  %v5167_v9 = vld [vmem:[%s7292_s0 + $0x284] ss:$16 sps:$4 sm:$0xff]  }
  0x7a   :  { %4753 = vmatpush3.bf16.msra.mxu1 %v5106_v10  ;;  %4690 = vmatprep.subr.bf16.mxu0 %v5113_v15  ;;  %v5193_v10 = vld [vmem:[%s7291_s1 + $0x348] sm:$0xff]   ;;  %v5203_v15 = vld [vmem:[%s7291_s1 + $0x340] sm:$0xff]  }
  0x7b   :  { %1302 = vmatmul.mubr.bf16.gmra.mxu0 %v5081_v3  ;;  %4754 = vmatprep.subr.bf16.mxu1 %v5114_v16  ;;  %v5183_v3 = vld [vmem:[%s7291_s1 + $0x350] sm:$0xff]   ;;  %v5204_v16 = vld [vmem:[%s7291_s1 + $0x3c0] sm:$0xff]  }
  0x7c   :  { %1399 = vmatmul.mubr.bf16.gmra.mxu1 %v5082_v4  ;;  %1309 = vmatprep.mubr.bf16.mxu0 %v5087_v5  ;;  %v5184_v4 = vld [vmem:[%s7291_s1 + $0x3d0] sm:$0xff]  }
  0x7d   :  { %1406 = vmatprep.mubr.bf16.mxu1 %v5089_v6  ;;  %4691 = vmatpush3.bf16.msra.mxu0 %v5115_v17  ;;  %v5185_v5 = vld [vmem:[%s7291_s1 + $0x310] sm:$0xff]  }
  0x7e   :  { %4755 = vmatpush3.bf16.msra.mxu1 %v5116_v18  ;;  %4692 = vmatprep.subr.bf16.mxu0 %v5123_v22  ;;  %v5161_v6 = vld [vmem:[%s7292_s0 + $0x260] ss:$16 sps:$4 sm:$0xff]   ;;  %v5179_v22 = vld [vmem:[%s7292_s0 + $0x2ac] ss:$16 sps:$4 sm:$0xff]  }
  0x7f   :  { %4756 = vmatprep.subr.bf16.mxu1 %v5124_v24  ;;  %v5171_v17 = vld [vmem:[%s7292_s0 + $0x280] ss:$16 sps:$4 sm:$0xff]   ;;  %v5182_v24 = vld [vmem:[%s7292_s0 + $0x2a8] ss:$16 sps:$4 sm:$0xff]  }
  0x80   :  { %v5205_v18 = vld [vmem:[%s7291_s1 + $0x300] sm:$0xff]  }
  0x81   :  { %4693 = vmatpush3.bf16.msra.mxu0 %v5125_v25  ;;  %v5187_v25 = vld [vmem:[%s7292_s0 + $0x2c4] ss:$16 sps:$4 sm:$0xff]  }
  0x82   :  { %4757 = vmatpush3.bf16.msra.mxu1 %v5126_v26  ;;  %4806 = vmatprep.subr.bf16.mxu0 %v5133_v28  ;;  %v5189_v26 = vld [vmem:[%s7292_s0 + $0x2cc] ss:$16 sps:$4 sm:$0xff]   ;;  %v5192_v28 = vld [vmem:[%s7292_s0 + $0x2c8] ss:$16 sps:$4 sm:$0xff]  }
  0x83   :  { %1310 = vmatmul.mubr.bf16.gmra.mxu0 %v5091_v11  ;;  %4870 = vmatprep.subr.bf16.mxu1 %v5134_v29  ;;  %v5194_v11 = vld [vmem:[%s7291_s1 + $0x3c8] sm:$0xff]   ;;  %v5197_v29 = vld [vmem:[%s7292_s0 + $0x2e4] ss:$16 sps:$4 sm:$0xff]  }
  0x84   :  { %1407 = vmatmul.mubr.bf16.gmra.mxu1 %v5092_v12  ;;  %1317 = vmatprep.mubr.bf16.mxu0 %v5097_v13  ;;  %v5169_v12 = vld [vmem:[%s7292_s0 + $0x28c] ss:$16 sps:$4 sm:$0xff]  }
  0x85   :  { %1414 = vmatprep.mubr.bf16.mxu1 %v5099_v14  ;;  %v5195_v13 = vld [vmem:[%s7291_s1 + $0x308] sm:$0xff]  }
  0x86   :  { %v5196_v14 = vld [vmem:[%s7291_s1 + $0x388] sm:$0xff]  }
  0x8b   :  { %1318 = vmatmul.mubr.bf16.gmra.mxu0 %v5101_v19  ;;  %v5206_v19 = vld [vmem:[%s7291_s1 + $0x380] sm:$0xff]  }
  0x8c   :  { %1415 = vmatmul.mubr.bf16.gmra.mxu1 %v5102_v20  ;;  %1325 = vmatprep.mubr.bf16.mxu0 %v5107_v21  ;;  %v5172_v20 = vld [vmem:[%s7292_s0 + $0x288] ss:$16 sps:$4 sm:$0xff]   ;;  %v5177_v21 = vld [vmem:[%s7292_s0 + $0x2a4] ss:$16 sps:$4 sm:$0xff]  }
  0x8d   :  { %1422 = vmatprep.mubr.bf16.mxu1 %v5109_v23  ;;  %v5181_v23 = vld [vmem:[%s7292_s0 + $0x2a0] ss:$16 sps:$4 sm:$0xff]  }
  0x93   :  { %1326 = vmatmul.mubr.bf16.gmra.mxu0 %v5111_v27  ;;  %v5191_v27 = vld [vmem:[%s7292_s0 + $0x2c0] ss:$16 sps:$4 sm:$0xff]  }
  0x94   :  { %1423 = vmatmul.mubr.bf16.gmra.mxu1 %v5112_v30  ;;  %1333 = vmatprep.mubr.bf16.mxu0 %v5117_v31  ;;  %v5199_v30 = vld [vmem:[%s7292_s0 + $0x2ec] ss:$16 sps:$4 sm:$0xff]   ;;  %v5201_v31 = vld [vmem:[%s7292_s0 + $0x2e0] ss:$16 sps:$4 sm:$0xff]  }
  0x95   :  { %1430 = vmatprep.mubr.bf16.mxu1 %v5119_v32  ;;  %v5202_v32 = vld [vmem:[%s7292_s0 + $0x2e8] ss:$16 sps:$4 sm:$0xff]  }
  0x9b   :  { %1334 = vmatmul.mubr.bf16.gmra.mxu0 %v5121_v33  ;;  %v5209_v33 = vld [vmem:[%s7292_s0 + $0x304] ss:$16 sps:$4 sm:$0xff]  }
  0x9c   :  { %1431 = vmatmul.mubr.bf16.gmra.mxu1 %v5122_v34  ;;  %1970 = vmatprep.mubr.bf16.mxu0 %v5129_v35  ;;  %v5212_v34 = vld [vmem:[%s7292_s0 + $0x30c] ss:$16 sps:$4 sm:$0xff]   ;;  %v5207_v35 = vld [vmem:[%s7292_s0 + $0x300] ss:$16 sps:$4 sm:$0xff]  }
  0x9d   :  { %2067 = vmatprep.mubr.bf16.mxu1 %v5132_v36  ;;  %v5210_v36 = vld [vmem:[%s7292_s0 + $0x308] ss:$16 sps:$4 sm:$0xff]  }
  0xa3   :  { %1971 = vmatmul.mubr.bf16.vlgmr.msra.gmra.mxu0 %v5127_v37  ;;  %v5213_v37 = vld [vmem:[%s7292_s0 + $0x324] ss:$16 sps:$4 sm:$0xff]  }
  0xa4   :  { %2068 = vmatmul.mubr.bf16.vlgmr.msra.gmra.mxu1 %v5130_v38  ;;  %4807 = vmatpush3.bf16.msra.mxu0 %v5135_v39  ;;  %v5215_v38 = vld [vmem:[%s7292_s0 + $0x32c] ss:$16 sps:$4 sm:$0xff]  }
  0xa5   :  { %4871 = vmatpush3.bf16.msra.mxu1 %v5136_v40  ;;  %1978 = vmatprep.mubr.bf16.mxu0 %v5137_v41 }
  0xa6   :  { %2075 = vmatprep.mubr.bf16.mxu1 %v5139_v42  ;;  %4808 = vmatprep.subr.bf16.mxu0 %v5143_v43 }
  0xa7   :  { %4872 = vmatprep.subr.bf16.mxu1 %v5144_v44 }
  0xa8   :  { %4809 = vmatpush3.bf16.msra.mxu0 %v5145_v45 }
  0xa9   :  { %4873 = vmatpush3.bf16.msra.mxu1 %v5146_v46  ;;  %4810 = vmatprep.subr.bf16.mxu0 %v5153_v48  ;;  %v5217_v46 = vld [vmem:[%s7292_s0 + $0x320] ss:$16 sps:$4 sm:$0xff]  }
  0xaa   :  { %4874 = vmatprep.subr.bf16.mxu1 %v5154_v51 }
  0xab   :  { %1979 = vmatmul.mubr.bf16.gmra.mxu0 %v5141_v47  ;;  %v87_v47 = vld [vmem:[#allocation2] sm:$0xff] }
  0xac   :  { %2076 = vmatmul.mubr.bf16.gmra.mxu1 %v5142_v49  ;;  %1986 = vmatprep.mubr.bf16.mxu0 %v5147_v50  ;;  %v5218_v49 = vld [vmem:[%s7292_s0 + $0x328] ss:$16 sps:$4 sm:$0xff]   ;;  %v5219_v50 = vld [vmem:[%s7292_s0 + $0x344] ss:$16 sps:$4 sm:$0xff]  }
  0xad   :  { %2083 = vmatprep.mubr.bf16.mxu1 %v5149_v52  ;;  %4811 = vmatpush3.bf16.msra.mxu0 %v5155_v53  ;;  %v5221_v53 = vld [vmem:[%s7292_s0 + $0x34c] ss:$16 sps:$4 sm:$0xff]  }
  0xae   :  { %4875 = vmatpush3.bf16.msra.mxu1 %v5156_v54  ;;  %4812 = vmatprep.subr.bf16.mxu0 %v5163_v55 }
  0xaf   :  { %4876 = vmatprep.subr.bf16.mxu1 %v5164_v56 }
  0xb1   :  { %4813 = vmatpush3.bf16.msra.mxu0 %v5165_v58 }
  0xb2   :  { %4877 = vmatpush3.bf16.msra.mxu1 %v5166_v59  ;;  %4814 = vmatprep.subr.bf16.mxu0 %v5173_v62  ;;  %v88_v59 = vld [vmem:[#allocation2 + $0x8] sm:$0xff] }
  0xb3   :  { %1987 = vmatmul.mubr.bf16.gmra.mxu0 %v5151_v57  ;;  %4878 = vmatprep.subr.bf16.mxu1 %v5174_v0 }
  0xb4   :  { %2084 = vmatmul.mubr.bf16.gmra.mxu1 %v5152_v60  ;;  %1994 = vmatprep.mubr.bf16.mxu0 %v5157_v61 }
  0xb5   :  { %2091 = vmatprep.mubr.bf16.mxu1 %v5159_v63  ;;  %4815 = vmatpush3.bf16.msra.mxu0 %v5175_v1 }
  0xb6   :  { %4879 = vmatpush3.bf16.msra.mxu1 %v5176_v2  ;;  %4816 = vmatprep.subr.bf16.mxu0 %v5183_v3 }
  0xb7   :  { %4880 = vmatprep.subr.bf16.mxu1 %v5184_v4  ;;  %v5223_v4 = vld [vmem:[%s7292_s0 + $0x340] ss:$16 sps:$4 sm:$0xff]  }
  0xb9   :  { %4817 = vmatpush3.bf16.msra.mxu0 %v5185_v5  ;;  %v89_v5 = vld [vmem:[#allocation2 + $0x10] sm:$0xff] }
  0xba   :  { %4881 = vmatpush3.bf16.msra.mxu1 %v5186_v7  ;;  %4818 = vmatprep.subr.bf16.mxu0 %v5193_v10  ;;  %v5224_v7 = vld [vmem:[%s7292_s0 + $0x348] ss:$16 sps:$4 sm:$0xff]  }
  0xbb   :  { %1995 = vmatmul.mubr.bf16.gmra.mxu0 %v5161_v6  ;;  %4882 = vmatprep.subr.bf16.mxu1 %v5194_v11  ;;  %v5227_v11 = vld [vmem:[%s7292_s0 + $0x36c] ss:$16 sps:$4 sm:$0xff]  }
  0xbc   :  { %2092 = vmatmul.mubr.bf16.gmra.mxu1 %v5162_v8  ;;  %2002 = vmatprep.mubr.bf16.mxu0 %v5167_v9  ;;  %v5225_v8 = vld [vmem:[%s7292_s0 + $0x364] ss:$16 sps:$4 sm:$0xff]  }
  0xbd   :  { %2099 = vmatprep.mubr.bf16.mxu1 %v5169_v12  ;;  %4819 = vmatpush3.bf16.msra.mxu0 %v5195_v13 }
  0xbe   :  { %4883 = vmatpush3.bf16.msra.mxu1 %v5196_v14  ;;  %4820 = vmatprep.subr.bf16.mxu0 %v5203_v15 }
  0xbf   :  { %4884 = vmatprep.subr.bf16.mxu1 %v5204_v16 }
  0xc1   :  { %4821 = vmatpush3.bf16.msra.mxu0 %v5205_v18 }
  0xc2   :  { %4885 = vmatpush3.bf16.msra.mxu1 %v5206_v19 }
  0xc3   :  { %2003 = vmatmul.mubr.bf16.gmra.mxu0 %v5171_v17  ;;  %v90_v17 = vld [vmem:[#allocation2 + $0x18] sm:$0xff] }
  0xc4   :  { %2100 = vmatmul.mubr.bf16.gmra.mxu1 %v5172_v20  ;;  %2010 = vmatprep.mubr.bf16.mxu0 %v5177_v21 }
  0xc5   :  { %2107 = vmatprep.mubr.bf16.mxu1 %v5179_v22 }
  0xcb   :  { %2011 = vmatmul.mubr.bf16.gmra.mxu0 %v5181_v23 }
  0xcc   :  { %2108 = vmatmul.mubr.bf16.gmra.mxu1 %v5182_v24  ;;  %2018 = vmatprep.mubr.bf16.mxu0 %v5187_v25 }
  0xcd   :  { %2115 = vmatprep.mubr.bf16.mxu1 %v5189_v26  ;;  %v5229_v26 = vld [vmem:[%s7292_s0 + $0x360] ss:$16 sps:$4 sm:$0xff]  }
  0xd3   :  { %2019 = vmatmul.mubr.bf16.gmra.mxu0 %v5191_v27  ;;  %v91_v27 = vld [vmem:[#allocation2 + $0x20] sm:$0xff] }
  0xd4   :  { %2116 = vmatmul.mubr.bf16.gmra.mxu1 %v5192_v28  ;;  %2026 = vmatprep.mubr.bf16.mxu0 %v5197_v29  ;;  %v5230_v29 = vld [vmem:[%s7292_s0 + $0x368] ss:$16 sps:$4 sm:$0xff]  }
  0xd5   :  { %2123 = vmatprep.mubr.bf16.mxu1 %v5199_v30  ;;  %v5233_v30 = vld [vmem:[%s7292_s0 + $0x384] ss:$16 sps:$4 sm:$0xff]  }
  0xdb   :  { %2027 = vmatmul.mubr.bf16.gmra.mxu0 %v5201_v31 }
  0xdc   :  { %2124 = vmatmul.mubr.bf16.gmra.mxu1 %v5202_v32  ;;  %2663 = vmatprep.mubr.bf16.mxu0 %v5209_v33  ;;  %v5236_v33 = vld [vmem:[%s7292_s0 + $0x38c] ss:$16 sps:$4 sm:$0xff]  }
  0xdd   :  { %2760 = vmatprep.mubr.bf16.mxu1 %v5212_v34 }
  0xe3   :  { %v4438_v39 = vpop.f32.mrf.mxu0  ;;  %2664 = vmatmul.mubr.bf16.vlgmr.msra.gmra.mxu0 %v5207_v35 }
  0xe4   :  { %v4502_v40 = vpop.f32.mrf.mxu1  ;;  %2761 = vmatmul.mubr.bf16.vlgmr.msra.gmra.mxu1 %v5210_v36  ;;  %2671 = vmatprep.mubr.bf16.mxu0 %v5213_v37 }
  0xe5   :  { %v4439_v41 = vpop.f32.mrf.mxu0  ;;  %2768 = vmatprep.mubr.bf16.mxu1 %v5215_v38 }
  0xe6   :  { %v4440_v42 = vadd.f32 %v4439_v41, %v4438_v39  ;;  %v4503_v43 = vpop.f32.mrf.mxu1  ;;  %v92_v39 = vld [vmem:[#allocation2 + $0x28] sm:$0xff] }
  0xe7   :  { %v4504_v44 = vadd.f32 %v4503_v43, %v4502_v40  ;;  %v4441_v45 = vpop.f32.mrf.mxu0 }
  0xe8   :  { %v4505_v48 = vpop.f32.mrf.mxu1 }
  0xe9   :  { %v683_v51 = vadd.f32 %v4504_v44, %v4440_v42  ;;  %v4442_v52 = vpop.f32.mrf.mxu0 }
  0xea   :  { %v4443_v54 = vadd.f32 %v4442_v52, %v4441_v45  ;;  %v4506_v55 = vpop.f32.mrf.mxu1  ;;  %v5239_v52 = vld [vmem:[%s7292_s0 + $0x3a4] ss:$16 sps:$4 sm:$0xff]  }
  0xeb   :  { %v745_v56 = vadd.f32 %v683_v51, %v87_v47  ;;  %v4507_v57 = vadd.f32 %v4506_v55, %v4505_v48  ;;  %v4444_v58 = vpop.f32.mrf.mxu0  ;;  %2672 = vmatmul.mubr.bf16.gmra.mxu0 %v5217_v46  ;;  %v5231_v48 = vld [vmem:[%s7292_s0 + $0x380] ss:$16 sps:$4 sm:$0xff]   ;;  %v5234_v51 = vld [vmem:[%s7292_s0 + $0x388] ss:$16 sps:$4 sm:$0xff]   ;;  %v5242_v55 = vld [vmem:[%s7292_s0 + $0x3ac] ss:$16 sps:$4 sm:$0xff]  }
  0xec   :  { %v4508_v60 = vpop.f32.mrf.mxu1  ;;  %2769 = vmatmul.mubr.bf16.gmra.mxu1 %v5218_v49  ;;  %2679 = vmatprep.mubr.bf16.mxu0 %v5219_v50  ;;  %v93_v49 = vld [vmem:[#allocation2 + $0x30] sm:$0xff] }
  0xed   :  { %762 = vst.msk [vmem:[#allocation2] sm:$0xff] %vm22_vm0, %v745_v56  ;;  %v686_v61 = vadd.f32 %v4507_v57, %v4443_v54  ;;  %v4445_v62 = vpop.f32.mrf.mxu0  ;;  %2776 = vmatprep.mubr.bf16.mxu1 %v5221_v53 }
  0xee   :  { %v4446_v63 = vadd.f32 %v4445_v62, %v4444_v58  ;;  %v4509_v0 = vpop.f32.mrf.mxu1 }
  0xef   :  { %v746_v1 = vadd.f32 %v686_v61, %v88_v59  ;;  %v4510_v2 = vadd.f32 %v4509_v0, %v4508_v60  ;;  %v4447_v3 = vpop.f32.mrf.mxu0  ;;  %v94_v61 = vld [vmem:[#allocation2 + $0x38] sm:$0xff] }
  0xf0   :  { %v4511_v6 = vpop.f32.mrf.mxu1 }
  0xf1   :  { %763 = vst.msk [vmem:[#allocation2 + $0x8] sm:$0xff] %vm22_vm0, %v746_v1  ;;  %v691_v9 = vadd.f32 %v4510_v2, %v4446_v63  ;;  %v4448_v10 = vpop.f32.mrf.mxu0 }
  0xf2   :  { %v4449_v12 = vadd.f32 %v4448_v10, %v4447_v3  ;;  %v4512_v13 = vpop.f32.mrf.mxu1  ;;  %v5245_v10 = vld [vmem:[%s7292_s0 + $0x3c4] ss:$16 sps:$4 sm:$0xff]  }
  0xf3   :  { %v747_v14 = vadd.f32 %v691_v9, %v89_v5  ;;  %v4513_v15 = vadd.f32 %v4512_v13, %v4511_v6  ;;  %v4450_v16 = vpop.f32.mrf.mxu0  ;;  %2680 = vmatmul.mubr.bf16.gmra.mxu0 %v5223_v4  ;;  %v5237_v6 = vld [vmem:[%s7292_s0 + $0x3a0] ss:$16 sps:$4 sm:$0xff]   ;;  %v5240_v9 = vld [vmem:[%s7292_s0 + $0x3a8] ss:$16 sps:$4 sm:$0xff]   ;;  %v5248_v13 = vld [vmem:[%s7292_s0 + $0x3cc] ss:$16 sps:$4 sm:$0xff]  }
  0xf4   :  { %v4514_v18 = vpop.f32.mrf.mxu1  ;;  %2777 = vmatmul.mubr.bf16.gmra.mxu1 %v5224_v7  ;;  %2687 = vmatprep.mubr.bf16.mxu0 %v5225_v8  ;;  %v95_v7 = vld [vmem:[#allocation2 + $0x40] sm:$0xff] }
  0xf5   :  { %764 = vst.msk [vmem:[#allocation2 + $0x10] sm:$0xff] %vm22_vm0, %v747_v14  ;;  %v694_v19 = vadd.f32 %v4513_v15, %v4449_v12  ;;  %v4451_v20 = vpop.f32.mrf.mxu0  ;;  %2784 = vmatprep.mubr.bf16.mxu1 %v5227_v11 }
  0xf6   :  { %v4452_v21 = vadd.f32 %v4451_v20, %v4450_v16  ;;  %v4515_v22 = vpop.f32.mrf.mxu1 }
  0xf7   :  { %v748_v23 = vadd.f32 %v694_v19, %v90_v17  ;;  %v4516_v24 = vadd.f32 %v4515_v22, %v4514_v18  ;;  %v4453_v25 = vpop.f32.mrf.mxu0  ;;  %v96_v19 = vld [vmem:[#allocation2 + $0x48] sm:$0xff] }
  0xf8   :  { %v4517_v28 = vpop.f32.mrf.mxu1 }
  0xf9   :  { %765 = vst.msk [vmem:[#allocation2 + $0x18] sm:$0xff] %vm22_vm0, %v748_v23  ;;  %v699_v31 = vadd.f32 %v4516_v24, %v4452_v21  ;;  %v4454_v32 = vpop.f32.mrf.mxu0 }
  0xfa   :  { %v4455_v34 = vadd.f32 %v4454_v32, %v4453_v25  ;;  %v4518_v35 = vpop.f32.mrf.mxu1  ;;  %v5251_v32 = vld [vmem:[%s7292_s0 + $0x3e4] ss:$16 sps:$4 sm:$0xff]  }
  0xfb   :  { %v749_v36 = vadd.f32 %v699_v31, %v91_v27  ;;  %v4519_v37 = vadd.f32 %v4518_v35, %v4517_v28  ;;  %v4456_v38 = vpop.f32.mrf.mxu0  ;;  %2688 = vmatmul.mubr.bf16.gmra.mxu0 %v5229_v26  ;;  %v5243_v28 = vld [vmem:[%s7292_s0 + $0x3c0] ss:$16 sps:$4 sm:$0xff]   ;;  %v5246_v31 = vld [vmem:[%s7292_s0 + $0x3c8] ss:$16 sps:$4 sm:$0xff]   ;;  %v5254_v35 = vld [vmem:[%s7292_s0 + $0x3ec] ss:$16 sps:$4 sm:$0xff]  }
  0xfc   :  { %v4520_v40 = vpop.f32.mrf.mxu1  ;;  %2785 = vmatmul.mubr.bf16.gmra.mxu1 %v5230_v29  ;;  %2695 = vmatprep.mubr.bf16.mxu0 %v5233_v30  ;;  %v97_v29 = vld [vmem:[#allocation2 + $0x50] sm:$0xff] }
  0xfd   :  { %766 = vst.msk [vmem:[#allocation2 + $0x20] sm:$0xff] %vm22_vm0, %v749_v36  ;;  %v702_v41 = vadd.f32 %v4519_v37, %v4455_v34  ;;  %v4457_v42 = vpop.f32.mrf.mxu0  ;;  %2792 = vmatprep.mubr.bf16.mxu1 %v5236_v33 }
  0xfe   :  { %v4458_v43 = vadd.f32 %v4457_v42, %v4456_v38  ;;  %v4521_v44 = vpop.f32.mrf.mxu1 }
  0xff   :  { %v750_v45 = vadd.f32 %v702_v41, %v92_v39  ;;  %v4522_v46 = vadd.f32 %v4521_v44, %v4520_v40  ;;  %v4459_v47 = vpop.f32.mrf.mxu0  ;;  %v98_v41 = vld [vmem:[#allocation2 + $0x58] sm:$0xff] }
 0x100   :  { %v4523_v50 = vpop.f32.mrf.mxu1 }
 0x101   :  { %767 = vst.msk [vmem:[#allocation2 + $0x28] sm:$0xff] %vm22_vm0, %v750_v45  ;;  %v707_v53 = vadd.f32 %v4522_v46, %v4458_v43  ;;  %v4460_v54 = vpop.f32.mrf.mxu0 }
 0x102   :  { %v4461_v56 = vadd.f32 %v4460_v54, %v4459_v47  ;;  %v4524_v57 = vpop.f32.mrf.mxu1 }
 0x103   :  { %v751_v58 = vadd.f32 %v707_v53, %v93_v49  ;;  %v4525_v59 = vadd.f32 %v4524_v57, %v4523_v50  ;;  %v4462_v60 = vpop.f32.mrf.mxu0  ;;  %2696 = vmatmul.mubr.bf16.gmra.mxu0 %v5231_v48  ;;  %v5249_v50 = vld [vmem:[%s7292_s0 + $0x3e0] ss:$16 sps:$4 sm:$0xff]   ;;  %v5252_v53 = vld [vmem:[%s7292_s0 + $0x3e8] ss:$16 sps:$4 sm:$0xff]  }
 0x104   :  { %v4526_v62 = vpop.f32.mrf.mxu1  ;;  %2793 = vmatmul.mubr.bf16.gmra.mxu1 %v5234_v51  ;;  %2703 = vmatprep.mubr.bf16.mxu0 %v5239_v52  ;;  %v99_v51 = vld [vmem:[#allocation2 + $0x60] sm:$0xff] }
 0x105   :  { %768 = vst.msk [vmem:[#allocation2 + $0x30] sm:$0xff] %vm22_vm0, %v751_v58  ;;  %v710_v63 = vadd.f32 %v4525_v59, %v4461_v56  ;;  %v4463_v0 = vpop.f32.mrf.mxu0  ;;  %2800 = vmatprep.mubr.bf16.mxu1 %v5242_v55 }
 0x106   :  { %v4464_v1 = vadd.f32 %v4463_v0, %v4462_v60  ;;  %v4527_v2 = vpop.f32.mrf.mxu1 }
 0x107   :  { %v752_v3 = vadd.f32 %v710_v63, %v94_v61  ;;  %v4528_v4 = vadd.f32 %v4527_v2, %v4526_v62  ;;  %v4465_v5 = vpop.f32.mrf.mxu0  ;;  %v100_v61 = vld [vmem:[#allocation2 + $0x68] sm:$0xff] }
 0x108   :  { %v4529_v8 = vpop.f32.mrf.mxu1 }
 0x109   :  { %769 = vst.msk [vmem:[#allocation2 + $0x38] sm:$0xff] %vm22_vm0, %v752_v3  ;;  %v715_v11 = vadd.f32 %v4528_v4, %v4464_v1  ;;  %v4466_v12 = vpop.f32.mrf.mxu0 }
 0x10a   :  { %v4467_v14 = vadd.f32 %v4466_v12, %v4465_v5  ;;  %v4530_v15 = vpop.f32.mrf.mxu1 }
 0x10b   :  { %v753_v16 = vadd.f32 %v715_v11, %v95_v7  ;;  %v4531_v17 = vadd.f32 %v4530_v15, %v4529_v8  ;;  %v4468_v18 = vpop.f32.mrf.mxu0  ;;  %2704 = vmatmul.mubr.bf16.gmra.mxu0 %v5237_v6  ;;  %v101_v6 = vld [vmem:[#allocation2 + $0x70] sm:$0xff]  ;;  %v102_v15 = vld [vmem:[#allocation2 + $0x78] sm:$0xff] }
 0x10c   :  { %v4532_v20 = vpop.f32.mrf.mxu1  ;;  %2801 = vmatmul.mubr.bf16.gmra.mxu1 %v5240_v9  ;;  %2711 = vmatprep.mubr.bf16.mxu0 %v5245_v10 }
 0x10d   :  { %770 = vst.msk [vmem:[#allocation2 + $0x40] sm:$0xff] %vm22_vm0, %v753_v16  ;;  %v718_v21 = vadd.f32 %v4531_v17, %v4467_v14  ;;  %v4469_v22 = vpop.f32.mrf.mxu0  ;;  %2808 = vmatprep.mubr.bf16.mxu1 %v5248_v13 }
 0x10e   :  { %v4470_v23 = vadd.f32 %v4469_v22, %v4468_v18  ;;  %v4533_v24 = vpop.f32.mrf.mxu1 }
 0x10f   :  { %v754_v25 = vadd.f32 %v718_v21, %v96_v19  ;;  %v4534_v26 = vadd.f32 %v4533_v24, %v4532_v20  ;;  %v4471_v27 = vpop.f32.mrf.mxu0  ;;  %v779_v24 = vld [vmem:[#allocation2 + $0x80] sm:$0xff] }
 0x110   :  { %v4535_v30 = vpop.f32.mrf.mxu1 }
 0x111   :  { %771 = vst.msk [vmem:[#allocation2 + $0x48] sm:$0xff] %vm22_vm0, %v754_v25  ;;  %v723_v33 = vadd.f32 %v4534_v26, %v4470_v23  ;;  %v4472_v34 = vpop.f32.mrf.mxu0 }
 0x112   :  { %v4473_v36 = vadd.f32 %v4472_v34, %v4471_v27  ;;  %v4536_v37 = vpop.f32.mrf.mxu1 }
 0x113   :  { %v755_v38 = vadd.f32 %v723_v33, %v97_v29  ;;  %v4537_v39 = vadd.f32 %v4536_v37, %v4535_v30  ;;  %v4474_v40 = vpop.f32.mrf.mxu0  ;;  %2712 = vmatmul.mubr.bf16.gmra.mxu0 %v5243_v28  ;;  %v780_v33 = vld [vmem:[#allocation2 + $0x88] sm:$0xff] }
 0x114   :  { %v4538_v42 = vpop.f32.mrf.mxu1  ;;  %2809 = vmatmul.mubr.bf16.gmra.mxu1 %v5246_v31  ;;  %2719 = vmatprep.mubr.bf16.mxu0 %v5251_v32 }
 0x115   :  { %772 = vst.msk [vmem:[#allocation2 + $0x50] sm:$0xff] %vm22_vm0, %v755_v38  ;;  %v726_v43 = vadd.f32 %v4537_v39, %v4473_v36  ;;  %v4475_v44 = vpop.f32.mrf.mxu0  ;;  %2816 = vmatprep.mubr.bf16.mxu1 %v5254_v35 }
 0x116   :  { %v4476_v45 = vadd.f32 %v4475_v44, %v4474_v40  ;;  %v4539_v46 = vpop.f32.mrf.mxu1 }
 0x117   :  { %v756_v47 = vadd.f32 %v726_v43, %v98_v41  ;;  %v4540_v48 = vadd.f32 %v4539_v46, %v4538_v42  ;;  %v4477_v49 = vpop.f32.mrf.mxu0  ;;  %v781_v42 = vld [vmem:[#allocation2 + $0x90] sm:$0xff] }
 0x118   :  { %v4541_v52 = vpop.f32.mrf.mxu1 }
 0x119   :  { %773 = vst.msk [vmem:[#allocation2 + $0x58] sm:$0xff] %vm22_vm0, %v756_v47  ;;  %v731_v54 = vadd.f32 %v4540_v48, %v4476_v45  ;;  %v4478_v55 = vpop.f32.mrf.mxu0 }
 0x11a   :  { %v4479_v56 = vadd.f32 %v4478_v55, %v4477_v49  ;;  %v4542_v57 = vpop.f32.mrf.mxu1 }
 0x11b   :  { %v757_v58 = vadd.f32 %v731_v54, %v99_v51  ;;  %v4543_v59 = vadd.f32 %v4542_v57, %v4541_v52  ;;  %v4480_v60 = vpop.f32.mrf.mxu0  ;;  %2720 = vmatmul.mubr.bf16.gmra.mxu0 %v5249_v50  ;;  %v782_v51 = vld [vmem:[#allocation2 + $0x98] sm:$0xff] }
 0x11c   :  { %v4544_v62 = vpop.f32.mrf.mxu1  ;;  %2817 = vmatmul.mubr.bf16.gmra.mxu1 %v5252_v53 }
 0x11d   :  { %774 = vst.msk [vmem:[#allocation2 + $0x60] sm:$0xff] %vm22_vm0, %v757_v58  ;;  %v734_v63 = vadd.f32 %v4543_v59, %v4479_v56  ;;  %v4481_v0 = vpop.f32.mrf.mxu0 }
 0x11e   :  { %v4482_v1 = vadd.f32 %v4481_v0, %v4480_v60  ;;  %v4545_v2 = vpop.f32.mrf.mxu1  ;;  %v783_v60 = vld [vmem:[#allocation2 + $0xa0] sm:$0xff] }
 0x11f   :  { %v758_v3 = vadd.f32 %v734_v63, %v100_v61  ;;  %v4546_v4 = vadd.f32 %v4545_v2, %v4544_v62  ;;  %v4483_v5 = vpop.f32.mrf.mxu0 }
 0x120   :  { %v4547_v7 = vpop.f32.mrf.mxu1 }
 0x121   :  { %775 = vst.msk [vmem:[#allocation2 + $0x68] sm:$0xff] %vm22_vm0, %v758_v3  ;;  %v739_v8 = vadd.f32 %v4546_v4, %v4482_v1  ;;  %v4484_v9 = vpop.f32.mrf.mxu0 }
 0x122   :  { %v4485_v10 = vadd.f32 %v4484_v9, %v4483_v5  ;;  %v4548_v11 = vpop.f32.mrf.mxu1  ;;  %v784_v5 = vld [vmem:[#allocation2 + $0xa8] sm:$0xff] }
 0x123   :  { %v759_v12 = vadd.f32 %v739_v8, %v101_v6  ;;  %v4549_v13 = vadd.f32 %v4548_v11, %v4547_v7  ;;  %v4566_v14 = vpop.f32.mrf.mxu0 }
 0x124   :  { %v4630_v16 = vpop.f32.mrf.mxu1 }
 0x125   :  { %776 = vst.msk [vmem:[#allocation2 + $0x70] sm:$0xff] %vm22_vm0, %v759_v12  ;;  %v742_v17 = vadd.f32 %v4549_v13, %v4485_v10  ;;  %v4567_v18 = vpop.f32.mrf.mxu0 }
 0x126   :  { %v4568_v19 = vadd.f32 %v4567_v18, %v4566_v14  ;;  %v4631_v20 = vpop.f32.mrf.mxu1  ;;  %v785_v14 = vld [vmem:[#allocation2 + $0xb0] sm:$0xff] }
 0x127   :  { %v760_v21 = vadd.f32 %v742_v17, %v102_v15  ;;  %v4632_v22 = vadd.f32 %v4631_v20, %v4630_v16  ;;  %v4569_v23 = vpop.f32.mrf.mxu0 }
 0x128   :  { %v4633_v25 = vpop.f32.mrf.mxu1 }
 0x129   :  { %777 = vst.msk [vmem:[#allocation2 + $0x78] sm:$0xff] %vm22_vm0, %v760_v21  ;;  %v1377_v26 = vadd.f32 %v4632_v22, %v4568_v19  ;;  %v4570_v27 = vpop.f32.mrf.mxu0 }
 0x12a   :  { %v4571_v28 = vadd.f32 %v4570_v27, %v4569_v23  ;;  %v4634_v29 = vpop.f32.mrf.mxu1  ;;  %v786_v23 = vld [vmem:[#allocation2 + $0xb8] sm:$0xff] }
 0x12b   :  { %v1439_v30 = vadd.f32 %v1377_v26, %v779_v24  ;;  %v4635_v31 = vadd.f32 %v4634_v29, %v4633_v25  ;;  %v4572_v32 = vpop.f32.mrf.mxu0 }
 0x12c   :  { %v4636_v34 = vpop.f32.mrf.mxu1 }
 0x12d   :  { %1455 = vst.msk [vmem:[#allocation2 + $0x80] sm:$0xff] %vm22_vm0, %v1439_v30  ;;  %v1380_v35 = vadd.f32 %v4635_v31, %v4571_v28  ;;  %v4573_v36 = vpop.f32.mrf.mxu0 }
 0x12e   :  { %v4574_v37 = vadd.f32 %v4573_v36, %v4572_v32  ;;  %v4637_v38 = vpop.f32.mrf.mxu1  ;;  %v787_v32 = vld [vmem:[#allocation2 + $0xc0] sm:$0xff] }
 0x12f   :  { %v1440_v39 = vadd.f32 %v1380_v35, %v780_v33  ;;  %v4638_v40 = vadd.f32 %v4637_v38, %v4636_v34  ;;  %v4575_v41 = vpop.f32.mrf.mxu0 }
 0x130   :  { %v4639_v43 = vpop.f32.mrf.mxu1 }
 0x131   :  { %1456 = vst.msk [vmem:[#allocation2 + $0x88] sm:$0xff] %vm22_vm0, %v1440_v39  ;;  %v1385_v44 = vadd.f32 %v4638_v40, %v4574_v37  ;;  %v4576_v45 = vpop.f32.mrf.mxu0 }
 0x132   :  { %v4577_v46 = vadd.f32 %v4576_v45, %v4575_v41  ;;  %v4640_v47 = vpop.f32.mrf.mxu1  ;;  %v788_v41 = vld [vmem:[#allocation2 + $0xc8] sm:$0xff] }
 0x133   :  { %v1441_v48 = vadd.f32 %v1385_v44, %v781_v42  ;;  %v4641_v49 = vadd.f32 %v4640_v47, %v4639_v43  ;;  %v4578_v50 = vpop.f32.mrf.mxu0 }
 0x134   :  { %v4642_v52 = vpop.f32.mrf.mxu1 }
 0x135   :  { %1457 = vst.msk [vmem:[#allocation2 + $0x90] sm:$0xff] %vm22_vm0, %v1441_v48  ;;  %v1388_v53 = vadd.f32 %v4641_v49, %v4577_v46  ;;  %v4579_v54 = vpop.f32.mrf.mxu0 }
 0x136   :  { %v4580_v55 = vadd.f32 %v4579_v54, %v4578_v50  ;;  %v4643_v56 = vpop.f32.mrf.mxu1  ;;  %v789_v50 = vld [vmem:[#allocation2 + $0xd0] sm:$0xff] }
 0x137   :  { %v1442_v57 = vadd.f32 %v1388_v53, %v782_v51  ;;  %v4644_v58 = vadd.f32 %v4643_v56, %v4642_v52  ;;  %v4581_v59 = vpop.f32.mrf.mxu0 }
 0x138   :  { %v4645_v61 = vpop.f32.mrf.mxu1 }
 0x139   :  { %1458 = vst.msk [vmem:[#allocation2 + $0x98] sm:$0xff] %vm22_vm0, %v1442_v57  ;;  %v1393_v62 = vadd.f32 %v4644_v58, %v4580_v55  ;;  %v4582_v63 = vpop.f32.mrf.mxu0 }
 0x13a   :  { %v4583_v0 = vadd.f32 %v4582_v63, %v4581_v59  ;;  %v4646_v1 = vpop.f32.mrf.mxu1  ;;  %v790_v59 = vld [vmem:[#allocation2 + $0xd8] sm:$0xff] }
 0x13b   :  { %v1443_v2 = vadd.f32 %v1393_v62, %v783_v60  ;;  %v4647_v3 = vadd.f32 %v4646_v1, %v4645_v61  ;;  %v4584_v4 = vpop.f32.mrf.mxu0 }
 0x13c   :  { %v4648_v6 = vpop.f32.mrf.mxu1 }
 0x13d   :  { %1459 = vst.msk [vmem:[#allocation2 + $0xa0] sm:$0xff] %vm22_vm0, %v1443_v2  ;;  %v1396_v7 = vadd.f32 %v4647_v3, %v4583_v0  ;;  %v4585_v8 = vpop.f32.mrf.mxu0 }
 0x13e   :  { %v4586_v9 = vadd.f32 %v4585_v8, %v4584_v4  ;;  %v4649_v10 = vpop.f32.mrf.mxu1  ;;  %v791_v4 = vld [vmem:[#allocation2 + $0xe0] sm:$0xff] }
 0x13f   :  { %v1444_v11 = vadd.f32 %v1396_v7, %v784_v5  ;;  %v4650_v12 = vadd.f32 %v4649_v10, %v4648_v6  ;;  %v4587_v13 = vpop.f32.mrf.mxu0 }
 0x140   :  { %v4651_v15 = vpop.f32.mrf.mxu1 }
 0x141   :  { %1460 = vst.msk [vmem:[#allocation2 + $0xa8] sm:$0xff] %vm22_vm0, %v1444_v11  ;;  %v1401_v16 = vadd.f32 %v4650_v12, %v4586_v9  ;;  %v4588_v17 = vpop.f32.mrf.mxu0 }
 0x142   :  { %v4589_v18 = vadd.f32 %v4588_v17, %v4587_v13  ;;  %v4652_v19 = vpop.f32.mrf.mxu1  ;;  %v792_v13 = vld [vmem:[#allocation2 + $0xe8] sm:$0xff] }
 0x143   :  { %v1445_v20 = vadd.f32 %v1401_v16, %v785_v14  ;;  %v4653_v21 = vadd.f32 %v4652_v19, %v4651_v15  ;;  %v4590_v22 = vpop.f32.mrf.mxu0 }
 0x144   :  { %v4654_v24 = vpop.f32.mrf.mxu1 }
 0x145   :  { %1461 = vst.msk [vmem:[#allocation2 + $0xb0] sm:$0xff] %vm22_vm0, %v1445_v20  ;;  %v1404_v25 = vadd.f32 %v4653_v21, %v4589_v18  ;;  %v4591_v26 = vpop.f32.mrf.mxu0 }
 0x146   :  { %v4592_v27 = vadd.f32 %v4591_v26, %v4590_v22  ;;  %v4655_v28 = vpop.f32.mrf.mxu1  ;;  %v793_v22 = vld [vmem:[#allocation2 + $0xf0] sm:$0xff] }
 0x147   :  { %v1446_v29 = vadd.f32 %v1404_v25, %v786_v23  ;;  %v4656_v30 = vadd.f32 %v4655_v28, %v4654_v24  ;;  %v4593_v31 = vpop.f32.mrf.mxu0 }
 0x148   :  { %v4657_v33 = vpop.f32.mrf.mxu1 }
 0x149   :  { %1462 = vst.msk [vmem:[#allocation2 + $0xb8] sm:$0xff] %vm22_vm0, %v1446_v29  ;;  %v1409_v34 = vadd.f32 %v4656_v30, %v4592_v27  ;;  %v4594_v35 = vpop.f32.mrf.mxu0 }
 0x14a   :  { %v4595_v36 = vadd.f32 %v4594_v35, %v4593_v31  ;;  %v4658_v37 = vpop.f32.mrf.mxu1  ;;  %v794_v31 = vld [vmem:[#allocation2 + $0xf8] sm:$0xff] }
 0x14b   :  { %v1447_v38 = vadd.f32 %v1409_v34, %v787_v32  ;;  %v4659_v39 = vadd.f32 %v4658_v37, %v4657_v33  ;;  %v4596_v40 = vpop.f32.mrf.mxu0 }
 0x14c   :  { %v4660_v42 = vpop.f32.mrf.mxu1 }
 0x14d   :  { %1463 = vst.msk [vmem:[#allocation2 + $0xc0] sm:$0xff] %vm22_vm0, %v1447_v38  ;;  %v1412_v43 = vadd.f32 %v4659_v39, %v4595_v36  ;;  %v4597_v44 = vpop.f32.mrf.mxu0 }
 0x14e   :  { %v4598_v45 = vadd.f32 %v4597_v44, %v4596_v40  ;;  %v4661_v46 = vpop.f32.mrf.mxu1  ;;  %v1472_v40 = vld [vmem:[#allocation2 + $0x100] sm:$0xff] }
 0x14f   :  { %v1448_v47 = vadd.f32 %v1412_v43, %v788_v41  ;;  %v4662_v48 = vadd.f32 %v4661_v46, %v4660_v42  ;;  %v4599_v49 = vpop.f32.mrf.mxu0 }
 0x150   :  { %v4663_v51 = vpop.f32.mrf.mxu1 }
 0x151   :  { %1464 = vst.msk [vmem:[#allocation2 + $0xc8] sm:$0xff] %vm22_vm0, %v1448_v47  ;;  %v1417_v52 = vadd.f32 %v4662_v48, %v4598_v45  ;;  %v4600_v53 = vpop.f32.mrf.mxu0 }
 0x152   :  { %v4601_v54 = vadd.f32 %v4600_v53, %v4599_v49  ;;  %v4664_v55 = vpop.f32.mrf.mxu1  ;;  %v1473_v49 = vld [vmem:[#allocation2 + $0x108] sm:$0xff] }
 0x153   :  { %v1449_v56 = vadd.f32 %v1417_v52, %v789_v50  ;;  %v4665_v57 = vadd.f32 %v4664_v55, %v4663_v51  ;;  %v4602_v58 = vpop.f32.mrf.mxu0 }
 0x154   :  { %v4666_v60 = vpop.f32.mrf.mxu1 }
 0x155   :  { %1465 = vst.msk [vmem:[#allocation2 + $0xd0] sm:$0xff] %vm22_vm0, %v1449_v56  ;;  %v1420_v61 = vadd.f32 %v4665_v57, %v4601_v54  ;;  %v4603_v62 = vpop.f32.mrf.mxu0 }
 0x156   :  { %v4604_v63 = vadd.f32 %v4603_v62, %v4602_v58  ;;  %v4667_v0 = vpop.f32.mrf.mxu1  ;;  %v1474_v58 = vld [vmem:[#allocation2 + $0x110] sm:$0xff] }
 0x157   :  { %v1450_v1 = vadd.f32 %v1420_v61, %v790_v59  ;;  %v4668_v2 = vadd.f32 %v4667_v0, %v4666_v60  ;;  %v4605_v3 = vpop.f32.mrf.mxu0 }
 0x158   :  { %v4669_v5 = vpop.f32.mrf.mxu1 }
 0x159   :  { %1466 = vst.msk [vmem:[#allocation2 + $0xd8] sm:$0xff] %vm22_vm0, %v1450_v1  ;;  %v1425_v6 = vadd.f32 %v4668_v2, %v4604_v63  ;;  %v4606_v7 = vpop.f32.mrf.mxu0 }
 0x15a   :  { %v4607_v8 = vadd.f32 %v4606_v7, %v4605_v3  ;;  %v4670_v9 = vpop.f32.mrf.mxu1  ;;  %v1475_v3 = vld [vmem:[#allocation2 + $0x118] sm:$0xff] }
 0x15b   :  { %v1451_v10 = vadd.f32 %v1425_v6, %v791_v4  ;;  %v4671_v11 = vadd.f32 %v4670_v9, %v4669_v5  ;;  %v4608_v12 = vpop.f32.mrf.mxu0 }
 0x15c   :  { %v4672_v14 = vpop.f32.mrf.mxu1 }
 0x15d   :  { %1467 = vst.msk [vmem:[#allocation2 + $0xe0] sm:$0xff] %vm22_vm0, %v1451_v10  ;;  %v1428_v15 = vadd.f32 %v4671_v11, %v4607_v8  ;;  %v4609_v16 = vpop.f32.mrf.mxu0 }
 0x15e   :  { %v4610_v17 = vadd.f32 %v4609_v16, %v4608_v12  ;;  %v4673_v18 = vpop.f32.mrf.mxu1  ;;  %v1476_v12 = vld [vmem:[#allocation2 + $0x120] sm:$0xff] }
 0x15f   :  { %v1452_v19 = vadd.f32 %v1428_v15, %v792_v13  ;;  %v4674_v20 = vadd.f32 %v4673_v18, %v4672_v14  ;;  %v4611_v21 = vpop.f32.mrf.mxu0 }
 0x160   :  { %v4675_v23 = vpop.f32.mrf.mxu1 }
 0x161   :  { %1468 = vst.msk [vmem:[#allocation2 + $0xe8] sm:$0xff] %vm22_vm0, %v1452_v19  ;;  %v1433_v24 = vadd.f32 %v4674_v20, %v4610_v17  ;;  %v4612_v25 = vpop.f32.mrf.mxu0 }
 0x162   :  { %v4613_v26 = vadd.f32 %v4612_v25, %v4611_v21  ;;  %v4676_v27 = vpop.f32.mrf.mxu1  ;;  %v1477_v21 = vld [vmem:[#allocation2 + $0x128] sm:$0xff] }
 0x163   :  { %v1453_v28 = vadd.f32 %v1433_v24, %v793_v22  ;;  %v4677_v29 = vadd.f32 %v4676_v27, %v4675_v23  ;;  %v4694_v30 = vpop.f32.mrf.mxu0 }
 0x164   :  { %v4758_v32 = vpop.f32.mrf.mxu1 }
 0x165   :  { %1469 = vst.msk [vmem:[#allocation2 + $0xf0] sm:$0xff] %vm22_vm0, %v1453_v28  ;;  %v1436_v33 = vadd.f32 %v4677_v29, %v4613_v26  ;;  %v4695_v34 = vpop.f32.mrf.mxu0 }
 0x166   :  { %v4696_v35 = vadd.f32 %v4695_v34, %v4694_v30  ;;  %v4759_v36 = vpop.f32.mrf.mxu1  ;;  %v1478_v30 = vld [vmem:[#allocation2 + $0x130] sm:$0xff] }
 0x167   :  { %v1454_v37 = vadd.f32 %v1436_v33, %v794_v31  ;;  %v4760_v38 = vadd.f32 %v4759_v36, %v4758_v32  ;;  %v4697_v39 = vpop.f32.mrf.mxu0 }
 0x168   :  { %v4761_v41 = vpop.f32.mrf.mxu1 }
 0x169   :  { %1470 = vst.msk [vmem:[#allocation2 + $0xf8] sm:$0xff] %vm22_vm0, %v1454_v37  ;;  %v2070_v42 = vadd.f32 %v4760_v38, %v4696_v35  ;;  %v4698_v43 = vpop.f32.mrf.mxu0 }
 0x16a   :  { %v4699_v44 = vadd.f32 %v4698_v43, %v4697_v39  ;;  %v4762_v45 = vpop.f32.mrf.mxu1  ;;  %v1479_v39 = vld [vmem:[#allocation2 + $0x138] sm:$0xff] }
 0x16b   :  { %v2132_v46 = vadd.f32 %v2070_v42, %v1472_v40  ;;  %v4763_v47 = vadd.f32 %v4762_v45, %v4761_v41  ;;  %v4700_v48 = vpop.f32.mrf.mxu0 }
 0x16c   :  { %v4764_v50 = vpop.f32.mrf.mxu1 }
 0x16d   :  { %2148 = vst.msk [vmem:[#allocation2 + $0x100] sm:$0xff] %vm22_vm0, %v2132_v46  ;;  %v2073_v51 = vadd.f32 %v4763_v47, %v4699_v44  ;;  %v4701_v52 = vpop.f32.mrf.mxu0 }
 0x16e   :  { %v4702_v53 = vadd.f32 %v4701_v52, %v4700_v48  ;;  %v4765_v54 = vpop.f32.mrf.mxu1  ;;  %v1480_v48 = vld [vmem:[#allocation2 + $0x140] sm:$0xff] }
 0x16f   :  { %v2133_v55 = vadd.f32 %v2073_v51, %v1473_v49  ;;  %v4766_v56 = vadd.f32 %v4765_v54, %v4764_v50  ;;  %v4703_v57 = vpop.f32.mrf.mxu0 }
 0x170   :  { %v4767_v59 = vpop.f32.mrf.mxu1 }
 0x171   :  { %2149 = vst.msk [vmem:[#allocation2 + $0x108] sm:$0xff] %vm22_vm0, %v2133_v55  ;;  %v2078_v60 = vadd.f32 %v4766_v56, %v4702_v53  ;;  %v4704_v61 = vpop.f32.mrf.mxu0 }
 0x172   :  { %v4705_v62 = vadd.f32 %v4704_v61, %v4703_v57  ;;  %v4768_v63 = vpop.f32.mrf.mxu1  ;;  %v1481_v57 = vld [vmem:[#allocation2 + $0x148] sm:$0xff] }
 0x173   :  { %v2134_v0 = vadd.f32 %v2078_v60, %v1474_v58  ;;  %v4769_v1 = vadd.f32 %v4768_v63, %v4767_v59  ;;  %v4706_v2 = vpop.f32.mrf.mxu0 }
 0x174   :  { %v4770_v4 = vpop.f32.mrf.mxu1 }
 0x175   :  { %2150 = vst.msk [vmem:[#allocation2 + $0x110] sm:$0xff] %vm22_vm0, %v2134_v0  ;;  %v2081_v5 = vadd.f32 %v4769_v1, %v4705_v62  ;;  %v4707_v6 = vpop.f32.mrf.mxu0 }
 0x176   :  { %v4708_v7 = vadd.f32 %v4707_v6, %v4706_v2  ;;  %v4771_v8 = vpop.f32.mrf.mxu1  ;;  %v1482_v2 = vld [vmem:[#allocation2 + $0x150] sm:$0xff] }
 0x177   :  { %v2135_v9 = vadd.f32 %v2081_v5, %v1475_v3  ;;  %v4772_v10 = vadd.f32 %v4771_v8, %v4770_v4  ;;  %v4709_v11 = vpop.f32.mrf.mxu0 }
 0x178   :  { %v4773_v13 = vpop.f32.mrf.mxu1 }
 0x179   :  { %2151 = vst.msk [vmem:[#allocation2 + $0x118] sm:$0xff] %vm22_vm0, %v2135_v9  ;;  %v2086_v14 = vadd.f32 %v4772_v10, %v4708_v7  ;;  %v4710_v15 = vpop.f32.mrf.mxu0 }
 0x17a   :  { %v4711_v16 = vadd.f32 %v4710_v15, %v4709_v11  ;;  %v4774_v17 = vpop.f32.mrf.mxu1  ;;  %v1483_v11 = vld [vmem:[#allocation2 + $0x158] sm:$0xff] }
 0x17b   :  { %v2136_v18 = vadd.f32 %v2086_v14, %v1476_v12  ;;  %v4775_v19 = vadd.f32 %v4774_v17, %v4773_v13  ;;  %v4712_v20 = vpop.f32.mrf.mxu0 }
 0x17c   :  { %v4776_v22 = vpop.f32.mrf.mxu1 }
 0x17d   :  { %2152 = vst.msk [vmem:[#allocation2 + $0x120] sm:$0xff] %vm22_vm0, %v2136_v18  ;;  %v2089_v23 = vadd.f32 %v4775_v19, %v4711_v16  ;;  %v4713_v24 = vpop.f32.mrf.mxu0 }
 0x17e   :  { %v4714_v25 = vadd.f32 %v4713_v24, %v4712_v20  ;;  %v4777_v26 = vpop.f32.mrf.mxu1  ;;  %v1484_v20 = vld [vmem:[#allocation2 + $0x160] sm:$0xff] }
 0x17f   :  { %v2137_v27 = vadd.f32 %v2089_v23, %v1477_v21  ;;  %v4778_v28 = vadd.f32 %v4777_v26, %v4776_v22  ;;  %v4715_v29 = vpop.f32.mrf.mxu0 }
 0x180   :  { %v4779_v31 = vpop.f32.mrf.mxu1 }
 0x181   :  { %2153 = vst.msk [vmem:[#allocation2 + $0x128] sm:$0xff] %vm22_vm0, %v2137_v27  ;;  %v2094_v32 = vadd.f32 %v4778_v28, %v4714_v25  ;;  %v4716_v33 = vpop.f32.mrf.mxu0 }
 0x182   :  { %v4717_v34 = vadd.f32 %v4716_v33, %v4715_v29  ;;  %v4780_v35 = vpop.f32.mrf.mxu1  ;;  %v1485_v29 = vld [vmem:[#allocation2 + $0x168] sm:$0xff] }
 0x183   :  { %v2138_v36 = vadd.f32 %v2094_v32, %v1478_v30  ;;  %v4781_v37 = vadd.f32 %v4780_v35, %v4779_v31  ;;  %v4718_v38 = vpop.f32.mrf.mxu0 }
 0x184   :  { %v4782_v40 = vpop.f32.mrf.mxu1 }
 0x185   :  { %2154 = vst.msk [vmem:[#allocation2 + $0x130] sm:$0xff] %vm22_vm0, %v2138_v36  ;;  %v2097_v41 = vadd.f32 %v4781_v37, %v4717_v34  ;;  %v4719_v42 = vpop.f32.mrf.mxu0 }
 0x186   :  { %v4720_v43 = vadd.f32 %v4719_v42, %v4718_v38  ;;  %v4783_v44 = vpop.f32.mrf.mxu1  ;;  %v1486_v38 = vld [vmem:[#allocation2 + $0x170] sm:$0xff] }
 0x187   :  { %v2139_v45 = vadd.f32 %v2097_v41, %v1479_v39  ;;  %v4784_v46 = vadd.f32 %v4783_v44, %v4782_v40  ;;  %v4721_v47 = vpop.f32.mrf.mxu0 }
 0x188   :  { %v4785_v49 = vpop.f32.mrf.mxu1 }
 0x189   :  { %2155 = vst.msk [vmem:[#allocation2 + $0x138] sm:$0xff] %vm22_vm0, %v2139_v45  ;;  %v2102_v50 = vadd.f32 %v4784_v46, %v4720_v43  ;;  %v4722_v51 = vpop.f32.mrf.mxu0 }
 0x18a   :  { %v4723_v52 = vadd.f32 %v4722_v51, %v4721_v47  ;;  %v4786_v53 = vpop.f32.mrf.mxu1  ;;  %v1487_v47 = vld [vmem:[#allocation2 + $0x178] sm:$0xff] }
 0x18b   :  { %v2140_v54 = vadd.f32 %v2102_v50, %v1480_v48  ;;  %v4787_v55 = vadd.f32 %v4786_v53, %v4785_v49  ;;  %v4724_v56 = vpop.f32.mrf.mxu0 }
 0x18c   :  { %v4788_v58 = vpop.f32.mrf.mxu1 }
 0x18d   :  { %2156 = vst.msk [vmem:[#allocation2 + $0x140] sm:$0xff] %vm22_vm0, %v2140_v54  ;;  %v2105_v59 = vadd.f32 %v4787_v55, %v4723_v52  ;;  %v4725_v60 = vpop.f32.mrf.mxu0 }
 0x18e   :  { %v4726_v61 = vadd.f32 %v4725_v60, %v4724_v56  ;;  %v4789_v62 = vpop.f32.mrf.mxu1  ;;  %v2165_v56 = vld [vmem:[#allocation2 + $0x180] sm:$0xff] }
 0x18f   :  { %v2141_v63 = vadd.f32 %v2105_v59, %v1481_v57  ;;  %v4790_v0 = vadd.f32 %v4789_v62, %v4788_v58  ;;  %v4727_v1 = vpop.f32.mrf.mxu0  ;;  %v6252_v60 = vld [vmem:[#allocation2] sm:$0xff]  ;;  %v6256_v62 = vld [vmem:[#allocation2 + $0x10] sm:$0xff] }
 0x190   :  { %v4791_v3 = vpop.f32.mrf.mxu1 }
 0x191   :  { %2157 = vst.msk [vmem:[#allocation2 + $0x148] sm:$0xff] %vm22_vm0, %v2141_v63  ;;  %v2110_v4 = vadd.f32 %v4790_v0, %v4726_v61  ;;  %v4728_v5 = vpop.f32.mrf.mxu0  ;;  %v6254_v61 = vld [vmem:[#allocation2 + $0x8] sm:$0xff] }
 0x192   :  { %v4729_v6 = vadd.f32 %v4728_v5, %v4727_v1  ;;  %v4792_v7 = vpop.f32.mrf.mxu1  ;;  %v6258_v1 = vld [vmem:[#allocation2 + $0x18] sm:$0xff] }
 0x193   :  { %v2142_v8 = vadd.f32 %v2110_v4, %v1482_v2  ;;  %v4793_v9 = vadd.f32 %v4792_v7, %v4791_v3  ;;  %v4730_v10 = vpop.f32.mrf.mxu0  ;;  %v6260_v2 = vld [vmem:[#allocation2 + $0x20] sm:$0xff]  ;;  %v6262_v3 = vld [vmem:[#allocation2 + $0x28] sm:$0xff]  ;;  %v6264_v7 = vld [vmem:[#allocation2 + $0x30] sm:$0xff] }
 0x194   :  { %v4794_v12 = vpop.f32.mrf.mxu1  ;;  %7333 = vst [vmem:[#allocation3_spill] sm:$0xff] %v6262_v3  ;;  %7334 = vst [vmem:[#allocation4_spill] sm:$0xff] %v6264_v7 }
 0x195   :  { %2158 = vst.msk [vmem:[#allocation2 + $0x150] sm:$0xff] %vm22_vm0, %v2142_v8  ;;  %v2113_v13 = vadd.f32 %v4793_v9, %v4729_v6  ;;  %v4731_v14 = vpop.f32.mrf.mxu0  ;;  %v6266_v8 = vld [vmem:[#allocation2 + $0x38] sm:$0xff]  ;;  %v2166_v9 = vld [vmem:[#allocation2 + $0x188] sm:$0xff] }
 0x196   :  { %v4732_v15 = vadd.f32 %v4731_v14, %v4730_v10  ;;  %v4795_v16 = vpop.f32.mrf.mxu1  ;;  %7335 = vst [vmem:[#allocation5_spill] sm:$0xff] %v6266_v8  ;;  %v6274_v14 = vld [vmem:[#allocation2 + $0x48] sm:$0xff] }
 0x197   :  { %v2143_v17 = vadd.f32 %v2113_v13, %v1483_v11  ;;  %v4796_v18 = vadd.f32 %v4795_v16, %v4794_v12  ;;  %v4733_v19 = vpop.f32.mrf.mxu0  ;;  %v2972_v11 = vmul.f32 %v6252_v60, %v6252_v60  ;;  %v2973_v12 = vmul.f32 %v6254_v61, %v6254_v61  ;;  %v6272_v13 = vld [vmem:[#allocation2 + $0x40] sm:$0xff]  ;;  %7337 = vst [vmem:[#allocation7_spill] sm:$0xff] %v6274_v14 }
 0x198   :  { %v4797_v21 = vpop.f32.mrf.mxu1  ;;  %7336 = vst [vmem:[#allocation6_spill] sm:$0xff] %v6272_v13 }
 0x199   :  { %2159 = vst.msk [vmem:[#allocation2 + $0x158] sm:$0xff] %vm22_vm0, %v2143_v17  ;;  %v2118_v22 = vadd.f32 %v4796_v18, %v4732_v15  ;;  %v4734_v23 = vpop.f32.mrf.mxu0  ;;  %v6276_v15 = vld [vmem:[#allocation2 + $0x80] sm:$0xff]  ;;  %v2974_v18 = vmul.f32 %v6256_v62, %v6256_v62 }
 0x19a   :  { %v4735_v24 = vadd.f32 %v4734_v23, %v4733_v19  ;;  %v4798_v25 = vpop.f32.mrf.mxu1  ;;  %7338 = vst [vmem:[#allocation8_spill] sm:$0xff] %v6276_v15  ;;  %v6283_v19 = vmul.f32 %v6258_v1, %v6258_v1  ;;  %v6293_v23 = vld [vmem:[#allocation2 + $0x88] sm:$0xff] }
 0x19b   :  { %v2144_v26 = vadd.f32 %v2118_v22, %v1484_v20  ;;  %v4799_v27 = vadd.f32 %v4798_v25, %v4797_v21  ;;  %v4736_v28 = vpop.f32.mrf.mxu0  ;;  %v6287_v20 = vmul.f32 %v6260_v2, %v6260_v2  ;;  %v6289_v21 = vld [vmem:[#allocation2 + $0x50] sm:$0xff]  ;;  %v6291_v22 = vld [vmem:[#allocation2 + $0x58] sm:$0xff]  ;;  %7341 = vst [vmem:[#allocation11_spill] sm:$0xff] %v6293_v23 }
 0x19c   :  { %v4800_v30 = vpop.f32.mrf.mxu1  ;;  %7339 = vst [vmem:[#allocation9_spill] sm:$0xff] %v6289_v21  ;;  %7340 = vst [vmem:[#allocation10_spill] sm:$0xff] %v6291_v22 }
 0x19d   :  { %2160 = vst.msk [vmem:[#allocation2 + $0x160] sm:$0xff] %vm22_vm0, %v2144_v26  ;;  %v2121_v31 = vadd.f32 %v4799_v27, %v4735_v24  ;;  %v4737_v32 = vpop.f32.mrf.mxu0  ;;  %v6297_v26 = vmul.f32 %v6262_v3, %v6262_v3  ;;  %v6301_v27 = vmul.f32 %v6264_v7, %v6264_v7 }
 0x19e   :  { %v4738_v33 = vadd.f32 %v4737_v32, %v4736_v28  ;;  %v4801_v34 = vpop.f32.mrf.mxu1  ;;  %v6303_v28 = vld [vmem:[#allocation2 + $0x60] sm:$0xff] }
 0x19f   :  { %v2145_v35 = vadd.f32 %v2121_v31, %v1485_v29  ;;  %v4802_v36 = vadd.f32 %v4801_v34, %v4800_v30  ;;  %v4739_v37 = vpop.f32.mrf.mxu0  ;;  %7342 = vst [vmem:[#allocation12_spill] sm:$0xff] %v6303_v28  ;;  %v6305_v29 = vld [vmem:[#allocation2 + $0x68] sm:$0xff]  ;;  %v6307_v30 = vld [vmem:[#allocation2 + $0x90] sm:$0xff]  ;;  %v6311_v34 = vmul.f32 %v6266_v8, %v6266_v8 }
 0x1a0   :  { %v4803_v39 = vpop.f32.mrf.mxu1  ;;  %7343 = vst [vmem:[#allocation13_spill] sm:$0xff] %v6305_v29  ;;  %7344 = vst [vmem:[#allocation14_spill] sm:$0xff] %v6307_v30 }
 0x1a1   :  { %2161 = vst.msk [vmem:[#allocation2 + $0x168] sm:$0xff] %vm22_vm0, %v2145_v35  ;;  %v2126_v40 = vadd.f32 %v4802_v36, %v4738_v33  ;;  %v4740_v41 = vpop.f32.mrf.mxu0  ;;  %v6315_v35 = vmul.f32 %v6272_v13, %v6272_v13  ;;  %v6319_v36 = vmul.f32 %v6274_v14, %v6274_v14 }
 0x1a2   :  { %v4741_v42 = vadd.f32 %v4740_v41, %v4739_v37  ;;  %v4804_v43 = vpop.f32.mrf.mxu1  ;;  %v6321_v37 = vld [vmem:[#allocation2 + $0x70] sm:$0xff] }
 0x1a3   :  { %v2146_v44 = vadd.f32 %v2126_v40, %v1486_v38  ;;  %v4805_v45 = vadd.f32 %v4804_v43, %v4803_v39  ;;  %v4822_v46 = vpop.f32.mrf.mxu0  ;;  %7345 = vst [vmem:[#allocation15_spill] sm:$0xff] %v6321_v37  ;;  %v6323_v38 = vld [vmem:[#allocation2 + $0x78] sm:$0xff]  ;;  %v2988_v39 = vmul.f32 %v6276_v15, %v6276_v15  ;;  %v2167_v40 = vld [vmem:[#allocation2 + $0x190] sm:$0xff]  ;;  %v6333_v43 = vmul.f32 %v6291_v22, %v6291_v22 }
 0x1a4   :  { %v4886_v48 = vpop.f32.mrf.mxu1 }
 0x1a5   :  { %2162 = vst.msk [vmem:[#allocation2 + $0x170] sm:$0xff] %vm22_vm0, %v2146_v44  ;;  %v2129_v49 = vadd.f32 %v4805_v45, %v4741_v42  ;;  %v4823_v50 = vpop.f32.mrf.mxu0  ;;  %v6329_v42 = vmul.f32 %v6289_v21, %v6289_v21  ;;  %v2989_v44 = vmul.f32 %v6293_v23, %v6293_v23  ;;  %v6337_v45 = vld [vmem:[#allocation2 + $0x98] sm:$0xff] }
 0x1a6   :  { %v4824_v51 = vadd.f32 %v4823_v50, %v4822_v46  ;;  %v4887_v52 = vpop.f32.mrf.mxu1  ;;  %7346 = vst [vmem:[#allocation16_spill] sm:$0xff] %v6337_v45  ;;  %v6339_v46 = vld [vmem:[#allocation2 + $0xa0] sm:$0xff]  ;;  %v6348_v50 = vmul.f32 %v6305_v29, %v6305_v29 }
 0x1a7   :  { %v2147_v53 = vadd.f32 %v2129_v49, %v1487_v47  ;;  %v4888_v54 = vadd.f32 %v4887_v52, %v4886_v48  ;;  %v4825_v55 = vpop.f32.mrf.mxu0  ;;  %7347 = vst [vmem:[#allocation17_spill] sm:$0xff] %v6339_v46  ;;  %v6344_v49 = vmul.f32 %v6303_v28, %v6303_v28  ;;  %v6352_v52 = vld [vmem:[#allocation2 + $0xa8] sm:$0xff] }
 0x1a8   :  { %v4889_v57 = vpop.f32.mrf.mxu1  ;;  %7348 = vst [vmem:[#allocation18_spill] sm:$0xff] %v6352_v52 }
 0x1a9   :  { %2163 = vst.msk [vmem:[#allocation2 + $0x178] sm:$0xff] %vm22_vm0, %v2147_v53  ;;  %v2763_v58 = vadd.f32 %v4888_v54, %v4824_v51  ;;  %v4826_v59 = vpop.f32.mrf.mxu0  ;;  %v2990_v51 = vmul.f32 %v6307_v30, %v6307_v30 }
 0x1aa   :  { %v4827_v63 = vadd.f32 %v4826_v59, %v4825_v55  ;;  %v4890_v0 = vpop.f32.mrf.mxu1  ;;  %v6356_v55 = vmul.f32 %v6321_v37, %v6321_v37 }
 0x1ab   :  { %v2825_v4 = vadd.f32 %v2763_v58, %v2165_v56  ;;  %v4891_v5 = vadd.f32 %v4890_v0, %v4889_v57  ;;  %v4828_v6 = vpop.f32.mrf.mxu0  ;;  %v6360_v56 = vmul.f32 %v6323_v38, %v6323_v38  ;;  %v6362_v57 = vld [vmem:[#allocation2 + $0xb0] sm:$0xff]  ;;  %v6366_v0 = vadd.f32 %v6276_v15, %v6252_v60 }
 0x1ac   :  { %v4892_v10 = vpop.f32.mrf.mxu1  ;;  %7349 = vst [vmem:[#allocation19_spill] sm:$0xff] %v6362_v57 }
 0x1ad   :  { %2841 = vst.msk [vmem:[#allocation2 + $0x180] sm:$0xff] %vm22_vm0, %v2825_v4  ;;  %v2766_v16 = vadd.f32 %v4891_v5, %v4827_v63  ;;  %v4829_v17 = vpop.f32.mrf.mxu0  ;;  %v6368_v4 = vadd.f32 %v2988_v39, %v2972_v11  ;;  %v2991_v5 = vmul.f32 %v6337_v45, %v6337_v45  ;;  %v2993_v11 = vmul.f32 %v6352_v52, %v6352_v52 }
 0x1ae   :  { %v4830_v24 = vadd.f32 %v4829_v17, %v4828_v6  ;;  %v4893_v25 = vpop.f32.mrf.mxu1  ;;  %v2992_v6 = vmul.f32 %v6339_v46, %v6339_v46  ;;  %v6378_v17 = vadd.f32 %v6293_v23, %v6254_v61  ;;  %v6391_v39 = vadd.f32 %v2990_v51, %v2974_v18 }
 0x1af   :  { %v2826_v31 = vadd.f32 %v2766_v16, %v2166_v9  ;;  %v4894_v32 = vadd.f32 %v4893_v25, %v4892_v10  ;;  %v4831_v33 = vpop.f32.mrf.mxu0  ;;  %v6374_v9 = vld [vmem:[#allocation2 + $0xb8] sm:$0xff]  ;;  %v6384_v25 = vld [vmem:[#allocation2 + $0xc0] sm:$0xff]  ;;  %v6406_v51 = vadd.f32 %v2991_v5, %v6283_v19 }
 0x1b0   :  { %v4895_v41 = vpop.f32.mrf.mxu1  ;;  %7350 = vst [vmem:[#allocation20_spill] sm:$0xff] %v6374_v9  ;;  %v2168_v10 = vld [vmem:[#allocation2 + $0x198] sm:$0xff]  ;;  %7351 = vst [vmem:[#allocation21_spill] sm:$0xff] %v6384_v25  ;;  %v6444_v15 = vadd.f32 %v6374_v9, %v6266_v8 }
 0x1b1   :  { %2842 = vst.msk [vmem:[#allocation2 + $0x188] sm:$0xff] %vm22_vm0, %v2826_v31  ;;  %v2771_v47 = vadd.f32 %v4894_v32, %v4830_v24  ;;  %v4832_v48 = vpop.f32.mrf.mxu0  ;;  %v6380_v24 = vadd.f32 %v2989_v44, %v2973_v12  ;;  %v6395_v12 = vld [vmem:[#allocation2 + $0xc8] sm:$0xff]  ;;  %v6426_v5 = vld [vmem:[#allocation2 + $0xd8] sm:$0xff] }
 0x1b2   :  { %v4833_v53 = vadd.f32 %v4832_v48, %v4831_v33  ;;  %v4896_v54 = vpop.f32.mrf.mxu1  ;;  %v6389_v33 = vadd.f32 %v6307_v30, %v6256_v62  ;;  %7352 = vst [vmem:[#allocation22_spill] sm:$0xff] %v6395_v12  ;;  %v2995_v48 = vmul.f32 %v6374_v9, %v6374_v9  ;;  %v2997_v19 = vmul.f32 %v6395_v12, %v6395_v12 }
 0x1b3   :  { %v2827_v58 = vadd.f32 %v2771_v47, %v2167_v40  ;;  %v4897_v59 = vadd.f32 %v4896_v54, %v4895_v41  ;;  %v4834_v63 = vpop.f32.mrf.mxu0  ;;  %v2994_v40 = vmul.f32 %v6362_v57, %v6362_v57  ;;  %v6399_v47 = vadd.f32 %v6337_v45, %v6258_v1  ;;  %v2169_v45 = vld [vmem:[#allocation2 + $0x1a0] sm:$0xff]  ;;  %7354 = vst [vmem:[#allocation24_spill] sm:$0xff] %v6426_v5 }
 0x1b4   :  { %v4898_v16 = vpop.f32.mrf.mxu1  ;;  %v6489_v8 = vadd.f32 %v6426_v5, %v6291_v22 }
 0x1b5   :  { %2843 = vst.msk [vmem:[#allocation2 + $0x190] sm:$0xff] %vm22_vm0, %v2827_v58  ;;  %v2774_v31 = vadd.f32 %v4897_v59, %v4833_v53  ;;  %v4835_v32 = vpop.f32.mrf.mxu0  ;;  %v6403_v53 = vld [vmem:[#allocation2 + $0xd0] sm:$0xff]  ;;  %v6410_v59 = vadd.f32 %v6339_v46, %v6260_v2 }
 0x1b6   :  { %v4836_v41 = vadd.f32 %v4835_v32, %v4834_v63  ;;  %v4899_v44 = vpop.f32.mrf.mxu1  ;;  %7353 = vst [vmem:[#allocation23_spill] sm:$0xff] %v6403_v53  ;;  %v6413_v63 = vadd.f32 %v2992_v6, %v6287_v20  ;;  %v2996_v32 = vmul.f32 %v6384_v25, %v6384_v25 }
 0x1b7   :  { %v2828_v54 = vadd.f32 %v2774_v31, %v2168_v10  ;;  %v4900_v58 = vadd.f32 %v4899_v44, %v4898_v16  ;;  %v4837_v18 = vpop.f32.mrf.mxu0  ;;  %v6419_v10 = vadd.f32 %v6352_v52, %v6262_v3  ;;  %v6422_v16 = vadd.f32 %v2993_v11, %v6297_v26  ;;  %v6428_v31 = vld [vmem:[#allocation2 + $0xe0] sm:$0xff]  ;;  %v6440_v11 = vld [vmem:[#allocation2 + $0xe8] sm:$0xff] }
 0x1b8   :  { %v4901_v30 = vpop.f32.mrf.mxu1  ;;  %7355 = vst [vmem:[#allocation25_spill] sm:$0xff] %v6428_v31  ;;  %v6433_v44 = vadd.f32 %v6362_v57, %v6264_v7  ;;  %v6436_v52 = vadd.f32 %v2994_v40, %v6301_v27  ;;  %v2998_v26 = vmul.f32 %v6403_v53, %v6403_v53  ;;  %7356 = vst [vmem:[#allocation26_spill] sm:$0xff] %v6440_v11 }
 0x1b9   :  { %2844 = vst.msk [vmem:[#allocation2 + $0x198] sm:$0xff] %vm22_vm0, %v2828_v54  ;;  %v2779_v20 = vadd.f32 %v4900_v58, %v4836_v41  ;;  %v4838_v6 = vpop.f32.mrf.mxu0  ;;  %v6447_v41 = vadd.f32 %v2995_v48, %v6311_v34  ;;  %v6449_v54 = vld [vmem:[#allocation2 + $0xf0] sm:$0xff]  ;;  %v6453_v40 = vadd.f32 %v6384_v25, %v6272_v13  ;;  %v6456_v7 = vadd.f32 %v2996_v32, %v6315_v35  ;;  %v6462_v34 = vld [vmem:[#allocation2 + $0x100] sm:$0xff]  ;;  %v2170_v48 = vld [vmem:[#allocation2 + $0x1a8] sm:$0xff] }
 0x1ba   :  { %v4839_v46 = vadd.f32 %v4838_v6, %v4837_v18  ;;  %v4902_v23 = vpop.f32.mrf.mxu1  ;;  %7357 = vst [vmem:[#allocation27_spill] sm:$0xff] %v6449_v54  ;;  %v2999_v18 = vmul.f32 %v6426_v5, %v6426_v5  ;;  %v3000_v6 = vmul.f32 %v6428_v31, %v6428_v31  ;;  %7358 = vst [vmem:[#allocation28_spill] sm:$0xff] %v6462_v34  ;;  %v2171_v5 = vld [vmem:[#allocation2 + $0x1b0] sm:$0xff] }
 0x1bb   :  { %v2829_v58 = vadd.f32 %v2779_v20, %v2169_v45  ;;  %v4903_v57 = vadd.f32 %v4902_v23, %v4901_v30  ;;  %v4840_v27 = vpop.f32.mrf.mxu0  ;;  %v6466_v23 = vadd.f32 %v6395_v12, %v6274_v14  ;;  %v6469_v30 = vadd.f32 %v2997_v19, %v6319_v36  ;;  %v6473_v45 = vld [vmem:[#allocation2 + $0x108] sm:$0xff]  ;;  %v6485_v19 = vld [vmem:[#allocation2 + $0x110] sm:$0xff] }
 0x1bc   :  { %v4904_v9 = vpop.f32.mrf.mxu1  ;;  %v3001_v35 = vmul.f32 %v6440_v11, %v6440_v11  ;;  %7359 = vst [vmem:[#allocation29_spill] sm:$0xff] %v6473_v45  ;;  %v6478_v25 = vadd.f32 %v6403_v53, %v6289_v21  ;;  %v6481_v13 = vadd.f32 %v2998_v26, %v6329_v42  ;;  %v3002_v36 = vmul.f32 %v6449_v54, %v6449_v54 }
 0x1bd   :  { %2845 = vst.msk [vmem:[#allocation2 + $0x1a0] sm:$0xff] %vm22_vm0, %v2829_v58  ;;  %v2782_v32 = vadd.f32 %v4903_v57, %v4839_v46  ;;  %v4841_v20 = vpop.f32.mrf.mxu0  ;;  %7360 = vst [vmem:[#allocation30_spill] sm:$0xff] %v6485_v19  ;;  %v3020_v46 = vmul.f32 %v6462_v34, %v6462_v34  ;;  %v6493_v57 = vld [vmem:[#allocation2 + $0x118] sm:$0xff]  ;;  %v6496_v26 = vadd.f32 %v2999_v18, %v6333_v43  ;;  %v6518_v18 = vld [vmem:[#allocation2 + $0x128] sm:$0xff] }
 0x1be   :  { %v4842_v12 = vadd.f32 %v4841_v20, %v4840_v27  ;;  %v4905_v14 = vpop.f32.mrf.mxu1  ;;  %7361 = vst [vmem:[#allocation31_spill] sm:$0xff] %v6493_v57  ;;  %v6500_v21 = vadd.f32 %v6428_v31, %v6303_v28  ;;  %v6503_v27 = vadd.f32 %v3000_v6, %v6344_v49  ;;  %v3021_v20 = vmul.f32 %v6473_v45, %v6473_v45 }
 0x1bf   :  { %v2830_v58 = vadd.f32 %v2782_v32, %v2170_v48  ;;  %v4906_v53 = vadd.f32 %v4905_v14, %v4904_v9  ;;  %v4843_v42 = vpop.f32.mrf.mxu0  ;;  %v6509_v48 = vadd.f32 %v6440_v11, %v6305_v29  ;;  %v6512_v14 = vadd.f32 %v3001_v35, %v6348_v50  ;;  %v6516_v9 = vld [vmem:[#allocation2 + $0x120] sm:$0xff]  ;;  %7363 = vst [vmem:[#allocation33_spill] sm:$0xff] %v6518_v18  ;;  %v6530_v35 = vld [vmem:[#allocation2 + $0x130] sm:$0xff] }
 0x1c0   :  { %v4907_v22 = vpop.f32.mrf.mxu1  ;;  %v3022_v43 = vmul.f32 %v6485_v19, %v6485_v19  ;;  %7362 = vst [vmem:[#allocation32_spill] sm:$0xff] %v6516_v9  ;;  %v6523_v32 = vadd.f32 %v6449_v54, %v6321_v37  ;;  %v6526_v11 = vadd.f32 %v3002_v36, %v6356_v55  ;;  %v3023_v50 = vmul.f32 %v6493_v57, %v6493_v57 }
 0x1c1   :  { %2846 = vst.msk [vmem:[#allocation2 + $0x1a8] sm:$0xff] %vm22_vm0, %v2830_v58  ;;  %v2787_v49 = vadd.f32 %v4906_v53, %v4842_v12  ;;  %v4844_v6 = vpop.f32.mrf.mxu0  ;;  %7364 = vst [vmem:[#allocation34_spill] sm:$0xff] %v6530_v35  ;;  %v6534_v28 = vadd.f32 %v6366_v0, %v6462_v34  ;;  %v6537_v12 = vadd.f32 %v3020_v46, %v6368_v4  ;;  %v6539_v53 = vld [vmem:[#allocation2 + $0x138] sm:$0xff] }
 0x1c2   :  { %v4845_v31 = vadd.f32 %v4844_v6, %v4843_v42  ;;  %v4908_v29 = vpop.f32.mrf.mxu1  ;;  %7365 = vst [vmem:[#allocation35_spill] sm:$0xff] %v6539_v53  ;;  %v2941_v36 = vadd.f32 %v6378_v17, %v6473_v45  ;;  %v6544_v37 = vadd.f32 %v3021_v20, %v6380_v24  ;;  %v3024_v42 = vmul.f32 %v6516_v9, %v6516_v9  ;;  %v6550_v6 = vld [vmem:[#allocation2 + $0x140] sm:$0xff]  ;;  %v2172_v4 = vld [vmem:[#allocation2 + $0x1b8] sm:$0xff]  ;;  %v6559_v24 = vld [vmem:[#allocation2 + $0x148] sm:$0xff] }
 0x1c3   :  { %v2831_v58 = vadd.f32 %v2787_v49, %v2171_v5  ;;  %v4909_v54 = vadd.f32 %v4908_v29, %v4907_v22  ;;  %v4846_v55 = vpop.f32.mrf.mxu0  ;;  %v3025_v0 = vmul.f32 %v6518_v18, %v6518_v18  ;;  %7366 = vst [vmem:[#allocation36_spill] sm:$0xff] %v6550_v6  ;;  %v2942_v22 = vadd.f32 %v6389_v33, %v6485_v19 }
 0x1c4   :  { %v4910_v46 = vpop.f32.mrf.mxu1  ;;  %v6555_v29 = vadd.f32 %v3022_v43, %v6391_v39  ;;  %v3026_v17 = vmul.f32 %v6530_v35, %v6530_v35  ;;  %7367 = vst [vmem:[#allocation37_spill] sm:$0xff] %v6559_v24  ;;  %v6564_v49 = vadd.f32 %v6399_v47, %v6493_v57  ;;  %v6567_v45 = vadd.f32 %v3023_v50, %v6406_v51 }
 0x1c5   :  { %2847 = vst.msk [vmem:[#allocation2 + $0x1b0] sm:$0xff] %vm22_vm0, %v2831_v58  ;;  %v2790_v5 = vadd.f32 %v4909_v54, %v4845_v31  ;;  %v4847_v20 = vpop.f32.mrf.mxu0  ;;  %v3027_v33 = vmul.f32 %v6539_v53, %v6539_v53  ;;  %v6573_v19 = vadd.f32 %v6410_v59, %v6516_v9  ;;  %v3028_v31 = vmul.f32 %v6550_v6, %v6550_v6  ;;  %v2909_v54 = vld [vmem:[#allocation2 + $0x188] sm:$0xff] }
 0x1c6   :  { %v4848_v39 = vadd.f32 %v4847_v20, %v4846_v55  ;;  %v4911_v43 = vpop.f32.mrf.mxu1  ;;  %v6578_v57 = vadd.f32 %v3024_v42, %v6413_v63  ;;  %v6582_v51 = vadd.f32 %v6419_v10, %v6518_v18  ;;  %v6585_v50 = vadd.f32 %v3025_v0, %v6422_v16  ;;  %v6589_v55 = vld [vmem:[#allocation2 + $0x150] sm:$0xff]  ;;  %v2173_v20 = vld [vmem:[#allocation2 + $0x1c0] sm:$0xff]  ;;  %v6602_v16 = vld [vmem:[#allocation2 + $0x158] sm:$0xff] }
 0x1c7   :  { %v2832_v58 = vadd.f32 %v2790_v5, %v2172_v4  ;;  %v4912_v34 = vadd.f32 %v4911_v43, %v4910_v46  ;;  %v4849_v47 = vpop.f32.mrf.mxu0  ;;  %v3029_v59 = vmul.f32 %v6559_v24, %v6559_v24  ;;  %7368 = vst [vmem:[#allocation38_spill] sm:$0xff] %v6589_v55  ;;  %v6593_v4 = vadd.f32 %v6433_v44, %v6530_v35  ;;  %v6604_v42 = vld [vmem:[#allocation2 + $0x180] sm:$0xff] }
 0x1c8   :  { %v4913_v9 = vpop.f32.mrf.mxu1  ;;  %v6596_v63 = vadd.f32 %v3026_v17, %v6436_v52  ;;  %v6600_v10 = vadd.f32 %v6444_v15, %v6539_v53  ;;  %v6608_v5 = vadd.f32 %v3027_v33, %v6447_v41  ;;  %v6612_v44 = vadd.f32 %v6453_v40, %v6550_v6  ;;  %v6614_v17 = vld [vmem:[#allocation2 + $0x190] sm:$0xff] }
 0x1c9   :  { %2848 = vst.msk [vmem:[#allocation2 + $0x1b8] sm:$0xff] %vm22_vm0, %v2832_v58  ;;  %v2795_v0 = vadd.f32 %v4912_v34, %v4848_v39  ;;  %v4850_v46 = vpop.f32.mrf.mxu0  ;;  %v3053_v52 = vmul.f32 %v2909_v54, %v2909_v54  ;;  %v6617_v53 = vadd.f32 %v3028_v31, %v6456_v7  ;;  %v3030_v58 = vmul.f32 %v6589_v55, %v6589_v55  ;;  %v6632_v31 = vld [vmem:[#allocation2 + $0x198] sm:$0xff] }
 0x1ca   :  { %v4851_v15 = vadd.f32 %v4850_v46, %v4849_v47  ;;  %v4914_v43 = vpop.f32.mrf.mxu1  ;;  %v6623_v41 = vadd.f32 %v6466_v23, %v6559_v24  ;;  %v6626_v40 = vadd.f32 %v3029_v59, %v6469_v30  ;;  %v3031_v33 = vmul.f32 %v6602_v16, %v6602_v16  ;;  %v2174_v47 = vld [vmem:[#allocation2 + $0x1c8] sm:$0xff]  ;;  %v6640_v30 = vld [vmem:[#allocation2 + $0x1a0] sm:$0xff] }
 0x1cb   :  { %v2833_v34 = vadd.f32 %v2795_v0, %v2173_v20  ;;  %v4915_v39 = vadd.f32 %v4914_v43, %v4913_v9  ;;  %v4852_v35 = vpop.f32.mrf.mxu0  ;;  %v3052_v7 = vmul.f32 %v6604_v42, %v6604_v42  ;;  %v6636_v9 = vadd.f32 %v6478_v25, %v6589_v55 }
 0x1cc   :  { %v4916_v46 = vpop.f32.mrf.mxu1  ;;  %v2957_v20 = vadd.f32 %v2941_v36, %v2909_v54  ;;  %v3054_v23 = vmul.f32 %v6614_v17, %v6614_v17  ;;  %v2956_v43 = vadd.f32 %v6534_v28, %v6604_v42  ;;  %v3069_v24 = vadd.f32 %v3053_v52, %v6544_v37 }
 0x1cd   :  { %2849 = vst.msk [vmem:[#allocation2 + $0x1c0] sm:$0xff] %vm22_vm0, %v2833_v34  ;;  %v2798_v59 = vadd.f32 %v4915_v39, %v4851_v15  ;;  %v4853_v0 = vpop.f32.mrf.mxu0  ;;  %v2958_v6 = vadd.f32 %v2942_v22, %v6614_v17  ;;  %v6648_v36 = vadd.f32 %v3030_v58, %v6481_v13  ;;  %v3055_v54 = vmul.f32 %v6632_v31, %v6632_v31  ;;  %v2175_v13 = vld [vmem:[#allocation2 + $0x1d0] sm:$0xff] }
 0x1ce   :  { %v4854_v18 = vadd.f32 %v4853_v0, %v4852_v35  ;;  %v4917_v25 = vpop.f32.mrf.mxu1  ;;  %v6654_v15 = vadd.f32 %v6489_v8, %v6602_v16  ;;  %v6657_v28 = vadd.f32 %v3031_v33, %v6496_v26  ;;  %v3068_v37 = vadd.f32 %v3052_v7, %v6537_v12 }
 0x1cf   :  { %v2834_v55 = vadd.f32 %v2798_v59, %v2174_v47  ;;  %v4918_v3 = vadd.f32 %v4917_v25, %v4916_v46  ;;  %v4855_v34 = vpop.f32.mrf.mxu0  ;;  %v3056_v35 = vmul.f32 %v6640_v30, %v6640_v30  ;;  %v3085_v52 = vsel %vm22_vm0, %v2957_v20, 0.0  ;;  %v6666_v47 = vld [vmem:[#allocation2 + $0x1a8] sm:$0xff]  ;;  %v6672_v20 = vld [vmem:[#allocation2 + $0x160] sm:$0xff] }
 0x1d0   :  { %v4919_v22 = vpop.f32.mrf.mxu1  ;;  %v3070_v58 = vadd.f32 %v3054_v23, %v6555_v29  ;;  %v2959_v39 = vadd.f32 %v6564_v49, %v6632_v31  ;;  %v3084_v12 = vsel %vm22_vm0, %v2956_v43, 0.0  ;;  %v3123_v33 = vsel %vm22_vm0, %v3069_v24, 0.0  ;;  %v2176_v24 = vld [vmem:[#allocation2 + $0x1d8] sm:$0xff] }
 0x1d1   :  { %2850 = vst.msk [vmem:[#allocation2 + $0x1c8] sm:$0xff] %vm22_vm0, %v2834_v55  ;;  %v2803_v8 = vadd.f32 %v4918_v3, %v4854_v18  ;;  %v4856_v26 = vpop.f32.mrf.mxu0  ;;  %v3087_v7 = vsel %vm22_vm0, %v2958_v6, 0.0  ;;  %v3071_v29 = vadd.f32 %v3055_v54, %v6567_v45  ;;  %v2960_v49 = vadd.f32 %v6573_v19, %v6640_v30 }
 0x1d2   :  { %v4857_v46 = vadd.f32 %v4856_v26, %v4855_v34  ;;  %v4920_v59 = vpop.f32.mrf.mxu1  ;;  %v3122_v3 = vsel %vm22_vm0, %v3068_v37, 0.0  ;;  %v3086_v18 = vadd.f32 %v3085_v52, %v3084_v12  ;;  %v3072_v43 = vadd.f32 %v3056_v35, %v6578_v57  ;;  %v6692_v26 = vld [vmem:[#allocation2 + $0x1b8] sm:$0xff] }
 0x1d3   :  { %v2835_v23 = vadd.f32 %v2803_v8, %v2175_v13  ;;  %v4921_v0 = vadd.f32 %v4920_v59, %v4919_v22  ;;  %v4858_v55 = vpop.f32.mrf.mxu0  ;;  %v3057_v6 = vmul.f32 %v6666_v47, %v6666_v47  ;;  %v3125_v34 = vsel %vm22_vm0, %v3070_v58, 0.0  ;;  %v6688_v22 = vld [vmem:[#allocation2 + $0x1b0] sm:$0xff] }
 0x1d4   :  { %v4922_v25 = vpop.f32.mrf.mxu1  ;;  %v3089_v45 = vsel %vm22_vm0, %v2959_v39, 0.0  ;;  %v2961_v19 = vadd.f32 %v6582_v51, %v6666_v47  ;;  %v3032_v37 = vmul.f32 %v6672_v20, %v6672_v20  ;;  %v3124_v57 = vadd.f32 %v3123_v33, %v3122_v3 }
 0x1d5   :  { %2851 = vst.msk [vmem:[#allocation2 + $0x1d0] sm:$0xff] %vm22_vm0, %v2835_v23  ;;  %v2806_v54 = vadd.f32 %v4921_v0, %v4857_v46  ;;  %v4859_v13 = vpop.f32.mrf.mxu0  ;;  %v3088_v35 = vadd.f32 %v3087_v7, %v3086_v18  ;;  %v3127_v58 = vsel %vm22_vm0, %v3071_v29, 0.0  ;;  %v3091_v39 = vsel %vm22_vm0, %v2960_v49, 0.0  ;;  %v2177_v7 = vld [vmem:[#allocation2 + $0x1e0] sm:$0xff] }
 0x1d6   :  { %v4860_v52 = vadd.f32 %v4859_v13, %v4858_v55  ;;  %v4923_v8 = vpop.f32.mrf.mxu1  ;;  %v3126_v46 = vadd.f32 %v3125_v34, %v3124_v57  ;;  %v3129_v0 = vsel %vm22_vm0, %v3072_v43, 0.0  ;;  %v3073_v33 = vadd.f32 %v3057_v6, %v6585_v50  ;;  %v6701_v18 = vld [vmem:[#allocation2 + $0x1c0] sm:$0xff] }
 0x1d7   :  { %v2836_v51 = vadd.f32 %v2806_v54, %v2176_v24  ;;  %v4924_v12 = vadd.f32 %v4923_v8, %v4922_v25  ;;  %v4861_v59 = vpop.f32.mrf.mxu0  ;;  %v3090_v23 = vadd.f32 %v3089_v45, %v3088_v35  ;;  %v3093_v55 = vsel %vm22_vm0, %v2961_v19, 0.0 }
 0x1d8   :  { %v4925_v3 = vpop.f32.mrf.mxu1  ;;  %v2962_v29 = vadd.f32 %v6593_v4, %v6688_v22  ;;  %v3058_v49 = vmul.f32 %v6688_v22, %v6688_v22  ;;  %v3128_v34 = vadd.f32 %v3127_v58, %v3126_v46  ;;  %v3059_v50 = vmul.f32 %v6692_v26, %v6692_v26  ;;  %v6713_v54 = vld [vmem:[#allocation2 + $0x1c8] sm:$0xff] }
 0x1d9   :  { %2852 = vst.msk [vmem:[#allocation2 + $0x1d8] sm:$0xff] %vm22_vm0, %v2836_v51  ;;  %v2811_v24 = vadd.f32 %v4924_v12, %v4860_v52  ;;  %v4862_v25 = vpop.f32.mrf.mxu0  ;;  %v3092_v43 = vadd.f32 %v3091_v39, %v3090_v23  ;;  %v6708_v19 = vadd.f32 %v6500_v21, %v6672_v20  ;;  %v6711_v4 = vadd.f32 %v3032_v37, %v6503_v27  ;;  %v6715_v52 = vld [vmem:[#allocation2 + $0x168] sm:$0xff] }
 0x1da   :  { %v4863_v6 = vadd.f32 %v4862_v25, %v4861_v59  ;;  %v4926_v45 = vpop.f32.mrf.mxu1  ;;  %v3130_v8 = vadd.f32 %v3129_v0, %v3128_v34  ;;  %v3131_v39 = vsel %vm22_vm0, %v3073_v33, 0.0  ;;  %v3060_v51 = vmul.f32 %v6701_v18, %v6701_v18  ;;  %v2178_v12 = vld [vmem:[#allocation2 + $0x1e8] sm:$0xff] }
 0x1db   :  { %v2837_v13 = vadd.f32 %v2811_v24, %v2177_v7  ;;  %v4927_v57 = vadd.f32 %v4926_v45, %v4925_v3  ;;  %v4864_v35 = vpop.f32.mrf.mxu0  ;;  %v3094_v58 = vadd.f32 %v3093_v55, %v3092_v43  ;;  %v3074_v59 = vadd.f32 %v3058_v49, %v6596_v63 }
 0x1dc   :  { %v4928_v21 = vpop.f32.mrf.mxu1  ;;  %v3095_v27 = vsel %vm22_vm0, %v2962_v29, 0.0  ;;  %v2963_v37 = vadd.f32 %v6600_v10, %v6692_v26  ;;  %v6724_v46 = vld [vmem:[#allocation2 + $0x1d0] sm:$0xff]  ;;  %v3075_v33 = vadd.f32 %v3059_v50, %v6608_v5  ;;  %v2964_v7 = vadd.f32 %v6612_v44, %v6701_v18 }
 0x1dd   :  { %2853 = vst.msk [vmem:[#allocation2 + $0x1e0] sm:$0xff] %vm22_vm0, %v2837_v13  ;;  %v2814_v23 = vadd.f32 %v4927_v57, %v4863_v6  ;;  %v4865_v0 = vpop.f32.mrf.mxu0  ;;  %v3061_v3 = vmul.f32 %v6713_v54, %v6713_v54  ;;  %v2953_v29 = vadd.f32 %v6509_v48, %v6715_v52  ;;  %v3033_v10 = vmul.f32 %v6715_v52, %v6715_v52  ;;  %v2179_v6 = vld [vmem:[#allocation2 + $0x1f0] sm:$0xff] }
 0x1de   :  { %v4866_v63 = vadd.f32 %v4865_v0, %v4864_v35  ;;  %v4929_v55 = vpop.f32.mrf.mxu1  ;;  %v3132_v34 = vadd.f32 %v3131_v39, %v3130_v8  ;;  %v3096_v43 = vadd.f32 %v3095_v27, %v3094_v58  ;;  %v3076_v5 = vadd.f32 %v3060_v51, %v6617_v53 }
 0x1df   :  { %v2838_v49 = vadd.f32 %v2814_v23, %v2178_v12  ;;  %v4930_v24 = vadd.f32 %v4929_v55, %v4928_v21  ;;  %v4867_v25 = vpop.f32.mrf.mxu0  ;;  %v3062_v44 = vmul.f32 %v6724_v46, %v6724_v46  ;;  %v3133_v13 = vsel %vm22_vm0, %v3074_v59, 0.0 }
 0x1e0   :  { %v6739_v50 = vld [vmem:[#allocation2 + $0x1d8] sm:$0xff]  ;;  %v4931_v45 = vpop.f32.mrf.mxu1  ;;  %v3097_v48 = vsel %vm22_vm0, %v2963_v37, 0.0  ;;  %v2965_v57 = vadd.f32 %v6623_v41, %v6713_v54  ;;  %v3135_v53 = vsel %vm22_vm0, %v3075_v33, 0.0  ;;  %v3099_v58 = vsel %vm22_vm0, %v2964_v7, 0.0 }
 0x1e1   :  { %2854 = vst.msk [vmem:[#allocation2 + $0x1e8] sm:$0xff] %vm22_vm0, %v2838_v49  ;;  %v2819_v35 = vadd.f32 %v4930_v24, %v4866_v63  ;;  %v4868_v8 = vpop.f32.mrf.mxu0  ;;  %v3077_v39 = vadd.f32 %v3061_v3, %v6626_v40  ;;  %v2966_v21 = vadd.f32 %v6636_v9, %v6724_v46  ;;  %v3063_v59 = vmul.f32 %v6739_v50, %v6739_v50  ;;  %v2180_v7 = vld [vmem:[#allocation2 + $0x1f8] sm:$0xff]  ;;  %v6757_v40 = vld [vmem:[#allocation2 + $0x170] sm:$0xff] }
 0x1e2   :  { %v4869_v51 = vadd.f32 %v4868_v8, %v4867_v25  ;;  %v4932_v12 = vpop.f32.mrf.mxu1  ;;  %v3134_v37 = vadd.f32 %v3133_v13, %v3132_v34  ;;  %v3098_v23 = vadd.f32 %v3097_v48, %v3096_v43  ;;  %v3137_v0 = vsel %vm22_vm0, %v3076_v5, 0.0  ;;  %v6767_v43 = vld [vmem:[#allocation2 + $0xf8] sm:$0xff] }
 0x1e3   :  { %v2839_v27 = vadd.f32 %v2819_v35, %v2179_v6  ;;  %v4933_v41 = vadd.f32 %v4932_v12, %v4931_v45  ;;  %v3078_v33 = vadd.f32 %v3062_v44, %v6648_v36  ;;  %v3101_v3 = vsel %vm22_vm0, %v2965_v57, 0.0  ;;  %v6778_v57 = vld [vmem:[#allocation2 + $0x178] sm:$0xff] }
 0x1e4   :  { %v6755_v63 = vld [vmem:[#allocation2 + $0x1e0] sm:$0xff]  ;;  %v2967_v9 = vadd.f32 %v6654_v15, %v6739_v50  ;;  %v3049_v24 = vadd.f32 %v3033_v10, %v6512_v14  ;;  %v3136_v25 = vadd.f32 %v3135_v53, %v3134_v37  ;;  %v3100_v36 = vadd.f32 %v3099_v58, %v3098_v23 }
 0x1e5   :  { %v3064_v55 = vmul.f32 %v6755_v63, %v6755_v63  ;;  %2855 = vst.msk [vmem:[#allocation2 + $0x1f0] sm:$0xff] %vm22_vm0, %v2839_v27  ;;  %v2822_v49 = vadd.f32 %v4933_v41, %v4869_v51  ;;  %v3139_v34 = vsel %vm22_vm0, %v3077_v39, 0.0  ;;  %v3103_v5 = vsel %vm22_vm0, %v2966_v21, 0.0 }
 0x1e6   :  { %v3079_v44 = vadd.f32 %v3063_v59, %v6657_v28  ;;  %v2968_v15 = vadd.f32 %v6708_v19, %v6755_v63  ;;  %v3034_v45 = vmul.f32 %v6757_v40, %v6757_v40  ;;  %v3138_v13 = vadd.f32 %v3137_v0, %v3136_v25 }
 0x1e7   :  { %v2840_v6 = vadd.f32 %v2822_v49, %v2180_v7  ;;  %v3102_v48 = vadd.f32 %v3101_v3, %v3100_v36  ;;  %v3141_v14 = vsel %vm22_vm0, %v3078_v33, 0.0  ;;  %v3105_v35 = vsel %vm22_vm0, %v2967_v9, 0.0 }
 0x1e8   :  { %v6776_v10 = vld [vmem:[#allocation2 + $0x1e8] sm:$0xff]  ;;  %v3080_v8 = vadd.f32 %v3064_v55, %v6711_v4  ;;  %v2939_v53 = vadd.f32 %v6767_v43, %v6323_v38  ;;  %v3003_v58 = vmul.f32 %v6767_v43, %v6767_v43  ;;  %v3140_v39 = vadd.f32 %v3139_v34, %v3138_v13 }
 0x1e9   :  { %v2969_v28 = vadd.f32 %v2953_v29, %v6776_v10  ;;  %v3065_v19 = vmul.f32 %v6776_v10, %v6776_v10  ;;  %2856 = vst.msk [vmem:[#allocation2 + $0x1f8] sm:$0xff] %vm22_vm0, %v2840_v6  ;;  %v3104_v51 = vadd.f32 %v3103_v5, %v3102_v48  ;;  %v2954_v12 = vadd.f32 %v6523_v32, %v6757_v40 }
 0x1ea   :  { %v3143_v4 = vsel %vm22_vm0, %v3079_v44, 0.0  ;;  %v3107_v29 = vsel %vm22_vm0, %v2968_v15, 0.0  ;;  %v3050_v59 = vadd.f32 %v3034_v45, %v6526_v11  ;;  %v3035_v27 = vmul.f32 %v6778_v57, %v6778_v57 }
 0x1eb   :  { %v3081_v21 = vadd.f32 %v3065_v19, %v3049_v24  ;;  %v3142_v41 = vadd.f32 %v3141_v14, %v3140_v39  ;;  %v3106_v37 = vadd.f32 %v3105_v35, %v3104_v51  ;;  %v3145_v0 = vsel %vm22_vm0, %v3080_v8, 0.0 }
 0x1ec   :  { %v6797_v23 = vld [vmem:[#allocation2 + $0x1f0] sm:$0xff]  ;;  %v3109_v33 = vsel %vm22_vm0, %v2969_v28, 0.0  ;;  %v3019_v3 = vadd.f32 %v3003_v58, %v6360_v56  ;;  %v2955_v55 = vadd.f32 %v2939_v53, %v6778_v57 }
 0x1ed   :  { %v2970_v32 = vadd.f32 %v2954_v12, %v6797_v23  ;;  %v3066_v7 = vmul.f32 %v6797_v23, %v6797_v23  ;;  %v3144_v9 = vadd.f32 %v3143_v4, %v3142_v41  ;;  %v3108_v11 = vadd.f32 %v3107_v29, %v3106_v37 }
 0x1ee   :  { %v3147_v49 = vsel %vm22_vm0, %v3081_v21, 0.0  ;;  %v3051_v44 = vadd.f32 %v3035_v27, %v3019_v3 }
 0x1ef   :  { %v3082_v24 = vadd.f32 %v3066_v7, %v3050_v59  ;;  %v3111_v25 = vsel %vm22_vm0, %v2970_v32, 0.0  ;;  %v3146_v36 = vadd.f32 %v3145_v0, %v3144_v9  ;;  %v3110_v34 = vadd.f32 %v3109_v33, %v3108_v11 }
 0x1f0   :  { %v6808_v5 = vld [vmem:[#allocation2 + $0x1f8] sm:$0xff]  ;;  %v3171_v11 = vlaneseq }
 0x1f1   :  { %7369 = vst [vmem:[#allocation39_spill] sm:$0xff] %v6808_v5  ;;  %v3149_v15 = vsel %vm22_vm0, %v3082_v24, 0.0  ;;  %v2971_v6 = vadd.f32 %v2955_v55, %v6808_v5  ;;  %v3067_v56 = vmul.f32 %v6808_v5, %v6808_v5  ;;  %v3148_v45 = vadd.f32 %v3147_v49, %v3146_v36  ;;  %v3163_v49 = vld [vmem:[%s7293_s2] sm:$0x1] }
 0x1f2   :  { %v3112_v13 = vadd.f32 %v3111_v25, %v3110_v34  ;;  %v3172_v55 = vshrl.u32 %v3171_v11, 7  ;;  %v3167_v34 = vld [vmem:[%s7294_s3] sm:$0x1] }
 0x1f3   :  { %v3083_v48 = vadd.f32 %v3067_v56, %v3051_v44  ;;  %v3113_v14 = vsel %vm22_vm0, %v2971_v6, 0.0  ;;  %v3150_v35 = vadd.f32 %v3149_v15, %v3148_v45 }
 0x1f4   :  { %v3114_v8 = vadd.f32 %v3113_v14, %v3112_v13  ;;  %v3173_v24 = vsub.s32 0, %v3172_v55  ;;  %v7383_v55 = vld [vmem:[#allocation16_spill] sm:$0xff] }
 0x1f5   :  { %v3151_v28 = vsel %vm22_vm0, %v3083_v48, 0.0 }
 0x1f6   :  { %v3115_v19 = vrot.slane %v3114_v8, 4  ;;  %v3152_v53 = vadd.f32 %v3151_v28, %v3150_v35  ;;  %v7370_v35 = vld [vmem:[#allocation3_spill] sm:$0xff]  ;;  %v7371_v28 = vld [vmem:[#allocation4_spill] sm:$0xff] }
 0x1f8   :  { %v3116_v58 = vadd.f32 %v3115_v19, %v3114_v8  ;;  %v3153_v39 = vrot.slane %v3152_v53, 4 }
 0x1fa   :  { %v3117_v51 = vrot.slane %v3116_v58, 2  ;;  %v3154_v12 = vadd.f32 %v3153_v39, %v3152_v53  ;;  %v7372_v53 = vld [vmem:[#allocation5_spill] sm:$0xff]  ;;  %v7374_v39 = vld [vmem:[#allocation7_spill] sm:$0xff] }
 0x1fc   :  { %v3118_v4 = vadd.f32 %v3117_v51, %v3116_v58  ;;  %v3155_v29 = vrot.slane %v3154_v12, 2  ;;  %v7373_v58 = vld [vmem:[#allocation6_spill] sm:$0xff]  ;;  %v7375_v51 = vld [vmem:[#allocation9_spill] sm:$0xff] }
 0x1fe   :  { %v3119_v21 = vrot.slane %v3118_v4, 1  ;;  %v3156_v59 = vadd.f32 %v3155_v29, %v3154_v12  ;;  %v7376_v12 = vld [vmem:[#allocation10_spill] sm:$0xff] }
 0x200   :  { %v3120_v27 = vadd.f32 %v3119_v21, %v3118_v4  ;;  %v3157_v41 = vrot.slane %v3156_v59, 1  ;;  %v7377_v4 = vld [vmem:[#allocation12_spill] sm:$0xff]  ;;  %v7378_v21 = vld [vmem:[#allocation13_spill] sm:$0xff] }
 0x202   :  { %v3121_v37 = vmul.f32 0.001953125, %v3120_v27  ;;  %v3158_v0 = vadd.f32 %v3157_v41, %v3156_v59  ;;  %v7379_v27 = vld [vmem:[#allocation15_spill] sm:$0xff] }
 0x204   :  { %v3159_v33 = vmul.f32 0.001953125, %v3158_v0  ;;  %v3160_v32 = vmul.f32 %v3121_v37, %v3121_v37 }
 0x206   :  { %v3161_v7 = vsub.f32 %v3159_v33, %v3160_v32  ;;  %v7380_v33 = vld [vmem:[#allocation8_spill] sm:$0xff] }
 0x208   :  { %v3162_v3 = vmax.f32 %v3161_v7, 0.0  ;;  %v7381_v7 = vld [vmem:[#allocation11_spill] sm:$0xff] }
 0x20a   :  { %v3164_v9 = vadd.f32 1e-05, %v3162_v3 }
 0x20c   :  { %5255 = vrsqrt.f32 %v3164_v9  ;;  %v7382_v9 = vld [vmem:[#allocation14_spill] sm:$0xff] }
 0x219   :  { %v5256_v25 = vpop.eup %5255 }
 0x21a   :  { %v3166_v36 = vmul.f32 %v5256_v25, %v3163_v49  ;;  %v7385_v25 = vld [vmem:[#allocation18_spill] sm:$0xff] }
 0x21c   :  { %v3168_v44 = vmul.f32 %v3166_v36, %v3121_v37  ;;  %v6822_v15 = vrot.slane %v3166_v36, %v3173_v24 }
 0x21e   :  { %v3169_v6 = vsub.f32 %v3167_v34, %v3168_v44  ;;  %v3176_v56 = vmul.f32 %v6822_v15, %v6252_v60  ;;  %v3177_v45 = vmul.f32 %v6822_v15, %v6254_v61  ;;  %v3178_v13 = vmul.f32 %v6822_v15, %v6256_v62 }
 0x21f   :  { %v3179_v48 = vmul.f32 %v6822_v15, %v6258_v1  ;;  %v3180_v14 = vmul.f32 %v6822_v15, %v6260_v2  ;;  %v3181_v8 = vmul.f32 %v6822_v15, %v7370_v35  ;;  %v3182_v19 = vmul.f32 %v6822_v15, %v7371_v28 }
 0x220   :  { %v3183_v60 = vmul.f32 %v6822_v15, %v7372_v53  ;;  %v3184_v61 = vmul.f32 %v6822_v15, %v7373_v58  ;;  %v3185_v62 = vmul.f32 %v6822_v15, %v7374_v39  ;;  %v3186_v1 = vmul.f32 %v6822_v15, %v7375_v51 }
 0x221   :  { %v3187_v2 = vmul.f32 %v6822_v15, %v7376_v12  ;;  %v3188_v29 = vmul.f32 %v6822_v15, %v7377_v4  ;;  %v3189_v59 = vmul.f32 %v6822_v15, %v7378_v21  ;;  %v3190_v41 = vmul.f32 %v6822_v15, %v7379_v27 }
 0x222   :  { %v3191_v37 = vmul.f32 %v6822_v15, %v6323_v38  ;;  %v6856_v0 = vrot.slane %v3169_v6, %v3173_v24  ;;  %v6860_v32 = vmul.f32 %v6822_v15, %v7380_v33  ;;  %v6864_v3 = vmul.f32 %v6822_v15, %v7381_v7  ;;  %v7384_v38 = vld [vmem:[#allocation17_spill] sm:$0xff] }
 0x223   :  { %v6868_v11 = vmul.f32 %v6822_v15, %v7382_v9  ;;  %v6872_v49 = vmul.f32 %v6822_v15, %v7383_v55  ;;  %v6876_v24 = vmul.f32 %v6822_v15, %v7384_v38  ;;  %v6880_v36 = vmul.f32 %v6822_v15, %v7385_v25 }
 0x224   :  { %v3198_v34 = vadd.f32 %v6856_v0, %v3176_v56  ;;  %v3199_v44 = vadd.f32 %v6856_v0, %v3177_v45  ;;  %v3200_v6 = vadd.f32 %v6856_v0, %v3178_v13  ;;  %v3201_v35 = vadd.f32 %v6856_v0, %v3179_v48 }
 0x225   :  { %v3202_v28 = vadd.f32 %v6856_v0, %v3180_v14  ;;  %v3203_v53 = vadd.f32 %v6856_v0, %v3181_v8  ;;  %v3204_v58 = vadd.f32 %v6856_v0, %v3182_v19  ;;  %v3205_v39 = vadd.f32 %v6856_v0, %v3183_v60 }
 0x226   :  { %v3206_v51 = vadd.f32 %v6856_v0, %v3184_v61  ;;  %v3207_v12 = vadd.f32 %v6856_v0, %v3185_v62  ;;  %v3208_v56 = vadd.f32 %v6856_v0, %v3186_v1  ;;  %v3209_v45 = vadd.f32 %v6856_v0, %v3187_v2 }
 0x227   :  { %v3210_v13 = vadd.f32 %v6856_v0, %v3188_v29  ;;  %v3211_v48 = vadd.f32 %v6856_v0, %v3189_v59  ;;  %v3212_v14 = vadd.f32 %v6856_v0, %v3190_v41  ;;  %v3213_v8 = vadd.f32 %v6856_v0, %v3191_v37 }
 0x228   :  { %v3214_v4 = vmax.f32 %v3198_v34, 0.0  ;;  %v3215_v19 = vmax.f32 %v3199_v44, 0.0  ;;  %v3216_v21 = vmax.f32 %v3200_v6, 0.0  ;;  %v3217_v60 = vmax.f32 %v3201_v35, 0.0 }
 0x229   :  { %v3218_v27 = vmax.f32 %v3202_v28, 0.0  ;;  %v3219_v61 = vmax.f32 %v3203_v53, 0.0  ;;  %v3220_v33 = vmax.f32 %v3204_v58, 0.0  ;;  %v3221_v62 = vmax.f32 %v3205_v39, 0.0 }
 0x22a   :  { %v3222_v7 = vmax.f32 %v3206_v51, 0.0  ;;  %v3223_v1 = vmax.f32 %v3207_v12, 0.0  ;;  %v3224_v9 = vmax.f32 %v3208_v56, 0.0  ;;  %v3225_v2 = vmax.f32 %v3209_v45, 0.0 }
 0x22b   :  { %v3226_v55 = vmax.f32 %v3210_v13, 0.0  ;;  %v3227_v29 = vmax.f32 %v3211_v48, 0.0  ;;  %v3228_v38 = vmax.f32 %v3212_v14, 0.0  ;;  %v3229_v59 = vmax.f32 %v3213_v8, 0.0  ;;  %v7387_v48 = vld [vmem:[#allocation20_spill] sm:$0xff]  ;;  %v7388_v8 = vld [vmem:[#allocation21_spill] sm:$0xff] }
 0x22c   :  { %v4358_v25 = vpack.c.bf16 %v3214_v4, %v3214_v4  ;;  %v4359_v41 = vpack.c.bf16 %v3215_v19, %v3215_v19  ;;  %v4360_v5 = vpack.c.bf16 %v3216_v21, %v3216_v21  ;;  %v4361_v37 = vpack.c.bf16 %v3217_v60, %v3217_v60  ;;  %v7389_v19 = vld [vmem:[#allocation22_spill] sm:$0xff]  ;;  %v7390_v60 = vld [vmem:[#allocation23_spill] sm:$0xff] }
 0x22d   :  { %v4362_v34 = vpack.c.bf16 %v3218_v27, %v3218_v27  ;;  %v4363_v44 = vpack.c.bf16 %v3219_v61, %v3219_v61  ;;  %v4364_v6 = vpack.c.bf16 %v3220_v33, %v3220_v33  ;;  %v4365_v35 = vpack.c.bf16 %v3221_v62, %v3221_v62  ;;  %v7391_v61 = vld [vmem:[#allocation24_spill] sm:$0xff]  ;;  %v7392_v62 = vld [vmem:[#allocation25_spill] sm:$0xff] }
 0x22e   :  { %v4366_v28 = vpack.c.bf16 %v3222_v7, %v3222_v7  ;;  %v4367_v53 = vpack.c.bf16 %v3223_v1, %v3223_v1  ;;  %v4368_v58 = vpack.c.bf16 %v3224_v9, %v3224_v9  ;;  %v4369_v39 = vpack.c.bf16 %v3225_v2, %v3225_v2  ;;  %3295 = vst.msk [vmem:[%s7295_s4] sm:$0xf] %vm3294_vm1, %v4358_v25  ;;  %v7393_v1 = vld [vmem:[#allocation26_spill] sm:$0xff]  ;;  %v7394_v2 = vld [vmem:[#allocation27_spill] sm:$0xff] }
 0x22f   :  { %3296 = vst.msk [vmem:[%s7295_s4 + $0x4] sm:$0xf] %vm3294_vm1, %v4359_v41  ;;  %3297 = vst.msk [vmem:[%s7295_s4 + $0x8] sm:$0xf] %vm3294_vm1, %v4360_v5  ;;  %v4370_v51 = vpack.c.bf16 %v3226_v55, %v3226_v55  ;;  %v4371_v12 = vpack.c.bf16 %v3227_v29, %v3227_v29  ;;  %v4372_v56 = vpack.c.bf16 %v3228_v38, %v3228_v38  ;;  %v7386_v5 = vld [vmem:[#allocation19_spill] sm:$0xff] }
 0x230   :  { %3298 = vst.msk [vmem:[%s7295_s4 + $0xc] sm:$0xf] %vm3294_vm1, %v4361_v37  ;;  %v4373_v45 = vpack.c.bf16 %v3229_v59, %v3229_v59  ;;  %3299 = vst.msk [vmem:[%s7295_s4 + $0x10] sm:$0xf] %vm3294_vm1, %v4362_v34  ;;  %v3317_v13 = vmul.f32 %v6822_v15, %v7386_v5  ;;  %v3318_v14 = vmul.f32 %v6822_v15, %v7387_v48 }
 0x231   :  { %3300 = vst.msk [vmem:[%s7295_s4 + $0x14] sm:$0xf] %vm3294_vm1, %v4363_v44  ;;  %3301 = vst.msk [vmem:[%s7295_s4 + $0x18] sm:$0xf] %vm3294_vm1, %v4364_v6  ;;  %v3319_v4 = vmul.f32 %v6822_v15, %v7388_v8  ;;  %v3320_v21 = vmul.f32 %v6822_v15, %v7389_v19  ;;  %v3321_v27 = vmul.f32 %v6822_v15, %v7390_v60 }
 0x232   :  { %3302 = vst.msk [vmem:[%s7295_s4 + $0x1c] sm:$0xf] %vm3294_vm1, %v4365_v35  ;;  %3303 = vst.msk [vmem:[%s7295_s4 + $0x20] sm:$0xf] %vm3294_vm1, %v4366_v28  ;;  %v3322_v33 = vmul.f32 %v6822_v15, %v7391_v61  ;;  %v3323_v7 = vmul.f32 %v6822_v15, %v7392_v62  ;;  %v3324_v9 = vmul.f32 %v6822_v15, %v7393_v1 }
 0x233   :  { %3304 = vst.msk [vmem:[%s7295_s4 + $0x24] sm:$0xf] %vm3294_vm1, %v4367_v53  ;;  %3305 = vst.msk [vmem:[%s7295_s4 + $0x28] sm:$0xf] %vm3294_vm1, %v4368_v58  ;;  %v3325_v55 = vmul.f32 %v6822_v15, %v7394_v2  ;;  %v3326_v29 = vmul.f32 %v6822_v15, %v6767_v43  ;;  %v3327_v38 = vadd.f32 %v6860_v32, %v6856_v0 }
 0x234   :  { %3306 = vst.msk [vmem:[%s7295_s4 + $0x2c] sm:$0xf] %vm3294_vm1, %v4369_v39  ;;  %3307 = vst.msk [vmem:[%s7295_s4 + $0x30] sm:$0xf] %vm3294_vm1, %v4370_v51  ;;  %v3328_v59 = vadd.f32 %v6864_v3, %v6856_v0  ;;  %v3329_v25 = vadd.f32 %v6868_v11, %v6856_v0  ;;  %v3330_v41 = vadd.f32 %v6872_v49, %v6856_v0 }
 0x235   :  { %3308 = vst.msk [vmem:[%s7295_s4 + $0x34] sm:$0xf] %vm3294_vm1, %v4371_v12  ;;  %3309 = vst.msk [vmem:[%s7295_s4 + $0x38] sm:$0xf] %vm3294_vm1, %v4372_v56  ;;  %v3331_v37 = vadd.f32 %v6876_v24, %v6856_v0  ;;  %v3332_v34 = vadd.f32 %v6880_v36, %v6856_v0  ;;  %v3333_v43 = vadd.f32 %v3317_v13, %v6856_v0  ;;  %v3343_v28 = vmax.f32 %v3327_v38, 0.0 }
 0x236   :  { %3310 = vst.msk [vmem:[%s7295_s4 + $0x3c] sm:$0xf] %vm3294_vm1, %v4373_v45  ;;  %v3334_v44 = vadd.f32 %v3318_v14, %v6856_v0  ;;  %v3335_v32 = vadd.f32 %v3319_v4, %v6856_v0  ;;  %v3336_v3 = vadd.f32 %v3320_v21, %v6856_v0  ;;  %v3337_v6 = vadd.f32 %v3321_v27, %v6856_v0 }
 0x237   :  { %v3338_v11 = vadd.f32 %v3322_v33, %v6856_v0  ;;  %v3339_v49 = vadd.f32 %v3323_v7, %v6856_v0  ;;  %v3340_v35 = vadd.f32 %v3324_v9, %v6856_v0  ;;  %v3341_v24 = vadd.f32 %v3325_v55, %v6856_v0 }
 0x238   :  { %v3342_v36 = vadd.f32 %v3326_v29, %v6856_v0  ;;  %v3344_v53 = vmax.f32 %v3328_v59, 0.0  ;;  %v3345_v58 = vmax.f32 %v3329_v25, 0.0  ;;  %v3346_v39 = vmax.f32 %v3330_v41, 0.0 }
 0x239   :  { %v3347_v51 = vmax.f32 %v3331_v37, 0.0  ;;  %v3348_v12 = vmax.f32 %v3332_v34, 0.0  ;;  %v3349_v56 = vmax.f32 %v3333_v43, 0.0  ;;  %v3350_v45 = vmax.f32 %v3334_v44, 0.0  ;;  %v7395_v34 = vld [vmem:[#allocation28_spill] sm:$0xff]  ;;  %v7396_v44 = vld [vmem:[#allocation29_spill] sm:$0xff] }
 0x23a   :  { %v3351_v5 = vmax.f32 %v3335_v32, 0.0  ;;  %v3352_v13 = vmax.f32 %v3336_v3, 0.0  ;;  %v3353_v48 = vmax.f32 %v3337_v6, 0.0  ;;  %v3354_v14 = vmax.f32 %v3338_v11, 0.0  ;;  %v7397_v3 = vld [vmem:[#allocation30_spill] sm:$0xff]  ;;  %v7398_v11 = vld [vmem:[#allocation31_spill] sm:$0xff] }
 0x23b   :  { %v3355_v8 = vmax.f32 %v3339_v49, 0.0  ;;  %v3356_v4 = vmax.f32 %v3340_v35, 0.0  ;;  %v3357_v19 = vmax.f32 %v3341_v24, 0.0  ;;  %v3358_v21 = vmax.f32 %v3342_v36, 0.0  ;;  %v7399_v35 = vld [vmem:[#allocation32_spill] sm:$0xff]  ;;  %v7400_v36 = vld [vmem:[#allocation33_spill] sm:$0xff] }
 0x23c   :  { %v4374_v60 = vpack.c.bf16 %v3343_v28, %v3343_v28  ;;  %v4375_v27 = vpack.c.bf16 %v3344_v53, %v3344_v53  ;;  %v4376_v61 = vpack.c.bf16 %v3345_v58, %v3345_v58  ;;  %v4377_v33 = vpack.c.bf16 %v3346_v39, %v3346_v39  ;;  %v7401_v53 = vld [vmem:[#allocation34_spill] sm:$0xff]  ;;  %v7402_v39 = vld [vmem:[#allocation35_spill] sm:$0xff] }
 0x23d   :  { %v4378_v62 = vpack.c.bf16 %v3347_v51, %v3347_v51  ;;  %v4379_v7 = vpack.c.bf16 %v3348_v12, %v3348_v12  ;;  %v4380_v1 = vpack.c.bf16 %v3349_v56, %v3349_v56  ;;  %v4381_v9 = vpack.c.bf16 %v3350_v45, %v3350_v45  ;;  %v7403_v12 = vld [vmem:[#allocation36_spill] sm:$0xff]  ;;  %v7404_v45 = vld [vmem:[#allocation37_spill] sm:$0xff] }
 0x23e   :  { %v4382_v2 = vpack.c.bf16 %v3351_v5, %v3351_v5  ;;  %v4383_v55 = vpack.c.bf16 %v3352_v13, %v3352_v13  ;;  %4278 = vst.msk [vmem:[%s7295_s4 + $0x40] sm:$0xf] %vm3294_vm1, %v4374_v60  ;;  %4279 = vst.msk [vmem:[%s7295_s4 + $0x44] sm:$0xf] %vm3294_vm1, %v4375_v27  ;;  %v4384_v29 = vpack.c.bf16 %v3353_v48, %v3353_v48  ;;  %v7405_v13 = vld [vmem:[#allocation38_spill] sm:$0xff] }
 0x23f   :  { %v4385_v38 = vpack.c.bf16 %v3354_v14, %v3354_v14  ;;  %v4386_v59 = vpack.c.bf16 %v3355_v8, %v3355_v8  ;;  %v4387_v25 = vpack.c.bf16 %v3356_v4, %v3356_v4  ;;  %4280 = vst.msk [vmem:[%s7295_s4 + $0x48] sm:$0xf] %vm3294_vm1, %v4376_v61  ;;  %4281 = vst.msk [vmem:[%s7295_s4 + $0x4c] sm:$0xf] %vm3294_vm1, %v4377_v33 }
 0x240   :  { %4282 = vst.msk [vmem:[%s7295_s4 + $0x50] sm:$0xf] %vm3294_vm1, %v4378_v62  ;;  %4283 = vst.msk [vmem:[%s7295_s4 + $0x54] sm:$0xf] %vm3294_vm1, %v4379_v7  ;;  %v4388_v41 = vpack.c.bf16 %v3357_v19, %v3357_v19  ;;  %v4389_v37 = vpack.c.bf16 %v3358_v21, %v3358_v21  ;;  %v3440_v43 = vmul.f32 %v6822_v15, %v7395_v34 }
 0x241   :  { %4284 = vst.msk [vmem:[%s7295_s4 + $0x58] sm:$0xf] %vm3294_vm1, %v4380_v1  ;;  %4285 = vst.msk [vmem:[%s7295_s4 + $0x5c] sm:$0xf] %vm3294_vm1, %v4381_v9  ;;  %v3441_v32 = vmul.f32 %v6822_v15, %v7396_v44  ;;  %v3442_v6 = vmul.f32 %v6822_v15, %v7397_v3  ;;  %v3443_v49 = vmul.f32 %v6822_v15, %v7398_v11 }
 0x242   :  { %4286 = vst.msk [vmem:[%s7295_s4 + $0x60] sm:$0xf] %vm3294_vm1, %v4382_v2  ;;  %4287 = vst.msk [vmem:[%s7295_s4 + $0x64] sm:$0xf] %vm3294_vm1, %v4383_v55  ;;  %v3444_v24 = vmul.f32 %v6822_v15, %v7399_v35  ;;  %v3445_v28 = vmul.f32 %v6822_v15, %v7400_v36  ;;  %v3446_v58 = vmul.f32 %v6822_v15, %v7401_v53 }
 0x243   :  { %4288 = vst.msk [vmem:[%s7295_s4 + $0x68] sm:$0xf] %vm3294_vm1, %v4384_v29  ;;  %4289 = vst.msk [vmem:[%s7295_s4 + $0x6c] sm:$0xf] %vm3294_vm1, %v4385_v38  ;;  %v3447_v51 = vmul.f32 %v6822_v15, %v7402_v39  ;;  %v3448_v56 = vmul.f32 %v6822_v15, %v7403_v12  ;;  %v3449_v5 = vmul.f32 %v6822_v15, %v7404_v45 }
 0x244   :  { %4290 = vst.msk [vmem:[%s7295_s4 + $0x70] sm:$0xf] %vm3294_vm1, %v4386_v59  ;;  %4291 = vst.msk [vmem:[%s7295_s4 + $0x74] sm:$0xf] %vm3294_vm1, %v4387_v25  ;;  %v3450_v48 = vmul.f32 %v6822_v15, %v7405_v13  ;;  %v3451_v14 = vmul.f32 %v6822_v15, %v6602_v16  ;;  %v3452_v8 = vmul.f32 %v6822_v15, %v6672_v20 }
 0x245   :  { %4292 = vst.msk [vmem:[%s7295_s4 + $0x78] sm:$0xf] %vm3294_vm1, %v4388_v41  ;;  %4293 = vst.msk [vmem:[%s7295_s4 + $0x7c] sm:$0xf] %vm3294_vm1, %v4389_v37  ;;  %v3453_v4 = vmul.f32 %v6822_v15, %v6715_v52  ;;  %v3454_v19 = vmul.f32 %v6822_v15, %v6757_v40  ;;  %v3455_v21 = vmul.f32 %v6822_v15, %v6778_v57 }
 0x246   :  { %v3456_v60 = vadd.f32 %v3440_v43, %v6856_v0  ;;  %v3457_v27 = vadd.f32 %v3441_v32, %v6856_v0  ;;  %v3458_v61 = vadd.f32 %v3442_v6, %v6856_v0  ;;  %v3459_v16 = vadd.f32 %v3443_v49, %v6856_v0 }
 0x247   :  { %v3460_v33 = vadd.f32 %v3444_v24, %v6856_v0  ;;  %v3461_v20 = vadd.f32 %v3445_v28, %v6856_v0  ;;  %v3462_v52 = vadd.f32 %v3446_v58, %v6856_v0  ;;  %v3463_v62 = vadd.f32 %v3447_v51, %v6856_v0 }
 0x248   :  { %v3464_v40 = vadd.f32 %v3448_v56, %v6856_v0  ;;  %v3465_v57 = vadd.f32 %v3449_v5, %v6856_v0  ;;  %v3466_v7 = vadd.f32 %v3450_v48, %v6856_v0  ;;  %v3467_v1 = vadd.f32 %v3451_v14, %v6856_v0 }
 0x249   :  { %v3468_v9 = vadd.f32 %v3452_v8, %v6856_v0  ;;  %v3469_v2 = vadd.f32 %v3453_v4, %v6856_v0  ;;  %v3470_v55 = vadd.f32 %v3454_v19, %v6856_v0  ;;  %v3471_v29 = vadd.f32 %v3455_v21, %v6856_v0 }
 0x24a   :  { %v3472_v38 = vmax.f32 %v3456_v60, 0.0  ;;  %v3473_v59 = vmax.f32 %v3457_v27, 0.0  ;;  %v3474_v25 = vmax.f32 %v3458_v61, 0.0  ;;  %v3475_v41 = vmax.f32 %v3459_v16, 0.0  ;;  %v5257_v27 = vld [vmem:[#allocation2 + $0x188] sm:$0xff] }
 0x24b   :  { %v3476_v37 = vmax.f32 %v3460_v33, 0.0  ;;  %v3477_v34 = vmax.f32 %v3461_v20, 0.0  ;;  %v3478_v43 = vmax.f32 %v3462_v52, 0.0  ;;  %v3479_v44 = vmax.f32 %v3463_v62, 0.0 }
 0x24c   :  { %v3480_v32 = vmax.f32 %v3464_v40, 0.0  ;;  %v3481_v3 = vmax.f32 %v3465_v57, 0.0  ;;  %v3482_v6 = vmax.f32 %v3466_v7, 0.0  ;;  %v3483_v11 = vmax.f32 %v3467_v1, 0.0  ;;  %v7406_v57 = vld [vmem:[#allocation39_spill] sm:$0xff] }
 0x24d   :  { %v3484_v49 = vmax.f32 %v3468_v9, 0.0  ;;  %v3485_v35 = vmax.f32 %v3469_v2, 0.0  ;;  %v3486_v24 = vmax.f32 %v3470_v55, 0.0  ;;  %v3487_v36 = vmax.f32 %v3471_v29, 0.0 }
 0x24e   :  { %v4390_v28 = vpack.c.bf16 %v3472_v38, %v3472_v38  ;;  %v4391_v53 = vpack.c.bf16 %v3473_v59, %v3473_v59  ;;  %v4392_v58 = vpack.c.bf16 %v3474_v25, %v3474_v25  ;;  %v4393_v39 = vpack.c.bf16 %v3475_v41, %v3475_v41 }
 0x24f   :  { %v4394_v51 = vpack.c.bf16 %v3476_v37, %v3476_v37  ;;  %v4395_v12 = vpack.c.bf16 %v3477_v34, %v3477_v34  ;;  %v4396_v56 = vpack.c.bf16 %v3478_v43, %v3478_v43  ;;  %v4397_v45 = vpack.c.bf16 %v3479_v44, %v3479_v44 }
 0x250   :  { %v4398_v5 = vpack.c.bf16 %v3480_v32, %v3480_v32  ;;  %v4399_v13 = vpack.c.bf16 %v3481_v3, %v3481_v3  ;;  %4310 = vst.msk [vmem:[%s7295_s4 + $0x80] sm:$0xf] %vm3294_vm1, %v4390_v28  ;;  %4311 = vst.msk [vmem:[%s7295_s4 + $0x84] sm:$0xf] %vm3294_vm1, %v4391_v53  ;;  %v4400_v48 = vpack.c.bf16 %v3482_v6, %v3482_v6 }
 0x251   :  { %v4401_v14 = vpack.c.bf16 %v3483_v11, %v3483_v11  ;;  %v4402_v8 = vpack.c.bf16 %v3484_v49, %v3484_v49  ;;  %v4403_v4 = vpack.c.bf16 %v3485_v35, %v3485_v35  ;;  %4312 = vst.msk [vmem:[%s7295_s4 + $0x88] sm:$0xf] %vm3294_vm1, %v4392_v58  ;;  %4313 = vst.msk [vmem:[%s7295_s4 + $0x8c] sm:$0xf] %vm3294_vm1, %v4393_v39 }
 0x252   :  { %4314 = vst.msk [vmem:[%s7295_s4 + $0x90] sm:$0xf] %vm3294_vm1, %v4394_v51  ;;  %4315 = vst.msk [vmem:[%s7295_s4 + $0x94] sm:$0xf] %vm3294_vm1, %v4395_v12  ;;  %v4404_v19 = vpack.c.bf16 %v3486_v24, %v3486_v24  ;;  %v4405_v21 = vpack.c.bf16 %v3487_v36, %v3487_v36  ;;  %v3569_v60 = vmul.f32 %v6822_v15, %v6604_v42 }
 0x253   :  { %4316 = vst.msk [vmem:[%s7295_s4 + $0x98] sm:$0xf] %vm3294_vm1, %v4396_v56  ;;  %4317 = vst.msk [vmem:[%s7295_s4 + $0x9c] sm:$0xf] %vm3294_vm1, %v4397_v45  ;;  %v3570_v61 = vmul.f32 %v5257_v27, %v6822_v15  ;;  %v3571_v42 = vmul.f32 %v6822_v15, %v6614_v17  ;;  %v3572_v16 = vmul.f32 %v6822_v15, %v6632_v31 }
 0x254   :  { %4318 = vst.msk [vmem:[%s7295_s4 + $0xa0] sm:$0xf] %vm3294_vm1, %v4398_v5  ;;  %4319 = vst.msk [vmem:[%s7295_s4 + $0xa4] sm:$0xf] %vm3294_vm1, %v4399_v13  ;;  %v3573_v33 = vmul.f32 %v6822_v15, %v6640_v30  ;;  %v3574_v20 = vmul.f32 %v6822_v15, %v6666_v47  ;;  %v3575_v17 = vmul.f32 %v6822_v15, %v6688_v22 }
 0x255   :  { %4320 = vst.msk [vmem:[%s7295_s4 + $0xa8] sm:$0xf] %vm3294_vm1, %v4400_v48  ;;  %4321 = vst.msk [vmem:[%s7295_s4 + $0xac] sm:$0xf] %vm3294_vm1, %v4401_v14  ;;  %v3576_v31 = vmul.f32 %v6822_v15, %v6692_v26  ;;  %v3577_v30 = vmul.f32 %v6822_v15, %v6701_v18  ;;  %v3578_v47 = vmul.f32 %v6822_v15, %v6713_v54 }
 0x256   :  { %4322 = vst.msk [vmem:[%s7295_s4 + $0xb0] sm:$0xf] %vm3294_vm1, %v4402_v8  ;;  %4323 = vst.msk [vmem:[%s7295_s4 + $0xb4] sm:$0xf] %vm3294_vm1, %v4403_v4  ;;  %v3579_v52 = vmul.f32 %v6822_v15, %v6724_v46  ;;  %v3580_v62 = vmul.f32 %v6822_v15, %v6739_v50  ;;  %v3581_v40 = vmul.f32 %v6822_v15, %v6755_v63 }
 0x257   :  { %4324 = vst.msk [vmem:[%s7295_s4 + $0xb8] sm:$0xf] %vm3294_vm1, %v4404_v19  ;;  %4325 = vst.msk [vmem:[%s7295_s4 + $0xbc] sm:$0xf] %vm3294_vm1, %v4405_v21  ;;  %v3582_v22 = vmul.f32 %v6822_v15, %v6776_v10  ;;  %v3583_v26 = vmul.f32 %v6822_v15, %v6797_v23  ;;  %v3584_v18 = vmul.f32 %v6822_v15, %v7406_v57 }
 0x258   :  { %v3585_v54 = vadd.f32 %v3569_v60, %v6856_v0  ;;  %v3586_v7 = vadd.f32 %v3570_v61, %v6856_v0  ;;  %v3587_v46 = vadd.f32 %v3571_v42, %v6856_v0  ;;  %v3588_v50 = vadd.f32 %v3572_v16, %v6856_v0 }
 0x259   :  { %v3589_v1 = vadd.f32 %v3573_v33, %v6856_v0  ;;  %v3590_v63 = vadd.f32 %v3574_v20, %v6856_v0  ;;  %v3591_v10 = vadd.f32 %v3575_v17, %v6856_v0  ;;  %v3592_v9 = vadd.f32 %v3576_v31, %v6856_v0 }
 0x25a   :  { %v3593_v23 = vadd.f32 %v3577_v30, %v6856_v0  ;;  %v3594_v15 = vadd.f32 %v3578_v47, %v6856_v0  ;;  %v3595_v2 = vadd.f32 %v3579_v52, %v6856_v0  ;;  %v3596_v55 = vadd.f32 %v3580_v62, %v6856_v0 }
 0x25b   :  { %v3597_v29 = vadd.f32 %v3581_v40, %v6856_v0  ;;  %v3598_v38 = vadd.f32 %v3582_v22, %v6856_v0  ;;  %v3599_v59 = vadd.f32 %v3583_v26, %v6856_v0  ;;  %v3600_v25 = vadd.f32 %v3584_v18, %v6856_v0 }
 0x25c   :  { %v3601_v41 = vmax.f32 %v3585_v54, 0.0  ;;  %v3602_v37 = vmax.f32 %v3586_v7, 0.0  ;;  %v3603_v34 = vmax.f32 %v3587_v46, 0.0  ;;  %v3604_v43 = vmax.f32 %v3588_v50, 0.0 }
 0x25d   :  { %v3605_v44 = vmax.f32 %v3589_v1, 0.0  ;;  %v3606_v32 = vmax.f32 %v3590_v63, 0.0  ;;  %v3607_v3 = vmax.f32 %v3591_v10, 0.0  ;;  %v3608_v6 = vmax.f32 %v3592_v9, 0.0 }
 0x25e   :  { %v3609_v11 = vmax.f32 %v3593_v23, 0.0  ;;  %v3610_v49 = vmax.f32 %v3594_v15, 0.0  ;;  %v3611_v35 = vmax.f32 %v3595_v2, 0.0  ;;  %v3612_v24 = vmax.f32 %v3596_v55, 0.0 }
 0x25f   :  { %v3613_v36 = vmax.f32 %v3597_v29, 0.0  ;;  %v3614_v28 = vmax.f32 %v3598_v38, 0.0  ;;  %v3615_v53 = vmax.f32 %v3599_v59, 0.0  ;;  %v3616_v58 = vmax.f32 %v3600_v25, 0.0 }
 0x260   :  { %v4406_v39 = vpack.c.bf16 %v3601_v41, %v3601_v41  ;;  %v4407_v51 = vpack.c.bf16 %v3602_v37, %v3602_v37  ;;  %v4408_v12 = vpack.c.bf16 %v3603_v34, %v3603_v34  ;;  %v4409_v0 = vpack.c.bf16 %v3604_v43, %v3604_v43 }
 0x261   :  { %v4410_v56 = vpack.c.bf16 %v3605_v44, %v3605_v44  ;;  %v4411_v45 = vpack.c.bf16 %v3606_v32, %v3606_v32  ;;  %v4412_v5 = vpack.c.bf16 %v3607_v3, %v3607_v3  ;;  %v4413_v13 = vpack.c.bf16 %v3608_v6, %v3608_v6 }
 0x262   :  { %v4414_v48 = vpack.c.bf16 %v3609_v11, %v3609_v11  ;;  %v4415_v14 = vpack.c.bf16 %v3610_v49, %v3610_v49  ;;  %4342 = vst.msk [vmem:[%s7295_s4 + $0xc0] sm:$0xf] %vm3294_vm1, %v4406_v39  ;;  %4343 = vst.msk [vmem:[%s7295_s4 + $0xc4] sm:$0xf] %vm3294_vm1, %v4407_v51  ;;  %v4416_v8 = vpack.c.bf16 %v3611_v35, %v3611_v35 }
 0x263   :  { %v4417_v4 = vpack.c.bf16 %v3612_v24, %v3612_v24  ;;  %v4418_v19 = vpack.c.bf16 %v3613_v36, %v3613_v36  ;;  %v4419_v21 = vpack.c.bf16 %v3614_v28, %v3614_v28  ;;  %4344 = vst.msk [vmem:[%s7295_s4 + $0xc8] sm:$0xf] %vm3294_vm1, %v4408_v12  ;;  %4345 = vst.msk [vmem:[%s7295_s4 + $0xcc] sm:$0xf] %vm3294_vm1, %v4409_v0 }
 0x264   :  { %4346 = vst.msk [vmem:[%s7295_s4 + $0xd0] sm:$0xf] %vm3294_vm1, %v4410_v56  ;;  %4347 = vst.msk [vmem:[%s7295_s4 + $0xd4] sm:$0xf] %vm3294_vm1, %v4411_v45  ;;  %v4420_v60 = vpack.c.bf16 %v3615_v53, %v3615_v53  ;;  %v4421_v27 = vpack.c.bf16 %v3616_v58, %v3616_v58 }
 0x265   :  { %4348 = vst.msk [vmem:[%s7295_s4 + $0xd8] sm:$0xf] %vm3294_vm1, %v4412_v5  ;;  %4349 = vst.msk [vmem:[%s7295_s4 + $0xdc] sm:$0xf] %vm3294_vm1, %v4413_v13 }
 0x266   :  { %4350 = vst.msk [vmem:[%s7295_s4 + $0xe0] sm:$0xf] %vm3294_vm1, %v4414_v48  ;;  %4351 = vst.msk [vmem:[%s7295_s4 + $0xe4] sm:$0xf] %vm3294_vm1, %v4415_v14 }
 0x267   :  { %4352 = vst.msk [vmem:[%s7295_s4 + $0xe8] sm:$0xf] %vm3294_vm1, %v4416_v8  ;;  %4353 = vst.msk [vmem:[%s7295_s4 + $0xec] sm:$0xf] %vm3294_vm1, %v4417_v4 }
 0x268   :  { %4354 = vst.msk [vmem:[%s7295_s4 + $0xf0] sm:$0xf] %vm3294_vm1, %v4418_v19  ;;  %4355 = vst.msk [vmem:[%s7295_s4 + $0xf4] sm:$0xf] %vm3294_vm1, %v4419_v21 }
 0x269   :  { %4356 = vst.msk [vmem:[%s7295_s4 + $0xf8] sm:$0xf] %vm3294_vm1, %v4420_v60  ;;  %4357 = vst.msk [vmem:[%s7295_s4 + $0xfc] sm:$0xf] %vm3294_vm1, %v4421_v27 }

// kernel: generator_forward.7
= control target key start
LH: loop header
LB: loop body
LE: loop exit
PB: predicated region body
PF: predicated region fallthrough
CT: control target
= control target key end

     0   :  { %v5516_v0 = vmov 0   ;;  %s7605_s1 = inlined_call_operand.vmem [shape: bf16[4,256,128], index: 1, kind: input, shape index: {}]   ;;  %s7606_s0 = inlined_call_operand.vmem [shape: bf16[4,512,256], index: 0, kind: input, shape index: {}]   ;;  %s7607_s2 = inlined_call_operand.vmem [shape: f32[1,128], index: 2, kind: input, shape index: {}]   ;;  %s7608_s3 = inlined_call_operand.vmem [shape: f32[4,512,128], index: 3, kind: output, shape index: {}]  }
   0x1   :  { %534 = vmatprep.subr.bf16.mxu0 %v5516_v0  ;;  %1465 = vmatprep.subr.bf16.mxu1 %v5516_v0  ;;  %v4553_v1 = vld [vmem:[%s7605_s1 + $0x38] sm:$0xff]   ;;  %v4555_v3 = vld [vmem:[%s7605_s1 + $0x30] sm:$0xff]   ;;  %v4557_v5 = vld [vmem:[%s7605_s1 + $0x28] sm:$0xff]  }
   0x2   :  { %v4554_v2 = vld [vmem:[%s7605_s1 + $0xb8] sm:$0xff]   ;;  %535 = vmatpush1.bf16.msra.mxu0 %v4553_v1  ;;  %v4556_v4 = vld [vmem:[%s7605_s1 + $0xb0] sm:$0xff]   ;;  %v4558_v6 = vld [vmem:[%s7605_s1 + $0xa8] sm:$0xff]  }
   0x3   :  { %1466 = vmatpush1.bf16.msra.mxu1 %v4554_v2  ;;  %536 = vmatprep.subr.bf16.mxu0 %v5516_v0  ;;  %v4559_v7 = vld [vmem:[%s7605_s1 + $0x20] sm:$0xff]   ;;  %v4561_v9 = vld [vmem:[%s7605_s1 + $0x18] sm:$0xff]   ;;  %v4563_v11 = vld [vmem:[%s7605_s1 + $0x10] sm:$0xff]  }
   0x4   :  { %1467 = vmatprep.subr.bf16.mxu1 %v5516_v0  ;;  %v4560_v8 = vld [vmem:[%s7605_s1 + $0xa0] sm:$0xff]   ;;  %v4562_v10 = vld [vmem:[%s7605_s1 + $0x98] sm:$0xff]   ;;  %v4564_v12 = vld [vmem:[%s7605_s1 + $0x90] sm:$0xff]  }
   0x5   :  { %v4565_v13 = vld [vmem:[%s7605_s1 + $0x8] sm:$0xff]   ;;  %v4567_v15 = vld [vmem:[%s7605_s1] sm:$0xff]   ;;  %v4569_v17 = vld [vmem:[%s7605_s1 + $0x78] sm:$0xff]  }
   0x6   :  { %537 = vmatpush1.bf16.msra.mxu0 %v4555_v3  ;;  %v4566_v14 = vld [vmem:[%s7605_s1 + $0x88] sm:$0xff]   ;;  %v4568_v16 = vld [vmem:[%s7605_s1 + $0x80] sm:$0xff]   ;;  %v4570_v18 = vld [vmem:[%s7605_s1 + $0xf8] sm:$0xff]  }
   0x7   :  { %1468 = vmatpush1.bf16.msra.mxu1 %v4556_v4  ;;  %538 = vmatprep.subr.bf16.mxu0 %v5516_v0  ;;  %v4587_v19 = vld [vmem:[%s7606_s0 + $0x4] ss:$8 sps:$4 sm:$0xff]   ;;  %v4571_v20 = vld [vmem:[%s7605_s1 + $0x70] sm:$0xff]   ;;  %v4577_v27 = vld [vmem:[%s7605_s1 + $0x58] sm:$0xff]  }
   0x8   :  { %1469 = vmatprep.subr.bf16.mxu1 %v5516_v0  ;;  %v4590_v21 = vld [vmem:[%s7606_s0 + $0x204] ss:$8 sps:$4 sm:$0xff]   ;;  %v4572_v22 = vld [vmem:[%s7605_s1 + $0xf0] sm:$0xff]   ;;  %566 = vmatprep.mubr.bf16.mxu0 %v4587_v19  ;;  %v4578_v28 = vld [vmem:[%s7605_s1 + $0xd8] sm:$0xff]  }
   0x9   :  { %1497 = vmatprep.mubr.bf16.mxu1 %v4590_v21  ;;  %v4573_v23 = vld [vmem:[%s7605_s1 + $0x68] sm:$0xff]   ;;  %v4575_v25 = vld [vmem:[%s7605_s1 + $0x60] sm:$0xff]   ;;  %v4579_v29 = vld [vmem:[%s7605_s1 + $0x50] sm:$0xff]  }
   0xa   :  { %539 = vmatpush1.bf16.msra.mxu0 %v4557_v5  ;;  %v4574_v24 = vld [vmem:[%s7605_s1 + $0xe8] sm:$0xff]   ;;  %v4576_v26 = vld [vmem:[%s7605_s1 + $0xe0] sm:$0xff]   ;;  %v4580_v30 = vld [vmem:[%s7605_s1 + $0xd0] sm:$0xff]  }
   0xb   :  { %1470 = vmatpush1.bf16.msra.mxu1 %v4558_v6  ;;  %540 = vmatprep.subr.bf16.mxu0 %v5516_v0  ;;  %v4581_v31 = vld [vmem:[%s7605_s1 + $0x48] sm:$0xff]   ;;  %v4583_v33 = vld [vmem:[%s7605_s1 + $0x40] sm:$0xff]   ;;  %v4591_v37 = vld [vmem:[%s7605_s1 + $0x138] sm:$0xff]  }
   0xc   :  { %1471 = vmatprep.subr.bf16.mxu1 %v5516_v0  ;;  %v4582_v32 = vld [vmem:[%s7605_s1 + $0xc8] sm:$0xff]   ;;  %v4584_v34 = vld [vmem:[%s7605_s1 + $0xc0] sm:$0xff]   ;;  %v4592_v38 = vld [vmem:[%s7605_s1 + $0x1b8] sm:$0xff]  }
   0xd   :  { %v4585_v35 = vld [vmem:[%s7606_s0] ss:$8 sps:$4 sm:$0xff]   ;;  %v4593_v39 = vld [vmem:[%s7606_s0 + $0x14] ss:$8 sps:$4 sm:$0xff]   ;;  %v4597_v43 = vld [vmem:[%s7606_s0 + $0x10] ss:$8 sps:$4 sm:$0xff]  }
   0xe   :  { %541 = vmatpush1.bf16.msra.mxu0 %v4559_v7  ;;  %v4588_v36 = vld [vmem:[%s7606_s0 + $0x200] ss:$8 sps:$4 sm:$0xff]   ;;  %v4595_v40 = vld [vmem:[%s7606_s0 + $0x214] ss:$8 sps:$4 sm:$0xff]   ;;  %v4598_v44 = vld [vmem:[%s7606_s0 + $0x210] ss:$8 sps:$4 sm:$0xff]  }
   0xf   :  { %1472 = vmatpush1.bf16.msra.mxu1 %v4560_v8  ;;  %542 = vmatprep.subr.bf16.mxu0 %v5516_v0  ;;  %v4605_v41 = vld [vmem:[%s7605_s1 + $0x130] sm:$0xff]   ;;  %v4599_v45 = vld [vmem:[%s7606_s0 + $0x24] ss:$8 sps:$4 sm:$0xff]   ;;  %v4603_v49 = vld [vmem:[%s7606_s0 + $0x20] ss:$8 sps:$4 sm:$0xff]  }
  0x10   :  { %1473 = vmatprep.subr.bf16.mxu1 %v5516_v0  ;;  %v4606_v42 = vld [vmem:[%s7605_s1 + $0x1b0] sm:$0xff]   ;;  %v4601_v46 = vld [vmem:[%s7606_s0 + $0x224] ss:$8 sps:$4 sm:$0xff]   ;;  %v4604_v52 = vld [vmem:[%s7606_s0 + $0x220] ss:$8 sps:$4 sm:$0xff]  }
  0x11   :  { %v4619_v47 = vld [vmem:[%s7605_s1 + $0x128] sm:$0xff]   ;;  %v4633_v50 = vld [vmem:[%s7605_s1 + $0x120] sm:$0xff]   ;;  %v4607_v53 = vld [vmem:[%s7606_s0 + $0x34] ss:$8 sps:$4 sm:$0xff]  }
  0x12   :  { %543 = vmatpush1.bf16.msra.mxu0 %v4561_v9  ;;  %v4620_v48 = vld [vmem:[%s7605_s1 + $0x1a8] sm:$0xff]   ;;  %v4634_v51 = vld [vmem:[%s7605_s1 + $0x1a0] sm:$0xff]   ;;  %v4609_v54 = vld [vmem:[%s7606_s0 + $0x234] ss:$8 sps:$4 sm:$0xff]  }
  0x13   :  { %1474 = vmatpush1.bf16.msra.mxu1 %v4562_v10  ;;  %544 = vmatprep.subr.bf16.mxu0 %v5516_v0  ;;  %v4647_v55 = vld [vmem:[%s7605_s1 + $0x118] sm:$0xff]   ;;  %v4661_v57 = vld [vmem:[%s7605_s1 + $0x110] sm:$0xff]   ;;  %v4613_v61 = vld [vmem:[%s7606_s0 + $0x44] ss:$8 sps:$4 sm:$0xff]  }
  0x14   :  { %1475 = vmatprep.subr.bf16.mxu1 %v5516_v0  ;;  %v4648_v56 = vld [vmem:[%s7605_s1 + $0x198] sm:$0xff]   ;;  %v4662_v58 = vld [vmem:[%s7605_s1 + $0x190] sm:$0xff]   ;;  %v4615_v62 = vld [vmem:[%s7606_s0 + $0x244] ss:$8 sps:$4 sm:$0xff]  }
  0x15   :  { %v4611_v59 = vld [vmem:[%s7606_s0 + $0x30] ss:$8 sps:$4 sm:$0xff]   ;;  %v4675_v63 = vld [vmem:[%s7605_s1 + $0x108] sm:$0xff]   ;;  %v4689_v3 = vld [vmem:[%s7605_s1 + $0x100] sm:$0xff]  }
  0x16   :  { %545 = vmatpush1.bf16.msra.mxu0 %v4563_v11  ;;  %v4612_v60 = vld [vmem:[%s7606_s0 + $0x230] ss:$8 sps:$4 sm:$0xff]   ;;  %v4676_v1 = vld [vmem:[%s7605_s1 + $0x188] sm:$0xff]   ;;  %v4690_v5 = vld [vmem:[%s7605_s1 + $0x180] sm:$0xff]  }
  0x17   :  { %1476 = vmatpush1.bf16.msra.mxu1 %v4564_v12  ;;  %546 = vmatprep.subr.bf16.mxu0 %v5516_v0  ;;  %v4617_v2 = vld [vmem:[%s7606_s0 + $0x40] ss:$8 sps:$4 sm:$0xff]   ;;  %v4621_v6 = vld [vmem:[%s7606_s0 + $0x54] ss:$8 sps:$4 sm:$0xff]   ;;  %v4625_v10 = vld [vmem:[%s7606_s0 + $0x50] ss:$8 sps:$4 sm:$0xff]  }
  0x18   :  { %1477 = vmatprep.subr.bf16.mxu1 %v5516_v0  ;;  %v4618_v4 = vld [vmem:[%s7606_s0 + $0x240] ss:$8 sps:$4 sm:$0xff]   ;;  %v4623_v7 = vld [vmem:[%s7606_s0 + $0x254] ss:$8 sps:$4 sm:$0xff]   ;;  %v4626_v11 = vld [vmem:[%s7606_s0 + $0x250] ss:$8 sps:$4 sm:$0xff]  }
  0x19   :  { %v4703_v8 = vld [vmem:[%s7605_s1 + $0x178] sm:$0xff]   ;;  %v4627_v12 = vld [vmem:[%s7606_s0 + $0x64] ss:$8 sps:$4 sm:$0xff]  }
  0x1a   :  { %547 = vmatpush1.bf16.msra.mxu0 %v4565_v13  ;;  %v4704_v9 = vld [vmem:[%s7605_s1 + $0x1f8] sm:$0xff]   ;;  %v4717_v13 = vld [vmem:[%s7605_s1 + $0x170] sm:$0xff]   ;;  %v4732_v19 = vld [vmem:[%s7605_s1 + $0x1e8] sm:$0xff]  }
  0x1b   :  { %1478 = vmatpush1.bf16.msra.mxu1 %v4566_v14  ;;  %548 = vmatprep.subr.bf16.mxu0 %v5516_v0  ;;  %v4718_v14 = vld [vmem:[%s7605_s1 + $0x1f0] sm:$0xff]  }
  0x1c   :  { %1479 = vmatprep.subr.bf16.mxu1 %v5516_v0  ;;  %v4637_v21 = vld [vmem:[%s7606_s0 + $0x274] ss:$8 sps:$4 sm:$0xff]  }
  0x1e   :  { %549 = vmatpush1.bf16.msra.mxu0 %v4567_v15  ;;  %v4629_v15 = vld [vmem:[%s7606_s0 + $0x264] ss:$8 sps:$4 sm:$0xff]  }
  0x1f   :  { %1480 = vmatpush1.bf16.msra.mxu1 %v4568_v16  ;;  %550 = vmatprep.subr.bf16.mxu0 %v5516_v0  ;;  %v4631_v16 = vld [vmem:[%s7606_s0 + $0x60] ss:$8 sps:$4 sm:$0xff]  }
  0x20   :  { %1481 = vmatprep.subr.bf16.mxu1 %v5516_v0 }
  0x22   :  { %551 = vmatpush2.bf16.msra.mxu0 %v4569_v17  ;;  %v4632_v17 = vld [vmem:[%s7606_s0 + $0x260] ss:$8 sps:$4 sm:$0xff]  }
  0x23   :  { %1482 = vmatpush2.bf16.msra.mxu1 %v4570_v18  ;;  %552 = vmatprep.subr.bf16.mxu0 %v5516_v0  ;;  %v4731_v18 = vld [vmem:[%s7605_s1 + $0x168] sm:$0xff]  }
  0x24   :  { %1483 = vmatprep.subr.bf16.mxu1 %v5516_v0 }
  0x26   :  { %553 = vmatpush2.bf16.msra.mxu0 %v4571_v20  ;;  %v4635_v20 = vld [vmem:[%s7606_s0 + $0x74] ss:$8 sps:$4 sm:$0xff]  }
  0x27   :  { %1484 = vmatpush2.bf16.msra.mxu1 %v4572_v22  ;;  %554 = vmatprep.subr.bf16.mxu0 %v5516_v0  ;;  %v4639_v22 = vld [vmem:[%s7606_s0 + $0x70] ss:$8 sps:$4 sm:$0xff]  }
  0x28   :  { %1485 = vmatprep.subr.bf16.mxu1 %v5516_v0 }
  0x2a   :  { %555 = vmatpush2.bf16.msra.mxu0 %v4573_v23  ;;  %v4640_v23 = vld [vmem:[%s7606_s0 + $0x270] ss:$8 sps:$4 sm:$0xff]  }
  0x2b   :  { %1486 = vmatpush2.bf16.msra.mxu1 %v4574_v24  ;;  %556 = vmatprep.subr.bf16.mxu0 %v5516_v0  ;;  %v4745_v24 = vld [vmem:[%s7605_s1 + $0x160] sm:$0xff]  }
  0x2c   :  { %1487 = vmatprep.subr.bf16.mxu1 %v5516_v0 }
  0x2e   :  { %557 = vmatpush2.bf16.msra.mxu0 %v4575_v25  ;;  %v4746_v25 = vld [vmem:[%s7605_s1 + $0x1e0] sm:$0xff]  }
  0x2f   :  { %1488 = vmatpush2.bf16.msra.mxu1 %v4576_v26  ;;  %558 = vmatprep.subr.bf16.mxu0 %v5516_v0  ;;  %v4641_v26 = vld [vmem:[%s7606_s0 + $0x84] ss:$8 sps:$4 sm:$0xff]  }
  0x30   :  { %1489 = vmatprep.subr.bf16.mxu1 %v5516_v0 }
  0x32   :  { %559 = vmatpush2.bf16.msra.mxu0 %v4577_v27  ;;  %v4643_v27 = vld [vmem:[%s7606_s0 + $0x284] ss:$8 sps:$4 sm:$0xff]  }
  0x33   :  { %1490 = vmatpush2.bf16.msra.mxu1 %v4578_v28  ;;  %560 = vmatprep.subr.bf16.mxu0 %v5516_v0  ;;  %v4645_v28 = vld [vmem:[%s7606_s0 + $0x80] ss:$8 sps:$4 sm:$0xff]  }
  0x34   :  { %1491 = vmatprep.subr.bf16.mxu1 %v5516_v0 }
  0x36   :  { %561 = vmatpush2.bf16.msra.mxu0 %v4579_v29  ;;  %v4646_v29 = vld [vmem:[%s7606_s0 + $0x280] ss:$8 sps:$4 sm:$0xff]  }
  0x37   :  { %1492 = vmatpush2.bf16.msra.mxu1 %v4580_v30  ;;  %562 = vmatprep.subr.bf16.mxu0 %v5516_v0  ;;  %v4649_v30 = vld [vmem:[%s7606_s0 + $0x94] ss:$8 sps:$4 sm:$0xff]  }
  0x38   :  { %1493 = vmatprep.subr.bf16.mxu1 %v5516_v0 }
  0x3a   :  { %563 = vmatpush2.bf16.msra.mxu0 %v4581_v31  ;;  %v4651_v31 = vld [vmem:[%s7606_s0 + $0x294] ss:$8 sps:$4 sm:$0xff]  }
  0x3b   :  { %1494 = vmatpush2.bf16.msra.mxu1 %v4582_v32  ;;  %564 = vmatprep.subr.bf16.mxu0 %v5516_v0  ;;  %v4653_v32 = vld [vmem:[%s7606_s0 + $0x90] ss:$8 sps:$4 sm:$0xff]  }
  0x3c   :  { %1495 = vmatprep.subr.bf16.mxu1 %v5516_v0 }
  0x3e   :  { %565 = vmatpush2.bf16.msra.mxu0 %v4583_v33  ;;  %v4654_v33 = vld [vmem:[%s7606_s0 + $0x290] ss:$8 sps:$4 sm:$0xff]  }
  0x3f   :  { %1496 = vmatpush2.bf16.msra.mxu1 %v4584_v34  ;;  %2397 = vmatprep.subr.bf16.mxu0 %v5516_v0  ;;  %v4655_v34 = vld [vmem:[%s7606_s0 + $0xa4] ss:$8 sps:$4 sm:$0xff]  }
  0x40   :  { %3329 = vmatprep.subr.bf16.mxu1 %v5516_v0 }
  0x41   :  { %567 = vmatmul.mubr.bf16.vlgmr.msra.gmra.mxu0 %v4585_v35  ;;  %v4657_v35 = vld [vmem:[%s7606_s0 + $0x2a4] ss:$8 sps:$4 sm:$0xff]  }
  0x42   :  { %1498 = vmatmul.mubr.bf16.vlgmr.msra.gmra.mxu1 %v4588_v36  ;;  %2398 = vmatpush1.bf16.msra.mxu0 %v4591_v37  ;;  %v4659_v36 = vld [vmem:[%s7606_s0 + $0xa0] ss:$8 sps:$4 sm:$0xff]  }
  0x43   :  { %3330 = vmatpush1.bf16.msra.mxu1 %v4592_v38  ;;  %574 = vmatprep.mubr.bf16.mxu0 %v4593_v39  ;;  %v4660_v37 = vld [vmem:[%s7606_s0 + $0x2a0] ss:$8 sps:$4 sm:$0xff]   ;;  %v4663_v38 = vld [vmem:[%s7606_s0 + $0xb4] ss:$8 sps:$4 sm:$0xff]  }
  0x44   :  { %1505 = vmatprep.mubr.bf16.mxu1 %v4595_v40  ;;  %2399 = vmatprep.subr.bf16.mxu0 %v5516_v0  ;;  %v4665_v39 = vld [vmem:[%s7606_s0 + $0x2b4] ss:$8 sps:$4 sm:$0xff]   ;;  %v4667_v40 = vld [vmem:[%s7606_s0 + $0xb0] ss:$8 sps:$4 sm:$0xff]  }
  0x45   :  { %3331 = vmatprep.subr.bf16.mxu1 %v5516_v0 }
  0x46   :  { %2400 = vmatpush1.bf16.msra.mxu0 %v4605_v41  ;;  %v4759_v41 = vld [vmem:[%s7605_s1 + $0x158] sm:$0xff]  }
  0x47   :  { %3332 = vmatpush1.bf16.msra.mxu1 %v4606_v42  ;;  %2401 = vmatprep.subr.bf16.mxu0 %v5516_v0  ;;  %v4760_v42 = vld [vmem:[%s7605_s1 + $0x1d8] sm:$0xff]  }
  0x48   :  { %3333 = vmatprep.subr.bf16.mxu1 %v5516_v0 }
  0x49   :  { %575 = vmatmul.mubr.bf16.gmra.mxu0 %v4597_v43  ;;  %v4668_v43 = vld [vmem:[%s7606_s0 + $0x2b0] ss:$8 sps:$4 sm:$0xff]  }
  0x4a   :  { %1506 = vmatmul.mubr.bf16.gmra.mxu1 %v4598_v44  ;;  %582 = vmatprep.mubr.bf16.mxu0 %v4599_v45  ;;  %v4669_v44 = vld [vmem:[%s7606_s0 + $0xc4] ss:$8 sps:$4 sm:$0xff]  }
  0x4b   :  { %1513 = vmatprep.mubr.bf16.mxu1 %v4601_v46  ;;  %2402 = vmatpush1.bf16.msra.mxu0 %v4619_v47  ;;  %v4671_v45 = vld [vmem:[%s7606_s0 + $0x2c4] ss:$8 sps:$4 sm:$0xff]   ;;  %v4673_v46 = vld [vmem:[%s7606_s0 + $0xc0] ss:$8 sps:$4 sm:$0xff]  }
  0x4c   :  { %3334 = vmatpush1.bf16.msra.mxu1 %v4620_v48  ;;  %2403 = vmatprep.subr.bf16.mxu0 %v5516_v0  ;;  %v4674_v47 = vld [vmem:[%s7606_s0 + $0x2c0] ss:$8 sps:$4 sm:$0xff]   ;;  %v4677_v48 = vld [vmem:[%s7606_s0 + $0xd4] ss:$8 sps:$4 sm:$0xff]  }
  0x4d   :  { %3335 = vmatprep.subr.bf16.mxu1 %v5516_v0 }
  0x4f   :  { %2404 = vmatpush1.bf16.msra.mxu0 %v4633_v50  ;;  %v4681_v50 = vld [vmem:[%s7606_s0 + $0xd0] ss:$8 sps:$4 sm:$0xff]  }
  0x50   :  { %3336 = vmatpush1.bf16.msra.mxu1 %v4634_v51  ;;  %2405 = vmatprep.subr.bf16.mxu0 %v5516_v0  ;;  %v4773_v51 = vld [vmem:[%s7605_s1 + $0x150] sm:$0xff]  }
  0x51   :  { %583 = vmatmul.mubr.bf16.gmra.mxu0 %v4603_v49  ;;  %3337 = vmatprep.subr.bf16.mxu1 %v5516_v0  ;;  %v4679_v49 = vld [vmem:[%s7606_s0 + $0x2d4] ss:$8 sps:$4 sm:$0xff]  }
  0x52   :  { %1514 = vmatmul.mubr.bf16.gmra.mxu1 %v4604_v52  ;;  %590 = vmatprep.mubr.bf16.mxu0 %v4607_v53  ;;  %v4774_v52 = vld [vmem:[%s7605_s1 + $0x1d0] sm:$0xff]  }
  0x53   :  { %1521 = vmatprep.mubr.bf16.mxu1 %v4609_v54  ;;  %2406 = vmatpush1.bf16.msra.mxu0 %v4647_v55  ;;  %v4682_v53 = vld [vmem:[%s7606_s0 + $0x2d0] ss:$8 sps:$4 sm:$0xff]   ;;  %v4683_v54 = vld [vmem:[%s7606_s0 + $0xe4] ss:$8 sps:$4 sm:$0xff]  }
  0x54   :  { %3338 = vmatpush1.bf16.msra.mxu1 %v4648_v56  ;;  %2407 = vmatprep.subr.bf16.mxu0 %v5516_v0  ;;  %v4685_v55 = vld [vmem:[%s7606_s0 + $0x2e4] ss:$8 sps:$4 sm:$0xff]   ;;  %v4687_v56 = vld [vmem:[%s7606_s0 + $0xe0] ss:$8 sps:$4 sm:$0xff]  }
  0x55   :  { %3339 = vmatprep.subr.bf16.mxu1 %v5516_v0 }
  0x57   :  { %2408 = vmatpush1.bf16.msra.mxu0 %v4661_v57  ;;  %v4688_v57 = vld [vmem:[%s7606_s0 + $0x2e0] ss:$8 sps:$4 sm:$0xff]  }
  0x58   :  { %3340 = vmatpush1.bf16.msra.mxu1 %v4662_v58  ;;  %2409 = vmatprep.subr.bf16.mxu0 %v5516_v0  ;;  %v4691_v58 = vld [vmem:[%s7606_s0 + $0xf4] ss:$8 sps:$4 sm:$0xff]  }
  0x59   :  { %591 = vmatmul.mubr.bf16.gmra.mxu0 %v4611_v59  ;;  %3341 = vmatprep.subr.bf16.mxu1 %v5516_v0  ;;  %v4693_v59 = vld [vmem:[%s7606_s0 + $0x2f4] ss:$8 sps:$4 sm:$0xff]  }
  0x5a   :  { %1522 = vmatmul.mubr.bf16.gmra.mxu1 %v4612_v60  ;;  %598 = vmatprep.mubr.bf16.mxu0 %v4613_v61  ;;  %v4695_v60 = vld [vmem:[%s7606_s0 + $0xf0] ss:$8 sps:$4 sm:$0xff]   ;;  %v4787_v61 = vld [vmem:[%s7605_s1 + $0x148] sm:$0xff]  }
  0x5b   :  { %1529 = vmatprep.mubr.bf16.mxu1 %v4615_v62  ;;  %2410 = vmatpush1.bf16.msra.mxu0 %v4675_v63  ;;  %v4788_v62 = vld [vmem:[%s7605_s1 + $0x1c8] sm:$0xff]   ;;  %v4696_v63 = vld [vmem:[%s7606_s0 + $0x2f0] ss:$8 sps:$4 sm:$0xff]  }
  0x5c   :  { %3342 = vmatpush1.bf16.msra.mxu1 %v4676_v1  ;;  %2411 = vmatprep.subr.bf16.mxu0 %v5516_v0  ;;  %v4697_v1 = vld [vmem:[%s7606_s0 + $0x104] ss:$8 sps:$4 sm:$0xff]  }
  0x5d   :  { %3343 = vmatprep.subr.bf16.mxu1 %v5516_v0 }
  0x5f   :  { %2412 = vmatpush1.bf16.msra.mxu0 %v4689_v3  ;;  %v4701_v3 = vld [vmem:[%s7606_s0 + $0x100] ss:$8 sps:$4 sm:$0xff]  }
  0x60   :  { %3344 = vmatpush1.bf16.msra.mxu1 %v4690_v5  ;;  %2413 = vmatprep.subr.bf16.mxu0 %v5516_v0  ;;  %v4801_v5 = vld [vmem:[%s7605_s1 + $0x140] sm:$0xff]  }
  0x61   :  { %599 = vmatmul.mubr.bf16.gmra.mxu0 %v4617_v2  ;;  %3345 = vmatprep.subr.bf16.mxu1 %v5516_v0  ;;  %v4699_v2 = vld [vmem:[%s7606_s0 + $0x304] ss:$8 sps:$4 sm:$0xff]  }
  0x62   :  { %1530 = vmatmul.mubr.bf16.gmra.mxu1 %v4618_v4  ;;  %606 = vmatprep.mubr.bf16.mxu0 %v4621_v6  ;;  %v4702_v4 = vld [vmem:[%s7606_s0 + $0x300] ss:$8 sps:$4 sm:$0xff]  }
  0x63   :  { %1537 = vmatprep.mubr.bf16.mxu1 %v4623_v7  ;;  %2414 = vmatpush2.bf16.msra.mxu0 %v4703_v8  ;;  %v4802_v6 = vld [vmem:[%s7605_s1 + $0x1c0] sm:$0xff]   ;;  %v4707_v7 = vld [vmem:[%s7606_s0 + $0x314] ss:$8 sps:$4 sm:$0xff]   ;;  %v4709_v8 = vld [vmem:[%s7606_s0 + $0x110] ss:$8 sps:$4 sm:$0xff]  }
  0x64   :  { %3346 = vmatpush2.bf16.msra.mxu1 %v4704_v9  ;;  %2415 = vmatprep.subr.bf16.mxu0 %v5516_v0  ;;  %v4710_v9 = vld [vmem:[%s7606_s0 + $0x310] ss:$8 sps:$4 sm:$0xff]  }
  0x65   :  { %3347 = vmatprep.subr.bf16.mxu1 %v5516_v0 }
  0x67   :  { %2416 = vmatpush2.bf16.msra.mxu0 %v4717_v13  ;;  %v4716_v13 = vld [vmem:[%s7606_s0 + $0x320] ss:$8 sps:$4 sm:$0xff]  }
  0x68   :  { %3348 = vmatpush2.bf16.msra.mxu1 %v4718_v14  ;;  %2417 = vmatprep.subr.bf16.mxu0 %v5516_v0  ;;  %v4719_v14 = vld [vmem:[%s7606_s0 + $0x134] ss:$8 sps:$4 sm:$0xff]  }
  0x69   :  { %607 = vmatmul.mubr.bf16.gmra.mxu0 %v4625_v10  ;;  %3349 = vmatprep.subr.bf16.mxu1 %v5516_v0  ;;  %v4711_v10 = vld [vmem:[%s7606_s0 + $0x124] ss:$8 sps:$4 sm:$0xff]  }
  0x6a   :  { %1538 = vmatmul.mubr.bf16.gmra.mxu1 %v4626_v11  ;;  %614 = vmatprep.mubr.bf16.mxu0 %v4627_v12  ;;  %v4713_v11 = vld [vmem:[%s7606_s0 + $0x324] ss:$8 sps:$4 sm:$0xff]   ;;  %v4715_v12 = vld [vmem:[%s7606_s0 + $0x120] ss:$8 sps:$4 sm:$0xff]  }
  0x6b   :  { %1545 = vmatprep.mubr.bf16.mxu1 %v4629_v15  ;;  %2418 = vmatpush2.bf16.msra.mxu0 %v4731_v18  ;;  %v4721_v15 = vld [vmem:[%s7606_s0 + $0x334] ss:$8 sps:$4 sm:$0xff]   ;;  %v4725_v18 = vld [vmem:[%s7606_s0 + $0x144] ss:$8 sps:$4 sm:$0xff]  }
  0x6c   :  { %3350 = vmatpush2.bf16.msra.mxu1 %v4732_v19  ;;  %2419 = vmatprep.subr.bf16.mxu0 %v5516_v0  ;;  %v4727_v19 = vld [vmem:[%s7606_s0 + $0x344] ss:$8 sps:$4 sm:$0xff]  }
  0x6d   :  { %3351 = vmatprep.subr.bf16.mxu1 %v5516_v0 }
  0x6f   :  { %2420 = vmatpush2.bf16.msra.mxu0 %v4745_v24  ;;  %v4737_v24 = vld [vmem:[%s7606_s0 + $0x150] ss:$8 sps:$4 sm:$0xff]  }
  0x70   :  { %3352 = vmatpush2.bf16.msra.mxu1 %v4746_v25  ;;  %2421 = vmatprep.subr.bf16.mxu0 %v5516_v0  ;;  %v4738_v25 = vld [vmem:[%s7606_s0 + $0x350] ss:$8 sps:$4 sm:$0xff]  }
  0x71   :  { %615 = vmatmul.mubr.bf16.gmra.mxu0 %v4631_v16  ;;  %3353 = vmatprep.subr.bf16.mxu1 %v5516_v0  ;;  %v4723_v16 = vld [vmem:[%s7606_s0 + $0x130] ss:$8 sps:$4 sm:$0xff]  }
  0x72   :  { %1546 = vmatmul.mubr.bf16.gmra.mxu1 %v4632_v17  ;;  %622 = vmatprep.mubr.bf16.mxu0 %v4635_v20  ;;  %v4724_v17 = vld [vmem:[%s7606_s0 + $0x330] ss:$8 sps:$4 sm:$0xff]   ;;  %v4729_v20 = vld [vmem:[%s7606_s0 + $0x140] ss:$8 sps:$4 sm:$0xff]  }
  0x73   :  { %1553 = vmatprep.mubr.bf16.mxu1 %v4637_v21  ;;  %2422 = vmatpush2.bf16.msra.mxu0 %v4759_v41  ;;  %v4730_v21 = vld [vmem:[%s7606_s0 + $0x340] ss:$8 sps:$4 sm:$0xff]  }
  0x74   :  { %3354 = vmatpush2.bf16.msra.mxu1 %v4760_v42  ;;  %2423 = vmatprep.subr.bf16.mxu0 %v5516_v0 }
  0x75   :  { %3355 = vmatprep.subr.bf16.mxu1 %v5516_v0 }
  0x77   :  { %2424 = vmatpush2.bf16.msra.mxu0 %v4773_v51  ;;  %v4766_v51 = vld [vmem:[%s7606_s0 + $0x390] ss:$8 sps:$4 sm:$0xff]  }
  0x78   :  { %3356 = vmatpush2.bf16.msra.mxu1 %v4774_v52  ;;  %2425 = vmatprep.subr.bf16.mxu0 %v5516_v0  ;;  %v4767_v52 = vld [vmem:[%s7606_s0 + $0x1a4] ss:$8 sps:$4 sm:$0xff]  }
  0x79   :  { %623 = vmatmul.mubr.bf16.gmra.mxu0 %v4639_v22  ;;  %3357 = vmatprep.subr.bf16.mxu1 %v5516_v0  ;;  %v4733_v22 = vld [vmem:[%s7606_s0 + $0x154] ss:$8 sps:$4 sm:$0xff]  }
  0x7a   :  { %1554 = vmatmul.mubr.bf16.gmra.mxu1 %v4640_v23  ;;  %630 = vmatprep.mubr.bf16.mxu0 %v4641_v26  ;;  %v4735_v23 = vld [vmem:[%s7606_s0 + $0x354] ss:$8 sps:$4 sm:$0xff]   ;;  %v4739_v26 = vld [vmem:[%s7606_s0 + $0x164] ss:$8 sps:$4 sm:$0xff]  }
  0x7b   :  { %1561 = vmatprep.mubr.bf16.mxu1 %v4643_v27  ;;  %2426 = vmatpush2.bf16.msra.mxu0 %v4787_v61  ;;  %v4741_v27 = vld [vmem:[%s7606_s0 + $0x364] ss:$8 sps:$4 sm:$0xff]  }
  0x7c   :  { %3358 = vmatpush2.bf16.msra.mxu1 %v4788_v62  ;;  %2427 = vmatprep.subr.bf16.mxu0 %v5516_v0 }
  0x7d   :  { %3359 = vmatprep.subr.bf16.mxu1 %v5516_v0  ;;  %v4705_v0 = vld [vmem:[%s7606_s0 + $0x114] ss:$8 sps:$4 sm:$0xff]  }
  0x7f   :  { %2428 = vmatpush2.bf16.msra.mxu0 %v4801_v5 }
  0x80   :  { %3360 = vmatpush2.bf16.msra.mxu1 %v4802_v6 }
  0x81   :  { %631 = vmatmul.mubr.bf16.gmra.mxu0 %v4645_v28  ;;  %v4743_v28 = vld [vmem:[%s7606_s0 + $0x160] ss:$8 sps:$4 sm:$0xff]  }
  0x82   :  { %1562 = vmatmul.mubr.bf16.gmra.mxu1 %v4646_v29  ;;  %638 = vmatprep.mubr.bf16.mxu0 %v4649_v30  ;;  %v4744_v29 = vld [vmem:[%s7606_s0 + $0x360] ss:$8 sps:$4 sm:$0xff]   ;;  %v4747_v30 = vld [vmem:[%s7606_s0 + $0x174] ss:$8 sps:$4 sm:$0xff]  }
  0x83   :  { %1569 = vmatprep.mubr.bf16.mxu1 %v4651_v31  ;;  %v4749_v31 = vld [vmem:[%s7606_s0 + $0x374] ss:$8 sps:$4 sm:$0xff]  }
  0x89   :  { %639 = vmatmul.mubr.bf16.gmra.mxu0 %v4653_v32  ;;  %v4751_v32 = vld [vmem:[%s7606_s0 + $0x170] ss:$8 sps:$4 sm:$0xff]  }
  0x8a   :  { %1570 = vmatmul.mubr.bf16.gmra.mxu1 %v4654_v33  ;;  %646 = vmatprep.mubr.bf16.mxu0 %v4655_v34  ;;  %v4752_v33 = vld [vmem:[%s7606_s0 + $0x370] ss:$8 sps:$4 sm:$0xff]   ;;  %v4753_v34 = vld [vmem:[%s7606_s0 + $0x184] ss:$8 sps:$4 sm:$0xff]  }
  0x8b   :  { %1577 = vmatprep.mubr.bf16.mxu1 %v4657_v35  ;;  %v4755_v35 = vld [vmem:[%s7606_s0 + $0x384] ss:$8 sps:$4 sm:$0xff]  }
  0x91   :  { %647 = vmatmul.mubr.bf16.gmra.mxu0 %v4659_v36  ;;  %v4757_v36 = vld [vmem:[%s7606_s0 + $0x180] ss:$8 sps:$4 sm:$0xff]  }
  0x92   :  { %1578 = vmatmul.mubr.bf16.gmra.mxu1 %v4660_v37  ;;  %654 = vmatprep.mubr.bf16.mxu0 %v4663_v38  ;;  %v4758_v37 = vld [vmem:[%s7606_s0 + $0x380] ss:$8 sps:$4 sm:$0xff]   ;;  %v4761_v38 = vld [vmem:[%s7606_s0 + $0x194] ss:$8 sps:$4 sm:$0xff]  }
  0x93   :  { %1585 = vmatprep.mubr.bf16.mxu1 %v4665_v39  ;;  %v6099_v39 = vld [vmem:[%s7607_s2] ss:$0 sm:$0xff] }
  0x99   :  { %655 = vmatmul.mubr.bf16.gmra.mxu0 %v4667_v40  ;;  %v4763_v40 = vld [vmem:[%s7606_s0 + $0x394] ss:$8 sps:$4 sm:$0xff]  }
  0x9a   :  { %1586 = vmatmul.mubr.bf16.gmra.mxu1 %v4668_v43  ;;  %662 = vmatprep.mubr.bf16.mxu0 %v4669_v44 }
  0x9b   :  { %1593 = vmatprep.mubr.bf16.mxu1 %v4671_v45 }
  0xa1   :  { %663 = vmatmul.mubr.bf16.gmra.mxu0 %v4673_v46 }
  0xa2   :  { %1594 = vmatmul.mubr.bf16.gmra.mxu1 %v4674_v47  ;;  %670 = vmatprep.mubr.bf16.mxu0 %v4677_v48  ;;  %v4765_v48 = vld [vmem:[%s7606_s0 + $0x190] ss:$8 sps:$4 sm:$0xff]  }
  0xa3   :  { %1601 = vmatprep.mubr.bf16.mxu1 %v4679_v49 }
  0xa9   :  { %671 = vmatmul.mubr.bf16.gmra.mxu0 %v4681_v50 }
  0xaa   :  { %1602 = vmatmul.mubr.bf16.gmra.mxu1 %v4682_v53  ;;  %678 = vmatprep.mubr.bf16.mxu0 %v4683_v54 }
  0xab   :  { %1609 = vmatprep.mubr.bf16.mxu1 %v4685_v55  ;;  %v4769_v55 = vld [vmem:[%s7606_s0 + $0x3a4] ss:$8 sps:$4 sm:$0xff]  }
  0xb1   :  { %679 = vmatmul.mubr.bf16.gmra.mxu0 %v4687_v56 }
  0xb2   :  { %1610 = vmatmul.mubr.bf16.gmra.mxu1 %v4688_v57  ;;  %686 = vmatprep.mubr.bf16.mxu0 %v4691_v58 }
  0xb3   :  { %1617 = vmatprep.mubr.bf16.mxu1 %v4693_v59 }
  0xb9   :  { %687 = vmatmul.mubr.bf16.gmra.mxu0 %v4695_v60 }
  0xba   :  { %1618 = vmatmul.mubr.bf16.gmra.mxu1 %v4696_v63  ;;  %694 = vmatprep.mubr.bf16.mxu0 %v4697_v1  ;;  %v4771_v1 = vld [vmem:[%s7606_s0 + $0x1a0] ss:$8 sps:$4 sm:$0xff]  }
  0xbb   :  { %1625 = vmatprep.mubr.bf16.mxu1 %v4699_v2 }
  0xc1   :  { %695 = vmatmul.mubr.bf16.gmra.mxu0 %v4701_v3 }
  0xc2   :  { %1626 = vmatmul.mubr.bf16.gmra.mxu1 %v4702_v4  ;;  %702 = vmatprep.mubr.bf16.mxu0 %v4705_v0  ;;  %v4772_v4 = vld [vmem:[%s7606_s0 + $0x3a0] ss:$8 sps:$4 sm:$0xff]   ;;  %v4775_v0 = vld [vmem:[%s7606_s0 + $0x1b4] ss:$8 sps:$4 sm:$0xff]  }
  0xc3   :  { %1633 = vmatprep.mubr.bf16.mxu1 %v4707_v7  ;;  %v4777_v7 = vld [vmem:[%s7606_s0 + $0x3b4] ss:$8 sps:$4 sm:$0xff]  }
  0xc9   :  { %703 = vmatmul.mubr.bf16.gmra.mxu0 %v4709_v8 }
  0xca   :  { %1634 = vmatmul.mubr.bf16.gmra.mxu1 %v4710_v9  ;;  %710 = vmatprep.mubr.bf16.mxu0 %v4711_v10 }
  0xcb   :  { %1641 = vmatprep.mubr.bf16.mxu1 %v4713_v11 }
  0xd1   :  { %711 = vmatmul.mubr.bf16.gmra.mxu0 %v4715_v12 }
  0xd2   :  { %1642 = vmatmul.mubr.bf16.gmra.mxu1 %v4716_v13  ;;  %718 = vmatprep.mubr.bf16.mxu0 %v4719_v14 }
  0xd3   :  { %1649 = vmatprep.mubr.bf16.mxu1 %v4721_v15 }
  0xd9   :  { %719 = vmatmul.mubr.bf16.gmra.mxu0 %v4723_v16 }
  0xda   :  { %1650 = vmatmul.mubr.bf16.gmra.mxu1 %v4724_v17  ;;  %726 = vmatprep.mubr.bf16.mxu0 %v4725_v18 }
  0xdb   :  { %1657 = vmatprep.mubr.bf16.mxu1 %v4727_v19  ;;  %v4779_v19 = vld [vmem:[%s7606_s0 + $0x1b0] ss:$8 sps:$4 sm:$0xff]  }
  0xe1   :  { %727 = vmatmul.mubr.bf16.gmra.mxu0 %v4729_v20 }
  0xe2   :  { %1658 = vmatmul.mubr.bf16.gmra.mxu1 %v4730_v21  ;;  %734 = vmatprep.mubr.bf16.mxu0 %v4733_v22 }
  0xe3   :  { %1665 = vmatprep.mubr.bf16.mxu1 %v4735_v23  ;;  %v4780_v23 = vld [vmem:[%s7606_s0 + $0x3b0] ss:$8 sps:$4 sm:$0xff]  }
  0xe9   :  { %735 = vmatmul.mubr.bf16.gmra.mxu0 %v4737_v24  ;;  %v4783_v24 = vld [vmem:[%s7606_s0 + $0x1c4] ss:$8 sps:$4 sm:$0xff]  }
  0xea   :  { %1666 = vmatmul.mubr.bf16.gmra.mxu1 %v4738_v25  ;;  %742 = vmatprep.mubr.bf16.mxu0 %v4739_v26 }
  0xeb   :  { %1673 = vmatprep.mubr.bf16.mxu1 %v4741_v27  ;;  %v4786_v27 = vld [vmem:[%s7606_s0 + $0x3c4] ss:$8 sps:$4 sm:$0xff]  }
  0xf1   :  { %743 = vmatmul.mubr.bf16.gmra.mxu0 %v4743_v28 }
  0xf2   :  { %1674 = vmatmul.mubr.bf16.gmra.mxu1 %v4744_v29  ;;  %750 = vmatprep.mubr.bf16.mxu0 %v4747_v30 }
  0xf3   :  { %1681 = vmatprep.mubr.bf16.mxu1 %v4749_v31 }
  0xf9   :  { %751 = vmatmul.mubr.bf16.gmra.mxu0 %v4751_v32 }
  0xfa   :  { %1682 = vmatmul.mubr.bf16.gmra.mxu1 %v4752_v33  ;;  %758 = vmatprep.mubr.bf16.mxu0 %v4753_v34 }
  0xfb   :  { %1689 = vmatprep.mubr.bf16.mxu1 %v4755_v35 }
 0x101   :  { %v568_v41 = vpop.f32.mrf.mxu0  ;;  %759 = vmatmul.mubr.bf16.gmra.mxu0 %v4757_v36 }
 0x102   :  { %v569_v42 = vadd.f32 %v6099_v39, %v568_v41  ;;  %v1499_v43 = vpop.f32.mrf.mxu1  ;;  %1690 = vmatmul.mubr.bf16.gmra.mxu1 %v4758_v37  ;;  %766 = vmatprep.mubr.bf16.mxu0 %v4761_v38 }
 0x103   :  { %v1500_v44 = vadd.f32 %v6099_v39, %v1499_v43  ;;  %v570_v45 = vpop.f32.mrf.mxu0  ;;  %1697 = vmatprep.mubr.bf16.mxu1 %v4763_v40  ;;  %v4781_v40 = vld [vmem:[%s7606_s0 + $0x1c0] ss:$8 sps:$4 sm:$0xff]  }
 0x104   :  { %5001 = vtanh.f32 %v569_v42  ;;  %v1501_v46 = vpop.f32.mrf.mxu1  ;;  %v4791_v45 = vld [vmem:[%s7606_s0 + $0x1d4] ss:$8 sps:$4 sm:$0xff]  }
 0x105   :  { %5003 = vtanh.f32 %v1500_v44  ;;  %v571_v47 = vpop.f32.mrf.mxu0  ;;  %v4784_v44 = vld [vmem:[%s7606_s0 + $0x3c0] ss:$8 sps:$4 sm:$0xff]  }
 0x106   :  { %v572_v49 = vadd.f32 %v6099_v39, %v571_v47  ;;  %v1502_v50 = vpop.f32.mrf.mxu1 }
 0x107   :  { %v1503_v53 = vadd.f32 %v6099_v39, %v1502_v50  ;;  %v573_v54 = vpop.f32.mrf.mxu0 }
 0x108   :  { %5005 = vtanh.f32 %v572_v49  ;;  %v1504_v56 = vpop.f32.mrf.mxu1 }
 0x109   :  { %5007 = vtanh.f32 %v1503_v53  ;;  %v576_v57 = vpop.f32.mrf.mxu0  ;;  %767 = vmatmul.mubr.bf16.gmra.mxu0 %v4765_v48  ;;  %v4794_v48 = vld [vmem:[%s7606_s0 + $0x3d4] ss:$8 sps:$4 sm:$0xff]  }
 0x10a   :  { %v577_v58 = vadd.f32 %v6099_v39, %v576_v57  ;;  %v1507_v59 = vpop.f32.mrf.mxu1  ;;  %1698 = vmatmul.mubr.bf16.gmra.mxu1 %v4766_v51  ;;  %774 = vmatprep.mubr.bf16.mxu0 %v4767_v52 }
 0x10b   :  { %v1508_v60 = vadd.f32 %v6099_v39, %v1507_v59  ;;  %v578_v61 = vpop.f32.mrf.mxu0  ;;  %1705 = vmatprep.mubr.bf16.mxu1 %v4769_v55 }
 0x10c   :  { %5009 = vtanh.f32 %v577_v58  ;;  %v1509_v62 = vpop.f32.mrf.mxu1 }
 0x10d   :  { %5011 = vtanh.f32 %v1508_v60  ;;  %v579_v63 = vpop.f32.mrf.mxu0  ;;  %v4789_v60 = vld [vmem:[%s7606_s0 + $0x1d0] ss:$8 sps:$4 sm:$0xff]  }
 0x10e   :  { %v580_v2 = vadd.f32 %v6099_v39, %v579_v63  ;;  %v1510_v3 = vpop.f32.mrf.mxu1 }
 0x10f   :  { %v1511_v5 = vadd.f32 %v6099_v39, %v1510_v3  ;;  %v581_v6 = vpop.f32.mrf.mxu0 }
 0x110   :  { %5013 = vtanh.f32 %v580_v2  ;;  %v1512_v8 = vpop.f32.mrf.mxu1  ;;  %v4797_v2 = vld [vmem:[%s7606_s0 + $0x1e4] ss:$8 sps:$4 sm:$0xff]  }
 0x111   :  { %v5002_v9 = vpop.eup %5001  ;;  %5015 = vtanh.f32 %v1511_v5  ;;  %v584_v10 = vpop.f32.mrf.mxu0  ;;  %775 = vmatmul.mubr.bf16.gmra.mxu0 %v4771_v1  ;;  %v4792_v1 = vld [vmem:[%s7606_s0 + $0x3d0] ss:$8 sps:$4 sm:$0xff]  }
 0x112   :  { %v5004_v11 = vpop.eup %5003  ;;  %887 = vst [vmem:[%s7608_s3] sm:$0xff] %v5002_v9  ;;  %v585_v12 = vadd.f32 %v6099_v39, %v584_v10  ;;  %v1515_v13 = vpop.f32.mrf.mxu1  ;;  %1706 = vmatmul.mubr.bf16.gmra.mxu1 %v4772_v4  ;;  %782 = vmatprep.mubr.bf16.mxu0 %v4775_v0  ;;  %v4800_v0 = vld [vmem:[%s7606_s0 + $0x3e4] ss:$8 sps:$4 sm:$0xff]  }
 0x113   :  { %4008 = vst [vmem:[%s7608_s3 + $0x200] sm:$0xff] %v5004_v11  ;;  %v1516_v14 = vadd.f32 %v6099_v39, %v1515_v13  ;;  %v586_v15 = vpop.f32.mrf.mxu0  ;;  %1713 = vmatprep.mubr.bf16.mxu1 %v4777_v7 }
 0x114   :  { %5017 = vtanh.f32 %v585_v12  ;;  %v1517_v16 = vpop.f32.mrf.mxu1 }
 0x115   :  { %v5006_v17 = vpop.eup %5005  ;;  %5019 = vtanh.f32 %v1516_v14  ;;  %v587_v18 = vpop.f32.mrf.mxu0  ;;  %v4795_v16 = vld [vmem:[%s7606_s0 + $0x1e0] ss:$8 sps:$4 sm:$0xff]  }
 0x116   :  { %v5008_v20 = vpop.eup %5007  ;;  %888 = vst [vmem:[%s7608_s3 + $0x8] sm:$0xff] %v5006_v17  ;;  %v588_v21 = vadd.f32 %v6099_v39, %v587_v18  ;;  %v1518_v22 = vpop.f32.mrf.mxu1 }
 0x117   :  { %4009 = vst [vmem:[%s7608_s3 + $0x208] sm:$0xff] %v5008_v20  ;;  %v1519_v25 = vadd.f32 %v6099_v39, %v1518_v22  ;;  %v589_v26 = vpop.f32.mrf.mxu0  ;;  %v4798_v20 = vld [vmem:[%s7606_s0 + $0x3e0] ss:$8 sps:$4 sm:$0xff]  }
 0x118   :  { %5021 = vtanh.f32 %v588_v21  ;;  %v1520_v28 = vpop.f32.mrf.mxu1  ;;  %v4805_v21 = vld [vmem:[%s7606_s0 + $0x1f4] ss:$8 sps:$4 sm:$0xff]  }
 0x119   :  { %v5010_v29 = vpop.eup %5009  ;;  %5023 = vtanh.f32 %v1519_v25  ;;  %v592_v30 = vpop.f32.mrf.mxu0  ;;  %783 = vmatmul.mubr.bf16.gmra.mxu0 %v4779_v19 }
 0x11a   :  { %v5012_v31 = vpop.eup %5011  ;;  %889 = vst [vmem:[%s7608_s3 + $0x10] sm:$0xff] %v5010_v29  ;;  %v593_v32 = vadd.f32 %v6099_v39, %v592_v30  ;;  %v1523_v33 = vpop.f32.mrf.mxu1  ;;  %1714 = vmatmul.mubr.bf16.gmra.mxu1 %v4780_v23  ;;  %790 = vmatprep.mubr.bf16.mxu0 %v4783_v24  ;;  %v4808_v24 = vld [vmem:[%s7606_s0 + $0x3f4] ss:$8 sps:$4 sm:$0xff]  }
 0x11b   :  { %4010 = vst [vmem:[%s7608_s3 + $0x210] sm:$0xff] %v5012_v31  ;;  %v1524_v34 = vadd.f32 %v6099_v39, %v1523_v33  ;;  %v594_v35 = vpop.f32.mrf.mxu0  ;;  %1721 = vmatprep.mubr.bf16.mxu1 %v4786_v27 }
 0x11c   :  { %5025 = vtanh.f32 %v593_v32  ;;  %v1525_v36 = vpop.f32.mrf.mxu1 }
 0x11d   :  { %v5014_v37 = vpop.eup %5013  ;;  %5027 = vtanh.f32 %v1524_v34  ;;  %v595_v38 = vpop.f32.mrf.mxu0  ;;  %v4803_v36 = vld [vmem:[%s7606_s0 + $0x1f0] ss:$8 sps:$4 sm:$0xff]  }
 0x11e   :  { %v5016_v41 = vpop.eup %5015  ;;  %890 = vst [vmem:[%s7608_s3 + $0x18] sm:$0xff] %v5014_v37  ;;  %v596_v42 = vadd.f32 %v6099_v39, %v595_v38  ;;  %v1526_v43 = vpop.f32.mrf.mxu1 }
 0x11f   :  { %4011 = vst [vmem:[%s7608_s3 + $0x218] sm:$0xff] %v5016_v41  ;;  %v1527_v46 = vadd.f32 %v6099_v39, %v1526_v43  ;;  %v597_v47 = vpop.f32.mrf.mxu0  ;;  %v4806_v41 = vld [vmem:[%s7606_s0 + $0x3f0] ss:$8 sps:$4 sm:$0xff]  }
 0x120   :  { %5029 = vtanh.f32 %v596_v42  ;;  %v1528_v49 = vpop.f32.mrf.mxu1  ;;  %v4811_v42 = vld [vmem:[%s7606_s0 + $0x404] ss:$8 sps:$4 sm:$0xff]  }
 0x121   :  { %v5018_v50 = vpop.eup %5017  ;;  %5031 = vtanh.f32 %v1527_v46  ;;  %v600_v51 = vpop.f32.mrf.mxu0  ;;  %791 = vmatmul.mubr.bf16.gmra.mxu0 %v4781_v40 }
 0x122   :  { %v5020_v52 = vpop.eup %5019  ;;  %891 = vst [vmem:[%s7608_s3 + $0x20] sm:$0xff] %v5018_v50  ;;  %v601_v53 = vadd.f32 %v6099_v39, %v600_v51  ;;  %v1531_v54 = vpop.f32.mrf.mxu1  ;;  %1722 = vmatmul.mubr.bf16.gmra.mxu1 %v4784_v44  ;;  %798 = vmatprep.mubr.bf16.mxu0 %v4791_v45  ;;  %v4814_v45 = vld [vmem:[%s7606_s0 + $0x604] ss:$8 sps:$4 sm:$0xff]  }
 0x123   :  { %4012 = vst [vmem:[%s7608_s3 + $0x220] sm:$0xff] %v5020_v52  ;;  %v1532_v55 = vadd.f32 %v6099_v39, %v1531_v54  ;;  %v602_v56 = vpop.f32.mrf.mxu0  ;;  %1729 = vmatprep.mubr.bf16.mxu1 %v4794_v48 }
 0x124   :  { %5033 = vtanh.f32 %v601_v53  ;;  %v1533_v57 = vpop.f32.mrf.mxu1 }
 0x125   :  { %v5022_v58 = vpop.eup %5021  ;;  %5035 = vtanh.f32 %v1532_v55  ;;  %v603_v59 = vpop.f32.mrf.mxu0  ;;  %v4809_v57 = vld [vmem:[%s7606_s0 + $0x400] ss:$8 sps:$4 sm:$0xff]  }
 0x126   :  { %v5024_v61 = vpop.eup %5023  ;;  %892 = vst [vmem:[%s7608_s3 + $0x28] sm:$0xff] %v5022_v58  ;;  %v604_v62 = vadd.f32 %v6099_v39, %v603_v59  ;;  %v1534_v63 = vpop.f32.mrf.mxu1 }
 0x127   :  { %4013 = vst [vmem:[%s7608_s3 + $0x228] sm:$0xff] %v5024_v61  ;;  %v1535_v3 = vadd.f32 %v6099_v39, %v1534_v63  ;;  %v605_v4 = vpop.f32.mrf.mxu0  ;;  %v4812_v61 = vld [vmem:[%s7606_s0 + $0x600] ss:$8 sps:$4 sm:$0xff]  }
 0x128   :  { %5037 = vtanh.f32 %v604_v62  ;;  %v1536_v5 = vpop.f32.mrf.mxu1  ;;  %v4817_v62 = vld [vmem:[%s7606_s0 + $0x414] ss:$8 sps:$4 sm:$0xff]  }
 0x129   :  { %v5026_v6 = vpop.eup %5025  ;;  %5039 = vtanh.f32 %v1535_v3  ;;  %v608_v7 = vpop.f32.mrf.mxu0  ;;  %799 = vmatmul.mubr.bf16.gmra.mxu0 %v4789_v60 }
 0x12a   :  { %v5028_v8 = vpop.eup %5027  ;;  %893 = vst [vmem:[%s7608_s3 + $0x30] sm:$0xff] %v5026_v6  ;;  %v609_v9 = vadd.f32 %v6099_v39, %v608_v7  ;;  %v1539_v10 = vpop.f32.mrf.mxu1  ;;  %1730 = vmatmul.mubr.bf16.gmra.mxu1 %v4792_v1  ;;  %806 = vmatprep.mubr.bf16.mxu0 %v4797_v2  ;;  %v4820_v2 = vld [vmem:[%s7606_s0 + $0x614] ss:$8 sps:$4 sm:$0xff]  }
 0x12b   :  { %4014 = vst [vmem:[%s7608_s3 + $0x230] sm:$0xff] %v5028_v8  ;;  %v1540_v11 = vadd.f32 %v6099_v39, %v1539_v10  ;;  %v610_v12 = vpop.f32.mrf.mxu0  ;;  %1737 = vmatprep.mubr.bf16.mxu1 %v4800_v0 }
 0x12c   :  { %5041 = vtanh.f32 %v609_v9  ;;  %v1541_v13 = vpop.f32.mrf.mxu1 }
 0x12d   :  { %v5030_v14 = vpop.eup %5029  ;;  %5043 = vtanh.f32 %v1540_v11  ;;  %v611_v15 = vpop.f32.mrf.mxu0  ;;  %v4815_v13 = vld [vmem:[%s7606_s0 + $0x410] ss:$8 sps:$4 sm:$0xff]  }
 0x12e   :  { %v5032_v17 = vpop.eup %5031  ;;  %894 = vst [vmem:[%s7608_s3 + $0x38] sm:$0xff] %v5030_v14  ;;  %v612_v18 = vadd.f32 %v6099_v39, %v611_v15  ;;  %v1542_v19 = vpop.f32.mrf.mxu1 }
 0x12f   :  { %4015 = vst [vmem:[%s7608_s3 + $0x238] sm:$0xff] %v5032_v17  ;;  %v1543_v22 = vadd.f32 %v6099_v39, %v1542_v19  ;;  %v613_v23 = vpop.f32.mrf.mxu0  ;;  %v4818_v17 = vld [vmem:[%s7606_s0 + $0x610] ss:$8 sps:$4 sm:$0xff]  }
 0x130   :  { %5045 = vtanh.f32 %v612_v18  ;;  %v1544_v25 = vpop.f32.mrf.mxu1  ;;  %v4823_v18 = vld [vmem:[%s7606_s0 + $0x424] ss:$8 sps:$4 sm:$0xff]  }
 0x131   :  { %v5034_v26 = vpop.eup %5033  ;;  %5047 = vtanh.f32 %v1543_v22  ;;  %v616_v27 = vpop.f32.mrf.mxu0  ;;  %807 = vmatmul.mubr.bf16.gmra.mxu0 %v4795_v16 }
 0x132   :  { %v5036_v28 = vpop.eup %5035  ;;  %895 = vst [vmem:[%s7608_s3 + $0x40] sm:$0xff] %v5034_v26  ;;  %v617_v29 = vadd.f32 %v6099_v39, %v616_v27  ;;  %v1547_v30 = vpop.f32.mrf.mxu1  ;;  %1738 = vmatmul.mubr.bf16.gmra.mxu1 %v4798_v20  ;;  %814 = vmatprep.mubr.bf16.mxu0 %v4805_v21  ;;  %v4826_v21 = vld [vmem:[%s7606_s0 + $0x624] ss:$8 sps:$4 sm:$0xff]  }
 0x133   :  { %4016 = vst [vmem:[%s7608_s3 + $0x240] sm:$0xff] %v5036_v28  ;;  %v1548_v31 = vadd.f32 %v6099_v39, %v1547_v30  ;;  %v618_v32 = vpop.f32.mrf.mxu0  ;;  %1745 = vmatprep.mubr.bf16.mxu1 %v4808_v24 }
 0x134   :  { %5049 = vtanh.f32 %v617_v29  ;;  %v1549_v33 = vpop.f32.mrf.mxu1 }
 0x135   :  { %v5038_v34 = vpop.eup %5037  ;;  %5051 = vtanh.f32 %v1548_v31  ;;  %v619_v35 = vpop.f32.mrf.mxu0  ;;  %v4821_v33 = vld [vmem:[%s7606_s0 + $0x420] ss:$8 sps:$4 sm:$0xff]  }
 0x136   :  { %v5040_v37 = vpop.eup %5039  ;;  %896 = vst [vmem:[%s7608_s3 + $0x48] sm:$0xff] %v5038_v34  ;;  %v620_v38 = vadd.f32 %v6099_v39, %v619_v35  ;;  %v1550_v40 = vpop.f32.mrf.mxu1 }
 0x137   :  { %4017 = vst [vmem:[%s7608_s3 + $0x248] sm:$0xff] %v5040_v37  ;;  %v1551_v43 = vadd.f32 %v6099_v39, %v1550_v40  ;;  %v621_v44 = vpop.f32.mrf.mxu0  ;;  %v4824_v37 = vld [vmem:[%s7606_s0 + $0x620] ss:$8 sps:$4 sm:$0xff]  }
 0x138   :  { %5053 = vtanh.f32 %v620_v38  ;;  %v1552_v46 = vpop.f32.mrf.mxu1  ;;  %v4829_v38 = vld [vmem:[%s7606_s0 + $0x434] ss:$8 sps:$4 sm:$0xff]  }
 0x139   :  { %v5042_v47 = vpop.eup %5041  ;;  %5055 = vtanh.f32 %v1551_v43  ;;  %v624_v48 = vpop.f32.mrf.mxu0  ;;  %815 = vmatmul.mubr.bf16.gmra.mxu0 %v4803_v36 }
 0x13a   :  { %v5044_v49 = vpop.eup %5043  ;;  %897 = vst [vmem:[%s7608_s3 + $0x50] sm:$0xff] %v5042_v47  ;;  %v625_v50 = vadd.f32 %v6099_v39, %v624_v48  ;;  %v1555_v51 = vpop.f32.mrf.mxu1  ;;  %1746 = vmatmul.mubr.bf16.gmra.mxu1 %v4806_v41  ;;  %2429 = vmatprep.mubr.bf16.mxu0 %v4811_v42  ;;  %v4832_v42 = vld [vmem:[%s7606_s0 + $0x634] ss:$8 sps:$4 sm:$0xff]  }
 0x13b   :  { %4018 = vst [vmem:[%s7608_s3 + $0x250] sm:$0xff] %v5044_v49  ;;  %v1556_v52 = vadd.f32 %v6099_v39, %v1555_v51  ;;  %v626_v53 = vpop.f32.mrf.mxu0  ;;  %3361 = vmatprep.mubr.bf16.mxu1 %v4814_v45 }
 0x13c   :  { %5057 = vtanh.f32 %v625_v50  ;;  %v1557_v54 = vpop.f32.mrf.mxu1 }
 0x13d   :  { %v5046_v55 = vpop.eup %5045  ;;  %5059 = vtanh.f32 %v1556_v52  ;;  %v627_v56 = vpop.f32.mrf.mxu0  ;;  %v4827_v54 = vld [vmem:[%s7606_s0 + $0x430] ss:$8 sps:$4 sm:$0xff]  }
 0x13e   :  { %v5048_v58 = vpop.eup %5047  ;;  %898 = vst [vmem:[%s7608_s3 + $0x58] sm:$0xff] %v5046_v55  ;;  %v628_v59 = vadd.f32 %v6099_v39, %v627_v56  ;;  %v1558_v60 = vpop.f32.mrf.mxu1 }
 0x13f   :  { %4019 = vst [vmem:[%s7608_s3 + $0x258] sm:$0xff] %v5048_v58  ;;  %v1559_v63 = vadd.f32 %v6099_v39, %v1558_v60  ;;  %v629_v1 = vpop.f32.mrf.mxu0  ;;  %v4830_v58 = vld [vmem:[%s7606_s0 + $0x630] ss:$8 sps:$4 sm:$0xff]  }
 0x140   :  { %5061 = vtanh.f32 %v628_v59  ;;  %v1560_v3 = vpop.f32.mrf.mxu1  ;;  %v4835_v59 = vld [vmem:[%s7606_s0 + $0x444] ss:$8 sps:$4 sm:$0xff]  }
 0x141   :  { %v5050_v4 = vpop.eup %5049  ;;  %5063 = vtanh.f32 %v1559_v63  ;;  %v632_v0 = vpop.f32.mrf.mxu0  ;;  %2430 = vmatmul.mubr.bf16.vlgmr.msra.gmra.mxu0 %v4809_v57 }
 0x142   :  { %v5052_v5 = vpop.eup %5051  ;;  %899 = vst [vmem:[%s7608_s3 + $0x60] sm:$0xff] %v5050_v4  ;;  %v633_v6 = vadd.f32 %v6099_v39, %v632_v0  ;;  %v1563_v7 = vpop.f32.mrf.mxu1  ;;  %3362 = vmatmul.mubr.bf16.vlgmr.msra.gmra.mxu1 %v4812_v61  ;;  %2437 = vmatprep.mubr.bf16.mxu0 %v4817_v62  ;;  %v4838_v62 = vld [vmem:[%s7606_s0 + $0x644] ss:$8 sps:$4 sm:$0xff]  }
 0x143   :  { %4020 = vst [vmem:[%s7608_s3 + $0x260] sm:$0xff] %v5052_v5  ;;  %v1564_v8 = vadd.f32 %v6099_v39, %v1563_v7  ;;  %v634_v9 = vpop.f32.mrf.mxu0  ;;  %3369 = vmatprep.mubr.bf16.mxu1 %v4820_v2 }
 0x144   :  { %5065 = vtanh.f32 %v633_v6  ;;  %v1565_v10 = vpop.f32.mrf.mxu1 }
 0x145   :  { %v5054_v11 = vpop.eup %5053  ;;  %5067 = vtanh.f32 %v1564_v8  ;;  %v635_v12 = vpop.f32.mrf.mxu0  ;;  %v4833_v10 = vld [vmem:[%s7606_s0 + $0x440] ss:$8 sps:$4 sm:$0xff]  }
 0x146   :  { %v5056_v14 = vpop.eup %5055  ;;  %900 = vst [vmem:[%s7608_s3 + $0x68] sm:$0xff] %v5054_v11  ;;  %v636_v15 = vadd.f32 %v6099_v39, %v635_v12  ;;  %v1566_v16 = vpop.f32.mrf.mxu1 }
 0x147   :  { %4021 = vst [vmem:[%s7608_s3 + $0x268] sm:$0xff] %v5056_v14  ;;  %v1567_v19 = vadd.f32 %v6099_v39, %v1566_v16  ;;  %v637_v20 = vpop.f32.mrf.mxu0  ;;  %v4836_v14 = vld [vmem:[%s7606_s0 + $0x640] ss:$8 sps:$4 sm:$0xff]  }
 0x148   :  { %5069 = vtanh.f32 %v636_v15  ;;  %v1568_v22 = vpop.f32.mrf.mxu1  ;;  %v4841_v15 = vld [vmem:[%s7606_s0 + $0x454] ss:$8 sps:$4 sm:$0xff]  }
 0x149   :  { %v5058_v23 = vpop.eup %5057  ;;  %5071 = vtanh.f32 %v1567_v19  ;;  %v640_v24 = vpop.f32.mrf.mxu0  ;;  %2438 = vmatmul.mubr.bf16.gmra.mxu0 %v4815_v13 }
 0x14a   :  { %v5060_v25 = vpop.eup %5059  ;;  %901 = vst [vmem:[%s7608_s3 + $0x70] sm:$0xff] %v5058_v23  ;;  %v641_v26 = vadd.f32 %v6099_v39, %v640_v24  ;;  %v1571_v27 = vpop.f32.mrf.mxu1  ;;  %3370 = vmatmul.mubr.bf16.gmra.mxu1 %v4818_v17  ;;  %2445 = vmatprep.mubr.bf16.mxu0 %v4823_v18  ;;  %v4844_v18 = vld [vmem:[%s7606_s0 + $0x654] ss:$8 sps:$4 sm:$0xff]  }
 0x14b   :  { %4022 = vst [vmem:[%s7608_s3 + $0x270] sm:$0xff] %v5060_v25  ;;  %v1572_v28 = vadd.f32 %v6099_v39, %v1571_v27  ;;  %v642_v29 = vpop.f32.mrf.mxu0  ;;  %3377 = vmatprep.mubr.bf16.mxu1 %v4826_v21 }
 0x14c   :  { %5073 = vtanh.f32 %v641_v26  ;;  %v1573_v30 = vpop.f32.mrf.mxu1 }
 0x14d   :  { %v5062_v31 = vpop.eup %5061  ;;  %5075 = vtanh.f32 %v1572_v28  ;;  %v643_v32 = vpop.f32.mrf.mxu0  ;;  %v4839_v30 = vld [vmem:[%s7606_s0 + $0x450] ss:$8 sps:$4 sm:$0xff]  }
 0x14e   :  { %v5064_v34 = vpop.eup %5063  ;;  %902 = vst [vmem:[%s7608_s3 + $0x78] sm:$0xff] %v5062_v31  ;;  %v644_v35 = vadd.f32 %v6099_v39, %v643_v32  ;;  %v1574_v36 = vpop.f32.mrf.mxu1 }
 0x14f   :  { %4023 = vst [vmem:[%s7608_s3 + $0x278] sm:$0xff] %v5064_v34  ;;  %v1575_v40 = vadd.f32 %v6099_v39, %v1574_v36  ;;  %v645_v41 = vpop.f32.mrf.mxu0  ;;  %v4842_v34 = vld [vmem:[%s7606_s0 + $0x650] ss:$8 sps:$4 sm:$0xff]  }
 0x150   :  { %5077 = vtanh.f32 %v644_v35  ;;  %v1576_v43 = vpop.f32.mrf.mxu1  ;;  %v4847_v35 = vld [vmem:[%s7606_s0 + $0x464] ss:$8 sps:$4 sm:$0xff]  }
 0x151   :  { %v5066_v44 = vpop.eup %5065  ;;  %5079 = vtanh.f32 %v1575_v40  ;;  %v648_v45 = vpop.f32.mrf.mxu0  ;;  %2446 = vmatmul.mubr.bf16.gmra.mxu0 %v4821_v33 }
 0x152   :  { %v5068_v46 = vpop.eup %5067  ;;  %903 = vst [vmem:[%s7608_s3 + $0x80] sm:$0xff] %v5066_v44  ;;  %v649_v47 = vadd.f32 %v6099_v39, %v648_v45  ;;  %v1579_v48 = vpop.f32.mrf.mxu1  ;;  %3378 = vmatmul.mubr.bf16.gmra.mxu1 %v4824_v37  ;;  %2453 = vmatprep.mubr.bf16.mxu0 %v4829_v38  ;;  %v4850_v38 = vld [vmem:[%s7606_s0 + $0x664] ss:$8 sps:$4 sm:$0xff]  }
 0x153   :  { %4024 = vst [vmem:[%s7608_s3 + $0x280] sm:$0xff] %v5068_v46  ;;  %v1580_v49 = vadd.f32 %v6099_v39, %v1579_v48  ;;  %v650_v50 = vpop.f32.mrf.mxu0  ;;  %3385 = vmatprep.mubr.bf16.mxu1 %v4832_v42 }
 0x154   :  { %5081 = vtanh.f32 %v649_v47  ;;  %v1581_v51 = vpop.f32.mrf.mxu1 }
 0x155   :  { %v5070_v52 = vpop.eup %5069  ;;  %5083 = vtanh.f32 %v1580_v49  ;;  %v651_v53 = vpop.f32.mrf.mxu0  ;;  %v4845_v51 = vld [vmem:[%s7606_s0 + $0x460] ss:$8 sps:$4 sm:$0xff]  }
 0x156   :  { %v5072_v55 = vpop.eup %5071  ;;  %904 = vst [vmem:[%s7608_s3 + $0x88] sm:$0xff] %v5070_v52  ;;  %v652_v56 = vadd.f32 %v6099_v39, %v651_v53  ;;  %v1582_v57 = vpop.f32.mrf.mxu1 }
 0x157   :  { %4025 = vst [vmem:[%s7608_s3 + $0x288] sm:$0xff] %v5072_v55  ;;  %v1583_v60 = vadd.f32 %v6099_v39, %v1582_v57  ;;  %v653_v61 = vpop.f32.mrf.mxu0  ;;  %v4848_v55 = vld [vmem:[%s7606_s0 + $0x660] ss:$8 sps:$4 sm:$0xff]  }
 0x158   :  { %5085 = vtanh.f32 %v652_v56  ;;  %v1584_v63 = vpop.f32.mrf.mxu1  ;;  %v4853_v56 = vld [vmem:[%s7606_s0 + $0x474] ss:$8 sps:$4 sm:$0xff]  }
 0x159   :  { %v5074_v1 = vpop.eup %5073  ;;  %5087 = vtanh.f32 %v1583_v60  ;;  %v656_v2 = vpop.f32.mrf.mxu0  ;;  %2454 = vmatmul.mubr.bf16.gmra.mxu0 %v4827_v54 }
 0x15a   :  { %v5076_v3 = vpop.eup %5075  ;;  %905 = vst [vmem:[%s7608_s3 + $0x90] sm:$0xff] %v5074_v1  ;;  %v657_v4 = vadd.f32 %v6099_v39, %v656_v2  ;;  %v1587_v0 = vpop.f32.mrf.mxu1  ;;  %3386 = vmatmul.mubr.bf16.gmra.mxu1 %v4830_v58  ;;  %2461 = vmatprep.mubr.bf16.mxu0 %v4835_v59  ;;  %v4856_v59 = vld [vmem:[%s7606_s0 + $0x674] ss:$8 sps:$4 sm:$0xff]  }
 0x15b   :  { %4026 = vst [vmem:[%s7608_s3 + $0x290] sm:$0xff] %v5076_v3  ;;  %v1588_v5 = vadd.f32 %v6099_v39, %v1587_v0  ;;  %v658_v6 = vpop.f32.mrf.mxu0  ;;  %3393 = vmatprep.mubr.bf16.mxu1 %v4838_v62 }
 0x15c   :  { %5089 = vtanh.f32 %v657_v4  ;;  %v1589_v7 = vpop.f32.mrf.mxu1 }
 0x15d   :  { %v5078_v8 = vpop.eup %5077  ;;  %5091 = vtanh.f32 %v1588_v5  ;;  %v659_v9 = vpop.f32.mrf.mxu0  ;;  %v4851_v7 = vld [vmem:[%s7606_s0 + $0x470] ss:$8 sps:$4 sm:$0xff]  }
 0x15e   :  { %v5080_v11 = vpop.eup %5079  ;;  %906 = vst [vmem:[%s7608_s3 + $0x98] sm:$0xff] %v5078_v8  ;;  %v660_v12 = vadd.f32 %v6099_v39, %v659_v9  ;;  %v1590_v13 = vpop.f32.mrf.mxu1 }
 0x15f   :  { %4027 = vst [vmem:[%s7608_s3 + $0x298] sm:$0xff] %v5080_v11  ;;  %v1591_v16 = vadd.f32 %v6099_v39, %v1590_v13  ;;  %v661_v17 = vpop.f32.mrf.mxu0  ;;  %v4854_v11 = vld [vmem:[%s7606_s0 + $0x670] ss:$8 sps:$4 sm:$0xff]  }
 0x160   :  { %5093 = vtanh.f32 %v660_v12  ;;  %v1592_v19 = vpop.f32.mrf.mxu1  ;;  %v4859_v12 = vld [vmem:[%s7606_s0 + $0x484] ss:$8 sps:$4 sm:$0xff]  }
 0x161   :  { %v5082_v20 = vpop.eup %5081  ;;  %5095 = vtanh.f32 %v1591_v16  ;;  %v664_v21 = vpop.f32.mrf.mxu0  ;;  %2462 = vmatmul.mubr.bf16.gmra.mxu0 %v4833_v10 }
 0x162   :  { %v5084_v22 = vpop.eup %5083  ;;  %907 = vst [vmem:[%s7608_s3 + $0xa0] sm:$0xff] %v5082_v20  ;;  %v665_v23 = vadd.f32 %v6099_v39, %v664_v21  ;;  %v1595_v24 = vpop.f32.mrf.mxu1  ;;  %3394 = vmatmul.mubr.bf16.gmra.mxu1 %v4836_v14  ;;  %2469 = vmatprep.mubr.bf16.mxu0 %v4841_v15  ;;  %v4862_v15 = vld [vmem:[%s7606_s0 + $0x684] ss:$8 sps:$4 sm:$0xff]  }
 0x163   :  { %4028 = vst [vmem:[%s7608_s3 + $0x2a0] sm:$0xff] %v5084_v22  ;;  %v1596_v25 = vadd.f32 %v6099_v39, %v1595_v24  ;;  %v666_v26 = vpop.f32.mrf.mxu0  ;;  %3401 = vmatprep.mubr.bf16.mxu1 %v4844_v18 }
 0x164   :  { %5097 = vtanh.f32 %v665_v23  ;;  %v1597_v27 = vpop.f32.mrf.mxu1 }
 0x165   :  { %v5086_v28 = vpop.eup %5085  ;;  %5099 = vtanh.f32 %v1596_v25  ;;  %v667_v29 = vpop.f32.mrf.mxu0  ;;  %v4857_v27 = vld [vmem:[%s7606_s0 + $0x480] ss:$8 sps:$4 sm:$0xff]  }
 0x166   :  { %v5088_v31 = vpop.eup %5087  ;;  %908 = vst [vmem:[%s7608_s3 + $0xa8] sm:$0xff] %v5086_v28  ;;  %v668_v32 = vadd.f32 %v6099_v39, %v667_v29  ;;  %v1598_v33 = vpop.f32.mrf.mxu1 }
 0x167   :  { %4029 = vst [vmem:[%s7608_s3 + $0x2a8] sm:$0xff] %v5088_v31  ;;  %v1599_v36 = vadd.f32 %v6099_v39, %v1598_v33  ;;  %v669_v37 = vpop.f32.mrf.mxu0  ;;  %v4860_v31 = vld [vmem:[%s7606_s0 + $0x680] ss:$8 sps:$4 sm:$0xff]  }
 0x168   :  { %5101 = vtanh.f32 %v668_v32  ;;  %v1600_v40 = vpop.f32.mrf.mxu1  ;;  %v4865_v32 = vld [vmem:[%s7606_s0 + $0x494] ss:$8 sps:$4 sm:$0xff]  }
 0x169   :  { %v5090_v41 = vpop.eup %5089  ;;  %5103 = vtanh.f32 %v1599_v36  ;;  %v672_v42 = vpop.f32.mrf.mxu0  ;;  %2470 = vmatmul.mubr.bf16.gmra.mxu0 %v4839_v30 }
 0x16a   :  { %v5092_v43 = vpop.eup %5091  ;;  %909 = vst [vmem:[%s7608_s3 + $0xb0] sm:$0xff] %v5090_v41  ;;  %v673_v44 = vadd.f32 %v6099_v39, %v672_v42  ;;  %v1603_v45 = vpop.f32.mrf.mxu1  ;;  %3402 = vmatmul.mubr.bf16.gmra.mxu1 %v4842_v34  ;;  %2477 = vmatprep.mubr.bf16.mxu0 %v4847_v35  ;;  %v4868_v35 = vld [vmem:[%s7606_s0 + $0x694] ss:$8 sps:$4 sm:$0xff]  }
 0x16b   :  { %4030 = vst [vmem:[%s7608_s3 + $0x2b0] sm:$0xff] %v5092_v43  ;;  %v1604_v46 = vadd.f32 %v6099_v39, %v1603_v45  ;;  %v674_v47 = vpop.f32.mrf.mxu0  ;;  %3409 = vmatprep.mubr.bf16.mxu1 %v4850_v38 }
 0x16c   :  { %5105 = vtanh.f32 %v673_v44  ;;  %v1605_v48 = vpop.f32.mrf.mxu1 }
 0x16d   :  { %v5094_v49 = vpop.eup %5093  ;;  %5107 = vtanh.f32 %v1604_v46  ;;  %v675_v50 = vpop.f32.mrf.mxu0  ;;  %v4863_v48 = vld [vmem:[%s7606_s0 + $0x490] ss:$8 sps:$4 sm:$0xff]  }
 0x16e   :  { %v5096_v52 = vpop.eup %5095  ;;  %910 = vst [vmem:[%s7608_s3 + $0xb8] sm:$0xff] %v5094_v49  ;;  %v676_v53 = vadd.f32 %v6099_v39, %v675_v50  ;;  %v1606_v54 = vpop.f32.mrf.mxu1 }
 0x16f   :  { %4031 = vst [vmem:[%s7608_s3 + $0x2b8] sm:$0xff] %v5096_v52  ;;  %v1607_v57 = vadd.f32 %v6099_v39, %v1606_v54  ;;  %v677_v58 = vpop.f32.mrf.mxu0  ;;  %v4866_v52 = vld [vmem:[%s7606_s0 + $0x690] ss:$8 sps:$4 sm:$0xff]  }
 0x170   :  { %5109 = vtanh.f32 %v676_v53  ;;  %v1608_v60 = vpop.f32.mrf.mxu1  ;;  %v4871_v53 = vld [vmem:[%s7606_s0 + $0x4a4] ss:$8 sps:$4 sm:$0xff]  }
 0x171   :  { %v5098_v61 = vpop.eup %5097  ;;  %5111 = vtanh.f32 %v1607_v57  ;;  %v680_v62 = vpop.f32.mrf.mxu0  ;;  %2478 = vmatmul.mubr.bf16.gmra.mxu0 %v4845_v51 }
 0x172   :  { %v5100_v63 = vpop.eup %5099  ;;  %911 = vst [vmem:[%s7608_s3 + $0xc0] sm:$0xff] %v5098_v61  ;;  %v681_v1 = vadd.f32 %v6099_v39, %v680_v62  ;;  %v1611_v2 = vpop.f32.mrf.mxu1  ;;  %3410 = vmatmul.mubr.bf16.gmra.mxu1 %v4848_v55  ;;  %2485 = vmatprep.mubr.bf16.mxu0 %v4853_v56  ;;  %v4874_v56 = vld [vmem:[%s7606_s0 + $0x6a4] ss:$8 sps:$4 sm:$0xff]  }
 0x173   :  { %4032 = vst [vmem:[%s7608_s3 + $0x2c0] sm:$0xff] %v5100_v63  ;;  %v1612_v3 = vadd.f32 %v6099_v39, %v1611_v2  ;;  %v682_v4 = vpop.f32.mrf.mxu0  ;;  %3417 = vmatprep.mubr.bf16.mxu1 %v4856_v59 }
 0x174   :  { %5113 = vtanh.f32 %v681_v1  ;;  %v1613_v0 = vpop.f32.mrf.mxu1 }
 0x175   :  { %v5102_v5 = vpop.eup %5101  ;;  %5115 = vtanh.f32 %v1612_v3  ;;  %v683_v6 = vpop.f32.mrf.mxu0  ;;  %v4869_v0 = vld [vmem:[%s7606_s0 + $0x4a0] ss:$8 sps:$4 sm:$0xff]  }
 0x176   :  { %v5104_v8 = vpop.eup %5103  ;;  %912 = vst [vmem:[%s7608_s3 + $0xc8] sm:$0xff] %v5102_v5  ;;  %v684_v9 = vadd.f32 %v6099_v39, %v683_v6  ;;  %v1614_v10 = vpop.f32.mrf.mxu1 }
 0x177   :  { %4033 = vst [vmem:[%s7608_s3 + $0x2c8] sm:$0xff] %v5104_v8  ;;  %v1615_v13 = vadd.f32 %v6099_v39, %v1614_v10  ;;  %v685_v14 = vpop.f32.mrf.mxu0  ;;  %v4872_v8 = vld [vmem:[%s7606_s0 + $0x6a0] ss:$8 sps:$4 sm:$0xff]  }
 0x178   :  { %5117 = vtanh.f32 %v684_v9  ;;  %v1616_v16 = vpop.f32.mrf.mxu1  ;;  %v4877_v9 = vld [vmem:[%s7606_s0 + $0x4b4] ss:$8 sps:$4 sm:$0xff]  }
 0x179   :  { %v5106_v17 = vpop.eup %5105  ;;  %5119 = vtanh.f32 %v1615_v13  ;;  %v688_v18 = vpop.f32.mrf.mxu0  ;;  %2486 = vmatmul.mubr.bf16.gmra.mxu0 %v4851_v7 }
 0x17a   :  { %v5108_v19 = vpop.eup %5107  ;;  %913 = vst [vmem:[%s7608_s3 + $0xd0] sm:$0xff] %v5106_v17  ;;  %v689_v20 = vadd.f32 %v6099_v39, %v688_v18  ;;  %v1619_v21 = vpop.f32.mrf.mxu1  ;;  %3418 = vmatmul.mubr.bf16.gmra.mxu1 %v4854_v11  ;;  %2493 = vmatprep.mubr.bf16.mxu0 %v4859_v12  ;;  %v4880_v12 = vld [vmem:[%s7606_s0 + $0x6b4] ss:$8 sps:$4 sm:$0xff]  }
 0x17b   :  { %4034 = vst [vmem:[%s7608_s3 + $0x2d0] sm:$0xff] %v5108_v19  ;;  %v1620_v22 = vadd.f32 %v6099_v39, %v1619_v21  ;;  %v690_v23 = vpop.f32.mrf.mxu0  ;;  %3425 = vmatprep.mubr.bf16.mxu1 %v4862_v15 }
 0x17c   :  { %5121 = vtanh.f32 %v689_v20  ;;  %v1621_v24 = vpop.f32.mrf.mxu1 }
 0x17d   :  { %v5110_v25 = vpop.eup %5109  ;;  %5123 = vtanh.f32 %v1620_v22  ;;  %v691_v26 = vpop.f32.mrf.mxu0  ;;  %v4875_v24 = vld [vmem:[%s7606_s0 + $0x4b0] ss:$8 sps:$4 sm:$0xff]  }
 0x17e   :  { %v5112_v28 = vpop.eup %5111  ;;  %914 = vst [vmem:[%s7608_s3 + $0xd8] sm:$0xff] %v5110_v25  ;;  %v692_v29 = vadd.f32 %v6099_v39, %v691_v26  ;;  %v1622_v30 = vpop.f32.mrf.mxu1 }
 0x17f   :  { %4035 = vst [vmem:[%s7608_s3 + $0x2d8] sm:$0xff] %v5112_v28  ;;  %v1623_v33 = vadd.f32 %v6099_v39, %v1622_v30  ;;  %v693_v34 = vpop.f32.mrf.mxu0  ;;  %v4878_v28 = vld [vmem:[%s7606_s0 + $0x6b0] ss:$8 sps:$4 sm:$0xff]  }
 0x180   :  { %5125 = vtanh.f32 %v692_v29  ;;  %v1624_v36 = vpop.f32.mrf.mxu1  ;;  %v4883_v29 = vld [vmem:[%s7606_s0 + $0x4c4] ss:$8 sps:$4 sm:$0xff]  }
 0x181   :  { %v5114_v37 = vpop.eup %5113  ;;  %5127 = vtanh.f32 %v1623_v33  ;;  %v696_v38 = vpop.f32.mrf.mxu0  ;;  %2494 = vmatmul.mubr.bf16.gmra.mxu0 %v4857_v27 }
 0x182   :  { %v5116_v40 = vpop.eup %5115  ;;  %915 = vst [vmem:[%s7608_s3 + $0xe0] sm:$0xff] %v5114_v37  ;;  %v697_v41 = vadd.f32 %v6099_v39, %v696_v38  ;;  %v1627_v42 = vpop.f32.mrf.mxu1  ;;  %3426 = vmatmul.mubr.bf16.gmra.mxu1 %v4860_v31  ;;  %2501 = vmatprep.mubr.bf16.mxu0 %v4865_v32  ;;  %v4886_v32 = vld [vmem:[%s7606_s0 + $0x6c4] ss:$8 sps:$4 sm:$0xff]  }
 0x183   :  { %4036 = vst [vmem:[%s7608_s3 + $0x2e0] sm:$0xff] %v5116_v40  ;;  %v1628_v43 = vadd.f32 %v6099_v39, %v1627_v42  ;;  %v698_v44 = vpop.f32.mrf.mxu0  ;;  %3433 = vmatprep.mubr.bf16.mxu1 %v4868_v35  ;;  %v6545_v39 = vld [vmem:[%s7607_s2] ss:$0 sm:$0xff] }
 0x184   :  { %5129 = vtanh.f32 %v697_v41  ;;  %v1629_v45 = vpop.f32.mrf.mxu1 }
 0x185   :  { %v5118_v46 = vpop.eup %5117  ;;  %5131 = vtanh.f32 %v1628_v43  ;;  %v699_v47 = vpop.f32.mrf.mxu0  ;;  %v4881_v45 = vld [vmem:[%s7606_s0 + $0x4c0] ss:$8 sps:$4 sm:$0xff]  }
 0x186   :  { %v5120_v49 = vpop.eup %5119  ;;  %916 = vst [vmem:[%s7608_s3 + $0xe8] sm:$0xff] %v5118_v46  ;;  %v700_v50 = vadd.f32 %v6545_v39, %v699_v47  ;;  %v1630_v51 = vpop.f32.mrf.mxu1 }
 0x187   :  { %4037 = vst [vmem:[%s7608_s3 + $0x2e8] sm:$0xff] %v5120_v49  ;;  %v1631_v54 = vadd.f32 %v6545_v39, %v1630_v51  ;;  %v701_v55 = vpop.f32.mrf.mxu0  ;;  %v4884_v49 = vld [vmem:[%s7606_s0 + $0x6c0] ss:$8 sps:$4 sm:$0xff]  }
 0x188   :  { %5133 = vtanh.f32 %v700_v50  ;;  %v1632_v57 = vpop.f32.mrf.mxu1  ;;  %v4889_v50 = vld [vmem:[%s7606_s0 + $0x4d4] ss:$8 sps:$4 sm:$0xff]  }
 0x189   :  { %v5122_v58 = vpop.eup %5121  ;;  %5135 = vtanh.f32 %v1631_v54  ;;  %v704_v59 = vpop.f32.mrf.mxu0  ;;  %2502 = vmatmul.mubr.bf16.gmra.mxu0 %v4863_v48 }
 0x18a   :  { %v5124_v60 = vpop.eup %5123  ;;  %917 = vst [vmem:[%s7608_s3 + $0xf0] sm:$0xff] %v5122_v58  ;;  %v705_v61 = vadd.f32 %v6545_v39, %v704_v59  ;;  %v1635_v62 = vpop.f32.mrf.mxu1  ;;  %3434 = vmatmul.mubr.bf16.gmra.mxu1 %v4866_v52  ;;  %2509 = vmatprep.mubr.bf16.mxu0 %v4871_v53  ;;  %v4892_v53 = vld [vmem:[%s7606_s0 + $0x6d4] ss:$8 sps:$4 sm:$0xff]  }
 0x18b   :  { %4038 = vst [vmem:[%s7608_s3 + $0x2f0] sm:$0xff] %v5124_v60  ;;  %v1636_v63 = vadd.f32 %v6545_v39, %v1635_v62  ;;  %v706_v1 = vpop.f32.mrf.mxu0  ;;  %3441 = vmatprep.mubr.bf16.mxu1 %v4874_v56 }
 0x18c   :  { %5137 = vtanh.f32 %v705_v61  ;;  %v1637_v2 = vpop.f32.mrf.mxu1 }
 0x18d   :  { %v5126_v3 = vpop.eup %5125  ;;  %5139 = vtanh.f32 %v1636_v63  ;;  %v707_v4 = vpop.f32.mrf.mxu0  ;;  %v4887_v2 = vld [vmem:[%s7606_s0 + $0x4d0] ss:$8 sps:$4 sm:$0xff]  }
 0x18e   :  { %v5128_v5 = vpop.eup %5127  ;;  %918 = vst [vmem:[%s7608_s3 + $0xf8] sm:$0xff] %v5126_v3  ;;  %v708_v6 = vadd.f32 %v6545_v39, %v707_v4  ;;  %v1638_v7 = vpop.f32.mrf.mxu1 }
 0x18f   :  { %4039 = vst [vmem:[%s7608_s3 + $0x2f8] sm:$0xff] %v5128_v5  ;;  %v1639_v10 = vadd.f32 %v6545_v39, %v1638_v7  ;;  %v709_v11 = vpop.f32.mrf.mxu0  ;;  %v4890_v5 = vld [vmem:[%s7606_s0 + $0x6d0] ss:$8 sps:$4 sm:$0xff]  }
 0x190   :  { %5141 = vtanh.f32 %v708_v6  ;;  %v1640_v13 = vpop.f32.mrf.mxu1  ;;  %v4895_v6 = vld [vmem:[%s7606_s0 + $0x4e4] ss:$8 sps:$4 sm:$0xff]  }
 0x191   :  { %v5130_v14 = vpop.eup %5129  ;;  %5143 = vtanh.f32 %v1639_v10  ;;  %v712_v15 = vpop.f32.mrf.mxu0  ;;  %2510 = vmatmul.mubr.bf16.gmra.mxu0 %v4869_v0 }
 0x192   :  { %v5132_v16 = vpop.eup %5131  ;;  %919 = vst [vmem:[%s7608_s3 + $0x100] sm:$0xff] %v5130_v14  ;;  %v713_v17 = vadd.f32 %v6545_v39, %v712_v15  ;;  %v1643_v18 = vpop.f32.mrf.mxu1  ;;  %3442 = vmatmul.mubr.bf16.gmra.mxu1 %v4872_v8  ;;  %2517 = vmatprep.mubr.bf16.mxu0 %v4877_v9  ;;  %v4898_v9 = vld [vmem:[%s7606_s0 + $0x6e4] ss:$8 sps:$4 sm:$0xff]  }
 0x193   :  { %4040 = vst [vmem:[%s7608_s3 + $0x300] sm:$0xff] %v5132_v16  ;;  %v1644_v19 = vadd.f32 %v6545_v39, %v1643_v18  ;;  %v714_v20 = vpop.f32.mrf.mxu0  ;;  %3449 = vmatprep.mubr.bf16.mxu1 %v4880_v12 }
 0x194   :  { %5145 = vtanh.f32 %v713_v17  ;;  %v1645_v21 = vpop.f32.mrf.mxu1 }
 0x195   :  { %v5134_v22 = vpop.eup %5133  ;;  %5147 = vtanh.f32 %v1644_v19  ;;  %v715_v23 = vpop.f32.mrf.mxu0  ;;  %v4893_v21 = vld [vmem:[%s7606_s0 + $0x4e0] ss:$8 sps:$4 sm:$0xff]  }
 0x196   :  { %v5136_v25 = vpop.eup %5135  ;;  %920 = vst [vmem:[%s7608_s3 + $0x108] sm:$0xff] %v5134_v22  ;;  %v716_v26 = vadd.f32 %v6545_v39, %v715_v23  ;;  %v1646_v27 = vpop.f32.mrf.mxu1 }
 0x197   :  { %4041 = vst [vmem:[%s7608_s3 + $0x308] sm:$0xff] %v5136_v25  ;;  %v1647_v30 = vadd.f32 %v6545_v39, %v1646_v27  ;;  %v717_v31 = vpop.f32.mrf.mxu0  ;;  %v4896_v25 = vld [vmem:[%s7606_s0 + $0x6e0] ss:$8 sps:$4 sm:$0xff]  }
 0x198   :  { %5149 = vtanh.f32 %v716_v26  ;;  %v1648_v33 = vpop.f32.mrf.mxu1  ;;  %v4901_v26 = vld [vmem:[%s7606_s0 + $0x4f4] ss:$8 sps:$4 sm:$0xff]  }
 0x199   :  { %v5138_v34 = vpop.eup %5137  ;;  %5151 = vtanh.f32 %v1647_v30  ;;  %v720_v35 = vpop.f32.mrf.mxu0  ;;  %2518 = vmatmul.mubr.bf16.gmra.mxu0 %v4875_v24 }
 0x19a   :  { %v5140_v36 = vpop.eup %5139  ;;  %921 = vst [vmem:[%s7608_s3 + $0x110] sm:$0xff] %v5138_v34  ;;  %v721_v37 = vadd.f32 %v6545_v39, %v720_v35  ;;  %v1651_v38 = vpop.f32.mrf.mxu1  ;;  %3450 = vmatmul.mubr.bf16.gmra.mxu1 %v4878_v28  ;;  %2525 = vmatprep.mubr.bf16.mxu0 %v4883_v29  ;;  %v4904_v29 = vld [vmem:[%s7606_s0 + $0x6f4] ss:$8 sps:$4 sm:$0xff]  }
 0x19b   :  { %4042 = vst [vmem:[%s7608_s3 + $0x310] sm:$0xff] %v5140_v36  ;;  %v1652_v40 = vadd.f32 %v6545_v39, %v1651_v38  ;;  %v722_v41 = vpop.f32.mrf.mxu0  ;;  %3457 = vmatprep.mubr.bf16.mxu1 %v4886_v32 }
 0x19c   :  { %5153 = vtanh.f32 %v721_v37  ;;  %v1653_v42 = vpop.f32.mrf.mxu1 }
 0x19d   :  { %v5142_v43 = vpop.eup %5141  ;;  %5155 = vtanh.f32 %v1652_v40  ;;  %v723_v44 = vpop.f32.mrf.mxu0  ;;  %v4899_v42 = vld [vmem:[%s7606_s0 + $0x4f0] ss:$8 sps:$4 sm:$0xff]  }
 0x19e   :  { %v5144_v46 = vpop.eup %5143  ;;  %922 = vst [vmem:[%s7608_s3 + $0x118] sm:$0xff] %v5142_v43  ;;  %v724_v47 = vadd.f32 %v6545_v39, %v723_v44  ;;  %v1654_v48 = vpop.f32.mrf.mxu1 }
 0x19f   :  { %4043 = vst [vmem:[%s7608_s3 + $0x318] sm:$0xff] %v5144_v46  ;;  %v1655_v51 = vadd.f32 %v6545_v39, %v1654_v48  ;;  %v725_v52 = vpop.f32.mrf.mxu0  ;;  %v4902_v46 = vld [vmem:[%s7606_s0 + $0x6f0] ss:$8 sps:$4 sm:$0xff]  }
 0x1a0   :  { %5157 = vtanh.f32 %v724_v47  ;;  %v1656_v54 = vpop.f32.mrf.mxu1  ;;  %v4907_v47 = vld [vmem:[%s7606_s0 + $0x504] ss:$8 sps:$4 sm:$0xff]  }
 0x1a1   :  { %v5146_v55 = vpop.eup %5145  ;;  %5159 = vtanh.f32 %v1655_v51  ;;  %v728_v56 = vpop.f32.mrf.mxu0  ;;  %2526 = vmatmul.mubr.bf16.gmra.mxu0 %v4881_v45 }
 0x1a2   :  { %v5148_v57 = vpop.eup %5147  ;;  %923 = vst [vmem:[%s7608_s3 + $0x120] sm:$0xff] %v5146_v55  ;;  %v729_v58 = vadd.f32 %v6545_v39, %v728_v56  ;;  %v1659_v59 = vpop.f32.mrf.mxu1  ;;  %3458 = vmatmul.mubr.bf16.gmra.mxu1 %v4884_v49  ;;  %2533 = vmatprep.mubr.bf16.mxu0 %v4889_v50  ;;  %v4910_v50 = vld [vmem:[%s7606_s0 + $0x704] ss:$8 sps:$4 sm:$0xff]  }
 0x1a3   :  { %4044 = vst [vmem:[%s7608_s3 + $0x320] sm:$0xff] %v5148_v57  ;;  %v1660_v60 = vadd.f32 %v6545_v39, %v1659_v59  ;;  %v730_v61 = vpop.f32.mrf.mxu0  ;;  %3465 = vmatprep.mubr.bf16.mxu1 %v4892_v53 }
 0x1a4   :  { %5161 = vtanh.f32 %v729_v58  ;;  %v1661_v62 = vpop.f32.mrf.mxu1 }
 0x1a5   :  { %v5150_v63 = vpop.eup %5149  ;;  %5163 = vtanh.f32 %v1660_v60  ;;  %v731_v1 = vpop.f32.mrf.mxu0  ;;  %v4905_v62 = vld [vmem:[%s7606_s0 + $0x500] ss:$8 sps:$4 sm:$0xff]  }
 0x1a6   :  { %v5152_v3 = vpop.eup %5151  ;;  %924 = vst [vmem:[%s7608_s3 + $0x128] sm:$0xff] %v5150_v63  ;;  %v732_v4 = vadd.f32 %v6545_v39, %v731_v1  ;;  %v1662_v0 = vpop.f32.mrf.mxu1 }
 0x1a7   :  { %4045 = vst [vmem:[%s7608_s3 + $0x328] sm:$0xff] %v5152_v3  ;;  %v1663_v7 = vadd.f32 %v6545_v39, %v1662_v0  ;;  %v733_v8 = vpop.f32.mrf.mxu0  ;;  %v4908_v3 = vld [vmem:[%s7606_s0 + $0x700] ss:$8 sps:$4 sm:$0xff]  }
 0x1a8   :  { %5165 = vtanh.f32 %v732_v4  ;;  %v1664_v10 = vpop.f32.mrf.mxu1  ;;  %v4913_v4 = vld [vmem:[%s7606_s0 + $0x514] ss:$8 sps:$4 sm:$0xff]  }
 0x1a9   :  { %v5154_v11 = vpop.eup %5153  ;;  %5167 = vtanh.f32 %v1663_v7  ;;  %v736_v12 = vpop.f32.mrf.mxu0  ;;  %2534 = vmatmul.mubr.bf16.gmra.mxu0 %v4887_v2 }
 0x1aa   :  { %v5156_v13 = vpop.eup %5155  ;;  %925 = vst [vmem:[%s7608_s3 + $0x130] sm:$0xff] %v5154_v11  ;;  %v737_v14 = vadd.f32 %v6545_v39, %v736_v12  ;;  %v1667_v15 = vpop.f32.mrf.mxu1  ;;  %3466 = vmatmul.mubr.bf16.gmra.mxu1 %v4890_v5  ;;  %2541 = vmatprep.mubr.bf16.mxu0 %v4895_v6  ;;  %v4916_v6 = vld [vmem:[%s7606_s0 + $0x714] ss:$8 sps:$4 sm:$0xff]  }
 0x1ab   :  { %4046 = vst [vmem:[%s7608_s3 + $0x330] sm:$0xff] %v5156_v13  ;;  %v1668_v16 = vadd.f32 %v6545_v39, %v1667_v15  ;;  %v738_v17 = vpop.f32.mrf.mxu0  ;;  %3473 = vmatprep.mubr.bf16.mxu1 %v4898_v9 }
 0x1ac   :  { %5169 = vtanh.f32 %v737_v14  ;;  %v1669_v18 = vpop.f32.mrf.mxu1 }
 0x1ad   :  { %v5158_v19 = vpop.eup %5157  ;;  %5171 = vtanh.f32 %v1668_v16  ;;  %v739_v20 = vpop.f32.mrf.mxu0  ;;  %v4911_v18 = vld [vmem:[%s7606_s0 + $0x510] ss:$8 sps:$4 sm:$0xff]  }
 0x1ae   :  { %v5160_v22 = vpop.eup %5159  ;;  %926 = vst [vmem:[%s7608_s3 + $0x138] sm:$0xff] %v5158_v19  ;;  %v740_v23 = vadd.f32 %v6545_v39, %v739_v20  ;;  %v1670_v24 = vpop.f32.mrf.mxu1 }
 0x1af   :  { %4047 = vst [vmem:[%s7608_s3 + $0x338] sm:$0xff] %v5160_v22  ;;  %v1671_v27 = vadd.f32 %v6545_v39, %v1670_v24  ;;  %v741_v28 = vpop.f32.mrf.mxu0  ;;  %v4914_v22 = vld [vmem:[%s7606_s0 + $0x710] ss:$8 sps:$4 sm:$0xff]  }
 0x1b0   :  { %5173 = vtanh.f32 %v740_v23  ;;  %v1672_v30 = vpop.f32.mrf.mxu1  ;;  %v4919_v23 = vld [vmem:[%s7606_s0 + $0x524] ss:$8 sps:$4 sm:$0xff]  }
 0x1b1   :  { %v5162_v31 = vpop.eup %5161  ;;  %5175 = vtanh.f32 %v1671_v27  ;;  %v744_v32 = vpop.f32.mrf.mxu0  ;;  %2542 = vmatmul.mubr.bf16.gmra.mxu0 %v4893_v21 }
 0x1b2   :  { %v5164_v33 = vpop.eup %5163  ;;  %927 = vst [vmem:[%s7608_s3 + $0x140] sm:$0xff] %v5162_v31  ;;  %v745_v34 = vadd.f32 %v6545_v39, %v744_v32  ;;  %v1675_v35 = vpop.f32.mrf.mxu1  ;;  %3474 = vmatmul.mubr.bf16.gmra.mxu1 %v4896_v25  ;;  %2549 = vmatprep.mubr.bf16.mxu0 %v4901_v26  ;;  %v4922_v26 = vld [vmem:[%s7606_s0 + $0x724] ss:$8 sps:$4 sm:$0xff]  }
 0x1b3   :  { %4048 = vst [vmem:[%s7608_s3 + $0x340] sm:$0xff] %v5164_v33  ;;  %v1676_v36 = vadd.f32 %v6545_v39, %v1675_v35  ;;  %v746_v37 = vpop.f32.mrf.mxu0  ;;  %3481 = vmatprep.mubr.bf16.mxu1 %v4904_v29 }
 0x1b4   :  { %5177 = vtanh.f32 %v745_v34  ;;  %v1677_v38 = vpop.f32.mrf.mxu1 }
 0x1b5   :  { %v5166_v40 = vpop.eup %5165  ;;  %5179 = vtanh.f32 %v1676_v36  ;;  %v747_v41 = vpop.f32.mrf.mxu0  ;;  %v4917_v38 = vld [vmem:[%s7606_s0 + $0x520] ss:$8 sps:$4 sm:$0xff]  }
 0x1b6   :  { %v5168_v43 = vpop.eup %5167  ;;  %928 = vst [vmem:[%s7608_s3 + $0x148] sm:$0xff] %v5166_v40  ;;  %v748_v44 = vadd.f32 %v6545_v39, %v747_v41  ;;  %v1678_v45 = vpop.f32.mrf.mxu1 }
 0x1b7   :  { %4049 = vst [vmem:[%s7608_s3 + $0x348] sm:$0xff] %v5168_v43  ;;  %v1679_v48 = vadd.f32 %v6545_v39, %v1678_v45  ;;  %v749_v49 = vpop.f32.mrf.mxu0  ;;  %v4920_v43 = vld [vmem:[%s7606_s0 + $0x720] ss:$8 sps:$4 sm:$0xff]  }
 0x1b8   :  { %5181 = vtanh.f32 %v748_v44  ;;  %v1680_v51 = vpop.f32.mrf.mxu1  ;;  %v4925_v44 = vld [vmem:[%s7606_s0 + $0x534] ss:$8 sps:$4 sm:$0xff]  }
 0x1b9   :  { %v5170_v52 = vpop.eup %5169  ;;  %5183 = vtanh.f32 %v1679_v48  ;;  %v752_v53 = vpop.f32.mrf.mxu0  ;;  %2550 = vmatmul.mubr.bf16.gmra.mxu0 %v4899_v42 }
 0x1ba   :  { %v5172_v54 = vpop.eup %5171  ;;  %929 = vst [vmem:[%s7608_s3 + $0x150] sm:$0xff] %v5170_v52  ;;  %v753_v55 = vadd.f32 %v6545_v39, %v752_v53  ;;  %v1683_v56 = vpop.f32.mrf.mxu1  ;;  %3482 = vmatmul.mubr.bf16.gmra.mxu1 %v4902_v46  ;;  %2557 = vmatprep.mubr.bf16.mxu0 %v4907_v47  ;;  %v4928_v47 = vld [vmem:[%s7606_s0 + $0x734] ss:$8 sps:$4 sm:$0xff]  }
 0x1bb   :  { %4050 = vst [vmem:[%s7608_s3 + $0x350] sm:$0xff] %v5172_v54  ;;  %v1684_v57 = vadd.f32 %v6545_v39, %v1683_v56  ;;  %v754_v58 = vpop.f32.mrf.mxu0  ;;  %3489 = vmatprep.mubr.bf16.mxu1 %v4910_v50 }
 0x1bc   :  { %5185 = vtanh.f32 %v753_v55  ;;  %v1685_v59 = vpop.f32.mrf.mxu1 }
 0x1bd   :  { %v5174_v60 = vpop.eup %5173  ;;  %5187 = vtanh.f32 %v1684_v57  ;;  %v755_v61 = vpop.f32.mrf.mxu0  ;;  %v4923_v59 = vld [vmem:[%s7606_s0 + $0x530] ss:$8 sps:$4 sm:$0xff]  }
 0x1be   :  { %v5176_v63 = vpop.eup %5175  ;;  %930 = vst [vmem:[%s7608_s3 + $0x158] sm:$0xff] %v5174_v60  ;;  %v756_v1 = vadd.f32 %v6545_v39, %v755_v61  ;;  %v1686_v2 = vpop.f32.mrf.mxu1 }
 0x1bf   :  { %4051 = vst [vmem:[%s7608_s3 + $0x358] sm:$0xff] %v5176_v63  ;;  %v1687_v0 = vadd.f32 %v6545_v39, %v1686_v2  ;;  %v757_v5 = vpop.f32.mrf.mxu0  ;;  %v4926_v63 = vld [vmem:[%s7606_s0 + $0x730] ss:$8 sps:$4 sm:$0xff]  }
 0x1c0   :  { %5189 = vtanh.f32 %v756_v1  ;;  %v1688_v7 = vpop.f32.mrf.mxu1  ;;  %v4931_v1 = vld [vmem:[%s7606_s0 + $0x544] ss:$8 sps:$4 sm:$0xff]  }
 0x1c1   :  { %v5178_v8 = vpop.eup %5177  ;;  %5191 = vtanh.f32 %v1687_v0  ;;  %v760_v9 = vpop.f32.mrf.mxu0  ;;  %2558 = vmatmul.mubr.bf16.gmra.mxu0 %v4905_v62 }
 0x1c2   :  { %v5180_v10 = vpop.eup %5179  ;;  %931 = vst [vmem:[%s7608_s3 + $0x160] sm:$0xff] %v5178_v8  ;;  %v761_v11 = vadd.f32 %v6545_v39, %v760_v9  ;;  %v1691_v12 = vpop.f32.mrf.mxu1  ;;  %3490 = vmatmul.mubr.bf16.gmra.mxu1 %v4908_v3  ;;  %2565 = vmatprep.mubr.bf16.mxu0 %v4913_v4  ;;  %v4934_v4 = vld [vmem:[%s7606_s0 + $0x744] ss:$8 sps:$4 sm:$0xff]  }
 0x1c3   :  { %4052 = vst [vmem:[%s7608_s3 + $0x360] sm:$0xff] %v5180_v10  ;;  %v1692_v13 = vadd.f32 %v6545_v39, %v1691_v12  ;;  %v762_v14 = vpop.f32.mrf.mxu0  ;;  %3497 = vmatprep.mubr.bf16.mxu1 %v4916_v6 }
 0x1c4   :  { %5193 = vtanh.f32 %v761_v11  ;;  %v1693_v15 = vpop.f32.mrf.mxu1 }
 0x1c5   :  { %v5182_v16 = vpop.eup %5181  ;;  %5195 = vtanh.f32 %v1692_v13  ;;  %v763_v17 = vpop.f32.mrf.mxu0  ;;  %v4929_v15 = vld [vmem:[%s7606_s0 + $0x540] ss:$8 sps:$4 sm:$0xff]  }
 0x1c6   :  { %v5184_v19 = vpop.eup %5183  ;;  %932 = vst [vmem:[%s7608_s3 + $0x168] sm:$0xff] %v5182_v16  ;;  %v764_v20 = vadd.f32 %v6545_v39, %v763_v17  ;;  %v1694_v21 = vpop.f32.mrf.mxu1 }
 0x1c7   :  { %4053 = vst [vmem:[%s7608_s3 + $0x368] sm:$0xff] %v5184_v19  ;;  %v1695_v24 = vadd.f32 %v6545_v39, %v1694_v21  ;;  %v765_v25 = vpop.f32.mrf.mxu0  ;;  %v4932_v19 = vld [vmem:[%s7606_s0 + $0x740] ss:$8 sps:$4 sm:$0xff]  }
 0x1c8   :  { %5197 = vtanh.f32 %v764_v20  ;;  %v1696_v27 = vpop.f32.mrf.mxu1  ;;  %v4937_v20 = vld [vmem:[%s7606_s0 + $0x554] ss:$8 sps:$4 sm:$0xff]  }
 0x1c9   :  { %v5186_v28 = vpop.eup %5185  ;;  %5199 = vtanh.f32 %v1695_v24  ;;  %v768_v29 = vpop.f32.mrf.mxu0  ;;  %2566 = vmatmul.mubr.bf16.gmra.mxu0 %v4911_v18 }
 0x1ca   :  { %v5188_v30 = vpop.eup %5187  ;;  %933 = vst [vmem:[%s7608_s3 + $0x170] sm:$0xff] %v5186_v28  ;;  %v769_v31 = vadd.f32 %v6545_v39, %v768_v29  ;;  %v1699_v32 = vpop.f32.mrf.mxu1  ;;  %3498 = vmatmul.mubr.bf16.gmra.mxu1 %v4914_v22  ;;  %2573 = vmatprep.mubr.bf16.mxu0 %v4919_v23  ;;  %v4940_v23 = vld [vmem:[%s7606_s0 + $0x754] ss:$8 sps:$4 sm:$0xff]  }
 0x1cb   :  { %4054 = vst [vmem:[%s7608_s3 + $0x370] sm:$0xff] %v5188_v30  ;;  %v1700_v33 = vadd.f32 %v6545_v39, %v1699_v32  ;;  %v770_v34 = vpop.f32.mrf.mxu0  ;;  %3505 = vmatprep.mubr.bf16.mxu1 %v4922_v26 }
 0x1cc   :  { %5201 = vtanh.f32 %v769_v31  ;;  %v1701_v35 = vpop.f32.mrf.mxu1 }
 0x1cd   :  { %v5190_v36 = vpop.eup %5189  ;;  %5203 = vtanh.f32 %v1700_v33  ;;  %v771_v37 = vpop.f32.mrf.mxu0  ;;  %v4935_v35 = vld [vmem:[%s7606_s0 + $0x550] ss:$8 sps:$4 sm:$0xff]  }
 0x1ce   :  { %v5192_v40 = vpop.eup %5191  ;;  %934 = vst [vmem:[%s7608_s3 + $0x178] sm:$0xff] %v5190_v36  ;;  %v772_v41 = vadd.f32 %v6545_v39, %v771_v37  ;;  %v1702_v42 = vpop.f32.mrf.mxu1 }
 0x1cf   :  { %4055 = vst [vmem:[%s7608_s3 + $0x378] sm:$0xff] %v5192_v40  ;;  %v1703_v45 = vadd.f32 %v6545_v39, %v1702_v42  ;;  %v773_v46 = vpop.f32.mrf.mxu0  ;;  %v4938_v40 = vld [vmem:[%s7606_s0 + $0x750] ss:$8 sps:$4 sm:$0xff]  }
 0x1d0   :  { %5205 = vtanh.f32 %v772_v41  ;;  %v1704_v48 = vpop.f32.mrf.mxu1  ;;  %v4943_v41 = vld [vmem:[%s7606_s0 + $0x564] ss:$8 sps:$4 sm:$0xff]  }
 0x1d1   :  { %v5194_v49 = vpop.eup %5193  ;;  %5207 = vtanh.f32 %v1703_v45  ;;  %v776_v50 = vpop.f32.mrf.mxu0  ;;  %2574 = vmatmul.mubr.bf16.gmra.mxu0 %v4917_v38 }
 0x1d2   :  { %v5196_v51 = vpop.eup %5195  ;;  %935 = vst [vmem:[%s7608_s3 + $0x180] sm:$0xff] %v5194_v49  ;;  %v777_v52 = vadd.f32 %v6545_v39, %v776_v50  ;;  %v1707_v53 = vpop.f32.mrf.mxu1  ;;  %3506 = vmatmul.mubr.bf16.gmra.mxu1 %v4920_v43  ;;  %2581 = vmatprep.mubr.bf16.mxu0 %v4925_v44  ;;  %v4946_v44 = vld [vmem:[%s7606_s0 + $0x764] ss:$8 sps:$4 sm:$0xff]  }
 0x1d3   :  { %4056 = vst [vmem:[%s7608_s3 + $0x380] sm:$0xff] %v5196_v51  ;;  %v1708_v54 = vadd.f32 %v6545_v39, %v1707_v53  ;;  %v778_v55 = vpop.f32.mrf.mxu0  ;;  %3513 = vmatprep.mubr.bf16.mxu1 %v4928_v47 }
 0x1d4   :  { %5209 = vtanh.f32 %v777_v52  ;;  %v1709_v56 = vpop.f32.mrf.mxu1 }
 0x1d5   :  { %v5198_v57 = vpop.eup %5197  ;;  %5211 = vtanh.f32 %v1708_v54  ;;  %v779_v58 = vpop.f32.mrf.mxu0  ;;  %v4941_v56 = vld [vmem:[%s7606_s0 + $0x560] ss:$8 sps:$4 sm:$0xff]  }
 0x1d6   :  { %v5200_v60 = vpop.eup %5199  ;;  %936 = vst [vmem:[%s7608_s3 + $0x188] sm:$0xff] %v5198_v57  ;;  %v780_v61 = vadd.f32 %v6545_v39, %v779_v58  ;;  %v1710_v62 = vpop.f32.mrf.mxu1 }
 0x1d7   :  { %4057 = vst [vmem:[%s7608_s3 + $0x388] sm:$0xff] %v5200_v60  ;;  %v1711_v2 = vadd.f32 %v6545_v39, %v1710_v62  ;;  %v781_v3 = vpop.f32.mrf.mxu0  ;;  %v4944_v60 = vld [vmem:[%s7606_s0 + $0x760] ss:$8 sps:$4 sm:$0xff]  }
 0x1d8   :  { %5213 = vtanh.f32 %v780_v61  ;;  %v1712_v0 = vpop.f32.mrf.mxu1  ;;  %v4949_v61 = vld [vmem:[%s7606_s0 + $0x574] ss:$8 sps:$4 sm:$0xff]  }
 0x1d9   :  { %v5202_v5 = vpop.eup %5201  ;;  %5215 = vtanh.f32 %v1711_v2  ;;  %v784_v6 = vpop.f32.mrf.mxu0  ;;  %2582 = vmatmul.mubr.bf16.gmra.mxu0 %v4923_v59 }
 0x1da   :  { %v5204_v7 = vpop.eup %5203  ;;  %937 = vst [vmem:[%s7608_s3 + $0x190] sm:$0xff] %v5202_v5  ;;  %v785_v8 = vadd.f32 %v6545_v39, %v784_v6  ;;  %v1715_v9 = vpop.f32.mrf.mxu1  ;;  %3514 = vmatmul.mubr.bf16.gmra.mxu1 %v4926_v63  ;;  %2589 = vmatprep.mubr.bf16.mxu0 %v4931_v1  ;;  %v4952_v1 = vld [vmem:[%s7606_s0 + $0x774] ss:$8 sps:$4 sm:$0xff]  }
 0x1db   :  { %4058 = vst [vmem:[%s7608_s3 + $0x390] sm:$0xff] %v5204_v7  ;;  %v1716_v10 = vadd.f32 %v6545_v39, %v1715_v9  ;;  %v786_v11 = vpop.f32.mrf.mxu0  ;;  %3521 = vmatprep.mubr.bf16.mxu1 %v4934_v4 }
 0x1dc   :  { %5217 = vtanh.f32 %v785_v8  ;;  %v1717_v12 = vpop.f32.mrf.mxu1 }
 0x1dd   :  { %v5206_v13 = vpop.eup %5205  ;;  %5219 = vtanh.f32 %v1716_v10  ;;  %v787_v14 = vpop.f32.mrf.mxu0  ;;  %v4947_v12 = vld [vmem:[%s7606_s0 + $0x570] ss:$8 sps:$4 sm:$0xff]  }
 0x1de   :  { %v5208_v16 = vpop.eup %5207  ;;  %938 = vst [vmem:[%s7608_s3 + $0x198] sm:$0xff] %v5206_v13  ;;  %v788_v17 = vadd.f32 %v6545_v39, %v787_v14  ;;  %v1718_v18 = vpop.f32.mrf.mxu1 }
 0x1df   :  { %4059 = vst [vmem:[%s7608_s3 + $0x398] sm:$0xff] %v5208_v16  ;;  %v1719_v21 = vadd.f32 %v6545_v39, %v1718_v18  ;;  %v789_v22 = vpop.f32.mrf.mxu0  ;;  %v4950_v16 = vld [vmem:[%s7606_s0 + $0x770] ss:$8 sps:$4 sm:$0xff]  }
 0x1e0   :  { %5221 = vtanh.f32 %v788_v17  ;;  %v1720_v24 = vpop.f32.mrf.mxu1  ;;  %v4955_v17 = vld [vmem:[%s7606_s0 + $0x584] ss:$8 sps:$4 sm:$0xff]  }
 0x1e1   :  { %v5210_v25 = vpop.eup %5209  ;;  %5223 = vtanh.f32 %v1719_v21  ;;  %v792_v26 = vpop.f32.mrf.mxu0  ;;  %2590 = vmatmul.mubr.bf16.gmra.mxu0 %v4929_v15 }
 0x1e2   :  { %v5212_v27 = vpop.eup %5211  ;;  %939 = vst [vmem:[%s7608_s3 + $0x1a0] sm:$0xff] %v5210_v25  ;;  %v793_v28 = vadd.f32 %v6545_v39, %v792_v26  ;;  %v1723_v29 = vpop.f32.mrf.mxu1  ;;  %3522 = vmatmul.mubr.bf16.gmra.mxu1 %v4932_v19  ;;  %2597 = vmatprep.mubr.bf16.mxu0 %v4937_v20  ;;  %v4958_v20 = vld [vmem:[%s7606_s0 + $0x784] ss:$8 sps:$4 sm:$0xff]  }
 0x1e3   :  { %4060 = vst [vmem:[%s7608_s3 + $0x3a0] sm:$0xff] %v5212_v27  ;;  %v1724_v30 = vadd.f32 %v6545_v39, %v1723_v29  ;;  %v794_v31 = vpop.f32.mrf.mxu0  ;;  %3529 = vmatprep.mubr.bf16.mxu1 %v4940_v23 }
 0x1e4   :  { %5225 = vtanh.f32 %v793_v28  ;;  %v1725_v32 = vpop.f32.mrf.mxu1 }
 0x1e5   :  { %v5214_v33 = vpop.eup %5213  ;;  %5227 = vtanh.f32 %v1724_v30  ;;  %v795_v34 = vpop.f32.mrf.mxu0  ;;  %v4953_v32 = vld [vmem:[%s7606_s0 + $0x580] ss:$8 sps:$4 sm:$0xff]  }
 0x1e6   :  { %v5216_v36 = vpop.eup %5215  ;;  %940 = vst [vmem:[%s7608_s3 + $0x1a8] sm:$0xff] %v5214_v33  ;;  %v796_v37 = vadd.f32 %v6545_v39, %v795_v34  ;;  %v1726_v38 = vpop.f32.mrf.mxu1 }
 0x1e7   :  { %4061 = vst [vmem:[%s7608_s3 + $0x3a8] sm:$0xff] %v5216_v36  ;;  %v1727_v42 = vadd.f32 %v6545_v39, %v1726_v38  ;;  %v797_v43 = vpop.f32.mrf.mxu0  ;;  %v4956_v36 = vld [vmem:[%s7606_s0 + $0x780] ss:$8 sps:$4 sm:$0xff]  }
 0x1e8   :  { %5229 = vtanh.f32 %v796_v37  ;;  %v1728_v45 = vpop.f32.mrf.mxu1  ;;  %v4961_v37 = vld [vmem:[%s7606_s0 + $0x594] ss:$8 sps:$4 sm:$0xff]  }
 0x1e9   :  { %v5218_v46 = vpop.eup %5217  ;;  %5231 = vtanh.f32 %v1727_v42  ;;  %v800_v47 = vpop.f32.mrf.mxu0  ;;  %2598 = vmatmul.mubr.bf16.gmra.mxu0 %v4935_v35 }
 0x1ea   :  { %v5220_v48 = vpop.eup %5219  ;;  %941 = vst [vmem:[%s7608_s3 + $0x1b0] sm:$0xff] %v5218_v46  ;;  %v801_v49 = vadd.f32 %v6545_v39, %v800_v47  ;;  %v1731_v50 = vpop.f32.mrf.mxu1  ;;  %3530 = vmatmul.mubr.bf16.gmra.mxu1 %v4938_v40  ;;  %2605 = vmatprep.mubr.bf16.mxu0 %v4943_v41  ;;  %v4964_v41 = vld [vmem:[%s7606_s0 + $0x794] ss:$8 sps:$4 sm:$0xff]  }
 0x1eb   :  { %4062 = vst [vmem:[%s7608_s3 + $0x3b0] sm:$0xff] %v5220_v48  ;;  %v1732_v51 = vadd.f32 %v6545_v39, %v1731_v50  ;;  %v802_v52 = vpop.f32.mrf.mxu0  ;;  %3537 = vmatprep.mubr.bf16.mxu1 %v4946_v44 }
 0x1ec   :  { %5233 = vtanh.f32 %v801_v49  ;;  %v1733_v53 = vpop.f32.mrf.mxu1 }
 0x1ed   :  { %v5222_v54 = vpop.eup %5221  ;;  %5235 = vtanh.f32 %v1732_v51  ;;  %v803_v55 = vpop.f32.mrf.mxu0  ;;  %v4959_v53 = vld [vmem:[%s7606_s0 + $0x590] ss:$8 sps:$4 sm:$0xff]  }
 0x1ee   :  { %v5224_v57 = vpop.eup %5223  ;;  %942 = vst [vmem:[%s7608_s3 + $0x1b8] sm:$0xff] %v5222_v54  ;;  %v804_v58 = vadd.f32 %v6545_v39, %v803_v55  ;;  %v1734_v59 = vpop.f32.mrf.mxu1 }
 0x1ef   :  { %4063 = vst [vmem:[%s7608_s3 + $0x3b8] sm:$0xff] %v5224_v57  ;;  %v1735_v62 = vadd.f32 %v6545_v39, %v1734_v59  ;;  %v805_v63 = vpop.f32.mrf.mxu0  ;;  %v4962_v57 = vld [vmem:[%s7606_s0 + $0x790] ss:$8 sps:$4 sm:$0xff]  }
 0x1f0   :  { %5237 = vtanh.f32 %v804_v58  ;;  %v1736_v2 = vpop.f32.mrf.mxu1  ;;  %v4967_v58 = vld [vmem:[%s7606_s0 + $0x5a4] ss:$8 sps:$4 sm:$0xff]  }
 0x1f1   :  { %v5226_v3 = vpop.eup %5225  ;;  %5239 = vtanh.f32 %v1735_v62  ;;  %v808_v4 = vpop.f32.mrf.mxu0  ;;  %2606 = vmatmul.mubr.bf16.gmra.mxu0 %v4941_v56 }
 0x1f2   :  { %v5228_v0 = vpop.eup %5227  ;;  %943 = vst [vmem:[%s7608_s3 + $0x1c0] sm:$0xff] %v5226_v3  ;;  %v809_v5 = vadd.f32 %v6545_v39, %v808_v4  ;;  %v1739_v6 = vpop.f32.mrf.mxu1  ;;  %3538 = vmatmul.mubr.bf16.gmra.mxu1 %v4944_v60  ;;  %2613 = vmatprep.mubr.bf16.mxu0 %v4949_v61  ;;  %v4970_v61 = vld [vmem:[%s7606_s0 + $0x7a4] ss:$8 sps:$4 sm:$0xff]  }
 0x1f3   :  { %4064 = vst [vmem:[%s7608_s3 + $0x3c0] sm:$0xff] %v5228_v0  ;;  %v1740_v7 = vadd.f32 %v6545_v39, %v1739_v6  ;;  %v810_v8 = vpop.f32.mrf.mxu0  ;;  %3545 = vmatprep.mubr.bf16.mxu1 %v4952_v1 }
 0x1f4   :  { %5241 = vtanh.f32 %v809_v5  ;;  %v1741_v9 = vpop.f32.mrf.mxu1 }
 0x1f5   :  { %v5230_v10 = vpop.eup %5229  ;;  %5243 = vtanh.f32 %v1740_v7  ;;  %v811_v11 = vpop.f32.mrf.mxu0  ;;  %v4965_v9 = vld [vmem:[%s7606_s0 + $0x5a0] ss:$8 sps:$4 sm:$0xff]  }
 0x1f6   :  { %v5232_v13 = vpop.eup %5231  ;;  %944 = vst [vmem:[%s7608_s3 + $0x1c8] sm:$0xff] %v5230_v10  ;;  %v812_v14 = vadd.f32 %v6545_v39, %v811_v11  ;;  %v1742_v15 = vpop.f32.mrf.mxu1 }
 0x1f7   :  { %4065 = vst [vmem:[%s7608_s3 + $0x3c8] sm:$0xff] %v5232_v13  ;;  %v1743_v18 = vadd.f32 %v6545_v39, %v1742_v15  ;;  %v813_v19 = vpop.f32.mrf.mxu0  ;;  %v4968_v13 = vld [vmem:[%s7606_s0 + $0x7a0] ss:$8 sps:$4 sm:$0xff]  }
 0x1f8   :  { %5245 = vtanh.f32 %v812_v14  ;;  %v1744_v21 = vpop.f32.mrf.mxu1  ;;  %v4973_v14 = vld [vmem:[%s7606_s0 + $0x5b4] ss:$8 sps:$4 sm:$0xff]  }
 0x1f9   :  { %v5234_v22 = vpop.eup %5233  ;;  %5247 = vtanh.f32 %v1743_v18  ;;  %v816_v23 = vpop.f32.mrf.mxu0  ;;  %2614 = vmatmul.mubr.bf16.gmra.mxu0 %v4947_v12 }
 0x1fa   :  { %v5236_v24 = vpop.eup %5235  ;;  %945 = vst [vmem:[%s7608_s3 + $0x1d0] sm:$0xff] %v5234_v22  ;;  %v817_v25 = vadd.f32 %v6545_v39, %v816_v23  ;;  %v1747_v26 = vpop.f32.mrf.mxu1  ;;  %3546 = vmatmul.mubr.bf16.gmra.mxu1 %v4950_v16  ;;  %2621 = vmatprep.mubr.bf16.mxu0 %v4955_v17  ;;  %v4976_v17 = vld [vmem:[%s7606_s0 + $0x7b4] ss:$8 sps:$4 sm:$0xff]  }
 0x1fb   :  { %4066 = vst [vmem:[%s7608_s3 + $0x3d0] sm:$0xff] %v5236_v24  ;;  %v1748_v27 = vadd.f32 %v6545_v39, %v1747_v26  ;;  %v818_v28 = vpop.f32.mrf.mxu0  ;;  %3553 = vmatprep.mubr.bf16.mxu1 %v4958_v20 }
 0x1fc   :  { %5249 = vtanh.f32 %v817_v25  ;;  %v1749_v29 = vpop.f32.mrf.mxu1 }
 0x1fd   :  { %v5238_v30 = vpop.eup %5237  ;;  %5251 = vtanh.f32 %v1748_v27  ;;  %v819_v31 = vpop.f32.mrf.mxu0  ;;  %v4971_v29 = vld [vmem:[%s7606_s0 + $0x5b0] ss:$8 sps:$4 sm:$0xff]  }
 0x1fe   :  { %v5240_v33 = vpop.eup %5239  ;;  %946 = vst [vmem:[%s7608_s3 + $0x1d8] sm:$0xff] %v5238_v30  ;;  %v820_v34 = vadd.f32 %v6545_v39, %v819_v31  ;;  %v1750_v35 = vpop.f32.mrf.mxu1 }
 0x1ff   :  { %4067 = vst [vmem:[%s7608_s3 + $0x3d8] sm:$0xff] %v5240_v33  ;;  %v1751_v38 = vadd.f32 %v6545_v39, %v1750_v35  ;;  %v821_v40 = vpop.f32.mrf.mxu0  ;;  %v4974_v33 = vld [vmem:[%s7606_s0 + $0x7b0] ss:$8 sps:$4 sm:$0xff]  }
 0x200   :  { %5253 = vtanh.f32 %v820_v34  ;;  %v1752_v42 = vpop.f32.mrf.mxu1  ;;  %v4979_v34 = vld [vmem:[%s7606_s0 + $0x5c4] ss:$8 sps:$4 sm:$0xff]  }
 0x201   :  { %v5242_v43 = vpop.eup %5241  ;;  %5255 = vtanh.f32 %v1751_v38  ;;  %v2431_v44 = vpop.f32.mrf.mxu0  ;;  %2622 = vmatmul.mubr.bf16.gmra.mxu0 %v4953_v32 }
 0x202   :  { %v5244_v45 = vpop.eup %5243  ;;  %947 = vst [vmem:[%s7608_s3 + $0x1e0] sm:$0xff] %v5242_v43  ;;  %v2432_v46 = vadd.f32 %v6545_v39, %v2431_v44  ;;  %v3363_v47 = vpop.f32.mrf.mxu1  ;;  %3554 = vmatmul.mubr.bf16.gmra.mxu1 %v4956_v36  ;;  %2629 = vmatprep.mubr.bf16.mxu0 %v4961_v37  ;;  %v4982_v37 = vld [vmem:[%s7606_s0 + $0x7c4] ss:$8 sps:$4 sm:$0xff]  }
 0x203   :  { %4068 = vst [vmem:[%s7608_s3 + $0x3e0] sm:$0xff] %v5244_v45  ;;  %v3364_v48 = vadd.f32 %v6545_v39, %v3363_v47  ;;  %v2433_v49 = vpop.f32.mrf.mxu0  ;;  %3561 = vmatprep.mubr.bf16.mxu1 %v4964_v41  ;;  %v6998_v39 = vld [vmem:[%s7607_s2] ss:$0 sm:$0xff] }
 0x204   :  { %5257 = vtanh.f32 %v2432_v46  ;;  %v3365_v50 = vpop.f32.mrf.mxu1 }
 0x205   :  { %v5246_v51 = vpop.eup %5245  ;;  %5259 = vtanh.f32 %v3364_v48  ;;  %v2434_v52 = vpop.f32.mrf.mxu0  ;;  %v4977_v50 = vld [vmem:[%s7606_s0 + $0x5c0] ss:$8 sps:$4 sm:$0xff]  }
 0x206   :  { %v5248_v54 = vpop.eup %5247  ;;  %948 = vst [vmem:[%s7608_s3 + $0x1e8] sm:$0xff] %v5246_v51  ;;  %v2435_v55 = vadd.f32 %v6998_v39, %v2434_v52  ;;  %v3366_v56 = vpop.f32.mrf.mxu1 }
 0x207   :  { %4069 = vst [vmem:[%s7608_s3 + $0x3e8] sm:$0xff] %v5248_v54  ;;  %v3367_v59 = vadd.f32 %v6998_v39, %v3366_v56  ;;  %v2436_v60 = vpop.f32.mrf.mxu0  ;;  %v4980_v54 = vld [vmem:[%s7606_s0 + $0x7c0] ss:$8 sps:$4 sm:$0xff]  }
 0x208   :  { %5261 = vtanh.f32 %v2435_v55  ;;  %v3368_v62 = vpop.f32.mrf.mxu1  ;;  %v4985_v55 = vld [vmem:[%s7606_s0 + $0x5d4] ss:$8 sps:$4 sm:$0xff]  }
 0x209   :  { %v5250_v63 = vpop.eup %5249  ;;  %5263 = vtanh.f32 %v3367_v59  ;;  %v2439_v1 = vpop.f32.mrf.mxu0  ;;  %2630 = vmatmul.mubr.bf16.gmra.mxu0 %v4959_v53 }
 0x20a   :  { %v5252_v2 = vpop.eup %5251  ;;  %949 = vst [vmem:[%s7608_s3 + $0x1f0] sm:$0xff] %v5250_v63  ;;  %v2440_v3 = vadd.f32 %v6998_v39, %v2439_v1  ;;  %v3371_v4 = vpop.f32.mrf.mxu1  ;;  %3562 = vmatmul.mubr.bf16.gmra.mxu1 %v4962_v57  ;;  %2637 = vmatprep.mubr.bf16.mxu0 %v4967_v58  ;;  %v4988_v58 = vld [vmem:[%s7606_s0 + $0x7d4] ss:$8 sps:$4 sm:$0xff]  }
 0x20b   :  { %4070 = vst [vmem:[%s7608_s3 + $0x3f0] sm:$0xff] %v5252_v2  ;;  %v3372_v0 = vadd.f32 %v6998_v39, %v3371_v4  ;;  %v2441_v5 = vpop.f32.mrf.mxu0  ;;  %3569 = vmatprep.mubr.bf16.mxu1 %v4970_v61 }
 0x20c   :  { %5265 = vtanh.f32 %v2440_v3  ;;  %v3373_v6 = vpop.f32.mrf.mxu1 }
 0x20d   :  { %v5254_v7 = vpop.eup %5253  ;;  %5267 = vtanh.f32 %v3372_v0  ;;  %v2442_v8 = vpop.f32.mrf.mxu0  ;;  %v4983_v6 = vld [vmem:[%s7606_s0 + $0x5d0] ss:$8 sps:$4 sm:$0xff]  }
 0x20e   :  { %v5256_v10 = vpop.eup %5255  ;;  %950 = vst [vmem:[%s7608_s3 + $0x1f8] sm:$0xff] %v5254_v7  ;;  %v2443_v11 = vadd.f32 %v6998_v39, %v2442_v8  ;;  %v3374_v12 = vpop.f32.mrf.mxu1 }
 0x20f   :  { %4071 = vst [vmem:[%s7608_s3 + $0x3f8] sm:$0xff] %v5256_v10  ;;  %v3375_v15 = vadd.f32 %v6998_v39, %v3374_v12  ;;  %v2444_v16 = vpop.f32.mrf.mxu0  ;;  %v4986_v10 = vld [vmem:[%s7606_s0 + $0x7d0] ss:$8 sps:$4 sm:$0xff]  }
 0x210   :  { %5269 = vtanh.f32 %v2443_v11  ;;  %v3376_v18 = vpop.f32.mrf.mxu1  ;;  %v4991_v11 = vld [vmem:[%s7606_s0 + $0x5e4] ss:$8 sps:$4 sm:$0xff]  }
 0x211   :  { %v5258_v19 = vpop.eup %5257  ;;  %5271 = vtanh.f32 %v3375_v15  ;;  %v2447_v20 = vpop.f32.mrf.mxu0  ;;  %2638 = vmatmul.mubr.bf16.gmra.mxu0 %v4965_v9 }
 0x212   :  { %v5260_v21 = vpop.eup %5259  ;;  %4248 = vst [vmem:[%s7608_s3 + $0x400] sm:$0xff] %v5258_v19  ;;  %v2448_v22 = vadd.f32 %v6998_v39, %v2447_v20  ;;  %v3379_v23 = vpop.f32.mrf.mxu1  ;;  %3570 = vmatmul.mubr.bf16.gmra.mxu1 %v4968_v13  ;;  %2645 = vmatprep.mubr.bf16.mxu0 %v4973_v14  ;;  %v4994_v14 = vld [vmem:[%s7606_s0 + $0x7e4] ss:$8 sps:$4 sm:$0xff]  }
 0x213   :  { %4488 = vst [vmem:[%s7608_s3 + $0x600] sm:$0xff] %v5260_v21  ;;  %v3380_v24 = vadd.f32 %v6998_v39, %v3379_v23  ;;  %v2449_v25 = vpop.f32.mrf.mxu0  ;;  %3577 = vmatprep.mubr.bf16.mxu1 %v4976_v17 }
 0x214   :  { %5273 = vtanh.f32 %v2448_v22  ;;  %v3381_v26 = vpop.f32.mrf.mxu1 }
 0x215   :  { %v5262_v27 = vpop.eup %5261  ;;  %5275 = vtanh.f32 %v3380_v24  ;;  %v2450_v28 = vpop.f32.mrf.mxu0  ;;  %v4989_v26 = vld [vmem:[%s7606_s0 + $0x5e0] ss:$8 sps:$4 sm:$0xff]  }
 0x216   :  { %v5264_v30 = vpop.eup %5263  ;;  %4249 = vst [vmem:[%s7608_s3 + $0x408] sm:$0xff] %v5262_v27  ;;  %v2451_v31 = vadd.f32 %v6998_v39, %v2450_v28  ;;  %v3382_v32 = vpop.f32.mrf.mxu1 }
 0x217   :  { %4489 = vst [vmem:[%s7608_s3 + $0x608] sm:$0xff] %v5264_v30  ;;  %v3383_v35 = vadd.f32 %v6998_v39, %v3382_v32  ;;  %v2452_v36 = vpop.f32.mrf.mxu0  ;;  %v4992_v30 = vld [vmem:[%s7606_s0 + $0x7e0] ss:$8 sps:$4 sm:$0xff]  }
 0x218   :  { %5277 = vtanh.f32 %v2451_v31  ;;  %v3384_v38 = vpop.f32.mrf.mxu1  ;;  %v4997_v31 = vld [vmem:[%s7606_s0 + $0x5f4] ss:$8 sps:$4 sm:$0xff]  }
 0x219   :  { %v5266_v40 = vpop.eup %5265  ;;  %5279 = vtanh.f32 %v3383_v35  ;;  %v2455_v41 = vpop.f32.mrf.mxu0  ;;  %2646 = vmatmul.mubr.bf16.gmra.mxu0 %v4971_v29 }
 0x21a   :  { %v5268_v42 = vpop.eup %5267  ;;  %4250 = vst [vmem:[%s7608_s3 + $0x410] sm:$0xff] %v5266_v40  ;;  %v2456_v43 = vadd.f32 %v6998_v39, %v2455_v41  ;;  %v3387_v44 = vpop.f32.mrf.mxu1  ;;  %3578 = vmatmul.mubr.bf16.gmra.mxu1 %v4974_v33  ;;  %2653 = vmatprep.mubr.bf16.mxu0 %v4979_v34  ;;  %v5000_v34 = vld [vmem:[%s7606_s0 + $0x7f4] ss:$8 sps:$4 sm:$0xff]  }
 0x21b   :  { %4490 = vst [vmem:[%s7608_s3 + $0x610] sm:$0xff] %v5268_v42  ;;  %v3388_v45 = vadd.f32 %v6998_v39, %v3387_v44  ;;  %v2457_v46 = vpop.f32.mrf.mxu0  ;;  %3585 = vmatprep.mubr.bf16.mxu1 %v4982_v37 }
 0x21c   :  { %5281 = vtanh.f32 %v2456_v43  ;;  %v3389_v47 = vpop.f32.mrf.mxu1 }
 0x21d   :  { %v5270_v48 = vpop.eup %5269  ;;  %5283 = vtanh.f32 %v3388_v45  ;;  %v2458_v49 = vpop.f32.mrf.mxu0  ;;  %v4995_v47 = vld [vmem:[%s7606_s0 + $0x5f0] ss:$8 sps:$4 sm:$0xff]  }
 0x21e   :  { %v5272_v51 = vpop.eup %5271  ;;  %4251 = vst [vmem:[%s7608_s3 + $0x418] sm:$0xff] %v5270_v48  ;;  %v2459_v52 = vadd.f32 %v6998_v39, %v2458_v49  ;;  %v3390_v53 = vpop.f32.mrf.mxu1 }
 0x21f   :  { %4491 = vst [vmem:[%s7608_s3 + $0x618] sm:$0xff] %v5272_v51  ;;  %v3391_v56 = vadd.f32 %v6998_v39, %v3390_v53  ;;  %v2460_v57 = vpop.f32.mrf.mxu0  ;;  %v4998_v51 = vld [vmem:[%s7606_s0 + $0x7f0] ss:$8 sps:$4 sm:$0xff]  }
 0x220   :  { %5285 = vtanh.f32 %v2459_v52  ;;  %v3392_v59 = vpop.f32.mrf.mxu1 }
 0x221   :  { %v5274_v60 = vpop.eup %5273  ;;  %5287 = vtanh.f32 %v3391_v56  ;;  %v2463_v61 = vpop.f32.mrf.mxu0  ;;  %2654 = vmatmul.mubr.bf16.gmra.mxu0 %v4977_v50 }
 0x222   :  { %v5276_v62 = vpop.eup %5275  ;;  %4252 = vst [vmem:[%s7608_s3 + $0x420] sm:$0xff] %v5274_v60  ;;  %v2464_v63 = vadd.f32 %v6998_v39, %v2463_v61  ;;  %v3395_v1 = vpop.f32.mrf.mxu1  ;;  %3586 = vmatmul.mubr.bf16.gmra.mxu1 %v4980_v54  ;;  %2661 = vmatprep.mubr.bf16.mxu0 %v4985_v55 }
 0x223   :  { %4492 = vst [vmem:[%s7608_s3 + $0x620] sm:$0xff] %v5276_v62  ;;  %v3396_v2 = vadd.f32 %v6998_v39, %v3395_v1  ;;  %v2465_v3 = vpop.f32.mrf.mxu0  ;;  %3593 = vmatprep.mubr.bf16.mxu1 %v4988_v58 }
 0x224   :  { %5289 = vtanh.f32 %v2464_v63  ;;  %v3397_v4 = vpop.f32.mrf.mxu1 }
 0x225   :  { %v5278_v0 = vpop.eup %5277  ;;  %5291 = vtanh.f32 %v3396_v2  ;;  %v2466_v5 = vpop.f32.mrf.mxu0 }
 0x226   :  { %v5280_v7 = vpop.eup %5279  ;;  %4253 = vst [vmem:[%s7608_s3 + $0x428] sm:$0xff] %v5278_v0  ;;  %v2467_v8 = vadd.f32 %v6998_v39, %v2466_v5  ;;  %v3398_v9 = vpop.f32.mrf.mxu1 }
 0x227   :  { %4493 = vst [vmem:[%s7608_s3 + $0x628] sm:$0xff] %v5280_v7  ;;  %v3399_v12 = vadd.f32 %v6998_v39, %v3398_v9  ;;  %v2468_v13 = vpop.f32.mrf.mxu0 }
 0x228   :  { %5293 = vtanh.f32 %v2467_v8  ;;  %v3400_v15 = vpop.f32.mrf.mxu1 }
 0x229   :  { %v5282_v16 = vpop.eup %5281  ;;  %5295 = vtanh.f32 %v3399_v12  ;;  %v2471_v17 = vpop.f32.mrf.mxu0  ;;  %2662 = vmatmul.mubr.bf16.gmra.mxu0 %v4983_v6 }
 0x22a   :  { %v5284_v18 = vpop.eup %5283  ;;  %4254 = vst [vmem:[%s7608_s3 + $0x430] sm:$0xff] %v5282_v16  ;;  %v2472_v19 = vadd.f32 %v6998_v39, %v2471_v17  ;;  %v3403_v20 = vpop.f32.mrf.mxu1  ;;  %3594 = vmatmul.mubr.bf16.gmra.mxu1 %v4986_v10  ;;  %2669 = vmatprep.mubr.bf16.mxu0 %v4991_v11 }
 0x22b   :  { %4494 = vst [vmem:[%s7608_s3 + $0x630] sm:$0xff] %v5284_v18  ;;  %v3404_v21 = vadd.f32 %v6998_v39, %v3403_v20  ;;  %v2473_v22 = vpop.f32.mrf.mxu0  ;;  %3601 = vmatprep.mubr.bf16.mxu1 %v4994_v14 }
 0x22c   :  { %5297 = vtanh.f32 %v2472_v19  ;;  %v3405_v23 = vpop.f32.mrf.mxu1 }
 0x22d   :  { %v5286_v24 = vpop.eup %5285  ;;  %5299 = vtanh.f32 %v3404_v21  ;;  %v2474_v25 = vpop.f32.mrf.mxu0 }
 0x22e   :  { %v5288_v27 = vpop.eup %5287  ;;  %4255 = vst [vmem:[%s7608_s3 + $0x438] sm:$0xff] %v5286_v24  ;;  %v2475_v28 = vadd.f32 %v6998_v39, %v2474_v25  ;;  %v3406_v29 = vpop.f32.mrf.mxu1 }
 0x22f   :  { %4495 = vst [vmem:[%s7608_s3 + $0x638] sm:$0xff] %v5288_v27  ;;  %v3407_v32 = vadd.f32 %v6998_v39, %v3406_v29  ;;  %v2476_v33 = vpop.f32.mrf.mxu0 }
 0x230   :  { %5301 = vtanh.f32 %v2475_v28  ;;  %v3408_v35 = vpop.f32.mrf.mxu1 }
 0x231   :  { %v5290_v36 = vpop.eup %5289  ;;  %5303 = vtanh.f32 %v3407_v32  ;;  %v2479_v37 = vpop.f32.mrf.mxu0  ;;  %2670 = vmatmul.mubr.bf16.gmra.mxu0 %v4989_v26 }
 0x232   :  { %v5292_v38 = vpop.eup %5291  ;;  %4256 = vst [vmem:[%s7608_s3 + $0x440] sm:$0xff] %v5290_v36  ;;  %v2480_v40 = vadd.f32 %v6998_v39, %v2479_v37  ;;  %v3411_v41 = vpop.f32.mrf.mxu1  ;;  %3602 = vmatmul.mubr.bf16.gmra.mxu1 %v4992_v30  ;;  %2677 = vmatprep.mubr.bf16.mxu0 %v4997_v31 }
 0x233   :  { %4496 = vst [vmem:[%s7608_s3 + $0x640] sm:$0xff] %v5292_v38  ;;  %v3412_v42 = vadd.f32 %v6998_v39, %v3411_v41  ;;  %v2481_v43 = vpop.f32.mrf.mxu0  ;;  %3609 = vmatprep.mubr.bf16.mxu1 %v5000_v34 }
 0x234   :  { %5305 = vtanh.f32 %v2480_v40  ;;  %v3413_v44 = vpop.f32.mrf.mxu1 }
 0x235   :  { %v5294_v45 = vpop.eup %5293  ;;  %5307 = vtanh.f32 %v3412_v42  ;;  %v2482_v46 = vpop.f32.mrf.mxu0 }
 0x236   :  { %v5296_v48 = vpop.eup %5295  ;;  %4257 = vst [vmem:[%s7608_s3 + $0x448] sm:$0xff] %v5294_v45  ;;  %v2483_v49 = vadd.f32 %v6998_v39, %v2482_v46  ;;  %v3414_v50 = vpop.f32.mrf.mxu1 }
 0x237   :  { %4497 = vst [vmem:[%s7608_s3 + $0x648] sm:$0xff] %v5296_v48  ;;  %v3415_v52 = vadd.f32 %v6998_v39, %v3414_v50  ;;  %v2484_v53 = vpop.f32.mrf.mxu0 }
 0x238   :  { %5309 = vtanh.f32 %v2483_v49  ;;  %v3416_v54 = vpop.f32.mrf.mxu1 }
 0x239   :  { %v5298_v55 = vpop.eup %5297  ;;  %5311 = vtanh.f32 %v3415_v52  ;;  %v2487_v56 = vpop.f32.mrf.mxu0  ;;  %2678 = vmatmul.mubr.bf16.gmra.mxu0 %v4995_v47 }
 0x23a   :  { %v5300_v57 = vpop.eup %5299  ;;  %4258 = vst [vmem:[%s7608_s3 + $0x450] sm:$0xff] %v5298_v55  ;;  %v2488_v58 = vadd.f32 %v6998_v39, %v2487_v56  ;;  %v3419_v59 = vpop.f32.mrf.mxu1  ;;  %3610 = vmatmul.mubr.bf16.gmra.mxu1 %v4998_v51 }
 0x23b   :  { %4498 = vst [vmem:[%s7608_s3 + $0x650] sm:$0xff] %v5300_v57  ;;  %v3420_v60 = vadd.f32 %v6998_v39, %v3419_v59  ;;  %v2489_v61 = vpop.f32.mrf.mxu0 }
 0x23c   :  { %5313 = vtanh.f32 %v2488_v58  ;;  %v3421_v62 = vpop.f32.mrf.mxu1 }
 0x23d   :  { %v5302_v63 = vpop.eup %5301  ;;  %5315 = vtanh.f32 %v3420_v60  ;;  %v2490_v1 = vpop.f32.mrf.mxu0 }
 0x23e   :  { %v5304_v2 = vpop.eup %5303  ;;  %4259 = vst [vmem:[%s7608_s3 + $0x458] sm:$0xff] %v5302_v63  ;;  %v2491_v3 = vadd.f32 %v6998_v39, %v2490_v1  ;;  %v3422_v4 = vpop.f32.mrf.mxu1 }
 0x23f   :  { %4499 = vst [vmem:[%s7608_s3 + $0x658] sm:$0xff] %v5304_v2  ;;  %v3423_v0 = vadd.f32 %v6998_v39, %v3422_v4  ;;  %v2492_v5 = vpop.f32.mrf.mxu0 }
 0x240   :  { %5317 = vtanh.f32 %v2491_v3  ;;  %v3424_v6 = vpop.f32.mrf.mxu1 }
 0x241   :  { %v5306_v7 = vpop.eup %5305  ;;  %5319 = vtanh.f32 %v3423_v0  ;;  %v2495_v8 = vpop.f32.mrf.mxu0 }
 0x242   :  { %v5308_v9 = vpop.eup %5307  ;;  %4260 = vst [vmem:[%s7608_s3 + $0x460] sm:$0xff] %v5306_v7  ;;  %v2496_v10 = vadd.f32 %v6998_v39, %v2495_v8  ;;  %v3427_v11 = vpop.f32.mrf.mxu1 }
 0x243   :  { %4500 = vst [vmem:[%s7608_s3 + $0x660] sm:$0xff] %v5308_v9  ;;  %v3428_v12 = vadd.f32 %v6998_v39, %v3427_v11  ;;  %v2497_v13 = vpop.f32.mrf.mxu0 }
 0x244   :  { %5321 = vtanh.f32 %v2496_v10  ;;  %v3429_v14 = vpop.f32.mrf.mxu1 }
 0x245   :  { %v5310_v15 = vpop.eup %5309  ;;  %5323 = vtanh.f32 %v3428_v12  ;;  %v2498_v16 = vpop.f32.mrf.mxu0 }
 0x246   :  { %v5312_v17 = vpop.eup %5311  ;;  %4261 = vst [vmem:[%s7608_s3 + $0x468] sm:$0xff] %v5310_v15  ;;  %v2499_v18 = vadd.f32 %v6998_v39, %v2498_v16  ;;  %v3430_v19 = vpop.f32.mrf.mxu1 }
 0x247   :  { %4501 = vst [vmem:[%s7608_s3 + $0x668] sm:$0xff] %v5312_v17  ;;  %v3431_v20 = vadd.f32 %v6998_v39, %v3430_v19  ;;  %v2500_v21 = vpop.f32.mrf.mxu0 }
 0x248   :  { %5325 = vtanh.f32 %v2499_v18  ;;  %v3432_v22 = vpop.f32.mrf.mxu1 }
 0x249   :  { %v5314_v23 = vpop.eup %5313  ;;  %5327 = vtanh.f32 %v3431_v20  ;;  %v2503_v24 = vpop.f32.mrf.mxu0 }
 0x24a   :  { %v5316_v25 = vpop.eup %5315  ;;  %4262 = vst [vmem:[%s7608_s3 + $0x470] sm:$0xff] %v5314_v23  ;;  %v2504_v26 = vadd.f32 %v6998_v39, %v2503_v24  ;;  %v3435_v27 = vpop.f32.mrf.mxu1 }
 0x24b   :  { %4502 = vst [vmem:[%s7608_s3 + $0x670] sm:$0xff] %v5316_v25  ;;  %v3436_v28 = vadd.f32 %v6998_v39, %v3435_v27  ;;  %v2505_v29 = vpop.f32.mrf.mxu0 }
 0x24c   :  { %5329 = vtanh.f32 %v2504_v26  ;;  %v3437_v30 = vpop.f32.mrf.mxu1 }
 0x24d   :  { %v5318_v31 = vpop.eup %5317  ;;  %5331 = vtanh.f32 %v3436_v28  ;;  %v2506_v32 = vpop.f32.mrf.mxu0 }
 0x24e   :  { %v5320_v33 = vpop.eup %5319  ;;  %4263 = vst [vmem:[%s7608_s3 + $0x478] sm:$0xff] %v5318_v31  ;;  %v2507_v34 = vadd.f32 %v6998_v39, %v2506_v32  ;;  %v3438_v35 = vpop.f32.mrf.mxu1 }
 0x24f   :  { %4503 = vst [vmem:[%s7608_s3 + $0x678] sm:$0xff] %v5320_v33  ;;  %v3439_v36 = vadd.f32 %v6998_v39, %v3438_v35  ;;  %v2508_v37 = vpop.f32.mrf.mxu0 }
 0x250   :  { %5333 = vtanh.f32 %v2507_v34  ;;  %v3440_v38 = vpop.f32.mrf.mxu1 }
 0x251   :  { %v5322_v40 = vpop.eup %5321  ;;  %5335 = vtanh.f32 %v3439_v36  ;;  %v2511_v41 = vpop.f32.mrf.mxu0 }
 0x252   :  { %v5324_v42 = vpop.eup %5323  ;;  %4264 = vst [vmem:[%s7608_s3 + $0x480] sm:$0xff] %v5322_v40  ;;  %v2512_v43 = vadd.f32 %v6998_v39, %v2511_v41  ;;  %v3443_v44 = vpop.f32.mrf.mxu1 }
 0x253   :  { %4504 = vst [vmem:[%s7608_s3 + $0x680] sm:$0xff] %v5324_v42  ;;  %v3444_v45 = vadd.f32 %v6998_v39, %v3443_v44  ;;  %v2513_v46 = vpop.f32.mrf.mxu0 }
 0x254   :  { %5337 = vtanh.f32 %v2512_v43  ;;  %v3445_v47 = vpop.f32.mrf.mxu1 }
 0x255   :  { %v5326_v48 = vpop.eup %5325  ;;  %5339 = vtanh.f32 %v3444_v45  ;;  %v2514_v49 = vpop.f32.mrf.mxu0 }
 0x256   :  { %v5328_v50 = vpop.eup %5327  ;;  %4265 = vst [vmem:[%s7608_s3 + $0x488] sm:$0xff] %v5326_v48  ;;  %v2515_v51 = vadd.f32 %v6998_v39, %v2514_v49  ;;  %v3446_v52 = vpop.f32.mrf.mxu1 }
 0x257   :  { %4505 = vst [vmem:[%s7608_s3 + $0x688] sm:$0xff] %v5328_v50  ;;  %v3447_v53 = vadd.f32 %v6998_v39, %v3446_v52  ;;  %v2516_v54 = vpop.f32.mrf.mxu0 }
 0x258   :  { %5341 = vtanh.f32 %v2515_v51  ;;  %v3448_v55 = vpop.f32.mrf.mxu1 }
 0x259   :  { %v5330_v56 = vpop.eup %5329  ;;  %5343 = vtanh.f32 %v3447_v53  ;;  %v2519_v57 = vpop.f32.mrf.mxu0 }
 0x25a   :  { %v5332_v58 = vpop.eup %5331  ;;  %4266 = vst [vmem:[%s7608_s3 + $0x490] sm:$0xff] %v5330_v56  ;;  %v2520_v59 = vadd.f32 %v6998_v39, %v2519_v57  ;;  %v3451_v60 = vpop.f32.mrf.mxu1 }
 0x25b   :  { %4506 = vst [vmem:[%s7608_s3 + $0x690] sm:$0xff] %v5332_v58  ;;  %v3452_v61 = vadd.f32 %v6998_v39, %v3451_v60  ;;  %v2521_v62 = vpop.f32.mrf.mxu0 }
 0x25c   :  { %5345 = vtanh.f32 %v2520_v59  ;;  %v3453_v63 = vpop.f32.mrf.mxu1 }
 0x25d   :  { %v5334_v1 = vpop.eup %5333  ;;  %5347 = vtanh.f32 %v3452_v61  ;;  %v2522_v2 = vpop.f32.mrf.mxu0 }
 0x25e   :  { %v5336_v3 = vpop.eup %5335  ;;  %4267 = vst [vmem:[%s7608_s3 + $0x498] sm:$0xff] %v5334_v1  ;;  %v2523_v4 = vadd.f32 %v6998_v39, %v2522_v2  ;;  %v3454_v0 = vpop.f32.mrf.mxu1 }
 0x25f   :  { %4507 = vst [vmem:[%s7608_s3 + $0x698] sm:$0xff] %v5336_v3  ;;  %v3455_v5 = vadd.f32 %v6998_v39, %v3454_v0  ;;  %v2524_v6 = vpop.f32.mrf.mxu0 }
 0x260   :  { %5349 = vtanh.f32 %v2523_v4  ;;  %v3456_v7 = vpop.f32.mrf.mxu1 }
 0x261   :  { %v5338_v8 = vpop.eup %5337  ;;  %5351 = vtanh.f32 %v3455_v5  ;;  %v2527_v9 = vpop.f32.mrf.mxu0 }
 0x262   :  { %v5340_v10 = vpop.eup %5339  ;;  %4268 = vst [vmem:[%s7608_s3 + $0x4a0] sm:$0xff] %v5338_v8  ;;  %v2528_v11 = vadd.f32 %v6998_v39, %v2527_v9  ;;  %v3459_v12 = vpop.f32.mrf.mxu1 }
 0x263   :  { %4508 = vst [vmem:[%s7608_s3 + $0x6a0] sm:$0xff] %v5340_v10  ;;  %v3460_v13 = vadd.f32 %v6998_v39, %v3459_v12  ;;  %v2529_v14 = vpop.f32.mrf.mxu0 }
 0x264   :  { %5353 = vtanh.f32 %v2528_v11  ;;  %v3461_v15 = vpop.f32.mrf.mxu1 }
 0x265   :  { %v5342_v16 = vpop.eup %5341  ;;  %5355 = vtanh.f32 %v3460_v13  ;;  %v2530_v17 = vpop.f32.mrf.mxu0 }
 0x266   :  { %v5344_v18 = vpop.eup %5343  ;;  %4269 = vst [vmem:[%s7608_s3 + $0x4a8] sm:$0xff] %v5342_v16  ;;  %v2531_v19 = vadd.f32 %v6998_v39, %v2530_v17  ;;  %v3462_v20 = vpop.f32.mrf.mxu1 }
 0x267   :  { %4509 = vst [vmem:[%s7608_s3 + $0x6a8] sm:$0xff] %v5344_v18  ;;  %v3463_v21 = vadd.f32 %v6998_v39, %v3462_v20  ;;  %v2532_v22 = vpop.f32.mrf.mxu0 }
 0x268   :  { %5357 = vtanh.f32 %v2531_v19  ;;  %v3464_v23 = vpop.f32.mrf.mxu1 }
 0x269   :  { %v5346_v24 = vpop.eup %5345  ;;  %5359 = vtanh.f32 %v3463_v21  ;;  %v2535_v25 = vpop.f32.mrf.mxu0 }
 0x26a   :  { %v5348_v26 = vpop.eup %5347  ;;  %4270 = vst [vmem:[%s7608_s3 + $0x4b0] sm:$0xff] %v5346_v24  ;;  %v2536_v27 = vadd.f32 %v6998_v39, %v2535_v25  ;;  %v3467_v28 = vpop.f32.mrf.mxu1 }
 0x26b   :  { %4510 = vst [vmem:[%s7608_s3 + $0x6b0] sm:$0xff] %v5348_v26  ;;  %v3468_v29 = vadd.f32 %v6998_v39, %v3467_v28  ;;  %v2537_v30 = vpop.f32.mrf.mxu0 }
 0x26c   :  { %5361 = vtanh.f32 %v2536_v27  ;;  %v3469_v31 = vpop.f32.mrf.mxu1 }
 0x26d   :  { %v5350_v32 = vpop.eup %5349  ;;  %5363 = vtanh.f32 %v3468_v29  ;;  %v2538_v33 = vpop.f32.mrf.mxu0 }
 0x26e   :  { %v5352_v34 = vpop.eup %5351  ;;  %4271 = vst [vmem:[%s7608_s3 + $0x4b8] sm:$0xff] %v5350_v32  ;;  %v2539_v35 = vadd.f32 %v6998_v39, %v2538_v33  ;;  %v3470_v36 = vpop.f32.mrf.mxu1 }
 0x26f   :  { %4511 = vst [vmem:[%s7608_s3 + $0x6b8] sm:$0xff] %v5352_v34  ;;  %v3471_v37 = vadd.f32 %v6998_v39, %v3470_v36  ;;  %v2540_v38 = vpop.f32.mrf.mxu0 }
 0x270   :  { %5365 = vtanh.f32 %v2539_v35  ;;  %v3472_v40 = vpop.f32.mrf.mxu1 }
 0x271   :  { %v5354_v41 = vpop.eup %5353  ;;  %5367 = vtanh.f32 %v3471_v37  ;;  %v2543_v42 = vpop.f32.mrf.mxu0 }
 0x272   :  { %v5356_v43 = vpop.eup %5355  ;;  %4272 = vst [vmem:[%s7608_s3 + $0x4c0] sm:$0xff] %v5354_v41  ;;  %v2544_v44 = vadd.f32 %v6998_v39, %v2543_v42  ;;  %v3475_v45 = vpop.f32.mrf.mxu1 }
 0x273   :  { %4512 = vst [vmem:[%s7608_s3 + $0x6c0] sm:$0xff] %v5356_v43  ;;  %v3476_v46 = vadd.f32 %v6998_v39, %v3475_v45  ;;  %v2545_v47 = vpop.f32.mrf.mxu0 }
 0x274   :  { %5369 = vtanh.f32 %v2544_v44  ;;  %v3477_v48 = vpop.f32.mrf.mxu1 }
 0x275   :  { %v5358_v49 = vpop.eup %5357  ;;  %5371 = vtanh.f32 %v3476_v46  ;;  %v2546_v50 = vpop.f32.mrf.mxu0 }
 0x276   :  { %v5360_v51 = vpop.eup %5359  ;;  %4273 = vst [vmem:[%s7608_s3 + $0x4c8] sm:$0xff] %v5358_v49  ;;  %v2547_v52 = vadd.f32 %v6998_v39, %v2546_v50  ;;  %v3478_v53 = vpop.f32.mrf.mxu1 }
 0x277   :  { %4513 = vst [vmem:[%s7608_s3 + $0x6c8] sm:$0xff] %v5360_v51  ;;  %v3479_v54 = vadd.f32 %v6998_v39, %v3478_v53  ;;  %v2548_v55 = vpop.f32.mrf.mxu0 }
 0x278   :  { %5373 = vtanh.f32 %v2547_v52  ;;  %v3480_v56 = vpop.f32.mrf.mxu1 }
 0x279   :  { %v5362_v57 = vpop.eup %5361  ;;  %5375 = vtanh.f32 %v3479_v54  ;;  %v2551_v58 = vpop.f32.mrf.mxu0 }
 0x27a   :  { %v5364_v59 = vpop.eup %5363  ;;  %4274 = vst [vmem:[%s7608_s3 + $0x4d0] sm:$0xff] %v5362_v57  ;;  %v2552_v60 = vadd.f32 %v6998_v39, %v2551_v58  ;;  %v3483_v61 = vpop.f32.mrf.mxu1 }
 0x27b   :  { %4514 = vst [vmem:[%s7608_s3 + $0x6d0] sm:$0xff] %v5364_v59  ;;  %v3484_v62 = vadd.f32 %v6998_v39, %v3483_v61  ;;  %v2553_v63 = vpop.f32.mrf.mxu0 }
 0x27c   :  { %5377 = vtanh.f32 %v2552_v60  ;;  %v3485_v1 = vpop.f32.mrf.mxu1 }
 0x27d   :  { %v5366_v2 = vpop.eup %5365  ;;  %5379 = vtanh.f32 %v3484_v62  ;;  %v2554_v3 = vpop.f32.mrf.mxu0 }
 0x27e   :  { %v5368_v4 = vpop.eup %5367  ;;  %4275 = vst [vmem:[%s7608_s3 + $0x4d8] sm:$0xff] %v5366_v2  ;;  %v2555_v0 = vadd.f32 %v6998_v39, %v2554_v3  ;;  %v3486_v5 = vpop.f32.mrf.mxu1 }
 0x27f   :  { %4515 = vst [vmem:[%s7608_s3 + $0x6d8] sm:$0xff] %v5368_v4  ;;  %v3487_v6 = vadd.f32 %v6998_v39, %v3486_v5  ;;  %v2556_v7 = vpop.f32.mrf.mxu0 }
 0x280   :  { %5381 = vtanh.f32 %v2555_v0  ;;  %v3488_v8 = vpop.f32.mrf.mxu1 }
 0x281   :  { %v5370_v9 = vpop.eup %5369  ;;  %5383 = vtanh.f32 %v3487_v6  ;;  %v2559_v10 = vpop.f32.mrf.mxu0 }
 0x282   :  { %v5372_v11 = vpop.eup %5371  ;;  %4276 = vst [vmem:[%s7608_s3 + $0x4e0] sm:$0xff] %v5370_v9  ;;  %v2560_v12 = vadd.f32 %v6998_v39, %v2559_v10  ;;  %v3491_v13 = vpop.f32.mrf.mxu1 }
 0x283   :  { %4516 = vst [vmem:[%s7608_s3 + $0x6e0] sm:$0xff] %v5372_v11  ;;  %v3492_v14 = vadd.f32 %v6998_v39, %v3491_v13  ;;  %v2561_v15 = vpop.f32.mrf.mxu0  ;;  %v7390_v13 = vld [vmem:[%s7607_s2] ss:$0 sm:$0xff] }
 0x284   :  { %5385 = vtanh.f32 %v2560_v12  ;;  %v3493_v16 = vpop.f32.mrf.mxu1 }
 0x285   :  { %v5374_v17 = vpop.eup %5373  ;;  %5387 = vtanh.f32 %v3492_v14  ;;  %v2562_v18 = vpop.f32.mrf.mxu0 }
 0x286   :  { %v5376_v19 = vpop.eup %5375  ;;  %4277 = vst [vmem:[%s7608_s3 + $0x4e8] sm:$0xff] %v5374_v17  ;;  %v2563_v20 = vadd.f32 %v6998_v39, %v2562_v18  ;;  %v3494_v21 = vpop.f32.mrf.mxu1 }
 0x287   :  { %4517 = vst [vmem:[%s7608_s3 + $0x6e8] sm:$0xff] %v5376_v19  ;;  %v3495_v22 = vadd.f32 %v6998_v39, %v3494_v21  ;;  %v2564_v23 = vpop.f32.mrf.mxu0 }
 0x288   :  { %5389 = vtanh.f32 %v2563_v20  ;;  %v3496_v24 = vpop.f32.mrf.mxu1 }
 0x289   :  { %v5378_v25 = vpop.eup %5377  ;;  %5391 = vtanh.f32 %v3495_v22  ;;  %v2567_v26 = vpop.f32.mrf.mxu0 }
 0x28a   :  { %v5380_v27 = vpop.eup %5379  ;;  %4278 = vst [vmem:[%s7608_s3 + $0x4f0] sm:$0xff] %v5378_v25  ;;  %v2568_v28 = vadd.f32 %v6998_v39, %v2567_v26  ;;  %v3499_v29 = vpop.f32.mrf.mxu1 }
 0x28b   :  { %4518 = vst [vmem:[%s7608_s3 + $0x6f0] sm:$0xff] %v5380_v27  ;;  %v3500_v30 = vadd.f32 %v6998_v39, %v3499_v29  ;;  %v2569_v31 = vpop.f32.mrf.mxu0 }
 0x28c   :  { %5393 = vtanh.f32 %v2568_v28  ;;  %v3501_v32 = vpop.f32.mrf.mxu1 }
 0x28d   :  { %v5382_v33 = vpop.eup %5381  ;;  %5395 = vtanh.f32 %v3500_v30  ;;  %v2570_v34 = vpop.f32.mrf.mxu0 }
 0x28e   :  { %v5384_v35 = vpop.eup %5383  ;;  %4279 = vst [vmem:[%s7608_s3 + $0x4f8] sm:$0xff] %v5382_v33  ;;  %v2571_v36 = vadd.f32 %v6998_v39, %v2570_v34  ;;  %v3502_v37 = vpop.f32.mrf.mxu1 }
 0x28f   :  { %4519 = vst [vmem:[%s7608_s3 + $0x6f8] sm:$0xff] %v5384_v35  ;;  %v3503_v38 = vadd.f32 %v6998_v39, %v3502_v37  ;;  %v2572_v40 = vpop.f32.mrf.mxu0 }
 0x290   :  { %5397 = vtanh.f32 %v2571_v36  ;;  %v3504_v41 = vpop.f32.mrf.mxu1 }
 0x291   :  { %v5386_v42 = vpop.eup %5385  ;;  %5399 = vtanh.f32 %v3503_v38  ;;  %v2575_v43 = vpop.f32.mrf.mxu0 }
 0x292   :  { %v5388_v44 = vpop.eup %5387  ;;  %4280 = vst [vmem:[%s7608_s3 + $0x500] sm:$0xff] %v5386_v42  ;;  %v2576_v45 = vadd.f32 %v6998_v39, %v2575_v43  ;;  %v3507_v46 = vpop.f32.mrf.mxu1 }
 0x293   :  { %4520 = vst [vmem:[%s7608_s3 + $0x700] sm:$0xff] %v5388_v44  ;;  %v3508_v47 = vadd.f32 %v6998_v39, %v3507_v46  ;;  %v2577_v48 = vpop.f32.mrf.mxu0 }
 0x294   :  { %5401 = vtanh.f32 %v2576_v45  ;;  %v3509_v49 = vpop.f32.mrf.mxu1 }
 0x295   :  { %v5390_v50 = vpop.eup %5389  ;;  %5403 = vtanh.f32 %v3508_v47  ;;  %v2578_v51 = vpop.f32.mrf.mxu0 }
 0x296   :  { %v5392_v52 = vpop.eup %5391  ;;  %4281 = vst [vmem:[%s7608_s3 + $0x508] sm:$0xff] %v5390_v50  ;;  %v2579_v53 = vadd.f32 %v6998_v39, %v2578_v51  ;;  %v3510_v54 = vpop.f32.mrf.mxu1 }
 0x297   :  { %4521 = vst [vmem:[%s7608_s3 + $0x708] sm:$0xff] %v5392_v52  ;;  %v3511_v55 = vadd.f32 %v6998_v39, %v3510_v54  ;;  %v2580_v56 = vpop.f32.mrf.mxu0 }
 0x298   :  { %5405 = vtanh.f32 %v2579_v53  ;;  %v3512_v57 = vpop.f32.mrf.mxu1 }
 0x299   :  { %v5394_v58 = vpop.eup %5393  ;;  %5407 = vtanh.f32 %v3511_v55  ;;  %v2583_v59 = vpop.f32.mrf.mxu0 }
 0x29a   :  { %v5396_v60 = vpop.eup %5395  ;;  %4282 = vst [vmem:[%s7608_s3 + $0x510] sm:$0xff] %v5394_v58  ;;  %v2584_v61 = vadd.f32 %v6998_v39, %v2583_v59  ;;  %v3515_v62 = vpop.f32.mrf.mxu1 }
 0x29b   :  { %4522 = vst [vmem:[%s7608_s3 + $0x710] sm:$0xff] %v5396_v60  ;;  %v3516_v63 = vadd.f32 %v6998_v39, %v3515_v62  ;;  %v2585_v1 = vpop.f32.mrf.mxu0 }
 0x29c   :  { %5409 = vtanh.f32 %v2584_v61  ;;  %v3517_v2 = vpop.f32.mrf.mxu1 }
 0x29d   :  { %v5398_v3 = vpop.eup %5397  ;;  %5411 = vtanh.f32 %v3516_v63  ;;  %v2586_v4 = vpop.f32.mrf.mxu0 }
 0x29e   :  { %v5400_v0 = vpop.eup %5399  ;;  %4283 = vst [vmem:[%s7608_s3 + $0x518] sm:$0xff] %v5398_v3  ;;  %v2587_v5 = vadd.f32 %v6998_v39, %v2586_v4  ;;  %v3518_v6 = vpop.f32.mrf.mxu1 }
 0x29f   :  { %4523 = vst [vmem:[%s7608_s3 + $0x718] sm:$0xff] %v5400_v0  ;;  %v3519_v7 = vadd.f32 %v6998_v39, %v3518_v6  ;;  %v2588_v8 = vpop.f32.mrf.mxu0 }
 0x2a0   :  { %5413 = vtanh.f32 %v2587_v5  ;;  %v3520_v9 = vpop.f32.mrf.mxu1 }
 0x2a1   :  { %v5402_v10 = vpop.eup %5401  ;;  %5415 = vtanh.f32 %v3519_v7  ;;  %v2591_v11 = vpop.f32.mrf.mxu0 }
 0x2a2   :  { %v5404_v12 = vpop.eup %5403  ;;  %4284 = vst [vmem:[%s7608_s3 + $0x520] sm:$0xff] %v5402_v10  ;;  %v2592_v14 = vadd.f32 %v7390_v13, %v2591_v11  ;;  %v3523_v15 = vpop.f32.mrf.mxu1 }
 0x2a3   :  { %4524 = vst [vmem:[%s7608_s3 + $0x720] sm:$0xff] %v5404_v12  ;;  %v3524_v39 = vadd.f32 %v7390_v13, %v3523_v15  ;;  %v2593_v16 = vpop.f32.mrf.mxu0 }
 0x2a4   :  { %5417 = vtanh.f32 %v2592_v14  ;;  %v3525_v17 = vpop.f32.mrf.mxu1 }
 0x2a5   :  { %v5406_v18 = vpop.eup %5405  ;;  %5419 = vtanh.f32 %v3524_v39  ;;  %v2594_v19 = vpop.f32.mrf.mxu0 }
 0x2a6   :  { %v5408_v20 = vpop.eup %5407  ;;  %4285 = vst [vmem:[%s7608_s3 + $0x528] sm:$0xff] %v5406_v18  ;;  %v2595_v21 = vadd.f32 %v7390_v13, %v2594_v19  ;;  %v3526_v22 = vpop.f32.mrf.mxu1 }
 0x2a7   :  { %4525 = vst [vmem:[%s7608_s3 + $0x728] sm:$0xff] %v5408_v20  ;;  %v3527_v23 = vadd.f32 %v7390_v13, %v3526_v22  ;;  %v2596_v24 = vpop.f32.mrf.mxu0 }
 0x2a8   :  { %5421 = vtanh.f32 %v2595_v21  ;;  %v3528_v25 = vpop.f32.mrf.mxu1 }
 0x2a9   :  { %v5410_v26 = vpop.eup %5409  ;;  %5423 = vtanh.f32 %v3527_v23  ;;  %v2599_v27 = vpop.f32.mrf.mxu0 }
 0x2aa   :  { %v5412_v28 = vpop.eup %5411  ;;  %4286 = vst [vmem:[%s7608_s3 + $0x530] sm:$0xff] %v5410_v26  ;;  %v2600_v29 = vadd.f32 %v7390_v13, %v2599_v27  ;;  %v3531_v30 = vpop.f32.mrf.mxu1 }
 0x2ab   :  { %4526 = vst [vmem:[%s7608_s3 + $0x730] sm:$0xff] %v5412_v28  ;;  %v3532_v31 = vadd.f32 %v7390_v13, %v3531_v30  ;;  %v2601_v32 = vpop.f32.mrf.mxu0 }
 0x2ac   :  { %5425 = vtanh.f32 %v2600_v29  ;;  %v3533_v33 = vpop.f32.mrf.mxu1 }
 0x2ad   :  { %v5414_v34 = vpop.eup %5413  ;;  %5427 = vtanh.f32 %v3532_v31  ;;  %v2602_v35 = vpop.f32.mrf.mxu0 }
 0x2ae   :  { %v5416_v36 = vpop.eup %5415  ;;  %4287 = vst [vmem:[%s7608_s3 + $0x538] sm:$0xff] %v5414_v34  ;;  %v2603_v37 = vadd.f32 %v7390_v13, %v2602_v35  ;;  %v3534_v38 = vpop.f32.mrf.mxu1 }
 0x2af   :  { %4527 = vst [vmem:[%s7608_s3 + $0x738] sm:$0xff] %v5416_v36  ;;  %v3535_v40 = vadd.f32 %v7390_v13, %v3534_v38  ;;  %v2604_v41 = vpop.f32.mrf.mxu0 }
 0x2b0   :  { %5429 = vtanh.f32 %v2603_v37  ;;  %v3536_v42 = vpop.f32.mrf.mxu1 }
 0x2b1   :  { %v5418_v43 = vpop.eup %5417  ;;  %5431 = vtanh.f32 %v3535_v40  ;;  %v2607_v44 = vpop.f32.mrf.mxu0 }
 0x2b2   :  { %v5420_v45 = vpop.eup %5419  ;;  %4288 = vst [vmem:[%s7608_s3 + $0x540] sm:$0xff] %v5418_v43  ;;  %v2608_v46 = vadd.f32 %v7390_v13, %v2607_v44  ;;  %v3539_v47 = vpop.f32.mrf.mxu1 }
 0x2b3   :  { %4528 = vst [vmem:[%s7608_s3 + $0x740] sm:$0xff] %v5420_v45  ;;  %v3540_v48 = vadd.f32 %v7390_v13, %v3539_v47  ;;  %v2609_v49 = vpop.f32.mrf.mxu0 }
 0x2b4   :  { %5433 = vtanh.f32 %v2608_v46  ;;  %v3541_v50 = vpop.f32.mrf.mxu1 }
 0x2b5   :  { %v5422_v51 = vpop.eup %5421  ;;  %5435 = vtanh.f32 %v3540_v48  ;;  %v2610_v52 = vpop.f32.mrf.mxu0 }
 0x2b6   :  { %v5424_v53 = vpop.eup %5423  ;;  %4289 = vst [vmem:[%s7608_s3 + $0x548] sm:$0xff] %v5422_v51  ;;  %v2611_v54 = vadd.f32 %v7390_v13, %v2610_v52  ;;  %v3542_v55 = vpop.f32.mrf.mxu1 }
 0x2b7   :  { %4529 = vst [vmem:[%s7608_s3 + $0x748] sm:$0xff] %v5424_v53  ;;  %v3543_v56 = vadd.f32 %v7390_v13, %v3542_v55  ;;  %v2612_v57 = vpop.f32.mrf.mxu0 }
 0x2b8   :  { %5437 = vtanh.f32 %v2611_v54  ;;  %v3544_v58 = vpop.f32.mrf.mxu1 }
 0x2b9   :  { %v5426_v59 = vpop.eup %5425  ;;  %5439 = vtanh.f32 %v3543_v56  ;;  %v2615_v60 = vpop.f32.mrf.mxu0 }
 0x2ba   :  { %v5428_v61 = vpop.eup %5427  ;;  %4290 = vst [vmem:[%s7608_s3 + $0x550] sm:$0xff] %v5426_v59  ;;  %v2616_v62 = vadd.f32 %v7390_v13, %v2615_v60  ;;  %v3547_v63 = vpop.f32.mrf.mxu1 }
 0x2bb   :  { %4530 = vst [vmem:[%s7608_s3 + $0x750] sm:$0xff] %v5428_v61  ;;  %v3548_v1 = vadd.f32 %v7390_v13, %v3547_v63  ;;  %v2617_v2 = vpop.f32.mrf.mxu0 }
 0x2bc   :  { %5441 = vtanh.f32 %v2616_v62  ;;  %v3549_v3 = vpop.f32.mrf.mxu1 }
 0x2bd   :  { %v5430_v4 = vpop.eup %5429  ;;  %5443 = vtanh.f32 %v3548_v1  ;;  %v2618_v0 = vpop.f32.mrf.mxu0 }
 0x2be   :  { %v5432_v5 = vpop.eup %5431  ;;  %4291 = vst [vmem:[%s7608_s3 + $0x558] sm:$0xff] %v5430_v4  ;;  %v2619_v6 = vadd.f32 %v7390_v13, %v2618_v0  ;;  %v3550_v7 = vpop.f32.mrf.mxu1 }
 0x2bf   :  { %4531 = vst [vmem:[%s7608_s3 + $0x758] sm:$0xff] %v5432_v5  ;;  %v3551_v8 = vadd.f32 %v7390_v13, %v3550_v7  ;;  %v2620_v9 = vpop.f32.mrf.mxu0 }
 0x2c0   :  { %5445 = vtanh.f32 %v2619_v6  ;;  %v3552_v10 = vpop.f32.mrf.mxu1 }
 0x2c1   :  { %v5434_v11 = vpop.eup %5433  ;;  %5447 = vtanh.f32 %v3551_v8  ;;  %v2623_v12 = vpop.f32.mrf.mxu0 }
 0x2c2   :  { %v5436_v14 = vpop.eup %5435  ;;  %4292 = vst [vmem:[%s7608_s3 + $0x560] sm:$0xff] %v5434_v11  ;;  %v2624_v15 = vadd.f32 %v7390_v13, %v2623_v12  ;;  %v3555_v39 = vpop.f32.mrf.mxu1 }
 0x2c3   :  { %4532 = vst [vmem:[%s7608_s3 + $0x760] sm:$0xff] %v5436_v14  ;;  %v3556_v16 = vadd.f32 %v7390_v13, %v3555_v39  ;;  %v2625_v17 = vpop.f32.mrf.mxu0 }
 0x2c4   :  { %5449 = vtanh.f32 %v2624_v15  ;;  %v3557_v18 = vpop.f32.mrf.mxu1 }
 0x2c5   :  { %v5438_v19 = vpop.eup %5437  ;;  %5451 = vtanh.f32 %v3556_v16  ;;  %v2626_v20 = vpop.f32.mrf.mxu0 }
 0x2c6   :  { %v5440_v21 = vpop.eup %5439  ;;  %4293 = vst [vmem:[%s7608_s3 + $0x568] sm:$0xff] %v5438_v19  ;;  %v2627_v22 = vadd.f32 %v7390_v13, %v2626_v20  ;;  %v3558_v23 = vpop.f32.mrf.mxu1 }
 0x2c7   :  { %4533 = vst [vmem:[%s7608_s3 + $0x768] sm:$0xff] %v5440_v21  ;;  %v3559_v24 = vadd.f32 %v7390_v13, %v3558_v23  ;;  %v2628_v25 = vpop.f32.mrf.mxu0 }
 0x2c8   :  { %5453 = vtanh.f32 %v2627_v22  ;;  %v3560_v26 = vpop.f32.mrf.mxu1 }
 0x2c9   :  { %v5442_v27 = vpop.eup %5441  ;;  %5455 = vtanh.f32 %v3559_v24  ;;  %v2631_v28 = vpop.f32.mrf.mxu0 }
 0x2ca   :  { %v5444_v29 = vpop.eup %5443  ;;  %4294 = vst [vmem:[%s7608_s3 + $0x570] sm:$0xff] %v5442_v27  ;;  %v2632_v30 = vadd.f32 %v7390_v13, %v2631_v28  ;;  %v3563_v31 = vpop.f32.mrf.mxu1 }
 0x2cb   :  { %4534 = vst [vmem:[%s7608_s3 + $0x770] sm:$0xff] %v5444_v29  ;;  %v3564_v32 = vadd.f32 %v7390_v13, %v3563_v31  ;;  %v2633_v33 = vpop.f32.mrf.mxu0 }
 0x2cc   :  { %5457 = vtanh.f32 %v2632_v30  ;;  %v3565_v34 = vpop.f32.mrf.mxu1 }
 0x2cd   :  { %v5446_v35 = vpop.eup %5445  ;;  %5459 = vtanh.f32 %v3564_v32  ;;  %v2634_v36 = vpop.f32.mrf.mxu0 }
 0x2ce   :  { %v5448_v37 = vpop.eup %5447  ;;  %4295 = vst [vmem:[%s7608_s3 + $0x578] sm:$0xff] %v5446_v35  ;;  %v2635_v38 = vadd.f32 %v7390_v13, %v2634_v36  ;;  %v3566_v40 = vpop.f32.mrf.mxu1 }
 0x2cf   :  { %4535 = vst [vmem:[%s7608_s3 + $0x778] sm:$0xff] %v5448_v37  ;;  %v3567_v41 = vadd.f32 %v7390_v13, %v3566_v40  ;;  %v2636_v42 = vpop.f32.mrf.mxu0 }
 0x2d0   :  { %5461 = vtanh.f32 %v2635_v38  ;;  %v3568_v43 = vpop.f32.mrf.mxu1 }
 0x2d1   :  { %v5450_v44 = vpop.eup %5449  ;;  %5463 = vtanh.f32 %v3567_v41  ;;  %v2639_v45 = vpop.f32.mrf.mxu0 }
 0x2d2   :  { %v5452_v46 = vpop.eup %5451  ;;  %4296 = vst [vmem:[%s7608_s3 + $0x580] sm:$0xff] %v5450_v44  ;;  %v2640_v47 = vadd.f32 %v7390_v13, %v2639_v45  ;;  %v3571_v48 = vpop.f32.mrf.mxu1 }
 0x2d3   :  { %4536 = vst [vmem:[%s7608_s3 + $0x780] sm:$0xff] %v5452_v46  ;;  %v3572_v49 = vadd.f32 %v7390_v13, %v3571_v48  ;;  %v2641_v50 = vpop.f32.mrf.mxu0 }
 0x2d4   :  { %5465 = vtanh.f32 %v2640_v47  ;;  %v3573_v51 = vpop.f32.mrf.mxu1 }
 0x2d5   :  { %v5454_v52 = vpop.eup %5453  ;;  %5467 = vtanh.f32 %v3572_v49  ;;  %v2642_v53 = vpop.f32.mrf.mxu0 }
 0x2d6   :  { %v5456_v54 = vpop.eup %5455  ;;  %4297 = vst [vmem:[%s7608_s3 + $0x588] sm:$0xff] %v5454_v52  ;;  %v2643_v55 = vadd.f32 %v7390_v13, %v2642_v53  ;;  %v3574_v56 = vpop.f32.mrf.mxu1 }
 0x2d7   :  { %4537 = vst [vmem:[%s7608_s3 + $0x788] sm:$0xff] %v5456_v54  ;;  %v3575_v57 = vadd.f32 %v7390_v13, %v3574_v56  ;;  %v2644_v58 = vpop.f32.mrf.mxu0 }
 0x2d8   :  { %5469 = vtanh.f32 %v2643_v55  ;;  %v3576_v59 = vpop.f32.mrf.mxu1 }
 0x2d9   :  { %v5458_v60 = vpop.eup %5457  ;;  %5471 = vtanh.f32 %v3575_v57  ;;  %v2647_v61 = vpop.f32.mrf.mxu0 }
 0x2da   :  { %v5460_v62 = vpop.eup %5459  ;;  %4298 = vst [vmem:[%s7608_s3 + $0x590] sm:$0xff] %v5458_v60  ;;  %v2648_v63 = vadd.f32 %v7390_v13, %v2647_v61  ;;  %v3579_v1 = vpop.f32.mrf.mxu1 }
 0x2db   :  { %4538 = vst [vmem:[%s7608_s3 + $0x790] sm:$0xff] %v5460_v62  ;;  %v3580_v2 = vadd.f32 %v7390_v13, %v3579_v1  ;;  %v2649_v3 = vpop.f32.mrf.mxu0 }
 0x2dc   :  { %5473 = vtanh.f32 %v2648_v63  ;;  %v3581_v4 = vpop.f32.mrf.mxu1 }
 0x2dd   :  { %v5462_v0 = vpop.eup %5461  ;;  %5475 = vtanh.f32 %v3580_v2  ;;  %v2650_v5 = vpop.f32.mrf.mxu0 }
 0x2de   :  { %v5464_v6 = vpop.eup %5463  ;;  %4299 = vst [vmem:[%s7608_s3 + $0x598] sm:$0xff] %v5462_v0  ;;  %v2651_v7 = vadd.f32 %v7390_v13, %v2650_v5  ;;  %v3582_v8 = vpop.f32.mrf.mxu1 }
 0x2df   :  { %4539 = vst [vmem:[%s7608_s3 + $0x798] sm:$0xff] %v5464_v6  ;;  %v3583_v9 = vadd.f32 %v7390_v13, %v3582_v8  ;;  %v2652_v10 = vpop.f32.mrf.mxu0 }
 0x2e0   :  { %5477 = vtanh.f32 %v2651_v7  ;;  %v3584_v11 = vpop.f32.mrf.mxu1 }
 0x2e1   :  { %v5466_v12 = vpop.eup %5465  ;;  %5479 = vtanh.f32 %v3583_v9  ;;  %v2655_v14 = vpop.f32.mrf.mxu0 }
 0x2e2   :  { %v5468_v15 = vpop.eup %5467  ;;  %4300 = vst [vmem:[%s7608_s3 + $0x5a0] sm:$0xff] %v5466_v12  ;;  %v2656_v39 = vadd.f32 %v7390_v13, %v2655_v14  ;;  %v3587_v16 = vpop.f32.mrf.mxu1 }
 0x2e3   :  { %4540 = vst [vmem:[%s7608_s3 + $0x7a0] sm:$0xff] %v5468_v15  ;;  %v3588_v17 = vadd.f32 %v7390_v13, %v3587_v16  ;;  %v2657_v18 = vpop.f32.mrf.mxu0 }
 0x2e4   :  { %5481 = vtanh.f32 %v2656_v39  ;;  %v3589_v19 = vpop.f32.mrf.mxu1 }
 0x2e5   :  { %v5470_v20 = vpop.eup %5469  ;;  %5483 = vtanh.f32 %v3588_v17  ;;  %v2658_v21 = vpop.f32.mrf.mxu0 }
 0x2e6   :  { %v5472_v22 = vpop.eup %5471  ;;  %4301 = vst [vmem:[%s7608_s3 + $0x5a8] sm:$0xff] %v5470_v20  ;;  %v2659_v23 = vadd.f32 %v7390_v13, %v2658_v21  ;;  %v3590_v24 = vpop.f32.mrf.mxu1 }
 0x2e7   :  { %4541 = vst [vmem:[%s7608_s3 + $0x7a8] sm:$0xff] %v5472_v22  ;;  %v3591_v25 = vadd.f32 %v7390_v13, %v3590_v24  ;;  %v2660_v26 = vpop.f32.mrf.mxu0 }
 0x2e8   :  { %5485 = vtanh.f32 %v2659_v23  ;;  %v3592_v27 = vpop.f32.mrf.mxu1 }
 0x2e9   :  { %v5474_v28 = vpop.eup %5473  ;;  %5487 = vtanh.f32 %v3591_v25  ;;  %v2663_v29 = vpop.f32.mrf.mxu0 }
 0x2ea   :  { %v5476_v30 = vpop.eup %5475  ;;  %4302 = vst [vmem:[%s7608_s3 + $0x5b0] sm:$0xff] %v5474_v28  ;;  %v2664_v31 = vadd.f32 %v7390_v13, %v2663_v29  ;;  %v3595_v32 = vpop.f32.mrf.mxu1 }
 0x2eb   :  { %4542 = vst [vmem:[%s7608_s3 + $0x7b0] sm:$0xff] %v5476_v30  ;;  %v3596_v33 = vadd.f32 %v7390_v13, %v3595_v32  ;;  %v2665_v34 = vpop.f32.mrf.mxu0 }
 0x2ec   :  { %5489 = vtanh.f32 %v2664_v31  ;;  %v3597_v35 = vpop.f32.mrf.mxu1 }
 0x2ed   :  { %v5478_v36 = vpop.eup %5477  ;;  %5491 = vtanh.f32 %v3596_v33  ;;  %v2666_v37 = vpop.f32.mrf.mxu0 }
 0x2ee   :  { %v5480_v38 = vpop.eup %5479  ;;  %4303 = vst [vmem:[%s7608_s3 + $0x5b8] sm:$0xff] %v5478_v36  ;;  %v2667_v40 = vadd.f32 %v7390_v13, %v2666_v37  ;;  %v3598_v41 = vpop.f32.mrf.mxu1 }
 0x2ef   :  { %4543 = vst [vmem:[%s7608_s3 + $0x7b8] sm:$0xff] %v5480_v38  ;;  %v3599_v42 = vadd.f32 %v7390_v13, %v3598_v41  ;;  %v2668_v43 = vpop.f32.mrf.mxu0 }
 0x2f0   :  { %5493 = vtanh.f32 %v2667_v40  ;;  %v3600_v44 = vpop.f32.mrf.mxu1 }
 0x2f1   :  { %v5482_v45 = vpop.eup %5481  ;;  %5495 = vtanh.f32 %v3599_v42  ;;  %v2671_v46 = vpop.f32.mrf.mxu0 }
 0x2f2   :  { %v5484_v47 = vpop.eup %5483  ;;  %4304 = vst [vmem:[%s7608_s3 + $0x5c0] sm:$0xff] %v5482_v45  ;;  %v2672_v48 = vadd.f32 %v7390_v13, %v2671_v46  ;;  %v3603_v49 = vpop.f32.mrf.mxu1 }
 0x2f3   :  { %4544 = vst [vmem:[%s7608_s3 + $0x7c0] sm:$0xff] %v5484_v47  ;;  %v3604_v50 = vadd.f32 %v7390_v13, %v3603_v49  ;;  %v2673_v51 = vpop.f32.mrf.mxu0 }
 0x2f4   :  { %5497 = vtanh.f32 %v2672_v48  ;;  %v3605_v52 = vpop.f32.mrf.mxu1 }
 0x2f5   :  { %v5486_v53 = vpop.eup %5485  ;;  %5499 = vtanh.f32 %v3604_v50  ;;  %v2674_v54 = vpop.f32.mrf.mxu0 }
 0x2f6   :  { %v5488_v55 = vpop.eup %5487  ;;  %4305 = vst [vmem:[%s7608_s3 + $0x5c8] sm:$0xff] %v5486_v53  ;;  %v2675_v56 = vadd.f32 %v7390_v13, %v2674_v54  ;;  %v3606_v57 = vpop.f32.mrf.mxu1 }
 0x2f7   :  { %4545 = vst [vmem:[%s7608_s3 + $0x7c8] sm:$0xff] %v5488_v55  ;;  %v3607_v58 = vadd.f32 %v7390_v13, %v3606_v57  ;;  %v2676_v59 = vpop.f32.mrf.mxu0 }
 0x2f8   :  { %5501 = vtanh.f32 %v2675_v56  ;;  %v3608_v60 = vpop.f32.mrf.mxu1 }
 0x2f9   :  { %v5490_v61 = vpop.eup %5489  ;;  %5503 = vtanh.f32 %v3607_v58  ;;  %v2679_v62 = vpop.f32.mrf.mxu0 }
 0x2fa   :  { %v5492_v63 = vpop.eup %5491  ;;  %4306 = vst [vmem:[%s7608_s3 + $0x5d0] sm:$0xff] %v5490_v61  ;;  %v2680_v1 = vadd.f32 %v7390_v13, %v2679_v62  ;;  %v3611_v2 = vpop.f32.mrf.mxu1 }
 0x2fb   :  { %4546 = vst [vmem:[%s7608_s3 + $0x7d0] sm:$0xff] %v5492_v63  ;;  %v3612_v3 = vadd.f32 %v7390_v13, %v3611_v2  ;;  %v2681_v4 = vpop.f32.mrf.mxu0 }
 0x2fc   :  { %5505 = vtanh.f32 %v2680_v1  ;;  %v3613_v0 = vpop.f32.mrf.mxu1 }
 0x2fd   :  { %v5494_v5 = vpop.eup %5493  ;;  %5507 = vtanh.f32 %v3612_v3  ;;  %v2682_v6 = vpop.f32.mrf.mxu0 }
 0x2fe   :  { %v5496_v7 = vpop.eup %5495  ;;  %4307 = vst [vmem:[%s7608_s3 + $0x5d8] sm:$0xff] %v5494_v5  ;;  %v2683_v8 = vadd.f32 %v7390_v13, %v2682_v6  ;;  %v3614_v9 = vpop.f32.mrf.mxu1 }
 0x2ff   :  { %4547 = vst [vmem:[%s7608_s3 + $0x7d8] sm:$0xff] %v5496_v7  ;;  %v3615_v10 = vadd.f32 %v7390_v13, %v3614_v9  ;;  %v2684_v11 = vpop.f32.mrf.mxu0 }
 0x300   :  { %5509 = vtanh.f32 %v2683_v8  ;;  %v3616_v12 = vpop.f32.mrf.mxu1 }
 0x301   :  { %v5498_v14 = vpop.eup %5497  ;;  %5511 = vtanh.f32 %v3615_v10 }
 0x302   :  { %v5500_v15 = vpop.eup %5499  ;;  %4308 = vst [vmem:[%s7608_s3 + $0x5e0] sm:$0xff] %v5498_v14 }
 0x303   :  { %4548 = vst [vmem:[%s7608_s3 + $0x7e0] sm:$0xff] %v5500_v15 }
 0x305   :  { %v5502_v39 = vpop.eup %5501 }
 0x306   :  { %v5504_v16 = vpop.eup %5503  ;;  %4309 = vst [vmem:[%s7608_s3 + $0x5e8] sm:$0xff] %v5502_v39 }
 0x307   :  { %4549 = vst [vmem:[%s7608_s3 + $0x7e8] sm:$0xff] %v5504_v16 }
 0x309   :  { %v5506_v13 = vpop.eup %5505 }
 0x30a   :  { %v5508_v17 = vpop.eup %5507  ;;  %4310 = vst [vmem:[%s7608_s3 + $0x5f0] sm:$0xff] %v5506_v13 }
 0x30b   :  { %4550 = vst [vmem:[%s7608_s3 + $0x7f0] sm:$0xff] %v5508_v17 }
 0x30d   :  { %v5510_v18 = vpop.eup %5509 }
 0x30e   :  { %v5512_v19 = vpop.eup %5511  ;;  %4311 = vst [vmem:[%s7608_s3 + $0x5f8] sm:$0xff] %v5510_v18 }
 0x30f   :  { %4551 = vst [vmem:[%s7608_s3 + $0x7f8] sm:$0xff] %v5512_v19 }

</bundles_post_ra>
